<compile_context>
chip_gen: v6e
topology: v6e:2x2x1
jax: 0.10.0
libtpu: 0.0.40
codegen_flags: <defaults>
</compile_context>

<pallas_src>
import math
from functools import partial

import jax
import jax.numpy as jnp
from jax.experimental import pallas as pl
from jax.experimental.pallas import tpu as pltpu

BN_EPS = 1e-3
BN_SCALE = 1.0 / math.sqrt(1.0 + BN_EPS)
VMEM_LIMIT = 32 * 1024 * 1024     # safe on v5e(128M)/v6e(128M)/v7x(64M physical)
ROW_TILE = 512                    # row tile for flattened 1x1-conv matmuls


# ----------------------------- config helpers ------------------------------

def _make_divisible(v, divisor=8, min_value=None):
    if min_value is None:
        min_value = divisor
    new_v = max(min_value, int(v + divisor / 2) // divisor * divisor)
    if new_v < 0.9 * v:
        new_v += divisor
    return new_v


class InvertedResidualConfig:
    def __init__(self, input_channels, kernel, expanded_channels, out_channels,
                 use_se, activation, stride, width_mult=1.0):
        self.input_channels = _make_divisible(input_channels * width_mult)
        self.kernel = kernel
        self.expanded_channels = _make_divisible(expanded_channels * width_mult)
        self.out_channels = _make_divisible(out_channels * width_mult)
        self.use_se = use_se
        self.use_hs = activation == "HS"
        self.stride = stride


# ------------------------------ small helpers -------------------------------

def _cparams(*sems):
    kw = dict(vmem_limit_bytes=VMEM_LIMIT)
    if sems:
        kw["dimension_semantics"] = sems
    return pltpu.CompilerParams(**kw)


def _activate(x, act):
    if act == "relu":
        return jnp.maximum(x, 0.0)
    if act == "hardswish":
        return x * (jnp.clip(x + 3.0, 0.0, 6.0) * (1.0 / 6.0))
    return x  # identity


def _phase_split(xp, s):
    # Split a padded NHWC tensor into its s*s stride phases so the conv kernels
    # only need contiguous slices.  Returns (N*s*s, Hp/s, Wp/s, C), batch-major.
    if s == 1:
        return xp
    n, hp, wp, c = xp.shape
    hp2 = ((hp + s - 1) // s) * s
    wp2 = ((wp + s - 1) // s) * s
    xp = jnp.pad(xp, ((0, 0), (0, hp2 - hp), (0, wp2 - wp), (0, 0)))
    planes = [xp[:, i::s, j::s, :] for i in range(s) for j in range(s)]
    ph = jnp.stack(planes, axis=1)                       # (N, s*s, hh, wh, C)
    return ph.reshape(n * s * s, hp2 // s, wp2 // s, c)


# ------------------------------ Pallas kernels ------------------------------

def _pw_flat_kernel(*refs, act, has_res):
    # Flattened 1x1 conv:  o = act(x @ w + bias [+ res])
    # x: (TS, Cin) bf16, w: (Cin, Cout) bf16, bias: (1, Cout) f32,
    # res: (TS, Cout) bf16 (optional).
    x_ref, w_ref, b_ref = refs[0], refs[1], refs[2]
    i = 3
    res_ref = None
    if has_res:
        res_ref = refs[i]
        i += 1
    o_ref = refs[i]

    y = jnp.dot(x_ref[...], w_ref[...], preferred_element_type=jnp.float32)
    y = y + b_ref[...]
    if has_res:
        y = y + res_ref[...].astype(jnp.float32)
    o_ref[...] = _activate(y, act).astype(o_ref.dtype)


def _pw_se_kernel(*refs, act, has_res):
    # Per-batch 1x1 conv with a fused SE channel scale on the input:
    #   o = act((x * se) @ w + bias [+ res])
    # x: (1, TS, Cin) bf16, se: (1, 1, Cin) f32, res: (1, TS, Cout) bf16.
    x_ref, w_ref, b_ref, se_ref = refs[0], refs[1], refs[2], refs[3]
    i = 4
    res_ref = None
    if has_res:
        res_ref = refs[i]
        i += 1
    o_ref = refs[i]

    x = (x_ref[0].astype(jnp.float32) * se_ref[0]).astype(w_ref.dtype)
    y = jnp.dot(x, w_ref[...], preferred_element_type=jnp.float32)
    y = y + b_ref[...]
    if has_res:
        y = y + res_ref[0].astype(jnp.float32)
    o_ref[0] = _activate(y, act).astype(o_ref.dtype)


def _dw_conv_kernel(*refs, k, stride, ho, wo, act, want_pool):
    # Depthwise KxK conv (stride folded in via phase planes) + bias + act,
    # optionally emitting the SE global average pool as a fused second output.
    # x: (s*s, Hh, Wh, C) phase planes, w: (K*K, C), bias: (1, C)
    x_ref, w_ref, b_ref = refs[0], refs[1], refs[2]
    o_ref = refs[3]
    pool_ref = refs[4] if want_pool else None

    c = x_ref.shape[-1]
    acc = jnp.zeros((ho, wo, c), jnp.float32)
    for i in range(k):
        for j in range(k):
            ph = (i % stride) * stride + (j % stride)
            oi, oj = i // stride, j // stride
            tap = x_ref[ph, oi:oi + ho, oj:oj + wo, :].astype(jnp.float32)
            wt = w_ref[i * k + j:i * k + j + 1, :].astype(jnp.float32)  # (1, C)
            acc = acc + tap * wt
    y = _activate(acc + b_ref[...], act)
    o_ref[0] = y.astype(o_ref.dtype)
    if want_pool:
        pooled = jnp.sum(jnp.sum(y, axis=0), axis=0, keepdims=True)
        pool_ref[0] = pooled * (1.0 / (ho * wo))                       # (1, C)


def _stem_conv_kernel(x_ref, w_ref, b_ref, o_ref, *, k, stride, ho, wo, cin, act):
    # Direct 3x3 (stride-2) conv for the 3-channel stem: per-tap / per-cin
    # broadcast MACs on the VPU (no im2col patch tensor in HBM).
    # x: (s*s, Hh, Wh, Cin), w: (K*K*Cin, Cout), bias: (1, Cout)
    cout = w_ref.shape[1]
    acc = jnp.zeros((ho, wo, cout), jnp.float32)
    for i in range(k):
        for j in range(k):
            ph = (i % stride) * stride + (j % stride)
            oi, oj = i // stride, j // stride
            tap = x_ref[ph, oi:oi + ho, oj:oj + wo, :].astype(jnp.float32)
            for cidx in range(cin):
                r = (i * k + j) * cin + cidx
                acc = acc + tap[:, :, cidx:cidx + 1] * w_ref[r:r + 1, :]
    y = _activate(acc + b_ref[...], act)
    o_ref[0] = y.astype(o_ref.dtype)


def _lastconv_gap_kernel(x_ref, w_ref, b_ref, o_ref, *, inv_hw):
    # Fused last 1x1 conv + Hardswish + global average pool per image:
    # only the pooled (1, Cout) vector ever hits HBM.
    # x: (1, HW, Cin) bf16, w: (Cin, Cout) bf16, bias: (1, Cout) f32.
    y = jnp.dot(x_ref[0], w_ref[...], preferred_element_type=jnp.float32)
    y = y + b_ref[...]
    y = y * (jnp.clip(y + 3.0, 0.0, 6.0) * (1.0 / 6.0))
    o_ref[0] = jnp.sum(y, axis=0, keepdims=True) * inv_hw


def _classifier_kernel(x_ref, w1_ref, b1_ref, w2_ref, b2_ref, o_ref):
    # Fused Linear -> Hardswish -> (Dropout=id) -> Linear; logits lane-padded.
    h = jnp.dot(x_ref[...], w1_ref[...], preferred_element_type=jnp.float32)
    h = h + b1_ref[...]
    h = h * (jnp.clip(h + 3.0, 0.0, 6.0) * (1.0 / 6.0))
    o_ref[...] = jnp.dot(h, w2_ref[...], preferred_element_type=jnp.float32) + b2_ref[...]


# ------------------------------ Pallas wrappers -----------------------------

def pointwise_conv_flat(x, w, bias, act, res=None):
    # 1x1 conv + (BN-folded) bias + activation, flattened over (N*H*W) rows,
    # optionally fused with a residual add on the output.
    n, h, wd, cin = x.shape
    cout = w.shape[1]
    m = n * h * wd
    ts = m if m <= ROW_TILE else ROW_TILE
    nt = pl.cdiv(m, ts)
    x2 = x.reshape(m, cin)

    in_specs = [pl.BlockSpec((ts, cin), lambda t: (t, 0)),
                pl.BlockSpec((cin, cout), lambda t: (0, 0)),
                pl.BlockSpec((1, cout), lambda t: (0, 0))]
    args = [x2, w, bias]
    if res is not None:
        in_specs.append(pl.BlockSpec((ts, cout), lambda t: (t, 0)))
        args.append(res.reshape(m, cout))

    out = pl.pallas_call(
        partial(_pw_flat_kernel, act=act, has_res=res is not None),
        grid=(nt,),
        out_shape=jax.ShapeDtypeStruct((m, cout), jnp.bfloat16),
        in_specs=in_specs,
        out_specs=pl.BlockSpec((ts, cout), lambda t: (t, 0)),
        compiler_params=_cparams("parallel"),
    )(*args)
    return out.reshape(n, h, wd, cout)


def pointwise_conv_se(x, w, bias, act, se, res=None):
    # Batched 1x1 conv with per-batch SE channel scale (and optional residual).
    n, h, wd, cin = x.shape
    cout = w.shape[1]
    hw = h * wd
    ts = hw if hw <= ROW_TILE else ROW_TILE
    nt = pl.cdiv(hw, ts)
    x2 = x.reshape(n, hw, cin)

    in_specs = [pl.BlockSpec((1, ts, cin), lambda b, t: (b, t, 0)),
                pl.BlockSpec((cin, cout), lambda b, t: (0, 0)),
                pl.BlockSpec((1, cout), lambda b, t: (0, 0)),
                pl.BlockSpec((1, 1, cin), lambda b, t: (b, 0, 0))]
    args = [x2, w, bias, se.astype(jnp.float32).reshape(n, 1, cin)]
    if res is not None:
        in_specs.append(pl.BlockSpec((1, ts, cout), lambda b, t: (b, t, 0)))
        args.append(res.reshape(n, hw, cout))

    out = pl.pallas_call(
        partial(_pw_se_kernel, act=act, has_res=res is not None),
        grid=(n, nt),
        out_shape=jax.ShapeDtypeStruct((n, hw, cout), jnp.bfloat16),
        in_specs=in_specs,
        out_specs=pl.BlockSpec((1, ts, cout), lambda b, t: (b, t, 0)),
        compiler_params=_cparams("parallel", "parallel"),
    )(*args)
    return out.reshape(n, h, wd, cout)


def depthwise_conv(x, w, bias, k, stride, act, want_pool):
    # Returns (conv output, global-average-pool of the output or None).
    n, h, wd, c = x.shape
    pad = (k - 1) // 2
    ho = (h + 2 * pad - k) // stride + 1
    wo = (wd + 2 * pad - k) // stride + 1
    xp = jnp.pad(x, ((0, 0), (pad, pad), (pad, pad), (0, 0)))
    xph = _phase_split(xp, stride)            # (n*s*s, hh, wh, c)
    s2 = stride * stride
    hh, wh = xph.shape[1], xph.shape[2]

    if want_pool:
        out_shape = (jax.ShapeDtypeStruct((n, ho, wo, c), x.dtype),
                     jax.ShapeDtypeStruct((n, 1, c), jnp.float32))
        out_specs = (pl.BlockSpec((1, ho, wo, c), lambda b: (b, 0, 0, 0)),
                     pl.BlockSpec((1, 1, c), lambda b: (b, 0, 0)))
    else:
        out_shape = jax.ShapeDtypeStruct((n, ho, wo, c), x.dtype)
        out_specs = pl.BlockSpec((1, ho, wo, c), lambda b: (b, 0, 0, 0))

    outs = pl.pallas_call(
        partial(_dw_conv_kernel, k=k, stride=stride, ho=ho, wo=wo,
                act=act, want_pool=want_pool),
        grid=(n,),
        out_shape=out_shape,
        in_specs=[pl.BlockSpec((s2, hh, wh, c), lambda b: (b, 0, 0, 0)),
                  pl.BlockSpec((k * k, c), lambda b: (0, 0)),
                  pl.BlockSpec((1, c), lambda b: (0, 0))],
        out_specs=out_specs,
        compiler_params=_cparams("parallel"),
    )(xph, w, bias)
    if want_pool:
        out, pooled = outs
        return out, pooled[:, 0, :]
    return outs, None


def stem_conv(x, w, bias, k, stride, act):
    n, h, wd, cin = x.shape
    cout = w.shape[1]
    pad = (k - 1) // 2
    ho = (h + 2 * pad - k) // stride + 1
    wo = (wd + 2 * pad - k) // stride + 1
    xp = jnp.pad(x, ((0, 0), (pad, pad), (pad, pad), (0, 0)))
    xph = _phase_split(xp, stride)
    s2 = stride * stride
    hh, wh = xph.shape[1], xph.shape[2]

    return pl.pallas_call(
        partial(_stem_conv_kernel, k=k, stride=stride, ho=ho, wo=wo,
                cin=cin, act=act),
        grid=(n,),
        out_shape=jax.ShapeDtypeStruct((n, ho, wo, cout), jnp.bfloat16),
        in_specs=[pl.BlockSpec((s2, hh, wh, cin), lambda b: (b, 0, 0, 0)),
                  pl.BlockSpec((k * k * cin, cout), lambda b: (0, 0)),
                  pl.BlockSpec((1, cout), lambda b: (0, 0))],
        out_specs=pl.BlockSpec((1, ho, wo, cout), lambda b: (b, 0, 0, 0)),
        compiler_params=_cparams("parallel"),
    )(xph, w, bias)


def lastconv_gap(x, w, bias):
    # Fused last 1x1 conv + Hardswish + AdaptiveAvgPool2d(1) + flatten.
    n, h, wd, cin = x.shape
    cout = w.shape[1]
    hw = h * wd
    x2 = x.reshape(n, hw, cin)
    out = pl.pallas_call(
        partial(_lastconv_gap_kernel, inv_hw=1.0 / hw),
        grid=(n,),
        out_shape=jax.ShapeDtypeStruct((n, 1, cout), jnp.float32),
        in_specs=[pl.BlockSpec((1, hw, cin), lambda b: (b, 0, 0)),
                  pl.BlockSpec((cin, cout), lambda b: (0, 0)),
                  pl.BlockSpec((1, cout), lambda b: (0, 0))],
        out_specs=pl.BlockSpec((1, 1, cout), lambda b: (b, 0, 0)),
        compiler_params=_cparams("parallel"),
    )(x2, w, bias)
    return out[:, 0, :]


def classifier_head(x, w1, b1, w2, b2):
    n = x.shape[0]
    ncls = w2.shape[1]
    ncls_pad = ((ncls + 127) // 128) * 128        # lane-dense logits store
    w2p = jnp.pad(w2, ((0, 0), (0, ncls_pad - ncls)))
    b2p = jnp.pad(b2, ((0, 0), (0, ncls_pad - ncls)))
    vmem = pl.BlockSpec(memory_space=pltpu.MemorySpace.VMEM)
    out = pl.pallas_call(
        _classifier_kernel,
        out_shape=jax.ShapeDtypeStruct((n, ncls_pad), jnp.float32),
        in_specs=[vmem] * 5,
        out_specs=vmem,
        compiler_params=_cparams(),
    )(x, w1, b1, w2p, b2p)
    return out[:, :ncls]


# ------------------------------- model forward ------------------------------

def inverted_residual(x, bp, cnf):
    inp = x
    act = "hardswish" if cnf.use_hs else "relu"
    if cnf.expanded_channels != cnf.input_channels:
        x = pointwise_conv_flat(x, bp["expand_w"], bp["expand_bias"], act)
    x, pooled = depthwise_conv(x, bp["dw_w"], bp["dw_bias"],
                               cnf.kernel, cnf.stride, act,
                               want_pool=cnf.use_se)
    use_res = cnf.stride == 1 and cnf.input_channels == cnf.out_channels
    res = inp if use_res else None
    if cnf.use_se:
        # Tiny (N, Cexp) SE math kept in plain JAX; the heavy pooled reduction
        # is already fused into the depthwise kernel above; the SE scale is
        # applied inside the projection 1x1-conv kernel.
        h = jnp.maximum(pooled @ bp["se_w1"] + bp["se_b1"], 0.0)
        s = h @ bp["se_w2"] + bp["se_b2"]
        se_scale = jnp.clip(s + 3.0, 0.0, 6.0) * (1.0 / 6.0)        # hardsigmoid
        x = pointwise_conv_se(x, bp["proj_w"], bp["proj_bias"], "identity",
                              se_scale, res)
    else:
        x = pointwise_conv_flat(x, bp["proj_w"], bp["proj_bias"], "identity",
                                res=res)
    return x


def mobilenet_v3_forward(x_nchw, params, setting):
    x = jnp.transpose(x_nchw, (0, 2, 3, 1)).astype(jnp.bfloat16)   # NCHW -> NHWC

    p = params["first_conv"]
    x = stem_conv(x, p["w"], p["bias"], 3, 2, "hardswish")

    for cnf, bp in zip(setting, params["blocks"]):
        x = inverted_residual(x, bp, cnf)

    p = params["last_conv"]
    x = lastconv_gap(x, p["w"], p["bias"])       # conv+HS+AdaptiveAvgPool2d(1)

    p = params["classifier"]                     # Dropout(0.2) is identity in eval
    return classifier_head(x, p["w1"], p["b1"], p["w2"], p["b2"])


# ------------------------------- parameter init -----------------------------

def init_params(key, setting, last_channel, num_classes):
    keys = iter(jax.random.split(key, 256))

    def nk():
        return next(keys)

    def kaiming(shape, fan_out):
        return jax.random.normal(nk(), shape, jnp.float32) * math.sqrt(2.0 / fan_out)

    params = {}
    c0 = setting[0].input_channels
    # stem weight rows ordered as (tap_i*K + tap_j)*Cin + cin ; BN scale folded.
    params["first_conv"] = {
        "w": kaiming((27, c0), fan_out=c0 * 9) * BN_SCALE,
        "bias": jnp.zeros((1, c0), jnp.float32),
    }

    blocks = []
    for cnf in setting:
        bp = {}
        cin, cexp, cout, k = (cnf.input_channels, cnf.expanded_channels,
                              cnf.out_channels, cnf.kernel)
        if cexp != cin:
            bp["expand_w"] = (kaiming((cin, cexp), cexp) * BN_SCALE).astype(jnp.bfloat16)
            bp["expand_bias"] = jnp.zeros((1, cexp), jnp.float32)
        bp["dw_w"] = (kaiming((k * k, cexp), cexp * k * k) * BN_SCALE).astype(jnp.bfloat16)
        bp["dw_bias"] = jnp.zeros((1, cexp), jnp.float32)
        if cnf.use_se:
            cs = _make_divisible(cexp // 4)
            bp["se_w1"] = kaiming((cexp, cs), cs)
            bp["se_b1"] = jnp.zeros((1, cs), jnp.float32)
            bp["se_w2"] = kaiming((cs, cexp), cexp)
            bp["se_b2"] = jnp.zeros((1, cexp), jnp.float32)
        bp["proj_w"] = (kaiming((cexp, cout), cout) * BN_SCALE).astype(jnp.bfloat16)
        bp["proj_bias"] = jnp.zeros((1, cout), jnp.float32)
        blocks.append(bp)
    params["blocks"] = blocks

    c_in = setting[-1].out_channels
    c_last = 6 * c_in
    params["last_conv"] = {
        "w": (kaiming((c_in, c_last), c_last) * BN_SCALE).astype(jnp.bfloat16),
        "bias": jnp.zeros((1, c_last), jnp.float32),
    }

    params["classifier"] = {
        "w1": jax.random.normal(nk(), (c_last, last_channel), jnp.float32) * 0.01,
        "b1": jnp.zeros((1, last_channel), jnp.float32),
        "w2": jax.random.normal(nk(), (last_channel, num_classes), jnp.float32) * 0.01,
        "b2": jnp.zeros((1, num_classes), jnp.float32),
    }
    return params


# ----------------------------------- main -----------------------------------

if __name__ == "__main__":
    # Small MobileNetV3-style configuration (mobilenet_v3_small-like prefix);
    # exercises: expand-skip, expand, SE, residual, RE/HS, stride 1/2, k=3/5.
    setting = [
        InvertedResidualConfig(16, 3, 16, 16, True,  "RE", 2),
        InvertedResidualConfig(16, 3, 72, 24, False, "RE", 2),
        InvertedResidualConfig(24, 5, 88, 24, False, "RE", 1),
        InvertedResidualConfig(24, 5, 96, 40, True,  "HS", 1),
    ]
    last_channel = 64
    num_classes = 10

    key = jax.random.PRNGKey(0)
    pkey, xkey = jax.random.split(key)
    params = init_params(pkey, setting, last_channel, num_classes)

    # PyTorch-style NCHW input.
    x = jax.random.normal(xkey, (2, 3, 16, 16), jnp.float32)

    fwd = jax.jit(partial(mobilenet_v3_forward, setting=setting))
    out = fwd(x, params)
    jax.block_until_ready(out)
    assert out.shape == (2, num_classes), out.shape
    assert out.dtype == jnp.float32
    assert bool(jnp.all(jnp.isfinite(out)))
    print("KERNEL_OK")
</pallas_src>

<mosaic_0001>
module attributes {stable_mosaic.version = 11 : i64} {
  func.func @_stem_conv_kernel(%arg0: i32, %arg1: memref<4x9x9x3xbf16, #tpu.memory_space<vmem>>, %arg2: memref<27x16xf32, #tpu.memory_space<vmem>>, %arg3: memref<1x16xf32, #tpu.memory_space<vmem>>, %arg4: memref<1x8x8x16xbf16, #tpu.memory_space<vmem>>) attributes {dimension_semantics = [#tpu.dimension_semantics<parallel>], iteration_bounds = array<i64: 2>, scalar_prefetch = 0 : i64, scratch_operands = 0 : i64, tpu.core_type = #tpu.core_type<tc>, window_params = [{transform_indices = @transform_0, window_bounds = array<i64: 4, 9, 9, 3>}, {pipeline_mode = #tpu.pipeline_mode<synchronous>, transform_indices = @transform_1, window_bounds = array<i64: 27, 16>}, {pipeline_mode = #tpu.pipeline_mode<synchronous>, transform_indices = @transform_2, window_bounds = array<i64: 1, 16>}, {transform_indices = @transform_3, window_bounds = array<i64: 1, 8, 8, 16>}]} {
    %cst = arith.constant 0.000000e+00 : f32
    %0 = vector.broadcast %cst : f32 to vector<8x8x16xf32>
    %c0 = arith.constant 0 : index
    %c0_0 = arith.constant 0 : index
    %c0_1 = arith.constant 0 : index
    %c0_2 = arith.constant 0 : index
    %1 = vector.load %arg1[%c0, %c0_0, %c0_1, %c0_2] : memref<4x9x9x3xbf16, #tpu.memory_space<vmem>>, vector<1x8x8x3xbf16>
    %2 = vector.shape_cast %1 : vector<1x8x8x3xbf16> to vector<8x8x3xbf16>
    %3 = arith.extf %2 : vector<8x8x3xbf16> to vector<8x8x3xf32>
    %4 = vector.extract_strided_slice %3 {offsets = [0, 0, 0], sizes = [8, 8, 1], strides = [1, 1, 1]} : vector<8x8x3xf32> to vector<8x8x1xf32>
    %c0_3 = arith.constant 0 : index
    %c0_4 = arith.constant 0 : index
    %5 = vector.load %arg2[%c0_3, %c0_4] : memref<27x16xf32, #tpu.memory_space<vmem>>, vector<1x16xf32>
    %6 = vector.shape_cast %5 : vector<1x16xf32> to vector<1x1x16xf32>
    %7 = vector.broadcast %4 : vector<8x8x1xf32> to vector<8x8x16xf32>
    %8 = vector.broadcast %6 : vector<1x1x16xf32> to vector<8x8x16xf32>
    %9 = arith.mulf %7, %8 : vector<8x8x16xf32>
    %10 = arith.addf %0, %9 : vector<8x8x16xf32>
    %11 = vector.extract_strided_slice %3 {offsets = [0, 0, 1], sizes = [8, 8, 1], strides = [1, 1, 1]} : vector<8x8x3xf32> to vector<8x8x1xf32>
    %c1 = arith.constant 1 : index
    %c0_5 = arith.constant 0 : index
    %12 = vector.load %arg2[%c1, %c0_5] : memref<27x16xf32, #tpu.memory_space<vmem>>, vector<1x16xf32>
    %13 = vector.shape_cast %12 : vector<1x16xf32> to vector<1x1x16xf32>
    %14 = vector.broadcast %11 : vector<8x8x1xf32> to vector<8x8x16xf32>
    %15 = vector.broadcast %13 : vector<1x1x16xf32> to vector<8x8x16xf32>
    %16 = arith.mulf %14, %15 : vector<8x8x16xf32>
    %17 = arith.addf %10, %16 : vector<8x8x16xf32>
    %18 = vector.extract_strided_slice %3 {offsets = [0, 0, 2], sizes = [8, 8, 1], strides = [1, 1, 1]} : vector<8x8x3xf32> to vector<8x8x1xf32>
    %c2 = arith.constant 2 : index
    %c0_6 = arith.constant 0 : index
    %19 = vector.load %arg2[%c2, %c0_6] : memref<27x16xf32, #tpu.memory_space<vmem>>, vector<1x16xf32>
    %20 = vector.shape_cast %19 : vector<1x16xf32> to vector<1x1x16xf32>
    %21 = vector.broadcast %18 : vector<8x8x1xf32> to vector<8x8x16xf32>
    %22 = vector.broadcast %20 : vector<1x1x16xf32> to vector<8x8x16xf32>
    %23 = arith.mulf %21, %22 : vector<8x8x16xf32>
    %24 = arith.addf %17, %23 : vector<8x8x16xf32>
    %c1_7 = arith.constant 1 : index
    %c0_8 = arith.constant 0 : index
    %c0_9 = arith.constant 0 : index
    %c0_10 = arith.constant 0 : index
    %25 = vector.load %arg1[%c1_7, %c0_8, %c0_9, %c0_10] : memref<4x9x9x3xbf16, #tpu.memory_space<vmem>>, vector<1x8x8x3xbf16>
    %26 = vector.shape_cast %25 : vector<1x8x8x3xbf16> to vector<8x8x3xbf16>
    %27 = arith.extf %26 : vector<8x8x3xbf16> to vector<8x8x3xf32>
    %28 = vector.extract_strided_slice %27 {offsets = [0, 0, 0], sizes = [8, 8, 1], strides = [1, 1, 1]} : vector<8x8x3xf32> to vector<8x8x1xf32>
    %c3 = arith.constant 3 : index
    %c0_11 = arith.constant 0 : index
    %29 = vector.load %arg2[%c3, %c0_11] : memref<27x16xf32, #tpu.memory_space<vmem>>, vector<1x16xf32>
    %30 = vector.shape_cast %29 : vector<1x16xf32> to vector<1x1x16xf32>
    %31 = vector.broadcast %28 : vector<8x8x1xf32> to vector<8x8x16xf32>
    %32 = vector.broadcast %30 : vector<1x1x16xf32> to vector<8x8x16xf32>
    %33 = arith.mulf %31, %32 : vector<8x8x16xf32>
    %34 = arith.addf %24, %33 : vector<8x8x16xf32>
    %35 = vector.extract_strided_slice %27 {offsets = [0, 0, 1], sizes = [8, 8, 1], strides = [1, 1, 1]} : vector<8x8x3xf32> to vector<8x8x1xf32>
    %c4 = arith.constant 4 : index
    %c0_12 = arith.constant 0 : index
    %36 = vector.load %arg2[%c4, %c0_12] : memref<27x16xf32, #tpu.memory_space<vmem>>, vector<1x16xf32>
    %37 = vector.shape_cast %36 : vector<1x16xf32> to vector<1x1x16xf32>
    %38 = vector.broadcast %35 : vector<8x8x1xf32> to vector<8x8x16xf32>
    %39 = vector.broadcast %37 : vector<1x1x16xf32> to vector<8x8x16xf32>
    %40 = arith.mulf %38, %39 : vector<8x8x16xf32>
    %41 = arith.addf %34, %40 : vector<8x8x16xf32>
    %42 = vector.extract_strided_slice %27 {offsets = [0, 0, 2], sizes = [8, 8, 1], strides = [1, 1, 1]} : vector<8x8x3xf32> to vector<8x8x1xf32>
    %c5 = arith.constant 5 : index
    %c0_13 = arith.constant 0 : index
    %43 = vector.load %arg2[%c5, %c0_13] : memref<27x16xf32, #tpu.memory_space<vmem>>, vector<1x16xf32>
    %44 = vector.shape_cast %43 : vector<1x16xf32> to vector<1x1x16xf32>
    %45 = vector.broadcast %42 : vector<8x8x1xf32> to vector<8x8x16xf32>
    %46 = vector.broadcast %44 : vector<1x1x16xf32> to vector<8x8x16xf32>
    %47 = arith.mulf %45, %46 : vector<8x8x16xf32>
    %48 = arith.addf %41, %47 : vector<8x8x16xf32>
    %c0_14 = arith.constant 0 : index
    %c0_15 = arith.constant 0 : index
    %c1_16 = arith.constant 1 : index
    %c0_17 = arith.constant 0 : index
    %49 = vector.load %arg1[%c0_14, %c0_15, %c1_16, %c0_17] : memref<4x9x9x3xbf16, #tpu.memory_space<vmem>>, vector<1x8x8x3xbf16>
    %50 = vector.shape_cast %49 : vector<1x8x8x3xbf16> to vector<8x8x3xbf16>
    %51 = arith.extf %50 : vector<8x8x3xbf16> to vector<8x8x3xf32>
    %52 = vector.extract_strided_slice %51 {offsets = [0, 0, 0], sizes = [8, 8, 1], strides = [1, 1, 1]} : vector<8x8x3xf32> to vector<8x8x1xf32>
    %c6 = arith.constant 6 : index
    %c0_18 = arith.constant 0 : index
    %53 = vector.load %arg2[%c6, %c0_18] : memref<27x16xf32, #tpu.memory_space<vmem>>, vector<1x16xf32>
    %54 = vector.shape_cast %53 : vector<1x16xf32> to vector<1x1x16xf32>
    %55 = vector.broadcast %52 : vector<8x8x1xf32> to vector<8x8x16xf32>
    %56 = vector.broadcast %54 : vector<1x1x16xf32> to vector<8x8x16xf32>
    %57 = arith.mulf %55, %56 : vector<8x8x16xf32>
    %58 = arith.addf %48, %57 : vector<8x8x16xf32>
    %59 = vector.extract_strided_slice %51 {offsets = [0, 0, 1], sizes = [8, 8, 1], strides = [1, 1, 1]} : vector<8x8x3xf32> to vector<8x8x1xf32>
    %c7 = arith.constant 7 : index
    %c0_19 = arith.constant 0 : index
    %60 = vector.load %arg2[%c7, %c0_19] : memref<27x16xf32, #tpu.memory_space<vmem>>, vector<1x16xf32>
    %61 = vector.shape_cast %60 : vector<1x16xf32> to vector<1x1x16xf32>
    %62 = vector.broadcast %59 : vector<8x8x1xf32> to vector<8x8x16xf32>
    %63 = vector.broadcast %61 : vector<1x1x16xf32> to vector<8x8x16xf32>
    %64 = arith.mulf %62, %63 : vector<8x8x16xf32>
    %65 = arith.addf %58, %64 : vector<8x8x16xf32>
    %66 = vector.extract_strided_slice %51 {offsets = [0, 0, 2], sizes = [8, 8, 1], strides = [1, 1, 1]} : vector<8x8x3xf32> to vector<8x8x1xf32>
    %c8 = arith.constant 8 : index
    %c0_20 = arith.constant 0 : index
    %67 = vector.load %arg2[%c8, %c0_20] : memref<27x16xf32, #tpu.memory_space<vmem>>, vector<1x16xf32>
    %68 = vector.shape_cast %67 : vector<1x16xf32> to vector<1x1x16xf32>
    %69 = vector.broadcast %66 : vector<8x8x1xf32> to vector<8x8x16xf32>
    %70 = vector.broadcast %68 : vector<1x1x16xf32> to vector<8x8x16xf32>
    %71 = arith.mulf %69, %70 : vector<8x8x16xf32>
    %72 = arith.addf %65, %71 : vector<8x8x16xf32>
    %c2_21 = arith.constant 2 : index
    %c0_22 = arith.constant 0 : index
    %c0_23 = arith.constant 0 : index
    %c0_24 = arith.constant 0 : index
    %73 = vector.load %arg1[%c2_21, %c0_22, %c0_23, %c0_24] : memref<4x9x9x3xbf16, #tpu.memory_space<vmem>>, vector<1x8x8x3xbf16>
    %74 = vector.shape_cast %73 : vector<1x8x8x3xbf16> to vector<8x8x3xbf16>
    %75 = arith.extf %74 : vector<8x8x3xbf16> to vector<8x8x3xf32>
    %76 = vector.extract_strided_slice %75 {offsets = [0, 0, 0], sizes = [8, 8, 1], strides = [1, 1, 1]} : vector<8x8x3xf32> to vector<8x8x1xf32>
    %c9 = arith.constant 9 : index
    %c0_25 = arith.constant 0 : index
    %77 = vector.load %arg2[%c9, %c0_25] : memref<27x16xf32, #tpu.memory_space<vmem>>, vector<1x16xf32>
    %78 = vector.shape_cast %77 : vector<1x16xf32> to vector<1x1x16xf32>
    %79 = vector.broadcast %76 : vector<8x8x1xf32> to vector<8x8x16xf32>
    %80 = vector.broadcast %78 : vector<1x1x16xf32> to vector<8x8x16xf32>
    %81 = arith.mulf %79, %80 : vector<8x8x16xf32>
    %82 = arith.addf %72, %81 : vector<8x8x16xf32>
    %83 = vector.extract_strided_slice %75 {offsets = [0, 0, 1], sizes = [8, 8, 1], strides = [1, 1, 1]} : vector<8x8x3xf32> to vector<8x8x1xf32>
    %c10 = arith.constant 10 : index
    %c0_26 = arith.constant 0 : index
    %84 = vector.load %arg2[%c10, %c0_26] : memref<27x16xf32, #tpu.memory_space<vmem>>, vector<1x16xf32>
    %85 = vector.shape_cast %84 : vector<1x16xf32> to vector<1x1x16xf32>
    %86 = vector.broadcast %83 : vector<8x8x1xf32> to vector<8x8x16xf32>
    %87 = vector.broadcast %85 : vector<1x1x16xf32> to vector<8x8x16xf32>
    %88 = arith.mulf %86, %87 : vector<8x8x16xf32>
    %89 = arith.addf %82, %88 : vector<8x8x16xf32>
    %90 = vector.extract_strided_slice %75 {offsets = [0, 0, 2], sizes = [8, 8, 1], strides = [1, 1, 1]} : vector<8x8x3xf32> to vector<8x8x1xf32>
    %c11 = arith.constant 11 : index
    %c0_27 = arith.constant 0 : index
    %91 = vector.load %arg2[%c11, %c0_27] : memref<27x16xf32, #tpu.memory_space<vmem>>, vector<1x16xf32>
    %92 = vector.shape_cast %91 : vector<1x16xf32> to vector<1x1x16xf32>
    %93 = vector.broadcast %90 : vector<8x8x1xf32> to vector<8x8x16xf32>
    %94 = vector.broadcast %92 : vector<1x1x16xf32> to vector<8x8x16xf32>
    %95 = arith.mulf %93, %94 : vector<8x8x16xf32>
    %96 = arith.addf %89, %95 : vector<8x8x16xf32>
    %c3_28 = arith.constant 3 : index
    %c0_29 = arith.constant 0 : index
    %c0_30 = arith.constant 0 : index
    %c0_31 = arith.constant 0 : index
    %97 = vector.load %arg1[%c3_28, %c0_29, %c0_30, %c0_31] : memref<4x9x9x3xbf16, #tpu.memory_space<vmem>>, vector<1x8x8x3xbf16>
    %98 = vector.shape_cast %97 : vector<1x8x8x3xbf16> to vector<8x8x3xbf16>
    %99 = arith.extf %98 : vector<8x8x3xbf16> to vector<8x8x3xf32>
    %100 = vector.extract_strided_slice %99 {offsets = [0, 0, 0], sizes = [8, 8, 1], strides = [1, 1, 1]} : vector<8x8x3xf32> to vector<8x8x1xf32>
    %c12 = arith.constant 12 : index
    %c0_32 = arith.constant 0 : index
    %101 = vector.load %arg2[%c12, %c0_32] : memref<27x16xf32, #tpu.memory_space<vmem>>, vector<1x16xf32>
    %102 = vector.shape_cast %101 : vector<1x16xf32> to vector<1x1x16xf32>
    %103 = vector.broadcast %100 : vector<8x8x1xf32> to vector<8x8x16xf32>
    %104 = vector.broadcast %102 : vector<1x1x16xf32> to vector<8x8x16xf32>
    %105 = arith.mulf %103, %104 : vector<8x8x16xf32>
    %106 = arith.addf %96, %105 : vector<8x8x16xf32>
    %107 = vector.extract_strided_slice %99 {offsets = [0, 0, 1], sizes = [8, 8, 1], strides = [1, 1, 1]} : vector<8x8x3xf32> to vector<8x8x1xf32>
    %c13 = arith.constant 13 : index
    %c0_33 = arith.constant 0 : index
    %108 = vector.load %arg2[%c13, %c0_33] : memref<27x16xf32, #tpu.memory_space<vmem>>, vector<1x16xf32>
    %109 = vector.shape_cast %108 : vector<1x16xf32> to vector<1x1x16xf32>
    %110 = vector.broadcast %107 : vector<8x8x1xf32> to vector<8x8x16xf32>
    %111 = vector.broadcast %109 : vector<1x1x16xf32> to vector<8x8x16xf32>
    %112 = arith.mulf %110, %111 : vector<8x8x16xf32>
    %113 = arith.addf %106, %112 : vector<8x8x16xf32>
    %114 = vector.extract_strided_slice %99 {offsets = [0, 0, 2], sizes = [8, 8, 1], strides = [1, 1, 1]} : vector<8x8x3xf32> to vector<8x8x1xf32>
    %c14 = arith.constant 14 : index
    %c0_34 = arith.constant 0 : index
    %115 = vector.load %arg2[%c14, %c0_34] : memref<27x16xf32, #tpu.memory_space<vmem>>, vector<1x16xf32>
    %116 = vector.shape_cast %115 : vector<1x16xf32> to vector<1x1x16xf32>
    %117 = vector.broadcast %114 : vector<8x8x1xf32> to vector<8x8x16xf32>
    %118 = vector.broadcast %116 : vector<1x1x16xf32> to vector<8x8x16xf32>
    %119 = arith.mulf %117, %118 : vector<8x8x16xf32>
    %120 = arith.addf %113, %119 : vector<8x8x16xf32>
    %c2_35 = arith.constant 2 : index
    %c0_36 = arith.constant 0 : index
    %c1_37 = arith.constant 1 : index
    %c0_38 = arith.constant 0 : index
    %121 = vector.load %arg1[%c2_35, %c0_36, %c1_37, %c0_38] : memref<4x9x9x3xbf16, #tpu.memory_space<vmem>>, vector<1x8x8x3xbf16>
    %122 = vector.shape_cast %121 : vector<1x8x8x3xbf16> to vector<8x8x3xbf16>
    %123 = arith.extf %122 : vector<8x8x3xbf16> to vector<8x8x3xf32>
    %124 = vector.extract_strided_slice %123 {offsets = [0, 0, 0], sizes = [8, 8, 1], strides = [1, 1, 1]} : vector<8x8x3xf32> to vector<8x8x1xf32>
    %c15 = arith.constant 15 : index
    %c0_39 = arith.constant 0 : index
    %125 = vector.load %arg2[%c15, %c0_39] : memref<27x16xf32, #tpu.memory_space<vmem>>, vector<1x16xf32>
    %126 = vector.shape_cast %125 : vector<1x16xf32> to vector<1x1x16xf32>
    %127 = vector.broadcast %124 : vector<8x8x1xf32> to vector<8x8x16xf32>
    %128 = vector.broadcast %126 : vector<1x1x16xf32> to vector<8x8x16xf32>
    %129 = arith.mulf %127, %128 : vector<8x8x16xf32>
    %130 = arith.addf %120, %129 : vector<8x8x16xf32>
    %131 = vector.extract_strided_slice %123 {offsets = [0, 0, 1], sizes = [8, 8, 1], strides = [1, 1, 1]} : vector<8x8x3xf32> to vector<8x8x1xf32>
    %c16 = arith.constant 16 : index
    %c0_40 = arith.constant 0 : index
    %132 = vector.load %arg2[%c16, %c0_40] : memref<27x16xf32, #tpu.memory_space<vmem>>, vector<1x16xf32>
    %133 = vector.shape_cast %132 : vector<1x16xf32> to vector<1x1x16xf32>
    %134 = vector.broadcast %131 : vector<8x8x1xf32> to vector<8x8x16xf32>
    %135 = vector.broadcast %133 : vector<1x1x16xf32> to vector<8x8x16xf32>
    %136 = arith.mulf %134, %135 : vector<8x8x16xf32>
    %137 = arith.addf %130, %136 : vector<8x8x16xf32>
    %138 = vector.extract_strided_slice %123 {offsets = [0, 0, 2], sizes = [8, 8, 1], strides = [1, 1, 1]} : vector<8x8x3xf32> to vector<8x8x1xf32>
    %c17 = arith.constant 17 : index
    %c0_41 = arith.constant 0 : index
    %139 = vector.load %arg2[%c17, %c0_41] : memref<27x16xf32, #tpu.memory_space<vmem>>, vector<1x16xf32>
    %140 = vector.shape_cast %139 : vector<1x16xf32> to vector<1x1x16xf32>
    %141 = vector.broadcast %138 : vector<8x8x1xf32> to vector<8x8x16xf32>
    %142 = vector.broadcast %140 : vector<1x1x16xf32> to vector<8x8x16xf32>
    %143 = arith.mulf %141, %142 : vector<8x8x16xf32>
    %144 = arith.addf %137, %143 : vector<8x8x16xf32>
    %c0_42 = arith.constant 0 : index
    %c1_43 = arith.constant 1 : index
    %c0_44 = arith.constant 0 : index
    %c0_45 = arith.constant 0 : index
    %145 = vector.load %arg1[%c0_42, %c1_43, %c0_44, %c0_45] : memref<4x9x9x3xbf16, #tpu.memory_space<vmem>>, vector<1x8x8x3xbf16>
    %146 = vector.shape_cast %145 : vector<1x8x8x3xbf16> to vector<8x8x3xbf16>
    %147 = arith.extf %146 : vector<8x8x3xbf16> to vector<8x8x3xf32>
    %148 = vector.extract_strided_slice %147 {offsets = [0, 0, 0], sizes = [8, 8, 1], strides = [1, 1, 1]} : vector<8x8x3xf32> to vector<8x8x1xf32>
    %c18 = arith.constant 18 : index
    %c0_46 = arith.constant 0 : index
    %149 = vector.load %arg2[%c18, %c0_46] : memref<27x16xf32, #tpu.memory_space<vmem>>, vector<1x16xf32>
    %150 = vector.shape_cast %149 : vector<1x16xf32> to vector<1x1x16xf32>
    %151 = vector.broadcast %148 : vector<8x8x1xf32> to vector<8x8x16xf32>
    %152 = vector.broadcast %150 : vector<1x1x16xf32> to vector<8x8x16xf32>
    %153 = arith.mulf %151, %152 : vector<8x8x16xf32>
    %154 = arith.addf %144, %153 : vector<8x8x16xf32>
    %155 = vector.extract_strided_slice %147 {offsets = [0, 0, 1], sizes = [8, 8, 1], strides = [1, 1, 1]} : vector<8x8x3xf32> to vector<8x8x1xf32>
    %c19 = arith.constant 19 : index
    %c0_47 = arith.constant 0 : index
    %156 = vector.load %arg2[%c19, %c0_47] : memref<27x16xf32, #tpu.memory_space<vmem>>, vector<1x16xf32>
    %157 = vector.shape_cast %156 : vector<1x16xf32> to vector<1x1x16xf32>
    %158 = vector.broadcast %155 : vector<8x8x1xf32> to vector<8x8x16xf32>
    %159 = vector.broadcast %157 : vector<1x1x16xf32> to vector<8x8x16xf32>
    %160 = arith.mulf %158, %159 : vector<8x8x16xf32>
    %161 = arith.addf %154, %160 : vector<8x8x16xf32>
    %162 = vector.extract_strided_slice %147 {offsets = [0, 0, 2], sizes = [8, 8, 1], strides = [1, 1, 1]} : vector<8x8x3xf32> to vector<8x8x1xf32>
    %c20 = arith.constant 20 : index
    %c0_48 = arith.constant 0 : index
    %163 = vector.load %arg2[%c20, %c0_48] : memref<27x16xf32, #tpu.memory_space<vmem>>, vector<1x16xf32>
    %164 = vector.shape_cast %163 : vector<1x16xf32> to vector<1x1x16xf32>
    %165 = vector.broadcast %162 : vector<8x8x1xf32> to vector<8x8x16xf32>
    %166 = vector.broadcast %164 : vector<1x1x16xf32> to vector<8x8x16xf32>
    %167 = arith.mulf %165, %166 : vector<8x8x16xf32>
    %168 = arith.addf %161, %167 : vector<8x8x16xf32>
    %c1_49 = arith.constant 1 : index
    %c1_50 = arith.constant 1 : index
    %c0_51 = arith.constant 0 : index
    %c0_52 = arith.constant 0 : index
    %169 = vector.load %arg1[%c1_49, %c1_50, %c0_51, %c0_52] : memref<4x9x9x3xbf16, #tpu.memory_space<vmem>>, vector<1x8x8x3xbf16>
    %170 = vector.shape_cast %169 : vector<1x8x8x3xbf16> to vector<8x8x3xbf16>
    %171 = arith.extf %170 : vector<8x8x3xbf16> to vector<8x8x3xf32>
    %172 = vector.extract_strided_slice %171 {offsets = [0, 0, 0], sizes = [8, 8, 1], strides = [1, 1, 1]} : vector<8x8x3xf32> to vector<8x8x1xf32>
    %c21 = arith.constant 21 : index
    %c0_53 = arith.constant 0 : index
    %173 = vector.load %arg2[%c21, %c0_53] : memref<27x16xf32, #tpu.memory_space<vmem>>, vector<1x16xf32>
    %174 = vector.shape_cast %173 : vector<1x16xf32> to vector<1x1x16xf32>
    %175 = vector.broadcast %172 : vector<8x8x1xf32> to vector<8x8x16xf32>
    %176 = vector.broadcast %174 : vector<1x1x16xf32> to vector<8x8x16xf32>
    %177 = arith.mulf %175, %176 : vector<8x8x16xf32>
    %178 = arith.addf %168, %177 : vector<8x8x16xf32>
    %179 = vector.extract_strided_slice %171 {offsets = [0, 0, 1], sizes = [8, 8, 1], strides = [1, 1, 1]} : vector<8x8x3xf32> to vector<8x8x1xf32>
    %c22 = arith.constant 22 : index
    %c0_54 = arith.constant 0 : index
    %180 = vector.load %arg2[%c22, %c0_54] : memref<27x16xf32, #tpu.memory_space<vmem>>, vector<1x16xf32>
    %181 = vector.shape_cast %180 : vector<1x16xf32> to vector<1x1x16xf32>
    %182 = vector.broadcast %179 : vector<8x8x1xf32> to vector<8x8x16xf32>
    %183 = vector.broadcast %181 : vector<1x1x16xf32> to vector<8x8x16xf32>
    %184 = arith.mulf %182, %183 : vector<8x8x16xf32>
    %185 = arith.addf %178, %184 : vector<8x8x16xf32>
    %186 = vector.extract_strided_slice %171 {offsets = [0, 0, 2], sizes = [8, 8, 1], strides = [1, 1, 1]} : vector<8x8x3xf32> to vector<8x8x1xf32>
    %c23 = arith.constant 23 : index
    %c0_55 = arith.constant 0 : index
    %187 = vector.load %arg2[%c23, %c0_55] : memref<27x16xf32, #tpu.memory_space<vmem>>, vector<1x16xf32>
    %188 = vector.shape_cast %187 : vector<1x16xf32> to vector<1x1x16xf32>
    %189 = vector.broadcast %186 : vector<8x8x1xf32> to vector<8x8x16xf32>
    %190 = vector.broadcast %188 : vector<1x1x16xf32> to vector<8x8x16xf32>
    %191 = arith.mulf %189, %190 : vector<8x8x16xf32>
    %192 = arith.addf %185, %191 : vector<8x8x16xf32>
    %c0_56 = arith.constant 0 : index
    %c1_57 = arith.constant 1 : index
    %c1_58 = arith.constant 1 : index
    %c0_59 = arith.constant 0 : index
    %193 = vector.load %arg1[%c0_56, %c1_57, %c1_58, %c0_59] : memref<4x9x9x3xbf16, #tpu.memory_space<vmem>>, vector<1x8x8x3xbf16>
    %194 = vector.shape_cast %193 : vector<1x8x8x3xbf16> to vector<8x8x3xbf16>
    %195 = arith.extf %194 : vector<8x8x3xbf16> to vector<8x8x3xf32>
    %196 = vector.extract_strided_slice %195 {offsets = [0, 0, 0], sizes = [8, 8, 1], strides = [1, 1, 1]} : vector<8x8x3xf32> to vector<8x8x1xf32>
    %c24 = arith.constant 24 : index
    %c0_60 = arith.constant 0 : index
    %197 = vector.load %arg2[%c24, %c0_60] : memref<27x16xf32, #tpu.memory_space<vmem>>, vector<1x16xf32>
    %198 = vector.shape_cast %197 : vector<1x16xf32> to vector<1x1x16xf32>
    %199 = vector.broadcast %196 : vector<8x8x1xf32> to vector<8x8x16xf32>
    %200 = vector.broadcast %198 : vector<1x1x16xf32> to vector<8x8x16xf32>
    %201 = arith.mulf %199, %200 : vector<8x8x16xf32>
    %202 = arith.addf %192, %201 : vector<8x8x16xf32>
    %203 = vector.extract_strided_slice %195 {offsets = [0, 0, 1], sizes = [8, 8, 1], strides = [1, 1, 1]} : vector<8x8x3xf32> to vector<8x8x1xf32>
    %c25 = arith.constant 25 : index
    %c0_61 = arith.constant 0 : index
    %204 = vector.load %arg2[%c25, %c0_61] : memref<27x16xf32, #tpu.memory_space<vmem>>, vector<1x16xf32>
    %205 = vector.shape_cast %204 : vector<1x16xf32> to vector<1x1x16xf32>
    %206 = vector.broadcast %203 : vector<8x8x1xf32> to vector<8x8x16xf32>
    %207 = vector.broadcast %205 : vector<1x1x16xf32> to vector<8x8x16xf32>
    %208 = arith.mulf %206, %207 : vector<8x8x16xf32>
    %209 = arith.addf %202, %208 : vector<8x8x16xf32>
    %210 = vector.extract_strided_slice %195 {offsets = [0, 0, 2], sizes = [8, 8, 1], strides = [1, 1, 1]} : vector<8x8x3xf32> to vector<8x8x1xf32>
    %c26 = arith.constant 26 : index
    %c0_62 = arith.constant 0 : index
    %211 = vector.load %arg2[%c26, %c0_62] : memref<27x16xf32, #tpu.memory_space<vmem>>, vector<1x16xf32>
    %212 = vector.shape_cast %211 : vector<1x16xf32> to vector<1x1x16xf32>
    %213 = vector.broadcast %210 : vector<8x8x1xf32> to vector<8x8x16xf32>
    %214 = vector.broadcast %212 : vector<1x1x16xf32> to vector<8x8x16xf32>
    %215 = arith.mulf %213, %214 : vector<8x8x16xf32>
    %216 = arith.addf %209, %215 : vector<8x8x16xf32>
    %c0_63 = arith.constant 0 : index
    %c0_64 = arith.constant 0 : index
    %217 = vector.load %arg3[%c0_63, %c0_64] : memref<1x16xf32, #tpu.memory_space<vmem>>, vector<1x16xf32>
    %218 = vector.shape_cast %217 : vector<1x16xf32> to vector<1x1x16xf32>
    %219 = vector.broadcast %218 : vector<1x1x16xf32> to vector<8x8x16xf32>
    %220 = arith.addf %216, %219 : vector<8x8x16xf32>
    %cst_65 = arith.constant 3.000000e+00 : f32
    %221 = vector.broadcast %cst_65 : f32 to vector<8x8x16xf32>
    %222 = arith.addf %220, %221 : vector<8x8x16xf32>
    %cst_66 = arith.constant 0.000000e+00 : f32
    %cst_67 = arith.constant 6.000000e+00 : f32
    %223 = vector.broadcast %cst_66 : f32 to vector<8x8x16xf32>
    %224 = arith.maximumf %223, %222 : vector<8x8x16xf32>
    %225 = vector.broadcast %cst_67 : f32 to vector<8x8x16xf32>
    %226 = arith.minimumf %225, %224 : vector<8x8x16xf32>
    %cst_68 = arith.constant 0.166666672 : f32
    %227 = vector.broadcast %cst_68 : f32 to vector<8x8x16xf32>
    %228 = arith.mulf %226, %227 : vector<8x8x16xf32>
    %229 = arith.mulf %220, %228 : vector<8x8x16xf32>
    %230 = arith.truncf %229 : vector<8x8x16xf32> to vector<8x8x16xbf16>
    %c0_69 = arith.constant 0 : index
    %c0_70 = arith.constant 0 : index
    %c0_71 = arith.constant 0 : index
    %c0_72 = arith.constant 0 : index
    %231 = vector.load %arg4[%c0_69, %c0_70, %c0_71, %c0_72] : memref<1x8x8x16xbf16, #tpu.memory_space<vmem>>, vector<1x8x8x16xbf16>
    %232 = vector.shape_cast %231 : vector<1x8x8x16xbf16> to vector<8x8x16xbf16>
    %233 = vector.shape_cast %230 : vector<8x8x16xbf16> to vector<1x8x8x16xbf16>
    tpu.vector_store %arg4[%c0_69, %c0_70, %c0_71, %c0_72], %233 {strides = array<i32>} : memref<1x8x8x16xbf16, #tpu.memory_space<vmem>>, vector<1x8x8x16xbf16>,
    return
  }
  func.func @transform_0(%arg0: i32) -> (i32, i32, i32, i32) {
    %c0_i32 = arith.constant 0 : i32
    %c0_i32_0 = arith.constant 0 : i32
    %c0_i32_1 = arith.constant 0 : i32
    %c0_i32_2 = arith.constant 0 : i32
    return %arg0, %c0_i32, %c0_i32_0, %c0_i32_1 : i32, i32, i32, i32
  }
  func.func @transform_1(%arg0: i32) -> (i32, i32) {
    %c0_i32 = arith.constant 0 : i32
    %c0_i32_0 = arith.constant 0 : i32
    %c0_i32_1 = arith.constant 0 : i32
    return %c0_i32, %c0_i32_0 : i32, i32
  }
  func.func @transform_2(%arg0: i32) -> (i32, i32) {
    %c0_i32 = arith.constant 0 : i32
    %c0_i32_0 = arith.constant 0 : i32
    %c0_i32_1 = arith.constant 0 : i32
    return %c0_i32, %c0_i32_0 : i32, i32
  }
  func.func @transform_3(%arg0: i32) -> (i32, i32, i32, i32) {
    %c0_i32 = arith.constant 0 : i32
    %c0_i32_0 = arith.constant 0 : i32
    %c0_i32_1 = arith.constant 0 : i32
    %c0_i32_2 = arith.constant 0 : i32
    return %arg0, %c0_i32, %c0_i32_0, %c0_i32_1 : i32, i32, i32, i32
  }
}

module attributes {stable_mosaic.version = 11 : i64} {
  func.func @_dw_conv_kernel(%arg0: i32, %arg1: memref<4x5x5x16xbf16, #tpu.memory_space<vmem>>, %arg2: memref<9x16xbf16, #tpu.memory_space<vmem>>, %arg3: memref<1x16xf32, #tpu.memory_space<vmem>>, %arg4: memref<1x4x4x16xbf16, #tpu.memory_space<vmem>>, %arg5: memref<1x1x16xf32, #tpu.memory_space<vmem>>) attributes {dimension_semantics = [#tpu.dimension_semantics<parallel>], iteration_bounds = array<i64: 2>, scalar_prefetch = 0 : i64, scratch_operands = 0 : i64, tpu.core_type = #tpu.core_type<tc>, window_params = [{transform_indices = @transform_0, window_bounds = array<i64: 4, 5, 5, 16>}, {pipeline_mode = #tpu.pipeline_mode<synchronous>, transform_indices = @transform_1, window_bounds = array<i64: 9, 16>}, {pipeline_mode = #tpu.pipeline_mode<synchronous>, transform_indices = @transform_2, window_bounds = array<i64: 1, 16>}, {transform_indices = @transform_3, window_bounds = array<i64: 1, 4, 4, 16>}, {transform_indices = @transform_4, window_bounds = array<i64: 1, 1, 16>}]} {
    %cst = arith.constant 0.000000e+00 : f32
    %0 = vector.broadcast %cst : f32 to vector<4x4x16xf32>
    %c0 = arith.constant 0 : index
    %c0_0 = arith.constant 0 : index
    %c0_1 = arith.constant 0 : index
    %c0_2 = arith.constant 0 : index
    %1 = vector.load %arg1[%c0, %c0_0, %c0_1, %c0_2] : memref<4x5x5x16xbf16, #tpu.memory_space<vmem>>, vector<1x4x4x16xbf16>
    %2 = vector.shape_cast %1 : vector<1x4x4x16xbf16> to vector<4x4x16xbf16>
    %3 = arith.extf %2 : vector<4x4x16xbf16> to vector<4x4x16xf32>
    %c0_3 = arith.constant 0 : index
    %c0_4 = arith.constant 0 : index
    %4 = vector.load %arg2[%c0_3, %c0_4] : memref<9x16xbf16, #tpu.memory_space<vmem>>, vector<1x16xbf16>
    %5 = arith.extf %4 : vector<1x16xbf16> to vector<1x16xf32>
    %6 = vector.shape_cast %5 : vector<1x16xf32> to vector<1x1x16xf32>
    %7 = vector.broadcast %6 : vector<1x1x16xf32> to vector<4x4x16xf32>
    %8 = arith.mulf %3, %7 : vector<4x4x16xf32>
    %9 = arith.addf %0, %8 : vector<4x4x16xf32>
    %c1 = arith.constant 1 : index
    %c0_5 = arith.constant 0 : index
    %c0_6 = arith.constant 0 : index
    %c0_7 = arith.constant 0 : index
    %10 = vector.load %arg1[%c1, %c0_5, %c0_6, %c0_7] : memref<4x5x5x16xbf16, #tpu.memory_space<vmem>>, vector<1x4x4x16xbf16>
    %11 = vector.shape_cast %10 : vector<1x4x4x16xbf16> to vector<4x4x16xbf16>
    %12 = arith.extf %11 : vector<4x4x16xbf16> to vector<4x4x16xf32>
    %c1_8 = arith.constant 1 : index
    %c0_9 = arith.constant 0 : index
    %13 = vector.load %arg2[%c1_8, %c0_9] : memref<9x16xbf16, #tpu.memory_space<vmem>>, vector<1x16xbf16>
    %14 = arith.extf %13 : vector<1x16xbf16> to vector<1x16xf32>
    %15 = vector.shape_cast %14 : vector<1x16xf32> to vector<1x1x16xf32>
    %16 = vector.broadcast %15 : vector<1x1x16xf32> to vector<4x4x16xf32>
    %17 = arith.mulf %12, %16 : vector<4x4x16xf32>
    %18 = arith.addf %9, %17 : vector<4x4x16xf32>
    %c0_10 = arith.constant 0 : index
    %c0_11 = arith.constant 0 : index
    %c1_12 = arith.constant 1 : index
    %c0_13 = arith.constant 0 : index
    %19 = vector.load %arg1[%c0_10, %c0_11, %c1_12, %c0_13] : memref<4x5x5x16xbf16, #tpu.memory_space<vmem>>, vector<1x4x4x16xbf16>
    %20 = vector.shape_cast %19 : vector<1x4x4x16xbf16> to vector<4x4x16xbf16>
    %21 = arith.extf %20 : vector<4x4x16xbf16> to vector<4x4x16xf32>
    %c2 = arith.constant 2 : index
    %c0_14 = arith.constant 0 : index
    %22 = vector.load %arg2[%c2, %c0_14] : memref<9x16xbf16, #tpu.memory_space<vmem>>, vector<1x16xbf16>
    %23 = arith.extf %22 : vector<1x16xbf16> to vector<1x16xf32>
    %24 = vector.shape_cast %23 : vector<1x16xf32> to vector<1x1x16xf32>
    %25 = vector.broadcast %24 : vector<1x1x16xf32> to vector<4x4x16xf32>
    %26 = arith.mulf %21, %25 : vector<4x4x16xf32>
    %27 = arith.addf %18, %26 : vector<4x4x16xf32>
    %c2_15 = arith.constant 2 : index
    %c0_16 = arith.constant 0 : index
    %c0_17 = arith.constant 0 : index
    %c0_18 = arith.constant 0 : index
    %28 = vector.load %arg1[%c2_15, %c0_16, %c0_17, %c0_18] : memref<4x5x5x16xbf16, #tpu.memory_space<vmem>>, vector<1x4x4x16xbf16>
    %29 = vector.shape_cast %28 : vector<1x4x4x16xbf16> to vector<4x4x16xbf16>
    %30 = arith.extf %29 : vector<4x4x16xbf16> to vector<4x4x16xf32>
    %c3 = arith.constant 3 : index
    %c0_19 = arith.constant 0 : index
    %31 = vector.load %arg2[%c3, %c0_19] : memref<9x16xbf16, #tpu.memory_space<vmem>>, vector<1x16xbf16>
    %32 = arith.extf %31 : vector<1x16xbf16> to vector<1x16xf32>
    %33 = vector.shape_cast %32 : vector<1x16xf32> to vector<1x1x16xf32>
    %34 = vector.broadcast %33 : vector<1x1x16xf32> to vector<4x4x16xf32>
    %35 = arith.mulf %30, %34 : vector<4x4x16xf32>
    %36 = arith.addf %27, %35 : vector<4x4x16xf32>
    %c3_20 = arith.constant 3 : index
    %c0_21 = arith.constant 0 : index
    %c0_22 = arith.constant 0 : index
    %c0_23 = arith.constant 0 : index
    %37 = vector.load %arg1[%c3_20, %c0_21, %c0_22, %c0_23] : memref<4x5x5x16xbf16, #tpu.memory_space<vmem>>, vector<1x4x4x16xbf16>
    %38 = vector.shape_cast %37 : vector<1x4x4x16xbf16> to vector<4x4x16xbf16>
    %39 = arith.extf %38 : vector<4x4x16xbf16> to vector<4x4x16xf32>
    %c4 = arith.constant 4 : index
    %c0_24 = arith.constant 0 : index
    %40 = vector.load %arg2[%c4, %c0_24] : memref<9x16xbf16, #tpu.memory_space<vmem>>, vector<1x16xbf16>
    %41 = arith.extf %40 : vector<1x16xbf16> to vector<1x16xf32>
    %42 = vector.shape_cast %41 : vector<1x16xf32> to vector<1x1x16xf32>
    %43 = vector.broadcast %42 : vector<1x1x16xf32> to vector<4x4x16xf32>
    %44 = arith.mulf %39, %43 : vector<4x4x16xf32>
    %45 = arith.addf %36, %44 : vector<4x4x16xf32>
    %c2_25 = arith.constant 2 : index
    %c0_26 = arith.constant 0 : index
    %c1_27 = arith.constant 1 : index
    %c0_28 = arith.constant 0 : index
    %46 = vector.load %arg1[%c2_25, %c0_26, %c1_27, %c0_28] : memref<4x5x5x16xbf16, #tpu.memory_space<vmem>>, vector<1x4x4x16xbf16>
    %47 = vector.shape_cast %46 : vector<1x4x4x16xbf16> to vector<4x4x16xbf16>
    %48 = arith.extf %47 : vector<4x4x16xbf16> to vector<4x4x16xf32>
    %c5 = arith.constant 5 : index
    %c0_29 = arith.constant 0 : index
    %49 = vector.load %arg2[%c5, %c0_29] : memref<9x16xbf16, #tpu.memory_space<vmem>>, vector<1x16xbf16>
    %50 = arith.extf %49 : vector<1x16xbf16> to vector<1x16xf32>
    %51 = vector.shape_cast %50 : vector<1x16xf32> to vector<1x1x16xf32>
    %52 = vector.broadcast %51 : vector<1x1x16xf32> to vector<4x4x16xf32>
    %53 = arith.mulf %48, %52 : vector<4x4x16xf32>
    %54 = arith.addf %45, %53 : vector<4x4x16xf32>
    %c0_30 = arith.constant 0 : index
    %c1_31 = arith.constant 1 : index
    %c0_32 = arith.constant 0 : index
    %c0_33 = arith.constant 0 : index
    %55 = vector.load %arg1[%c0_30, %c1_31, %c0_32, %c0_33] : memref<4x5x5x16xbf16, #tpu.memory_space<vmem>>, vector<1x4x4x16xbf16>
    %56 = vector.shape_cast %55 : vector<1x4x4x16xbf16> to vector<4x4x16xbf16>
    %57 = arith.extf %56 : vector<4x4x16xbf16> to vector<4x4x16xf32>
    %c6 = arith.constant 6 : index
    %c0_34 = arith.constant 0 : index
    %58 = vector.load %arg2[%c6, %c0_34] : memref<9x16xbf16, #tpu.memory_space<vmem>>, vector<1x16xbf16>
    %59 = arith.extf %58 : vector<1x16xbf16> to vector<1x16xf32>
    %60 = vector.shape_cast %59 : vector<1x16xf32> to vector<1x1x16xf32>
    %61 = vector.broadcast %60 : vector<1x1x16xf32> to vector<4x4x16xf32>
    %62 = arith.mulf %57, %61 : vector<4x4x16xf32>
    %63 = arith.addf %54, %62 : vector<4x4x16xf32>
    %c1_35 = arith.constant 1 : index
    %c1_36 = arith.constant 1 : index
    %c0_37 = arith.constant 0 : index
    %c0_38 = arith.constant 0 : index
    %64 = vector.load %arg1[%c1_35, %c1_36, %c0_37, %c0_38] : memref<4x5x5x16xbf16, #tpu.memory_space<vmem>>, vector<1x4x4x16xbf16>
    %65 = vector.shape_cast %64 : vector<1x4x4x16xbf16> to vector<4x4x16xbf16>
    %66 = arith.extf %65 : vector<4x4x16xbf16> to vector<4x4x16xf32>
    %c7 = arith.constant 7 : index
    %c0_39 = arith.constant 0 : index
    %67 = vector.load %arg2[%c7, %c0_39] : memref<9x16xbf16, #tpu.memory_space<vmem>>, vector<1x16xbf16>
    %68 = arith.extf %67 : vector<1x16xbf16> to vector<1x16xf32>
    %69 = vector.shape_cast %68 : vector<1x16xf32> to vector<1x1x16xf32>
    %70 = vector.broadcast %69 : vector<1x1x16xf32> to vector<4x4x16xf32>
    %71 = arith.mulf %66, %70 : vector<4x4x16xf32>
    %72 = arith.addf %63, %71 : vector<4x4x16xf32>
    %c0_40 = arith.constant 0 : index
    %c1_41 = arith.constant 1 : index
    %c1_42 = arith.constant 1 : index
    %c0_43 = arith.constant 0 : index
    %73 = vector.load %arg1[%c0_40, %c1_41, %c1_42, %c0_43] : memref<4x5x5x16xbf16, #tpu.memory_space<vmem>>, vector<1x4x4x16xbf16>
    %74 = vector.shape_cast %73 : vector<1x4x4x16xbf16> to vector<4x4x16xbf16>
    %75 = arith.extf %74 : vector<4x4x16xbf16> to vector<4x4x16xf32>
    %c8 = arith.constant 8 : index
    %c0_44 = arith.constant 0 : index
    %76 = vector.load %arg2[%c8, %c0_44] : memref<9x16xbf16, #tpu.memory_space<vmem>>, vector<1x16xbf16>
    %77 = arith.extf %76 : vector<1x16xbf16> to vector<1x16xf32>
    %78 = vector.shape_cast %77 : vector<1x16xf32> to vector<1x1x16xf32>
    %79 = vector.broadcast %78 : vector<1x1x16xf32> to vector<4x4x16xf32>
    %80 = arith.mulf %75, %79 : vector<4x4x16xf32>
    %81 = arith.addf %72, %80 : vector<4x4x16xf32>
    %c0_45 = arith.constant 0 : index
    %c0_46 = arith.constant 0 : index
    %82 = vector.load %arg3[%c0_45, %c0_46] : memref<1x16xf32, #tpu.memory_space<vmem>>, vector<1x16xf32>
    %83 = vector.shape_cast %82 : vector<1x16xf32> to vector<1x1x16xf32>
    %84 = vector.broadcast %83 : vector<1x1x16xf32> to vector<4x4x16xf32>
    %85 = arith.addf %81, %84 : vector<4x4x16xf32>
    %cst_47 = arith.constant 0.000000e+00 : f32
    %86 = vector.broadcast %cst_47 : f32 to vector<4x4x16xf32>
    %87 = arith.maximumf %85, %86 : vector<4x4x16xf32>
    %88 = arith.truncf %87 : vector<4x4x16xf32> to vector<4x4x16xbf16>
    %c0_48 = arith.constant 0 : index
    %c0_49 = arith.constant 0 : index
    %c0_50 = arith.constant 0 : index
    %c0_51 = arith.constant 0 : index
    %89 = vector.load %arg4[%c0_48, %c0_49, %c0_50, %c0_51] : memref<1x4x4x16xbf16, #tpu.memory_space<vmem>>, vector<1x4x4x16xbf16>
    %90 = vector.shape_cast %89 : vector<1x4x4x16xbf16> to vector<4x4x16xbf16>
    %91 = vector.shape_cast %88 : vector<4x4x16xbf16> to vector<1x4x4x16xbf16>
    tpu.vector_store %arg4[%c0_48, %c0_49, %c0_50, %c0_51], %91 {strides = array<i32>} : memref<1x4x4x16xbf16, #tpu.memory_space<vmem>>, vector<1x4x4x16xbf16>,
    %cst_52 = arith.constant dense<0.000000e+00> : vector<4x16xf32>
    %92 = vector.multi_reduction <add>, %87, %cst_52 [0] : vector<4x4x16xf32> to vector<4x16xf32>
    %cst_53 = arith.constant dense<0.000000e+00> : vector<16xf32>
    %93 = vector.multi_reduction <add>, %92, %cst_53 [0] : vector<4x16xf32> to vector<16xf32>
    %94 = vector.shape_cast %93 : vector<16xf32> to vector<1x16xf32>
    %cst_54 = arith.constant 6.250000e-02 : f32
    %95 = vector.broadcast %cst_54 : f32 to vector<1x16xf32>
    %96 = arith.mulf %94, %95 : vector<1x16xf32>
    %c0_55 = arith.constant 0 : index
    %c0_56 = arith.constant 0 : index
    %c0_57 = arith.constant 0 : index
    %97 = vector.load %arg5[%c0_55, %c0_56, %c0_57] : memref<1x1x16xf32, #tpu.memory_space<vmem>>, vector<1x1x16xf32>
    %98 = vector.shape_cast %97 : vector<1x1x16xf32> to vector<1x16xf32>
    %99 = vector.shape_cast %96 : vector<1x16xf32> to vector<1x1x16xf32>
    tpu.vector_store %arg5[%c0_55, %c0_56, %c0_57], %99 {strides = array<i32>} : memref<1x1x16xf32, #tpu.memory_space<vmem>>, vector<1x1x16xf32>,
    return
  }
  func.func @transform_0(%arg0: i32) -> (i32, i32, i32, i32) {
    %c0_i32 = arith.constant 0 : i32
    %c0_i32_0 = arith.constant 0 : i32
    %c0_i32_1 = arith.constant 0 : i32
    %c0_i32_2 = arith.constant 0 : i32
    return %arg0, %c0_i32, %c0_i32_0, %c0_i32_1 : i32, i32, i32, i32
  }
  func.func @transform_1(%arg0: i32) -> (i32, i32) {
    %c0_i32 = arith.constant 0 : i32
    %c0_i32_0 = arith.constant 0 : i32
    %c0_i32_1 = arith.constant 0 : i32
    return %c0_i32, %c0_i32_0 : i32, i32
  }
  func.func @transform_2(%arg0: i32) -> (i32, i32) {
    %c0_i32 = arith.constant 0 : i32
    %c0_i32_0 = arith.constant 0 : i32
    %c0_i32_1 = arith.constant 0 : i32
    return %c0_i32, %c0_i32_0 : i32, i32
  }
  func.func @transform_3(%arg0: i32) -> (i32, i32, i32, i32) {
    %c0_i32 = arith.constant 0 : i32
    %c0_i32_0 = arith.constant 0 : i32
    %c0_i32_1 = arith.constant 0 : i32
    %c0_i32_2 = arith.constant 0 : i32
    return %arg0, %c0_i32, %c0_i32_0, %c0_i32_1 : i32, i32, i32, i32
  }
  func.func @transform_4(%arg0: i32) -> (i32, i32, i32) {
    %c0_i32 = arith.constant 0 : i32
    %c0_i32_0 = arith.constant 0 : i32
    %c0_i32_1 = arith.constant 0 : i32
    return %arg0, %c0_i32, %c0_i32_0 : i32, i32, i32
  }
}

module attributes {stable_mosaic.version = 11 : i64} {
  func.func @_pw_se_kernel(%arg0: i32, %arg1: i32, %arg2: memref<1x16x16xbf16, #tpu.memory_space<vmem>>, %arg3: memref<16x16xbf16, #tpu.memory_space<vmem>>, %arg4: memref<1x16xf32, #tpu.memory_space<vmem>>, %arg5: memref<1x1x16xf32, #tpu.memory_space<vmem>>, %arg6: memref<1x16x16xbf16, #tpu.memory_space<vmem>>) attributes {dimension_semantics = [#tpu.dimension_semantics<parallel>, #tpu.dimension_semantics<parallel>], iteration_bounds = array<i64: 2, 1>, scalar_prefetch = 0 : i64, scratch_operands = 0 : i64, tpu.core_type = #tpu.core_type<tc>, window_params = [{transform_indices = @transform_0, window_bounds = array<i64: 1, 16, 16>}, {pipeline_mode = #tpu.pipeline_mode<synchronous>, transform_indices = @transform_1, window_bounds = array<i64: 16, 16>}, {pipeline_mode = #tpu.pipeline_mode<synchronous>, transform_indices = @transform_2, window_bounds = array<i64: 1, 16>}, {transform_indices = @transform_3, window_bounds = array<i64: 1, 1, 16>}, {transform_indices = @transform_4, window_bounds = array<i64: 1, 16, 16>}]} {
    %c0 = arith.constant 0 : index
    %c0_0 = arith.constant 0 : index
    %c0_1 = arith.constant 0 : index
    %0 = vector.load %arg2[%c0, %c0_0, %c0_1] : memref<1x16x16xbf16, #tpu.memory_space<vmem>>, vector<1x16x16xbf16>
    %1 = vector.shape_cast %0 : vector<1x16x16xbf16> to vector<16x16xbf16>
    %2 = arith.extf %1 : vector<16x16xbf16> to vector<16x16xf32>
    %c0_2 = arith.constant 0 : index
    %c0_3 = arith.constant 0 : index
    %c0_4 = arith.constant 0 : index
    %3 = vector.load %arg5[%c0_2, %c0_3, %c0_4] : memref<1x1x16xf32, #tpu.memory_space<vmem>>, vector<1x1x16xf32>
    %4 = vector.shape_cast %3 : vector<1x1x16xf32> to vector<1x16xf32>
    %5 = vector.broadcast %4 : vector<1x16xf32> to vector<16x16xf32>
    %6 = arith.mulf %2, %5 : vector<16x16xf32>
    %7 = arith.truncf %6 : vector<16x16xf32> to vector<16x16xbf16>
    %c0_5 = arith.constant 0 : index
    %c0_6 = arith.constant 0 : index
    %8 = vector.load %arg3[%c0_5, %c0_6] : memref<16x16xbf16, #tpu.memory_space<vmem>>, vector<16x16xbf16>
    %cst = arith.constant dense<0.000000e+00> : vector<16x16xf32>
    %9 = tpu.matmul %7, %8, %cst {dimension_numbers = #tpu.dot_dimension_numbers<[1], [0], [0], [1], [0, 0, 1, 1], [], []>} : vector<16x16xbf16>, vector<16x16xbf16>, vector<16x16xf32> -> vector<16x16xf32>
    %c0_7 = arith.constant 0 : index
    %c0_8 = arith.constant 0 : index
    %10 = vector.load %arg4[%c0_7, %c0_8] : memref<1x16xf32, #tpu.memory_space<vmem>>, vector<1x16xf32>
    %11 = vector.broadcast %10 : vector<1x16xf32> to vector<16x16xf32>
    %12 = arith.addf %9, %11 : vector<16x16xf32>
    %13 = arith.truncf %12 : vector<16x16xf32> to vector<16x16xbf16>
    %c0_9 = arith.constant 0 : index
    %c0_10 = arith.constant 0 : index
    %c0_11 = arith.constant 0 : index
    %14 = vector.load %arg6[%c0_9, %c0_10, %c0_11] : memref<1x16x16xbf16, #tpu.memory_space<vmem>>, vector<1x16x16xbf16>
    %15 = vector.shape_cast %14 : vector<1x16x16xbf16> to vector<16x16xbf16>
    %16 = vector.shape_cast %13 : vector<16x16xbf16> to vector<1x16x16xbf16>
    tpu.vector_store %arg6[%c0_9, %c0_10, %c0_11], %16 {strides = array<i32>} : memref<1x16x16xbf16, #tpu.memory_space<vmem>>, vector<1x16x16xbf16>,
    return
  }
  func.func @transform_0(%arg0: i32, %arg1: i32) -> (i32, i32, i32) {
    %c0_i32 = arith.constant 0 : i32
    %c0_i32_0 = arith.constant 0 : i32
    return %arg0, %arg1, %c0_i32 : i32, i32, i32
  }
  func.func @transform_1(%arg0: i32, %arg1: i32) -> (i32, i32) {
    %c0_i32 = arith.constant 0 : i32
    %c0_i32_0 = arith.constant 0 : i32
    %c0_i32_1 = arith.constant 0 : i32
    return %c0_i32, %c0_i32_0 : i32, i32
  }
  func.func @transform_2(%arg0: i32, %arg1: i32) -> (i32, i32) {
    %c0_i32 = arith.constant 0 : i32
    %c0_i32_0 = arith.constant 0 : i32
    %c0_i32_1 = arith.constant 0 : i32
    return %c0_i32, %c0_i32_0 : i32, i32
  }
  func.func @transform_3(%arg0: i32, %arg1: i32) -> (i32, i32, i32) {
    %c0_i32 = arith.constant 0 : i32
    %c0_i32_0 = arith.constant 0 : i32
    %c0_i32_1 = arith.constant 0 : i32
    return %arg0, %c0_i32, %c0_i32_0 : i32, i32, i32
  }
  func.func @transform_4(%arg0: i32, %arg1: i32) -> (i32, i32, i32) {
    %c0_i32 = arith.constant 0 : i32
    %c0_i32_0 = arith.constant 0 : i32
    return %arg0, %arg1, %c0_i32 : i32, i32, i32
  }
}

module attributes {stable_mosaic.version = 11 : i64} {
  func.func @_pw_flat_kernel(%arg0: i32, %arg1: memref<32x16xbf16, #tpu.memory_space<vmem>>, %arg2: memref<16x72xbf16, #tpu.memory_space<vmem>>, %arg3: memref<1x72xf32, #tpu.memory_space<vmem>>, %arg4: memref<32x72xbf16, #tpu.memory_space<vmem>>) attributes {dimension_semantics = [#tpu.dimension_semantics<parallel>], iteration_bounds = array<i64: 1>, scalar_prefetch = 0 : i64, scratch_operands = 0 : i64, tpu.core_type = #tpu.core_type<tc>, window_params = [{transform_indices = @transform_0, window_bounds = array<i64: 32, 16>}, {pipeline_mode = #tpu.pipeline_mode<synchronous>, transform_indices = @transform_1, window_bounds = array<i64: 16, 72>}, {pipeline_mode = #tpu.pipeline_mode<synchronous>, transform_indices = @transform_2, window_bounds = array<i64: 1, 72>}, {transform_indices = @transform_3, window_bounds = array<i64: 32, 72>}]} {
    %c0 = arith.constant 0 : index
    %c0_0 = arith.constant 0 : index
    %0 = vector.load %arg1[%c0, %c0_0] : memref<32x16xbf16, #tpu.memory_space<vmem>>, vector<32x16xbf16>
    %c0_1 = arith.constant 0 : index
    %c0_2 = arith.constant 0 : index
    %1 = vector.load %arg2[%c0_1, %c0_2] : memref<16x72xbf16, #tpu.memory_space<vmem>>, vector<16x72xbf16>
    %cst = arith.constant dense<0.000000e+00> : vector<32x72xf32>
    %2 = tpu.matmul %0, %1, %cst {dimension_numbers = #tpu.dot_dimension_numbers<[1], [0], [0], [1], [0, 0, 1, 1], [], []>} : vector<32x16xbf16>, vector<16x72xbf16>, vector<32x72xf32> -> vector<32x72xf32>
    %c0_3 = arith.constant 0 : index
    %c0_4 = arith.constant 0 : index
    %3 = vector.load %arg3[%c0_3, %c0_4] : memref<1x72xf32, #tpu.memory_space<vmem>>, vector<1x72xf32>
    %4 = vector.broadcast %3 : vector<1x72xf32> to vector<32x72xf32>
    %5 = arith.addf %2, %4 : vector<32x72xf32>
    %cst_5 = arith.constant 0.000000e+00 : f32
    %6 = vector.broadcast %cst_5 : f32 to vector<32x72xf32>
    %7 = arith.maximumf %5, %6 : vector<32x72xf32>
    %8 = arith.truncf %7 : vector<32x72xf32> to vector<32x72xbf16>
    %c0_6 = arith.constant 0 : index
    %c0_7 = arith.constant 0 : index
    %9 = vector.load %arg4[%c0_6, %c0_7] : memref<32x72xbf16, #tpu.memory_space<vmem>>, vector<32x72xbf16>
    tpu.vector_store %arg4[%c0_6, %c0_7], %8 {strides = array<i32>} : memref<32x72xbf16, #tpu.memory_space<vmem>>, vector<32x72xbf16>,
    return
  }
  func.func @transform_0(%arg0: i32) -> (i32, i32) {
    %c0_i32 = arith.constant 0 : i32
    %c0_i32_0 = arith.constant 0 : i32
    return %arg0, %c0_i32 : i32, i32
  }
  func.func @transform_1(%arg0: i32) -> (i32, i32) {
    %c0_i32 = arith.constant 0 : i32
    %c0_i32_0 = arith.constant 0 : i32
    %c0_i32_1 = arith.constant 0 : i32
    return %c0_i32, %c0_i32_0 : i32, i32
  }
  func.func @transform_2(%arg0: i32) -> (i32, i32) {
    %c0_i32 = arith.constant 0 : i32
    %c0_i32_0 = arith.constant 0 : i32
    %c0_i32_1 = arith.constant 0 : i32
    return %c0_i32, %c0_i32_0 : i32, i32
  }
  func.func @transform_3(%arg0: i32) -> (i32, i32) {
    %c0_i32 = arith.constant 0 : i32
    %c0_i32_0 = arith.constant 0 : i32
    return %arg0, %c0_i32 : i32, i32
  }
}

module attributes {stable_mosaic.version = 11 : i64} {
  func.func @_dw_conv_kernel(%arg0: i32, %arg1: memref<4x3x3x72xbf16, #tpu.memory_space<vmem>>, %arg2: memref<9x72xbf16, #tpu.memory_space<vmem>>, %arg3: memref<1x72xf32, #tpu.memory_space<vmem>>, %arg4: memref<1x2x2x72xbf16, #tpu.memory_space<vmem>>) attributes {dimension_semantics = [#tpu.dimension_semantics<parallel>], iteration_bounds = array<i64: 2>, scalar_prefetch = 0 : i64, scratch_operands = 0 : i64, tpu.core_type = #tpu.core_type<tc>, window_params = [{transform_indices = @transform_0, window_bounds = array<i64: 4, 3, 3, 72>}, {pipeline_mode = #tpu.pipeline_mode<synchronous>, transform_indices = @transform_1, window_bounds = array<i64: 9, 72>}, {pipeline_mode = #tpu.pipeline_mode<synchronous>, transform_indices = @transform_2, window_bounds = array<i64: 1, 72>}, {transform_indices = @transform_3, window_bounds = array<i64: 1, 2, 2, 72>}]} {
    %cst = arith.constant 0.000000e+00 : f32
    %0 = vector.broadcast %cst : f32 to vector<2x2x72xf32>
    %c0 = arith.constant 0 : index
    %c0_0 = arith.constant 0 : index
    %c0_1 = arith.constant 0 : index
    %c0_2 = arith.constant 0 : index
    %1 = vector.load %arg1[%c0, %c0_0, %c0_1, %c0_2] : memref<4x3x3x72xbf16, #tpu.memory_space<vmem>>, vector<1x2x2x72xbf16>
    %2 = vector.shape_cast %1 : vector<1x2x2x72xbf16> to vector<2x2x72xbf16>
    %3 = arith.extf %2 : vector<2x2x72xbf16> to vector<2x2x72xf32>
    %c0_3 = arith.constant 0 : index
    %c0_4 = arith.constant 0 : index
    %4 = vector.load %arg2[%c0_3, %c0_4] : memref<9x72xbf16, #tpu.memory_space<vmem>>, vector<1x72xbf16>
    %5 = arith.extf %4 : vector<1x72xbf16> to vector<1x72xf32>
    %6 = vector.shape_cast %5 : vector<1x72xf32> to vector<1x1x72xf32>
    %7 = vector.broadcast %6 : vector<1x1x72xf32> to vector<2x2x72xf32>
    %8 = arith.mulf %3, %7 : vector<2x2x72xf32>
    %9 = arith.addf %0, %8 : vector<2x2x72xf32>
    %c1 = arith.constant 1 : index
    %c0_5 = arith.constant 0 : index
    %c0_6 = arith.constant 0 : index
    %c0_7 = arith.constant 0 : index
    %10 = vector.load %arg1[%c1, %c0_5, %c0_6, %c0_7] : memref<4x3x3x72xbf16, #tpu.memory_space<vmem>>, vector<1x2x2x72xbf16>
    %11 = vector.shape_cast %10 : vector<1x2x2x72xbf16> to vector<2x2x72xbf16>
    %12 = arith.extf %11 : vector<2x2x72xbf16> to vector<2x2x72xf32>
    %c1_8 = arith.constant 1 : index
    %c0_9 = arith.constant 0 : index
    %13 = vector.load %arg2[%c1_8, %c0_9] : memref<9x72xbf16, #tpu.memory_space<vmem>>, vector<1x72xbf16>
    %14 = arith.extf %13 : vector<1x72xbf16> to vector<1x72xf32>
    %15 = vector.shape_cast %14 : vector<1x72xf32> to vector<1x1x72xf32>
    %16 = vector.broadcast %15 : vector<1x1x72xf32> to vector<2x2x72xf32>
    %17 = arith.mulf %12, %16 : vector<2x2x72xf32>
    %18 = arith.addf %9, %17 : vector<2x2x72xf32>
    %c0_10 = arith.constant 0 : index
    %c0_11 = arith.constant 0 : index
    %c1_12 = arith.constant 1 : index
    %c0_13 = arith.constant 0 : index
    %19 = vector.load %arg1[%c0_10, %c0_11, %c1_12, %c0_13] : memref<4x3x3x72xbf16, #tpu.memory_space<vmem>>, vector<1x2x2x72xbf16>
    %20 = vector.shape_cast %19 : vector<1x2x2x72xbf16> to vector<2x2x72xbf16>
    %21 = arith.extf %20 : vector<2x2x72xbf16> to vector<2x2x72xf32>
    %c2 = arith.constant 2 : index
    %c0_14 = arith.constant 0 : index
    %22 = vector.load %arg2[%c2, %c0_14] : memref<9x72xbf16, #tpu.memory_space<vmem>>, vector<1x72xbf16>
    %23 = arith.extf %22 : vector<1x72xbf16> to vector<1x72xf32>
    %24 = vector.shape_cast %23 : vector<1x72xf32> to vector<1x1x72xf32>
    %25 = vector.broadcast %24 : vector<1x1x72xf32> to vector<2x2x72xf32>
    %26 = arith.mulf %21, %25 : vector<2x2x72xf32>
    %27 = arith.addf %18, %26 : vector<2x2x72xf32>
    %c2_15 = arith.constant 2 : index
    %c0_16 = arith.constant 0 : index
    %c0_17 = arith.constant 0 : index
    %c0_18 = arith.constant 0 : index
    %28 = vector.load %arg1[%c2_15, %c0_16, %c0_17, %c0_18] : memref<4x3x3x72xbf16, #tpu.memory_space<vmem>>, vector<1x2x2x72xbf16>
    %29 = vector.shape_cast %28 : vector<1x2x2x72xbf16> to vector<2x2x72xbf16>
    %30 = arith.extf %29 : vector<2x2x72xbf16> to vector<2x2x72xf32>
    %c3 = arith.constant 3 : index
    %c0_19 = arith.constant 0 : index
    %31 = vector.load %arg2[%c3, %c0_19] : memref<9x72xbf16, #tpu.memory_space<vmem>>, vector<1x72xbf16>
    %32 = arith.extf %31 : vector<1x72xbf16> to vector<1x72xf32>
    %33 = vector.shape_cast %32 : vector<1x72xf32> to vector<1x1x72xf32>
    %34 = vector.broadcast %33 : vector<1x1x72xf32> to vector<2x2x72xf32>
    %35 = arith.mulf %30, %34 : vector<2x2x72xf32>
    %36 = arith.addf %27, %35 : vector<2x2x72xf32>
    %c3_20 = arith.constant 3 : index
    %c0_21 = arith.constant 0 : index
    %c0_22 = arith.constant 0 : index
    %c0_23 = arith.constant 0 : index
    %37 = vector.load %arg1[%c3_20, %c0_21, %c0_22, %c0_23] : memref<4x3x3x72xbf16, #tpu.memory_space<vmem>>, vector<1x2x2x72xbf16>
    %38 = vector.shape_cast %37 : vector<1x2x2x72xbf16> to vector<2x2x72xbf16>
    %39 = arith.extf %38 : vector<2x2x72xbf16> to vector<2x2x72xf32>
    %c4 = arith.constant 4 : index
    %c0_24 = arith.constant 0 : index
    %40 = vector.load %arg2[%c4, %c0_24] : memref<9x72xbf16, #tpu.memory_space<vmem>>, vector<1x72xbf16>
    %41 = arith.extf %40 : vector<1x72xbf16> to vector<1x72xf32>
    %42 = vector.shape_cast %41 : vector<1x72xf32> to vector<1x1x72xf32>
    %43 = vector.broadcast %42 : vector<1x1x72xf32> to vector<2x2x72xf32>
    %44 = arith.mulf %39, %43 : vector<2x2x72xf32>
    %45 = arith.addf %36, %44 : vector<2x2x72xf32>
    %c2_25 = arith.constant 2 : index
    %c0_26 = arith.constant 0 : index
    %c1_27 = arith.constant 1 : index
    %c0_28 = arith.constant 0 : index
    %46 = vector.load %arg1[%c2_25, %c0_26, %c1_27, %c0_28] : memref<4x3x3x72xbf16, #tpu.memory_space<vmem>>, vector<1x2x2x72xbf16>
    %47 = vector.shape_cast %46 : vector<1x2x2x72xbf16> to vector<2x2x72xbf16>
    %48 = arith.extf %47 : vector<2x2x72xbf16> to vector<2x2x72xf32>
    %c5 = arith.constant 5 : index
    %c0_29 = arith.constant 0 : index
    %49 = vector.load %arg2[%c5, %c0_29] : memref<9x72xbf16, #tpu.memory_space<vmem>>, vector<1x72xbf16>
    %50 = arith.extf %49 : vector<1x72xbf16> to vector<1x72xf32>
    %51 = vector.shape_cast %50 : vector<1x72xf32> to vector<1x1x72xf32>
    %52 = vector.broadcast %51 : vector<1x1x72xf32> to vector<2x2x72xf32>
    %53 = arith.mulf %48, %52 : vector<2x2x72xf32>
    %54 = arith.addf %45, %53 : vector<2x2x72xf32>
    %c0_30 = arith.constant 0 : index
    %c1_31 = arith.constant 1 : index
    %c0_32 = arith.constant 0 : index
    %c0_33 = arith.constant 0 : index
    %55 = vector.load %arg1[%c0_30, %c1_31, %c0_32, %c0_33] : memref<4x3x3x72xbf16, #tpu.memory_space<vmem>>, vector<1x2x2x72xbf16>
    %56 = vector.shape_cast %55 : vector<1x2x2x72xbf16> to vector<2x2x72xbf16>
    %57 = arith.extf %56 : vector<2x2x72xbf16> to vector<2x2x72xf32>
    %c6 = arith.constant 6 : index
    %c0_34 = arith.constant 0 : index
    %58 = vector.load %arg2[%c6, %c0_34] : memref<9x72xbf16, #tpu.memory_space<vmem>>, vector<1x72xbf16>
    %59 = arith.extf %58 : vector<1x72xbf16> to vector<1x72xf32>
    %60 = vector.shape_cast %59 : vector<1x72xf32> to vector<1x1x72xf32>
    %61 = vector.broadcast %60 : vector<1x1x72xf32> to vector<2x2x72xf32>
    %62 = arith.mulf %57, %61 : vector<2x2x72xf32>
    %63 = arith.addf %54, %62 : vector<2x2x72xf32>
    %c1_35 = arith.constant 1 : index
    %c1_36 = arith.constant 1 : index
    %c0_37 = arith.constant 0 : index
    %c0_38 = arith.constant 0 : index
    %64 = vector.load %arg1[%c1_35, %c1_36, %c0_37, %c0_38] : memref<4x3x3x72xbf16, #tpu.memory_space<vmem>>, vector<1x2x2x72xbf16>
    %65 = vector.shape_cast %64 : vector<1x2x2x72xbf16> to vector<2x2x72xbf16>
    %66 = arith.extf %65 : vector<2x2x72xbf16> to vector<2x2x72xf32>
    %c7 = arith.constant 7 : index
    %c0_39 = arith.constant 0 : index
    %67 = vector.load %arg2[%c7, %c0_39] : memref<9x72xbf16, #tpu.memory_space<vmem>>, vector<1x72xbf16>
    %68 = arith.extf %67 : vector<1x72xbf16> to vector<1x72xf32>
    %69 = vector.shape_cast %68 : vector<1x72xf32> to vector<1x1x72xf32>
    %70 = vector.broadcast %69 : vector<1x1x72xf32> to vector<2x2x72xf32>
    %71 = arith.mulf %66, %70 : vector<2x2x72xf32>
    %72 = arith.addf %63, %71 : vector<2x2x72xf32>
    %c0_40 = arith.constant 0 : index
    %c1_41 = arith.constant 1 : index
    %c1_42 = arith.constant 1 : index
    %c0_43 = arith.constant 0 : index
    %73 = vector.load %arg1[%c0_40, %c1_41, %c1_42, %c0_43] : memref<4x3x3x72xbf16, #tpu.memory_space<vmem>>, vector<1x2x2x72xbf16>
    %74 = vector.shape_cast %73 : vector<1x2x2x72xbf16> to vector<2x2x72xbf16>
    %75 = arith.extf %74 : vector<2x2x72xbf16> to vector<2x2x72xf32>
    %c8 = arith.constant 8 : index
    %c0_44 = arith.constant 0 : index
    %76 = vector.load %arg2[%c8, %c0_44] : memref<9x72xbf16, #tpu.memory_space<vmem>>, vector<1x72xbf16>
    %77 = arith.extf %76 : vector<1x72xbf16> to vector<1x72xf32>
    %78 = vector.shape_cast %77 : vector<1x72xf32> to vector<1x1x72xf32>
    %79 = vector.broadcast %78 : vector<1x1x72xf32> to vector<2x2x72xf32>
    %80 = arith.mulf %75, %79 : vector<2x2x72xf32>
    %81 = arith.addf %72, %80 : vector<2x2x72xf32>
    %c0_45 = arith.constant 0 : index
    %c0_46 = arith.constant 0 : index
    %82 = vector.load %arg3[%c0_45, %c0_46] : memref<1x72xf32, #tpu.memory_space<vmem>>, vector<1x72xf32>
    %83 = vector.shape_cast %82 : vector<1x72xf32> to vector<1x1x72xf32>
    %84 = vector.broadcast %83 : vector<1x1x72xf32> to vector<2x2x72xf32>
    %85 = arith.addf %81, %84 : vector<2x2x72xf32>
    %cst_47 = arith.constant 0.000000e+00 : f32
    %86 = vector.broadcast %cst_47 : f32 to vector<2x2x72xf32>
    %87 = arith.maximumf %85, %86 : vector<2x2x72xf32>
    %88 = arith.truncf %87 : vector<2x2x72xf32> to vector<2x2x72xbf16>
    %c0_48 = arith.constant 0 : index
    %c0_49 = arith.constant 0 : index
    %c0_50 = arith.constant 0 : index
    %c0_51 = arith.constant 0 : index
    %89 = vector.load %arg4[%c0_48, %c0_49, %c0_50, %c0_51] : memref<1x2x2x72xbf16, #tpu.memory_space<vmem>>, vector<1x2x2x72xbf16>
    %90 = vector.shape_cast %89 : vector<1x2x2x72xbf16> to vector<2x2x72xbf16>
    %91 = vector.shape_cast %88 : vector<2x2x72xbf16> to vector<1x2x2x72xbf16>
    tpu.vector_store %arg4[%c0_48, %c0_49, %c0_50, %c0_51], %91 {strides = array<i32>} : memref<1x2x2x72xbf16, #tpu.memory_space<vmem>>, vector<1x2x2x72xbf16>,
    return
  }
  func.func @transform_0(%arg0: i32) -> (i32, i32, i32, i32) {
    %c0_i32 = arith.constant 0 : i32
    %c0_i32_0 = arith.constant 0 : i32
    %c0_i32_1 = arith.constant 0 : i32
    %c0_i32_2 = arith.constant 0 : i32
    return %arg0, %c0_i32, %c0_i32_0, %c0_i32_1 : i32, i32, i32, i32
  }
  func.func @transform_1(%arg0: i32) -> (i32, i32) {
    %c0_i32 = arith.constant 0 : i32
    %c0_i32_0 = arith.constant 0 : i32
    %c0_i32_1 = arith.constant 0 : i32
    return %c0_i32, %c0_i32_0 : i32, i32
  }
  func.func @transform_2(%arg0: i32) -> (i32, i32) {
    %c0_i32 = arith.constant 0 : i32
    %c0_i32_0 = arith.constant 0 : i32
    %c0_i32_1 = arith.constant 0 : i32
    return %c0_i32, %c0_i32_0 : i32, i32
  }
  func.func @transform_3(%arg0: i32) -> (i32, i32, i32, i32) {
    %c0_i32 = arith.constant 0 : i32
    %c0_i32_0 = arith.constant 0 : i32
    %c0_i32_1 = arith.constant 0 : i32
    %c0_i32_2 = arith.constant 0 : i32
    return %arg0, %c0_i32, %c0_i32_0, %c0_i32_1 : i32, i32, i32, i32
  }
}

module attributes {stable_mosaic.version = 11 : i64} {
  func.func @_pw_flat_kernel(%arg0: i32, %arg1: memref<8x24xbf16, #tpu.memory_space<vmem>>, %arg2: memref<24x88xbf16, #tpu.memory_space<vmem>>, %arg3: memref<1x88xf32, #tpu.memory_space<vmem>>, %arg4: memref<8x88xbf16, #tpu.memory_space<vmem>>) attributes {dimension_semantics = [#tpu.dimension_semantics<parallel>], iteration_bounds = array<i64: 1>, scalar_prefetch = 0 : i64, scratch_operands = 0 : i64, tpu.core_type = #tpu.core_type<tc>, window_params = [{transform_indices = @transform_0, window_bounds = array<i64: 8, 24>}, {pipeline_mode = #tpu.pipeline_mode<synchronous>, transform_indices = @transform_1, window_bounds = array<i64: 24, 88>}, {pipeline_mode = #tpu.pipeline_mode<synchronous>, transform_indices = @transform_2, window_bounds = array<i64: 1, 88>}, {transform_indices = @transform_3, window_bounds = array<i64: 8, 88>}]} {
    %c0 = arith.constant 0 : index
    %c0_0 = arith.constant 0 : index
    %0 = vector.load %arg1[%c0, %c0_0] : memref<8x24xbf16, #tpu.memory_space<vmem>>, vector<8x24xbf16>
    %c0_1 = arith.constant 0 : index
    %c0_2 = arith.constant 0 : index
    %1 = vector.load %arg2[%c0_1, %c0_2] : memref<24x88xbf16, #tpu.memory_space<vmem>>, vector<24x88xbf16>
    %cst = arith.constant dense<0.000000e+00> : vector<8x88xf32>
    %2 = tpu.matmul %0, %1, %cst {dimension_numbers = #tpu.dot_dimension_numbers<[1], [0], [0], [1], [0, 0, 1, 1], [], []>} : vector<8x24xbf16>, vector<24x88xbf16>, vector<8x88xf32> -> vector<8x88xf32>
    %c0_3 = arith.constant 0 : index
    %c0_4 = arith.constant 0 : index
    %3 = vector.load %arg3[%c0_3, %c0_4] : memref<1x88xf32, #tpu.memory_space<vmem>>, vector<1x88xf32>
    %4 = vector.broadcast %3 : vector<1x88xf32> to vector<8x88xf32>
    %5 = arith.addf %2, %4 : vector<8x88xf32>
    %cst_5 = arith.constant 0.000000e+00 : f32
    %6 = vector.broadcast %cst_5 : f32 to vector<8x88xf32>
    %7 = arith.maximumf %5, %6 : vector<8x88xf32>
    %8 = arith.truncf %7 : vector<8x88xf32> to vector<8x88xbf16>
    %c0_6 = arith.constant 0 : index
    %c0_7 = arith.constant 0 : index
    %9 = vector.load %arg4[%c0_6, %c0_7] : memref<8x88xbf16, #tpu.memory_space<vmem>>, vector<8x88xbf16>
    tpu.vector_store %arg4[%c0_6, %c0_7], %8 {strides = array<i32>} : memref<8x88xbf16, #tpu.memory_space<vmem>>, vector<8x88xbf16>,
    return
  }
  func.func @transform_0(%arg0: i32) -> (i32, i32) {
    %c0_i32 = arith.constant 0 : i32
    %c0_i32_0 = arith.constant 0 : i32
    return %arg0, %c0_i32 : i32, i32
  }
  func.func @transform_1(%arg0: i32) -> (i32, i32) {
    %c0_i32 = arith.constant 0 : i32
    %c0_i32_0 = arith.constant 0 : i32
    %c0_i32_1 = arith.constant 0 : i32
    return %c0_i32, %c0_i32_0 : i32, i32
  }
  func.func @transform_2(%arg0: i32) -> (i32, i32) {
    %c0_i32 = arith.constant 0 : i32
    %c0_i32_0 = arith.constant 0 : i32
    %c0_i32_1 = arith.constant 0 : i32
    return %c0_i32, %c0_i32_0 : i32, i32
  }
  func.func @transform_3(%arg0: i32) -> (i32, i32) {
    %c0_i32 = arith.constant 0 : i32
    %c0_i32_0 = arith.constant 0 : i32
    return %arg0, %c0_i32 : i32, i32
  }
}

module attributes {stable_mosaic.version = 11 : i64} {
  func.func @_pw_flat_kernel(%arg0: i32, %arg1: memref<8x72xbf16, #tpu.memory_space<vmem>>, %arg2: memref<72x24xbf16, #tpu.memory_space<vmem>>, %arg3: memref<1x24xf32, #tpu.memory_space<vmem>>, %arg4: memref<8x24xbf16, #tpu.memory_space<vmem>>) attributes {dimension_semantics = [#tpu.dimension_semantics<parallel>], iteration_bounds = array<i64: 1>, scalar_prefetch = 0 : i64, scratch_operands = 0 : i64, tpu.core_type = #tpu.core_type<tc>, window_params = [{transform_indices = @transform_0, window_bounds = array<i64: 8, 72>}, {pipeline_mode = #tpu.pipeline_mode<synchronous>, transform_indices = @transform_1, window_bounds = array<i64: 72, 24>}, {pipeline_mode = #tpu.pipeline_mode<synchronous>, transform_indices = @transform_2, window_bounds = array<i64: 1, 24>}, {transform_indices = @transform_3, window_bounds = array<i64: 8, 24>}]} {
    %c0 = arith.constant 0 : index
    %c0_0 = arith.constant 0 : index
    %0 = vector.load %arg1[%c0, %c0_0] : memref<8x72xbf16, #tpu.memory_space<vmem>>, vector<8x72xbf16>
    %c0_1 = arith.constant 0 : index
    %c0_2 = arith.constant 0 : index
    %1 = vector.load %arg2[%c0_1, %c0_2] : memref<72x24xbf16, #tpu.memory_space<vmem>>, vector<72x24xbf16>
    %cst = arith.constant dense<0.000000e+00> : vector<8x24xf32>
    %2 = tpu.matmul %0, %1, %cst {dimension_numbers = #tpu.dot_dimension_numbers<[1], [0], [0], [1], [0, 0, 1, 1], [], []>} : vector<8x72xbf16>, vector<72x24xbf16>, vector<8x24xf32> -> vector<8x24xf32>
    %c0_3 = arith.constant 0 : index
    %c0_4 = arith.constant 0 : index
    %3 = vector.load %arg3[%c0_3, %c0_4] : memref<1x24xf32, #tpu.memory_space<vmem>>, vector<1x24xf32>
    %4 = vector.broadcast %3 : vector<1x24xf32> to vector<8x24xf32>
    %5 = arith.addf %2, %4 : vector<8x24xf32>
    %6 = arith.truncf %5 : vector<8x24xf32> to vector<8x24xbf16>
    %c0_5 = arith.constant 0 : index
    %c0_6 = arith.constant 0 : index
    %7 = vector.load %arg4[%c0_5, %c0_6] : memref<8x24xbf16, #tpu.memory_space<vmem>>, vector<8x24xbf16>
    tpu.vector_store %arg4[%c0_5, %c0_6], %6 {strides = array<i32>} : memref<8x24xbf16, #tpu.memory_space<vmem>>, vector<8x24xbf16>,
    return
  }
  func.func @transform_0(%arg0: i32) -> (i32, i32) {
    %c0_i32 = arith.constant 0 : i32
    %c0_i32_0 = arith.constant 0 : i32
    return %arg0, %c0_i32 : i32, i32
  }
  func.func @transform_1(%arg0: i32) -> (i32, i32) {
    %c0_i32 = arith.constant 0 : i32
    %c0_i32_0 = arith.constant 0 : i32
    %c0_i32_1 = arith.constant 0 : i32
    return %c0_i32, %c0_i32_0 : i32, i32
  }
  func.func @transform_2(%arg0: i32) -> (i32, i32) {
    %c0_i32 = arith.constant 0 : i32
    %c0_i32_0 = arith.constant 0 : i32
    %c0_i32_1 = arith.constant 0 : i32
    return %c0_i32, %c0_i32_0 : i32, i32
  }
  func.func @transform_3(%arg0: i32) -> (i32, i32) {
    %c0_i32 = arith.constant 0 : i32
    %c0_i32_0 = arith.constant 0 : i32
    return %arg0, %c0_i32 : i32, i32
  }
}

module attributes {stable_mosaic.version = 11 : i64} {
  func.func @_pw_flat_kernel(%arg0: i32, %arg1: memref<8x88xbf16, #tpu.memory_space<vmem>>, %arg2: memref<88x24xbf16, #tpu.memory_space<vmem>>, %arg3: memref<1x24xf32, #tpu.memory_space<vmem>>, %arg4: memref<8x24xbf16, #tpu.memory_space<vmem>>, %arg5: memref<8x24xbf16, #tpu.memory_space<vmem>>) attributes {dimension_semantics = [#tpu.dimension_semantics<parallel>], iteration_bounds = array<i64: 1>, scalar_prefetch = 0 : i64, scratch_operands = 0 : i64, tpu.core_type = #tpu.core_type<tc>, window_params = [{transform_indices = @transform_0, window_bounds = array<i64: 8, 88>}, {pipeline_mode = #tpu.pipeline_mode<synchronous>, transform_indices = @transform_1, window_bounds = array<i64: 88, 24>}, {pipeline_mode = #tpu.pipeline_mode<synchronous>, transform_indices = @transform_2, window_bounds = array<i64: 1, 24>}, {transform_indices = @transform_3, window_bounds = array<i64: 8, 24>}, {transform_indices = @transform_4, window_bounds = array<i64: 8, 24>}]} {
    %c0 = arith.constant 0 : index
    %c0_0 = arith.constant 0 : index
    %0 = vector.load %arg1[%c0, %c0_0] : memref<8x88xbf16, #tpu.memory_space<vmem>>, vector<8x88xbf16>
    %c0_1 = arith.constant 0 : index
    %c0_2 = arith.constant 0 : index
    %1 = vector.load %arg2[%c0_1, %c0_2] : memref<88x24xbf16, #tpu.memory_space<vmem>>, vector<88x24xbf16>
    %cst = arith.constant dense<0.000000e+00> : vector<8x24xf32>
    %2 = tpu.matmul %0, %1, %cst {dimension_numbers = #tpu.dot_dimension_numbers<[1], [0], [0], [1], [0, 0, 1, 1], [], []>} : vector<8x88xbf16>, vector<88x24xbf16>, vector<8x24xf32> -> vector<8x24xf32>
    %c0_3 = arith.constant 0 : index
    %c0_4 = arith.constant 0 : index
    %3 = vector.load %arg3[%c0_3, %c0_4] : memref<1x24xf32, #tpu.memory_space<vmem>>, vector<1x24xf32>
    %4 = vector.broadcast %3 : vector<1x24xf32> to vector<8x24xf32>
    %5 = arith.addf %2, %4 : vector<8x24xf32>
    %c0_5 = arith.constant 0 : index
    %c0_6 = arith.constant 0 : index
    %6 = vector.load %arg4[%c0_5, %c0_6] : memref<8x24xbf16, #tpu.memory_space<vmem>>, vector<8x24xbf16>
    %7 = arith.extf %6 : vector<8x24xbf16> to vector<8x24xf32>
    %8 = arith.addf %5, %7 : vector<8x24xf32>
    %9 = arith.truncf %8 : vector<8x24xf32> to vector<8x24xbf16>
    %c0_7 = arith.constant 0 : index
    %c0_8 = arith.constant 0 : index
    %10 = vector.load %arg5[%c0_7, %c0_8] : memref<8x24xbf16, #tpu.memory_space<vmem>>, vector<8x24xbf16>
    tpu.vector_store %arg5[%c0_7, %c0_8], %9 {strides = array<i32>} : memref<8x24xbf16, #tpu.memory_space<vmem>>, vector<8x24xbf16>,
    return
  }
  func.func @transform_0(%arg0: i32) -> (i32, i32) {
    %c0_i32 = arith.constant 0 : i32
    %c0_i32_0 = arith.constant 0 : i32
    return %arg0, %c0_i32 : i32, i32
  }
  func.func @transform_1(%arg0: i32) -> (i32, i32) {
    %c0_i32 = arith.constant 0 : i32
    %c0_i32_0 = arith.constant 0 : i32
    %c0_i32_1 = arith.constant 0 : i32
    return %c0_i32, %c0_i32_0 : i32, i32
  }
  func.func @transform_2(%arg0: i32) -> (i32, i32) {
    %c0_i32 = arith.constant 0 : i32
    %c0_i32_0 = arith.constant 0 : i32
    %c0_i32_1 = arith.constant 0 : i32
    return %c0_i32, %c0_i32_0 : i32, i32
  }
  func.func @transform_3(%arg0: i32) -> (i32, i32) {
    %c0_i32 = arith.constant 0 : i32
    %c0_i32_0 = arith.constant 0 : i32
    return %arg0, %c0_i32 : i32, i32
  }
  func.func @transform_4(%arg0: i32) -> (i32, i32) {
    %c0_i32 = arith.constant 0 : i32
    %c0_i32_0 = arith.constant 0 : i32
    return %arg0, %c0_i32 : i32, i32
  }
}

module attributes {stable_mosaic.version = 11 : i64} {
  func.func @_dw_conv_kernel(%arg0: i32, %arg1: memref<1x6x6x88xbf16, #tpu.memory_space<vmem>>, %arg2: memref<25x88xbf16, #tpu.memory_space<vmem>>, %arg3: memref<1x88xf32, #tpu.memory_space<vmem>>, %arg4: memref<1x2x2x88xbf16, #tpu.memory_space<vmem>>) attributes {dimension_semantics = [#tpu.dimension_semantics<parallel>], iteration_bounds = array<i64: 2>, scalar_prefetch = 0 : i64, scratch_operands = 0 : i64, tpu.core_type = #tpu.core_type<tc>, window_params = [{transform_indices = @transform_0, window_bounds = array<i64: 1, 6, 6, 88>}, {pipeline_mode = #tpu.pipeline_mode<synchronous>, transform_indices = @transform_1, window_bounds = array<i64: 25, 88>}, {pipeline_mode = #tpu.pipeline_mode<synchronous>, transform_indices = @transform_2, window_bounds = array<i64: 1, 88>}, {transform_indices = @transform_3, window_bounds = array<i64: 1, 2, 2, 88>}]} {
    %cst = arith.constant 0.000000e+00 : f32
    %0 = vector.broadcast %cst : f32 to vector<2x2x88xf32>
    %c0 = arith.constant 0 : index
    %c0_0 = arith.constant 0 : index
    %c0_1 = arith.constant 0 : index
    %c0_2 = arith.constant 0 : index
    %1 = vector.load %arg1[%c0, %c0_0, %c0_1, %c0_2] : memref<1x6x6x88xbf16, #tpu.memory_space<vmem>>, vector<1x2x2x88xbf16>
    %2 = vector.shape_cast %1 : vector<1x2x2x88xbf16> to vector<2x2x88xbf16>
    %3 = arith.extf %2 : vector<2x2x88xbf16> to vector<2x2x88xf32>
    %c0_3 = arith.constant 0 : index
    %c0_4 = arith.constant 0 : index
    %4 = vector.load %arg2[%c0_3, %c0_4] : memref<25x88xbf16, #tpu.memory_space<vmem>>, vector<1x88xbf16>
    %5 = arith.extf %4 : vector<1x88xbf16> to vector<1x88xf32>
    %6 = vector.shape_cast %5 : vector<1x88xf32> to vector<1x1x88xf32>
    %7 = vector.broadcast %6 : vector<1x1x88xf32> to vector<2x2x88xf32>
    %8 = arith.mulf %3, %7 : vector<2x2x88xf32>
    %9 = arith.addf %0, %8 : vector<2x2x88xf32>
    %c0_5 = arith.constant 0 : index
    %c0_6 = arith.constant 0 : index
    %c1 = arith.constant 1 : index
    %c0_7 = arith.constant 0 : index
    %10 = vector.load %arg1[%c0_5, %c0_6, %c1, %c0_7] : memref<1x6x6x88xbf16, #tpu.memory_space<vmem>>, vector<1x2x2x88xbf16>
    %11 = vector.shape_cast %10 : vector<1x2x2x88xbf16> to vector<2x2x88xbf16>
    %12 = arith.extf %11 : vector<2x2x88xbf16> to vector<2x2x88xf32>
    %c1_8 = arith.constant 1 : index
    %c0_9 = arith.constant 0 : index
    %13 = vector.load %arg2[%c1_8, %c0_9] : memref<25x88xbf16, #tpu.memory_space<vmem>>, vector<1x88xbf16>
    %14 = arith.extf %13 : vector<1x88xbf16> to vector<1x88xf32>
    %15 = vector.shape_cast %14 : vector<1x88xf32> to vector<1x1x88xf32>
    %16 = vector.broadcast %15 : vector<1x1x88xf32> to vector<2x2x88xf32>
    %17 = arith.mulf %12, %16 : vector<2x2x88xf32>
    %18 = arith.addf %9, %17 : vector<2x2x88xf32>
    %c0_10 = arith.constant 0 : index
    %c0_11 = arith.constant 0 : index
    %c2 = arith.constant 2 : index
    %c0_12 = arith.constant 0 : index
    %19 = vector.load %arg1[%c0_10, %c0_11, %c2, %c0_12] : memref<1x6x6x88xbf16, #tpu.memory_space<vmem>>, vector<1x2x2x88xbf16>
    %20 = vector.shape_cast %19 : vector<1x2x2x88xbf16> to vector<2x2x88xbf16>
    %21 = arith.extf %20 : vector<2x2x88xbf16> to vector<2x2x88xf32>
    %c2_13 = arith.constant 2 : index
    %c0_14 = arith.constant 0 : index
    %22 = vector.load %arg2[%c2_13, %c0_14] : memref<25x88xbf16, #tpu.memory_space<vmem>>, vector<1x88xbf16>
    %23 = arith.extf %22 : vector<1x88xbf16> to vector<1x88xf32>
    %24 = vector.shape_cast %23 : vector<1x88xf32> to vector<1x1x88xf32>
    %25 = vector.broadcast %24 : vector<1x1x88xf32> to vector<2x2x88xf32>
    %26 = arith.mulf %21, %25 : vector<2x2x88xf32>
    %27 = arith.addf %18, %26 : vector<2x2x88xf32>
    %c0_15 = arith.constant 0 : index
    %c0_16 = arith.constant 0 : index
    %c3 = arith.constant 3 : index
    %c0_17 = arith.constant 0 : index
    %28 = vector.load %arg1[%c0_15, %c0_16, %c3, %c0_17] : memref<1x6x6x88xbf16, #tpu.memory_space<vmem>>, vector<1x2x2x88xbf16>
    %29 = vector.shape_cast %28 : vector<1x2x2x88xbf16> to vector<2x2x88xbf16>
    %30 = arith.extf %29 : vector<2x2x88xbf16> to vector<2x2x88xf32>
    %c3_18 = arith.constant 3 : index
    %c0_19 = arith.constant 0 : index
    %31 = vector.load %arg2[%c3_18, %c0_19] : memref<25x88xbf16, #tpu.memory_space<vmem>>, vector<1x88xbf16>
    %32 = arith.extf %31 : vector<1x88xbf16> to vector<1x88xf32>
    %33 = vector.shape_cast %32 : vector<1x88xf32> to vector<1x1x88xf32>
    %34 = vector.broadcast %33 : vector<1x1x88xf32> to vector<2x2x88xf32>
    %35 = arith.mulf %30, %34 : vector<2x2x88xf32>
    %36 = arith.addf %27, %35 : vector<2x2x88xf32>
    %c0_20 = arith.constant 0 : index
    %c0_21 = arith.constant 0 : index
    %c4 = arith.constant 4 : index
    %c0_22 = arith.constant 0 : index
    %37 = vector.load %arg1[%c0_20, %c0_21, %c4, %c0_22] : memref<1x6x6x88xbf16, #tpu.memory_space<vmem>>, vector<1x2x2x88xbf16>
    %38 = vector.shape_cast %37 : vector<1x2x2x88xbf16> to vector<2x2x88xbf16>
    %39 = arith.extf %38 : vector<2x2x88xbf16> to vector<2x2x88xf32>
    %c4_23 = arith.constant 4 : index
    %c0_24 = arith.constant 0 : index
    %40 = vector.load %arg2[%c4_23, %c0_24] : memref<25x88xbf16, #tpu.memory_space<vmem>>, vector<1x88xbf16>
    %41 = arith.extf %40 : vector<1x88xbf16> to vector<1x88xf32>
    %42 = vector.shape_cast %41 : vector<1x88xf32> to vector<1x1x88xf32>
    %43 = vector.broadcast %42 : vector<1x1x88xf32> to vector<2x2x88xf32>
    %44 = arith.mulf %39, %43 : vector<2x2x88xf32>
    %45 = arith.addf %36, %44 : vector<2x2x88xf32>
    %c0_25 = arith.constant 0 : index
    %c1_26 = arith.constant 1 : index
    %c0_27 = arith.constant 0 : index
    %c0_28 = arith.constant 0 : index
    %46 = vector.load %arg1[%c0_25, %c1_26, %c0_27, %c0_28] : memref<1x6x6x88xbf16, #tpu.memory_space<vmem>>, vector<1x2x2x88xbf16>
    %47 = vector.shape_cast %46 : vector<1x2x2x88xbf16> to vector<2x2x88xbf16>
    %48 = arith.extf %47 : vector<2x2x88xbf16> to vector<2x2x88xf32>
    %c5 = arith.constant 5 : index
    %c0_29 = arith.constant 0 : index
    %49 = vector.load %arg2[%c5, %c0_29] : memref<25x88xbf16, #tpu.memory_space<vmem>>, vector<1x88xbf16>
    %50 = arith.extf %49 : vector<1x88xbf16> to vector<1x88xf32>
    %51 = vector.shape_cast %50 : vector<1x88xf32> to vector<1x1x88xf32>
    %52 = vector.broadcast %51 : vector<1x1x88xf32> to vector<2x2x88xf32>
    %53 = arith.mulf %48, %52 : vector<2x2x88xf32>
    %54 = arith.addf %45, %53 : vector<2x2x88xf32>
    %c0_30 = arith.constant 0 : index
    %c1_31 = arith.constant 1 : index
    %c1_32 = arith.constant 1 : index
    %c0_33 = arith.constant 0 : index
    %55 = vector.load %arg1[%c0_30, %c1_31, %c1_32, %c0_33] : memref<1x6x6x88xbf16, #tpu.memory_space<vmem>>, vector<1x2x2x88xbf16>
    %56 = vector.shape_cast %55 : vector<1x2x2x88xbf16> to vector<2x2x88xbf16>
    %57 = arith.extf %56 : vector<2x2x88xbf16> to vector<2x2x88xf32>
    %c6 = arith.constant 6 : index
    %c0_34 = arith.constant 0 : index
    %58 = vector.load %arg2[%c6, %c0_34] : memref<25x88xbf16, #tpu.memory_space<vmem>>, vector<1x88xbf16>
    %59 = arith.extf %58 : vector<1x88xbf16> to vector<1x88xf32>
    %60 = vector.shape_cast %59 : vector<1x88xf32> to vector<1x1x88xf32>
    %61 = vector.broadcast %60 : vector<1x1x88xf32> to vector<2x2x88xf32>
    %62 = arith.mulf %57, %61 : vector<2x2x88xf32>
    %63 = arith.addf %54, %62 : vector<2x2x88xf32>
    %c0_35 = arith.constant 0 : index
    %c1_36 = arith.constant 1 : index
    %c2_37 = arith.constant 2 : index
    %c0_38 = arith.constant 0 : index
    %64 = vector.load %arg1[%c0_35, %c1_36, %c2_37, %c0_38] : memref<1x6x6x88xbf16, #tpu.memory_space<vmem>>, vector<1x2x2x88xbf16>
    %65 = vector.shape_cast %64 : vector<1x2x2x88xbf16> to vector<2x2x88xbf16>
    %66 = arith.extf %65 : vector<2x2x88xbf16> to vector<2x2x88xf32>
    %c7 = arith.constant 7 : index
    %c0_39 = arith.constant 0 : index
    %67 = vector.load %arg2[%c7, %c0_39] : memref<25x88xbf16, #tpu.memory_space<vmem>>, vector<1x88xbf16>
    %68 = arith.extf %67 : vector<1x88xbf16> to vector<1x88xf32>
    %69 = vector.shape_cast %68 : vector<1x88xf32> to vector<1x1x88xf32>
    %70 = vector.broadcast %69 : vector<1x1x88xf32> to vector<2x2x88xf32>
    %71 = arith.mulf %66, %70 : vector<2x2x88xf32>
    %72 = arith.addf %63, %71 : vector<2x2x88xf32>
    %c0_40 = arith.constant 0 : index
    %c1_41 = arith.constant 1 : index
    %c3_42 = arith.constant 3 : index
    %c0_43 = arith.constant 0 : index
    %73 = vector.load %arg1[%c0_40, %c1_41, %c3_42, %c0_43] : memref<1x6x6x88xbf16, #tpu.memory_space<vmem>>, vector<1x2x2x88xbf16>
    %74 = vector.shape_cast %73 : vector<1x2x2x88xbf16> to vector<2x2x88xbf16>
    %75 = arith.extf %74 : vector<2x2x88xbf16> to vector<2x2x88xf32>
    %c8 = arith.constant 8 : index
    %c0_44 = arith.constant 0 : index
    %76 = vector.load %arg2[%c8, %c0_44] : memref<25x88xbf16, #tpu.memory_space<vmem>>, vector<1x88xbf16>
    %77 = arith.extf %76 : vector<1x88xbf16> to vector<1x88xf32>
    %78 = vector.shape_cast %77 : vector<1x88xf32> to vector<1x1x88xf32>
    %79 = vector.broadcast %78 : vector<1x1x88xf32> to vector<2x2x88xf32>
    %80 = arith.mulf %75, %79 : vector<2x2x88xf32>
    %81 = arith.addf %72, %80 : vector<2x2x88xf32>
    %c0_45 = arith.constant 0 : index
    %c1_46 = arith.constant 1 : index
    %c4_47 = arith.constant 4 : index
    %c0_48 = arith.constant 0 : index
    %82 = vector.load %arg1[%c0_45, %c1_46, %c4_47, %c0_48] : memref<1x6x6x88xbf16, #tpu.memory_space<vmem>>, vector<1x2x2x88xbf16>
    %83 = vector.shape_cast %82 : vector<1x2x2x88xbf16> to vector<2x2x88xbf16>
    %84 = arith.extf %83 : vector<2x2x88xbf16> to vector<2x2x88xf32>
    %c9 = arith.constant 9 : index
    %c0_49 = arith.constant 0 : index
    %85 = vector.load %arg2[%c9, %c0_49] : memref<25x88xbf16, #tpu.memory_space<vmem>>, vector<1x88xbf16>
    %86 = arith.extf %85 : vector<1x88xbf16> to vector<1x88xf32>
    %87 = vector.shape_cast %86 : vector<1x88xf32> to vector<1x1x88xf32>
    %88 = vector.broadcast %87 : vector<1x1x88xf32> to vector<2x2x88xf32>
    %89 = arith.mulf %84, %88 : vector<2x2x88xf32>
    %90 = arith.addf %81, %89 : vector<2x2x88xf32>
    %c0_50 = arith.constant 0 : index
    %c2_51 = arith.constant 2 : index
    %c0_52 = arith.constant 0 : index
    %c0_53 = arith.constant 0 : index
    %91 = vector.load %arg1[%c0_50, %c2_51, %c0_52, %c0_53] : memref<1x6x6x88xbf16, #tpu.memory_space<vmem>>, vector<1x2x2x88xbf16>
    %92 = vector.shape_cast %91 : vector<1x2x2x88xbf16> to vector<2x2x88xbf16>
    %93 = arith.extf %92 : vector<2x2x88xbf16> to vector<2x2x88xf32>
    %c10 = arith.constant 10 : index
    %c0_54 = arith.constant 0 : index
    %94 = vector.load %arg2[%c10, %c0_54] : memref<25x88xbf16, #tpu.memory_space<vmem>>, vector<1x88xbf16>
    %95 = arith.extf %94 : vector<1x88xbf16> to vector<1x88xf32>
    %96 = vector.shape_cast %95 : vector<1x88xf32> to vector<1x1x88xf32>
    %97 = vector.broadcast %96 : vector<1x1x88xf32> to vector<2x2x88xf32>
    %98 = arith.mulf %93, %97 : vector<2x2x88xf32>
    %99 = arith.addf %90, %98 : vector<2x2x88xf32>
    %c0_55 = arith.constant 0 : index
    %c2_56 = arith.constant 2 : index
    %c1_57 = arith.constant 1 : index
    %c0_58 = arith.constant 0 : index
    %100 = vector.load %arg1[%c0_55, %c2_56, %c1_57, %c0_58] : memref<1x6x6x88xbf16, #tpu.memory_space<vmem>>, vector<1x2x2x88xbf16>
    %101 = vector.shape_cast %100 : vector<1x2x2x88xbf16> to vector<2x2x88xbf16>
    %102 = arith.extf %101 : vector<2x2x88xbf16> to vector<2x2x88xf32>
    %c11 = arith.constant 11 : index
    %c0_59 = arith.constant 0 : index
    %103 = vector.load %arg2[%c11, %c0_59] : memref<25x88xbf16, #tpu.memory_space<vmem>>, vector<1x88xbf16>
    %104 = arith.extf %103 : vector<1x88xbf16> to vector<1x88xf32>
    %105 = vector.shape_cast %104 : vector<1x88xf32> to vector<1x1x88xf32>
    %106 = vector.broadcast %105 : vector<1x1x88xf32> to vector<2x2x88xf32>
    %107 = arith.mulf %102, %106 : vector<2x2x88xf32>
    %108 = arith.addf %99, %107 : vector<2x2x88xf32>
    %c0_60 = arith.constant 0 : index
    %c2_61 = arith.constant 2 : index
    %c2_62 = arith.constant 2 : index
    %c0_63 = arith.constant 0 : index
    %109 = vector.load %arg1[%c0_60, %c2_61, %c2_62, %c0_63] : memref<1x6x6x88xbf16, #tpu.memory_space<vmem>>, vector<1x2x2x88xbf16>
    %110 = vector.shape_cast %109 : vector<1x2x2x88xbf16> to vector<2x2x88xbf16>
    %111 = arith.extf %110 : vector<2x2x88xbf16> to vector<2x2x88xf32>
    %c12 = arith.constant 12 : index
    %c0_64 = arith.constant 0 : index
    %112 = vector.load %arg2[%c12, %c0_64] : memref<25x88xbf16, #tpu.memory_space<vmem>>, vector<1x88xbf16>
    %113 = arith.extf %112 : vector<1x88xbf16> to vector<1x88xf32>
    %114 = vector.shape_cast %113 : vector<1x88xf32> to vector<1x1x88xf32>
    %115 = vector.broadcast %114 : vector<1x1x88xf32> to vector<2x2x88xf32>
    %116 = arith.mulf %111, %115 : vector<2x2x88xf32>
    %117 = arith.addf %108, %116 : vector<2x2x88xf32>
    %c0_65 = arith.constant 0 : index
    %c2_66 = arith.constant 2 : index
    %c3_67 = arith.constant 3 : index
    %c0_68 = arith.constant 0 : index
    %118 = vector.load %arg1[%c0_65, %c2_66, %c3_67, %c0_68] : memref<1x6x6x88xbf16, #tpu.memory_space<vmem>>, vector<1x2x2x88xbf16>
    %119 = vector.shape_cast %118 : vector<1x2x2x88xbf16> to vector<2x2x88xbf16>
    %120 = arith.extf %119 : vector<2x2x88xbf16> to vector<2x2x88xf32>
    %c13 = arith.constant 13 : index
    %c0_69 = arith.constant 0 : index
    %121 = vector.load %arg2[%c13, %c0_69] : memref<25x88xbf16, #tpu.memory_space<vmem>>, vector<1x88xbf16>
    %122 = arith.extf %121 : vector<1x88xbf16> to vector<1x88xf32>
    %123 = vector.shape_cast %122 : vector<1x88xf32> to vector<1x1x88xf32>
    %124 = vector.broadcast %123 : vector<1x1x88xf32> to vector<2x2x88xf32>
    %125 = arith.mulf %120, %124 : vector<2x2x88xf32>
    %126 = arith.addf %117, %125 : vector<2x2x88xf32>
    %c0_70 = arith.constant 0 : index
    %c2_71 = arith.constant 2 : index
    %c4_72 = arith.constant 4 : index
    %c0_73 = arith.constant 0 : index
    %127 = vector.load %arg1[%c0_70, %c2_71, %c4_72, %c0_73] : memref<1x6x6x88xbf16, #tpu.memory_space<vmem>>, vector<1x2x2x88xbf16>
    %128 = vector.shape_cast %127 : vector<1x2x2x88xbf16> to vector<2x2x88xbf16>
    %129 = arith.extf %128 : vector<2x2x88xbf16> to vector<2x2x88xf32>
    %c14 = arith.constant 14 : index
    %c0_74 = arith.constant 0 : index
    %130 = vector.load %arg2[%c14, %c0_74] : memref<25x88xbf16, #tpu.memory_space<vmem>>, vector<1x88xbf16>
    %131 = arith.extf %130 : vector<1x88xbf16> to vector<1x88xf32>
    %132 = vector.shape_cast %131 : vector<1x88xf32> to vector<1x1x88xf32>
    %133 = vector.broadcast %132 : vector<1x1x88xf32> to vector<2x2x88xf32>
    %134 = arith.mulf %129, %133 : vector<2x2x88xf32>
    %135 = arith.addf %126, %134 : vector<2x2x88xf32>
    %c0_75 = arith.constant 0 : index
    %c3_76 = arith.constant 3 : index
    %c0_77 = arith.constant 0 : index
    %c0_78 = arith.constant 0 : index
    %136 = vector.load %arg1[%c0_75, %c3_76, %c0_77, %c0_78] : memref<1x6x6x88xbf16, #tpu.memory_space<vmem>>, vector<1x2x2x88xbf16>
    %137 = vector.shape_cast %136 : vector<1x2x2x88xbf16> to vector<2x2x88xbf16>
    %138 = arith.extf %137 : vector<2x2x88xbf16> to vector<2x2x88xf32>
    %c15 = arith.constant 15 : index
    %c0_79 = arith.constant 0 : index
    %139 = vector.load %arg2[%c15, %c0_79] : memref<25x88xbf16, #tpu.memory_space<vmem>>, vector<1x88xbf16>
    %140 = arith.extf %139 : vector<1x88xbf16> to vector<1x88xf32>
    %141 = vector.shape_cast %140 : vector<1x88xf32> to vector<1x1x88xf32>
    %142 = vector.broadcast %141 : vector<1x1x88xf32> to vector<2x2x88xf32>
    %143 = arith.mulf %138, %142 : vector<2x2x88xf32>
    %144 = arith.addf %135, %143 : vector<2x2x88xf32>
    %c0_80 = arith.constant 0 : index
    %c3_81 = arith.constant 3 : index
    %c1_82 = arith.constant 1 : index
    %c0_83 = arith.constant 0 : index
    %145 = vector.load %arg1[%c0_80, %c3_81, %c1_82, %c0_83] : memref<1x6x6x88xbf16, #tpu.memory_space<vmem>>, vector<1x2x2x88xbf16>
    %146 = vector.shape_cast %145 : vector<1x2x2x88xbf16> to vector<2x2x88xbf16>
    %147 = arith.extf %146 : vector<2x2x88xbf16> to vector<2x2x88xf32>
    %c16 = arith.constant 16 : index
    %c0_84 = arith.constant 0 : index
    %148 = vector.load %arg2[%c16, %c0_84] : memref<25x88xbf16, #tpu.memory_space<vmem>>, vector<1x88xbf16>
    %149 = arith.extf %148 : vector<1x88xbf16> to vector<1x88xf32>
    %150 = vector.shape_cast %149 : vector<1x88xf32> to vector<1x1x88xf32>
    %151 = vector.broadcast %150 : vector<1x1x88xf32> to vector<2x2x88xf32>
    %152 = arith.mulf %147, %151 : vector<2x2x88xf32>
    %153 = arith.addf %144, %152 : vector<2x2x88xf32>
    %c0_85 = arith.constant 0 : index
    %c3_86 = arith.constant 3 : index
    %c2_87 = arith.constant 2 : index
    %c0_88 = arith.constant 0 : index
    %154 = vector.load %arg1[%c0_85, %c3_86, %c2_87, %c0_88] : memref<1x6x6x88xbf16, #tpu.memory_space<vmem>>, vector<1x2x2x88xbf16>
    %155 = vector.shape_cast %154 : vector<1x2x2x88xbf16> to vector<2x2x88xbf16>
    %156 = arith.extf %155 : vector<2x2x88xbf16> to vector<2x2x88xf32>
    %c17 = arith.constant 17 : index
    %c0_89 = arith.constant 0 : index
    %157 = vector.load %arg2[%c17, %c0_89] : memref<25x88xbf16, #tpu.memory_space<vmem>>, vector<1x88xbf16>
    %158 = arith.extf %157 : vector<1x88xbf16> to vector<1x88xf32>
    %159 = vector.shape_cast %158 : vector<1x88xf32> to vector<1x1x88xf32>
    %160 = vector.broadcast %159 : vector<1x1x88xf32> to vector<2x2x88xf32>
    %161 = arith.mulf %156, %160 : vector<2x2x88xf32>
    %162 = arith.addf %153, %161 : vector<2x2x88xf32>
    %c0_90 = arith.constant 0 : index
    %c3_91 = arith.constant 3 : index
    %c3_92 = arith.constant 3 : index
    %c0_93 = arith.constant 0 : index
    %163 = vector.load %arg1[%c0_90, %c3_91, %c3_92, %c0_93] : memref<1x6x6x88xbf16, #tpu.memory_space<vmem>>, vector<1x2x2x88xbf16>
    %164 = vector.shape_cast %163 : vector<1x2x2x88xbf16> to vector<2x2x88xbf16>
    %165 = arith.extf %164 : vector<2x2x88xbf16> to vector<2x2x88xf32>
    %c18 = arith.constant 18 : index
    %c0_94 = arith.constant 0 : index
    %166 = vector.load %arg2[%c18, %c0_94] : memref<25x88xbf16, #tpu.memory_space<vmem>>, vector<1x88xbf16>
    %167 = arith.extf %166 : vector<1x88xbf16> to vector<1x88xf32>
    %168 = vector.shape_cast %167 : vector<1x88xf32> to vector<1x1x88xf32>
    %169 = vector.broadcast %168 : vector<1x1x88xf32> to vector<2x2x88xf32>
    %170 = arith.mulf %165, %169 : vector<2x2x88xf32>
    %171 = arith.addf %162, %170 : vector<2x2x88xf32>
    %c0_95 = arith.constant 0 : index
    %c3_96 = arith.constant 3 : index
    %c4_97 = arith.constant 4 : index
    %c0_98 = arith.constant 0 : index
    %172 = vector.load %arg1[%c0_95, %c3_96, %c4_97, %c0_98] : memref<1x6x6x88xbf16, #tpu.memory_space<vmem>>, vector<1x2x2x88xbf16>
    %173 = vector.shape_cast %172 : vector<1x2x2x88xbf16> to vector<2x2x88xbf16>
    %174 = arith.extf %173 : vector<2x2x88xbf16> to vector<2x2x88xf32>
    %c19 = arith.constant 19 : index
    %c0_99 = arith.constant 0 : index
    %175 = vector.load %arg2[%c19, %c0_99] : memref<25x88xbf16, #tpu.memory_space<vmem>>, vector<1x88xbf16>
    %176 = arith.extf %175 : vector<1x88xbf16> to vector<1x88xf32>
    %177 = vector.shape_cast %176 : vector<1x88xf32> to vector<1x1x88xf32>
    %178 = vector.broadcast %177 : vector<1x1x88xf32> to vector<2x2x88xf32>
    %179 = arith.mulf %174, %178 : vector<2x2x88xf32>
    %180 = arith.addf %171, %179 : vector<2x2x88xf32>
    %c0_100 = arith.constant 0 : index
    %c4_101 = arith.constant 4 : index
    %c0_102 = arith.constant 0 : index
    %c0_103 = arith.constant 0 : index
    %181 = vector.load %arg1[%c0_100, %c4_101, %c0_102, %c0_103] : memref<1x6x6x88xbf16, #tpu.memory_space<vmem>>, vector<1x2x2x88xbf16>
    %182 = vector.shape_cast %181 : vector<1x2x2x88xbf16> to vector<2x2x88xbf16>
    %183 = arith.extf %182 : vector<2x2x88xbf16> to vector<2x2x88xf32>
    %c20 = arith.constant 20 : index
    %c0_104 = arith.constant 0 : index
    %184 = vector.load %arg2[%c20, %c0_104] : memref<25x88xbf16, #tpu.memory_space<vmem>>, vector<1x88xbf16>
    %185 = arith.extf %184 : vector<1x88xbf16> to vector<1x88xf32>
    %186 = vector.shape_cast %185 : vector<1x88xf32> to vector<1x1x88xf32>
    %187 = vector.broadcast %186 : vector<1x1x88xf32> to vector<2x2x88xf32>
    %188 = arith.mulf %183, %187 : vector<2x2x88xf32>
    %189 = arith.addf %180, %188 : vector<2x2x88xf32>
    %c0_105 = arith.constant 0 : index
    %c4_106 = arith.constant 4 : index
    %c1_107 = arith.constant 1 : index
    %c0_108 = arith.constant 0 : index
    %190 = vector.load %arg1[%c0_105, %c4_106, %c1_107, %c0_108] : memref<1x6x6x88xbf16, #tpu.memory_space<vmem>>, vector<1x2x2x88xbf16>
    %191 = vector.shape_cast %190 : vector<1x2x2x88xbf16> to vector<2x2x88xbf16>
    %192 = arith.extf %191 : vector<2x2x88xbf16> to vector<2x2x88xf32>
    %c21 = arith.constant 21 : index
    %c0_109 = arith.constant 0 : index
    %193 = vector.load %arg2[%c21, %c0_109] : memref<25x88xbf16, #tpu.memory_space<vmem>>, vector<1x88xbf16>
    %194 = arith.extf %193 : vector<1x88xbf16> to vector<1x88xf32>
    %195 = vector.shape_cast %194 : vector<1x88xf32> to vector<1x1x88xf32>
    %196 = vector.broadcast %195 : vector<1x1x88xf32> to vector<2x2x88xf32>
    %197 = arith.mulf %192, %196 : vector<2x2x88xf32>
    %198 = arith.addf %189, %197 : vector<2x2x88xf32>
    %c0_110 = arith.constant 0 : index
    %c4_111 = arith.constant 4 : index
    %c2_112 = arith.constant 2 : index
    %c0_113 = arith.constant 0 : index
    %199 = vector.load %arg1[%c0_110, %c4_111, %c2_112, %c0_113] : memref<1x6x6x88xbf16, #tpu.memory_space<vmem>>, vector<1x2x2x88xbf16>
    %200 = vector.shape_cast %199 : vector<1x2x2x88xbf16> to vector<2x2x88xbf16>
    %201 = arith.extf %200 : vector<2x2x88xbf16> to vector<2x2x88xf32>
    %c22 = arith.constant 22 : index
    %c0_114 = arith.constant 0 : index
    %202 = vector.load %arg2[%c22, %c0_114] : memref<25x88xbf16, #tpu.memory_space<vmem>>, vector<1x88xbf16>
    %203 = arith.extf %202 : vector<1x88xbf16> to vector<1x88xf32>
    %204 = vector.shape_cast %203 : vector<1x88xf32> to vector<1x1x88xf32>
    %205 = vector.broadcast %204 : vector<1x1x88xf32> to vector<2x2x88xf32>
    %206 = arith.mulf %201, %205 : vector<2x2x88xf32>
    %207 = arith.addf %198, %206 : vector<2x2x88xf32>
    %c0_115 = arith.constant 0 : index
    %c4_116 = arith.constant 4 : index
    %c3_117 = arith.constant 3 : index
    %c0_118 = arith.constant 0 : index
    %208 = vector.load %arg1[%c0_115, %c4_116, %c3_117, %c0_118] : memref<1x6x6x88xbf16, #tpu.memory_space<vmem>>, vector<1x2x2x88xbf16>
    %209 = vector.shape_cast %208 : vector<1x2x2x88xbf16> to vector<2x2x88xbf16>
    %210 = arith.extf %209 : vector<2x2x88xbf16> to vector<2x2x88xf32>
    %c23 = arith.constant 23 : index
    %c0_119 = arith.constant 0 : index
    %211 = vector.load %arg2[%c23, %c0_119] : memref<25x88xbf16, #tpu.memory_space<vmem>>, vector<1x88xbf16>
    %212 = arith.extf %211 : vector<1x88xbf16> to vector<1x88xf32>
    %213 = vector.shape_cast %212 : vector<1x88xf32> to vector<1x1x88xf32>
    %214 = vector.broadcast %213 : vector<1x1x88xf32> to vector<2x2x88xf32>
    %215 = arith.mulf %210, %214 : vector<2x2x88xf32>
    %216 = arith.addf %207, %215 : vector<2x2x88xf32>
    %c0_120 = arith.constant 0 : index
    %c4_121 = arith.constant 4 : index
    %c4_122 = arith.constant 4 : index
    %c0_123 = arith.constant 0 : index
    %217 = vector.load %arg1[%c0_120, %c4_121, %c4_122, %c0_123] : memref<1x6x6x88xbf16, #tpu.memory_space<vmem>>, vector<1x2x2x88xbf16>
    %218 = vector.shape_cast %217 : vector<1x2x2x88xbf16> to vector<2x2x88xbf16>
    %219 = arith.extf %218 : vector<2x2x88xbf16> to vector<2x2x88xf32>
    %c24 = arith.constant 24 : index
    %c0_124 = arith.constant 0 : index
    %220 = vector.load %arg2[%c24, %c0_124] : memref<25x88xbf16, #tpu.memory_space<vmem>>, vector<1x88xbf16>
    %221 = arith.extf %220 : vector<1x88xbf16> to vector<1x88xf32>
    %222 = vector.shape_cast %221 : vector<1x88xf32> to vector<1x1x88xf32>
    %223 = vector.broadcast %222 : vector<1x1x88xf32> to vector<2x2x88xf32>
    %224 = arith.mulf %219, %223 : vector<2x2x88xf32>
    %225 = arith.addf %216, %224 : vector<2x2x88xf32>
    %c0_125 = arith.constant 0 : index
    %c0_126 = arith.constant 0 : index
    %226 = vector.load %arg3[%c0_125, %c0_126] : memref<1x88xf32, #tpu.memory_space<vmem>>, vector<1x88xf32>
    %227 = vector.shape_cast %226 : vector<1x88xf32> to vector<1x1x88xf32>
    %228 = vector.broadcast %227 : vector<1x1x88xf32> to vector<2x2x88xf32>
    %229 = arith.addf %225, %228 : vector<2x2x88xf32>
    %cst_127 = arith.constant 0.000000e+00 : f32
    %230 = vector.broadcast %cst_127 : f32 to vector<2x2x88xf32>
    %231 = arith.maximumf %229, %230 : vector<2x2x88xf32>
    %232 = arith.truncf %231 : vector<2x2x88xf32> to vector<2x2x88xbf16>
    %c0_128 = arith.constant 0 : index
    %c0_129 = arith.constant 0 : index
    %c0_130 = arith.constant 0 : index
    %c0_131 = arith.constant 0 : index
    %233 = vector.load %arg4[%c0_128, %c0_129, %c0_130, %c0_131] : memref<1x2x2x88xbf16, #tpu.memory_space<vmem>>, vector<1x2x2x88xbf16>
    %234 = vector.shape_cast %233 : vector<1x2x2x88xbf16> to vector<2x2x88xbf16>
    %235 = vector.shape_cast %232 : vector<2x2x88xbf16> to vector<1x2x2x88xbf16>
    tpu.vector_store %arg4[%c0_128, %c0_129, %c0_130, %c0_131], %235 {strides = array<i32>} : memref<1x2x2x88xbf16, #tpu.memory_space<vmem>>, vector<1x2x2x88xbf16>,
    return
  }
  func.func @transform_0(%arg0: i32) -> (i32, i32, i32, i32) {
    %c0_i32 = arith.constant 0 : i32
    %c0_i32_0 = arith.constant 0 : i32
    %c0_i32_1 = arith.constant 0 : i32
    %c0_i32_2 = arith.constant 0 : i32
    return %arg0, %c0_i32, %c0_i32_0, %c0_i32_1 : i32, i32, i32, i32
  }
  func.func @transform_1(%arg0: i32) -> (i32, i32) {
    %c0_i32 = arith.constant 0 : i32
    %c0_i32_0 = arith.constant 0 : i32
    %c0_i32_1 = arith.constant 0 : i32
    return %c0_i32, %c0_i32_0 : i32, i32
  }
  func.func @transform_2(%arg0: i32) -> (i32, i32) {
    %c0_i32 = arith.constant 0 : i32
    %c0_i32_0 = arith.constant 0 : i32
    %c0_i32_1 = arith.constant 0 : i32
    return %c0_i32, %c0_i32_0 : i32, i32
  }
  func.func @transform_3(%arg0: i32) -> (i32, i32, i32, i32) {
    %c0_i32 = arith.constant 0 : i32
    %c0_i32_0 = arith.constant 0 : i32
    %c0_i32_1 = arith.constant 0 : i32
    %c0_i32_2 = arith.constant 0 : i32
    return %arg0, %c0_i32, %c0_i32_0, %c0_i32_1 : i32, i32, i32, i32
  }
}

module attributes {stable_mosaic.version = 11 : i64} {
  func.func @_pw_flat_kernel(%arg0: i32, %arg1: memref<8x24xbf16, #tpu.memory_space<vmem>>, %arg2: memref<24x96xbf16, #tpu.memory_space<vmem>>, %arg3: memref<1x96xf32, #tpu.memory_space<vmem>>, %arg4: memref<8x96xbf16, #tpu.memory_space<vmem>>) attributes {dimension_semantics = [#tpu.dimension_semantics<parallel>], iteration_bounds = array<i64: 1>, scalar_prefetch = 0 : i64, scratch_operands = 0 : i64, tpu.core_type = #tpu.core_type<tc>, window_params = [{transform_indices = @transform_0, window_bounds = array<i64: 8, 24>}, {pipeline_mode = #tpu.pipeline_mode<synchronous>, transform_indices = @transform_1, window_bounds = array<i64: 24, 96>}, {pipeline_mode = #tpu.pipeline_mode<synchronous>, transform_indices = @transform_2, window_bounds = array<i64: 1, 96>}, {transform_indices = @transform_3, window_bounds = array<i64: 8, 96>}]} {
    %c0 = arith.constant 0 : index
    %c0_0 = arith.constant 0 : index
    %0 = vector.load %arg1[%c0, %c0_0] : memref<8x24xbf16, #tpu.memory_space<vmem>>, vector<8x24xbf16>
    %c0_1 = arith.constant 0 : index
    %c0_2 = arith.constant 0 : index
    %1 = vector.load %arg2[%c0_1, %c0_2] : memref<24x96xbf16, #tpu.memory_space<vmem>>, vector<24x96xbf16>
    %cst = arith.constant dense<0.000000e+00> : vector<8x96xf32>
    %2 = tpu.matmul %0, %1, %cst {dimension_numbers = #tpu.dot_dimension_numbers<[1], [0], [0], [1], [0, 0, 1, 1], [], []>} : vector<8x24xbf16>, vector<24x96xbf16>, vector<8x96xf32> -> vector<8x96xf32>
    %c0_3 = arith.constant 0 : index
    %c0_4 = arith.constant 0 : index
    %3 = vector.load %arg3[%c0_3, %c0_4] : memref<1x96xf32, #tpu.memory_space<vmem>>, vector<1x96xf32>
    %4 = vector.broadcast %3 : vector<1x96xf32> to vector<8x96xf32>
    %5 = arith.addf %2, %4 : vector<8x96xf32>
    %cst_5 = arith.constant 3.000000e+00 : f32
    %6 = vector.broadcast %cst_5 : f32 to vector<8x96xf32>
    %7 = arith.addf %5, %6 : vector<8x96xf32>
    %cst_6 = arith.constant 0.000000e+00 : f32
    %cst_7 = arith.constant 6.000000e+00 : f32
    %8 = vector.broadcast %cst_6 : f32 to vector<8x96xf32>
    %9 = arith.maximumf %8, %7 : vector<8x96xf32>
    %10 = vector.broadcast %cst_7 : f32 to vector<8x96xf32>
    %11 = arith.minimumf %10, %9 : vector<8x96xf32>
    %cst_8 = arith.constant 0.166666672 : f32
    %12 = vector.broadcast %cst_8 : f32 to vector<8x96xf32>
    %13 = arith.mulf %11, %12 : vector<8x96xf32>
    %14 = arith.mulf %5, %13 : vector<8x96xf32>
    %15 = arith.truncf %14 : vector<8x96xf32> to vector<8x96xbf16>
    %c0_9 = arith.constant 0 : index
    %c0_10 = arith.constant 0 : index
    %16 = vector.load %arg4[%c0_9, %c0_10] : memref<8x96xbf16, #tpu.memory_space<vmem>>, vector<8x96xbf16>
    tpu.vector_store %arg4[%c0_9, %c0_10], %15 {strides = array<i32>} : memref<8x96xbf16, #tpu.memory_space<vmem>>, vector<8x96xbf16>,
    return
  }
  func.func @transform_0(%arg0: i32) -> (i32, i32) {
    %c0_i32 = arith.constant 0 : i32
    %c0_i32_0 = arith.constant 0 : i32
    return %arg0, %c0_i32 : i32, i32
  }
  func.func @transform_1(%arg0: i32) -> (i32, i32) {
    %c0_i32 = arith.constant 0 : i32
    %c0_i32_0 = arith.constant 0 : i32
    %c0_i32_1 = arith.constant 0 : i32
    return %c0_i32, %c0_i32_0 : i32, i32
  }
  func.func @transform_2(%arg0: i32) -> (i32, i32) {
    %c0_i32 = arith.constant 0 : i32
    %c0_i32_0 = arith.constant 0 : i32
    %c0_i32_1 = arith.constant 0 : i32
    return %c0_i32, %c0_i32_0 : i32, i32
  }
  func.func @transform_3(%arg0: i32) -> (i32, i32) {
    %c0_i32 = arith.constant 0 : i32
    %c0_i32_0 = arith.constant 0 : i32
    return %arg0, %c0_i32 : i32, i32
  }
}

module attributes {stable_mosaic.version = 11 : i64} {
  func.func @_dw_conv_kernel(%arg0: i32, %arg1: memref<1x6x6x96xbf16, #tpu.memory_space<vmem>>, %arg2: memref<25x96xbf16, #tpu.memory_space<vmem>>, %arg3: memref<1x96xf32, #tpu.memory_space<vmem>>, %arg4: memref<1x2x2x96xbf16, #tpu.memory_space<vmem>>, %arg5: memref<1x1x96xf32, #tpu.memory_space<vmem>>) attributes {dimension_semantics = [#tpu.dimension_semantics<parallel>], iteration_bounds = array<i64: 2>, scalar_prefetch = 0 : i64, scratch_operands = 0 : i64, tpu.core_type = #tpu.core_type<tc>, window_params = [{transform_indices = @transform_0, window_bounds = array<i64: 1, 6, 6, 96>}, {pipeline_mode = #tpu.pipeline_mode<synchronous>, transform_indices = @transform_1, window_bounds = array<i64: 25, 96>}, {pipeline_mode = #tpu.pipeline_mode<synchronous>, transform_indices = @transform_2, window_bounds = array<i64: 1, 96>}, {transform_indices = @transform_3, window_bounds = array<i64: 1, 2, 2, 96>}, {transform_indices = @transform_4, window_bounds = array<i64: 1, 1, 96>}]} {
    %cst = arith.constant 0.000000e+00 : f32
    %0 = vector.broadcast %cst : f32 to vector<2x2x96xf32>
    %c0 = arith.constant 0 : index
    %c0_0 = arith.constant 0 : index
    %c0_1 = arith.constant 0 : index
    %c0_2 = arith.constant 0 : index
    %1 = vector.load %arg1[%c0, %c0_0, %c0_1, %c0_2] : memref<1x6x6x96xbf16, #tpu.memory_space<vmem>>, vector<1x2x2x96xbf16>
    %2 = vector.shape_cast %1 : vector<1x2x2x96xbf16> to vector<2x2x96xbf16>
    %3 = arith.extf %2 : vector<2x2x96xbf16> to vector<2x2x96xf32>
    %c0_3 = arith.constant 0 : index
    %c0_4 = arith.constant 0 : index
    %4 = vector.load %arg2[%c0_3, %c0_4] : memref<25x96xbf16, #tpu.memory_space<vmem>>, vector<1x96xbf16>
    %5 = arith.extf %4 : vector<1x96xbf16> to vector<1x96xf32>
    %6 = vector.shape_cast %5 : vector<1x96xf32> to vector<1x1x96xf32>
    %7 = vector.broadcast %6 : vector<1x1x96xf32> to vector<2x2x96xf32>
    %8 = arith.mulf %3, %7 : vector<2x2x96xf32>
    %9 = arith.addf %0, %8 : vector<2x2x96xf32>
    %c0_5 = arith.constant 0 : index
    %c0_6 = arith.constant 0 : index
    %c1 = arith.constant 1 : index
    %c0_7 = arith.constant 0 : index
    %10 = vector.load %arg1[%c0_5, %c0_6, %c1, %c0_7] : memref<1x6x6x96xbf16, #tpu.memory_space<vmem>>, vector<1x2x2x96xbf16>
    %11 = vector.shape_cast %10 : vector<1x2x2x96xbf16> to vector<2x2x96xbf16>
    %12 = arith.extf %11 : vector<2x2x96xbf16> to vector<2x2x96xf32>
    %c1_8 = arith.constant 1 : index
    %c0_9 = arith.constant 0 : index
    %13 = vector.load %arg2[%c1_8, %c0_9] : memref<25x96xbf16, #tpu.memory_space<vmem>>, vector<1x96xbf16>
    %14 = arith.extf %13 : vector<1x96xbf16> to vector<1x96xf32>
    %15 = vector.shape_cast %14 : vector<1x96xf32> to vector<1x1x96xf32>
    %16 = vector.broadcast %15 : vector<1x1x96xf32> to vector<2x2x96xf32>
    %17 = arith.mulf %12, %16 : vector<2x2x96xf32>
    %18 = arith.addf %9, %17 : vector<2x2x96xf32>
    %c0_10 = arith.constant 0 : index
    %c0_11 = arith.constant 0 : index
    %c2 = arith.constant 2 : index
    %c0_12 = arith.constant 0 : index
    %19 = vector.load %arg1[%c0_10, %c0_11, %c2, %c0_12] : memref<1x6x6x96xbf16, #tpu.memory_space<vmem>>, vector<1x2x2x96xbf16>
    %20 = vector.shape_cast %19 : vector<1x2x2x96xbf16> to vector<2x2x96xbf16>
    %21 = arith.extf %20 : vector<2x2x96xbf16> to vector<2x2x96xf32>
    %c2_13 = arith.constant 2 : index
    %c0_14 = arith.constant 0 : index
    %22 = vector.load %arg2[%c2_13, %c0_14] : memref<25x96xbf16, #tpu.memory_space<vmem>>, vector<1x96xbf16>
    %23 = arith.extf %22 : vector<1x96xbf16> to vector<1x96xf32>
    %24 = vector.shape_cast %23 : vector<1x96xf32> to vector<1x1x96xf32>
    %25 = vector.broadcast %24 : vector<1x1x96xf32> to vector<2x2x96xf32>
    %26 = arith.mulf %21, %25 : vector<2x2x96xf32>
    %27 = arith.addf %18, %26 : vector<2x2x96xf32>
    %c0_15 = arith.constant 0 : index
    %c0_16 = arith.constant 0 : index
    %c3 = arith.constant 3 : index
    %c0_17 = arith.constant 0 : index
    %28 = vector.load %arg1[%c0_15, %c0_16, %c3, %c0_17] : memref<1x6x6x96xbf16, #tpu.memory_space<vmem>>, vector<1x2x2x96xbf16>
    %29 = vector.shape_cast %28 : vector<1x2x2x96xbf16> to vector<2x2x96xbf16>
    %30 = arith.extf %29 : vector<2x2x96xbf16> to vector<2x2x96xf32>
    %c3_18 = arith.constant 3 : index
    %c0_19 = arith.constant 0 : index
    %31 = vector.load %arg2[%c3_18, %c0_19] : memref<25x96xbf16, #tpu.memory_space<vmem>>, vector<1x96xbf16>
    %32 = arith.extf %31 : vector<1x96xbf16> to vector<1x96xf32>
    %33 = vector.shape_cast %32 : vector<1x96xf32> to vector<1x1x96xf32>
    %34 = vector.broadcast %33 : vector<1x1x96xf32> to vector<2x2x96xf32>
    %35 = arith.mulf %30, %34 : vector<2x2x96xf32>
    %36 = arith.addf %27, %35 : vector<2x2x96xf32>
    %c0_20 = arith.constant 0 : index
    %c0_21 = arith.constant 0 : index
    %c4 = arith.constant 4 : index
    %c0_22 = arith.constant 0 : index
    %37 = vector.load %arg1[%c0_20, %c0_21, %c4, %c0_22] : memref<1x6x6x96xbf16, #tpu.memory_space<vmem>>, vector<1x2x2x96xbf16>
    %38 = vector.shape_cast %37 : vector<1x2x2x96xbf16> to vector<2x2x96xbf16>
    %39 = arith.extf %38 : vector<2x2x96xbf16> to vector<2x2x96xf32>
    %c4_23 = arith.constant 4 : index
    %c0_24 = arith.constant 0 : index
    %40 = vector.load %arg2[%c4_23, %c0_24] : memref<25x96xbf16, #tpu.memory_space<vmem>>, vector<1x96xbf16>
    %41 = arith.extf %40 : vector<1x96xbf16> to vector<1x96xf32>
    %42 = vector.shape_cast %41 : vector<1x96xf32> to vector<1x1x96xf32>
    %43 = vector.broadcast %42 : vector<1x1x96xf32> to vector<2x2x96xf32>
    %44 = arith.mulf %39, %43 : vector<2x2x96xf32>
    %45 = arith.addf %36, %44 : vector<2x2x96xf32>
    %c0_25 = arith.constant 0 : index
    %c1_26 = arith.constant 1 : index
    %c0_27 = arith.constant 0 : index
    %c0_28 = arith.constant 0 : index
    %46 = vector.load %arg1[%c0_25, %c1_26, %c0_27, %c0_28] : memref<1x6x6x96xbf16, #tpu.memory_space<vmem>>, vector<1x2x2x96xbf16>
    %47 = vector.shape_cast %46 : vector<1x2x2x96xbf16> to vector<2x2x96xbf16>
    %48 = arith.extf %47 : vector<2x2x96xbf16> to vector<2x2x96xf32>
    %c5 = arith.constant 5 : index
    %c0_29 = arith.constant 0 : index
    %49 = vector.load %arg2[%c5, %c0_29] : memref<25x96xbf16, #tpu.memory_space<vmem>>, vector<1x96xbf16>
    %50 = arith.extf %49 : vector<1x96xbf16> to vector<1x96xf32>
    %51 = vector.shape_cast %50 : vector<1x96xf32> to vector<1x1x96xf32>
    %52 = vector.broadcast %51 : vector<1x1x96xf32> to vector<2x2x96xf32>
    %53 = arith.mulf %48, %52 : vector<2x2x96xf32>
    %54 = arith.addf %45, %53 : vector<2x2x96xf32>
    %c0_30 = arith.constant 0 : index
    %c1_31 = arith.constant 1 : index
    %c1_32 = arith.constant 1 : index
    %c0_33 = arith.constant 0 : index
    %55 = vector.load %arg1[%c0_30, %c1_31, %c1_32, %c0_33] : memref<1x6x6x96xbf16, #tpu.memory_space<vmem>>, vector<1x2x2x96xbf16>
    %56 = vector.shape_cast %55 : vector<1x2x2x96xbf16> to vector<2x2x96xbf16>
    %57 = arith.extf %56 : vector<2x2x96xbf16> to vector<2x2x96xf32>
    %c6 = arith.constant 6 : index
    %c0_34 = arith.constant 0 : index
    %58 = vector.load %arg2[%c6, %c0_34] : memref<25x96xbf16, #tpu.memory_space<vmem>>, vector<1x96xbf16>
    %59 = arith.extf %58 : vector<1x96xbf16> to vector<1x96xf32>
    %60 = vector.shape_cast %59 : vector<1x96xf32> to vector<1x1x96xf32>
    %61 = vector.broadcast %60 : vector<1x1x96xf32> to vector<2x2x96xf32>
    %62 = arith.mulf %57, %61 : vector<2x2x96xf32>
    %63 = arith.addf %54, %62 : vector<2x2x96xf32>
    %c0_35 = arith.constant 0 : index
    %c1_36 = arith.constant 1 : index
    %c2_37 = arith.constant 2 : index
    %c0_38 = arith.constant 0 : index
    %64 = vector.load %arg1[%c0_35, %c1_36, %c2_37, %c0_38] : memref<1x6x6x96xbf16, #tpu.memory_space<vmem>>, vector<1x2x2x96xbf16>
    %65 = vector.shape_cast %64 : vector<1x2x2x96xbf16> to vector<2x2x96xbf16>
    %66 = arith.extf %65 : vector<2x2x96xbf16> to vector<2x2x96xf32>
    %c7 = arith.constant 7 : index
    %c0_39 = arith.constant 0 : index
    %67 = vector.load %arg2[%c7, %c0_39] : memref<25x96xbf16, #tpu.memory_space<vmem>>, vector<1x96xbf16>
    %68 = arith.extf %67 : vector<1x96xbf16> to vector<1x96xf32>
    %69 = vector.shape_cast %68 : vector<1x96xf32> to vector<1x1x96xf32>
    %70 = vector.broadcast %69 : vector<1x1x96xf32> to vector<2x2x96xf32>
    %71 = arith.mulf %66, %70 : vector<2x2x96xf32>
    %72 = arith.addf %63, %71 : vector<2x2x96xf32>
    %c0_40 = arith.constant 0 : index
    %c1_41 = arith.constant 1 : index
    %c3_42 = arith.constant 3 : index
    %c0_43 = arith.constant 0 : index
    %73 = vector.load %arg1[%c0_40, %c1_41, %c3_42, %c0_43] : memref<1x6x6x96xbf16, #tpu.memory_space<vmem>>, vector<1x2x2x96xbf16>
    %74 = vector.shape_cast %73 : vector<1x2x2x96xbf16> to vector<2x2x96xbf16>
    %75 = arith.extf %74 : vector<2x2x96xbf16> to vector<2x2x96xf32>
    %c8 = arith.constant 8 : index
    %c0_44 = arith.constant 0 : index
    %76 = vector.load %arg2[%c8, %c0_44] : memref<25x96xbf16, #tpu.memory_space<vmem>>, vector<1x96xbf16>
    %77 = arith.extf %76 : vector<1x96xbf16> to vector<1x96xf32>
    %78 = vector.shape_cast %77 : vector<1x96xf32> to vector<1x1x96xf32>
    %79 = vector.broadcast %78 : vector<1x1x96xf32> to vector<2x2x96xf32>
    %80 = arith.mulf %75, %79 : vector<2x2x96xf32>
    %81 = arith.addf %72, %80 : vector<2x2x96xf32>
    %c0_45 = arith.constant 0 : index
    %c1_46 = arith.constant 1 : index
    %c4_47 = arith.constant 4 : index
    %c0_48 = arith.constant 0 : index
    %82 = vector.load %arg1[%c0_45, %c1_46, %c4_47, %c0_48] : memref<1x6x6x96xbf16, #tpu.memory_space<vmem>>, vector<1x2x2x96xbf16>
    %83 = vector.shape_cast %82 : vector<1x2x2x96xbf16> to vector<2x2x96xbf16>
    %84 = arith.extf %83 : vector<2x2x96xbf16> to vector<2x2x96xf32>
    %c9 = arith.constant 9 : index
    %c0_49 = arith.constant 0 : index
    %85 = vector.load %arg2[%c9, %c0_49] : memref<25x96xbf16, #tpu.memory_space<vmem>>, vector<1x96xbf16>
    %86 = arith.extf %85 : vector<1x96xbf16> to vector<1x96xf32>
    %87 = vector.shape_cast %86 : vector<1x96xf32> to vector<1x1x96xf32>
    %88 = vector.broadcast %87 : vector<1x1x96xf32> to vector<2x2x96xf32>
    %89 = arith.mulf %84, %88 : vector<2x2x96xf32>
    %90 = arith.addf %81, %89 : vector<2x2x96xf32>
    %c0_50 = arith.constant 0 : index
    %c2_51 = arith.constant 2 : index
    %c0_52 = arith.constant 0 : index
    %c0_53 = arith.constant 0 : index
    %91 = vector.load %arg1[%c0_50, %c2_51, %c0_52, %c0_53] : memref<1x6x6x96xbf16, #tpu.memory_space<vmem>>, vector<1x2x2x96xbf16>
    %92 = vector.shape_cast %91 : vector<1x2x2x96xbf16> to vector<2x2x96xbf16>
    %93 = arith.extf %92 : vector<2x2x96xbf16> to vector<2x2x96xf32>
    %c10 = arith.constant 10 : index
    %c0_54 = arith.constant 0 : index
    %94 = vector.load %arg2[%c10, %c0_54] : memref<25x96xbf16, #tpu.memory_space<vmem>>, vector<1x96xbf16>
    %95 = arith.extf %94 : vector<1x96xbf16> to vector<1x96xf32>
    %96 = vector.shape_cast %95 : vector<1x96xf32> to vector<1x1x96xf32>
    %97 = vector.broadcast %96 : vector<1x1x96xf32> to vector<2x2x96xf32>
    %98 = arith.mulf %93, %97 : vector<2x2x96xf32>
    %99 = arith.addf %90, %98 : vector<2x2x96xf32>
    %c0_55 = arith.constant 0 : index
    %c2_56 = arith.constant 2 : index
    %c1_57 = arith.constant 1 : index
    %c0_58 = arith.constant 0 : index
    %100 = vector.load %arg1[%c0_55, %c2_56, %c1_57, %c0_58] : memref<1x6x6x96xbf16, #tpu.memory_space<vmem>>, vector<1x2x2x96xbf16>
    %101 = vector.shape_cast %100 : vector<1x2x2x96xbf16> to vector<2x2x96xbf16>
    %102 = arith.extf %101 : vector<2x2x96xbf16> to vector<2x2x96xf32>
    %c11 = arith.constant 11 : index
    %c0_59 = arith.constant 0 : index
    %103 = vector.load %arg2[%c11, %c0_59] : memref<25x96xbf16, #tpu.memory_space<vmem>>, vector<1x96xbf16>
    %104 = arith.extf %103 : vector<1x96xbf16> to vector<1x96xf32>
    %105 = vector.shape_cast %104 : vector<1x96xf32> to vector<1x1x96xf32>
    %106 = vector.broadcast %105 : vector<1x1x96xf32> to vector<2x2x96xf32>
    %107 = arith.mulf %102, %106 : vector<2x2x96xf32>
    %108 = arith.addf %99, %107 : vector<2x2x96xf32>
    %c0_60 = arith.constant 0 : index
    %c2_61 = arith.constant 2 : index
    %c2_62 = arith.constant 2 : index
    %c0_63 = arith.constant 0 : index
    %109 = vector.load %arg1[%c0_60, %c2_61, %c2_62, %c0_63] : memref<1x6x6x96xbf16, #tpu.memory_space<vmem>>, vector<1x2x2x96xbf16>
    %110 = vector.shape_cast %109 : vector<1x2x2x96xbf16> to vector<2x2x96xbf16>
    %111 = arith.extf %110 : vector<2x2x96xbf16> to vector<2x2x96xf32>
    %c12 = arith.constant 12 : index
    %c0_64 = arith.constant 0 : index
    %112 = vector.load %arg2[%c12, %c0_64] : memref<25x96xbf16, #tpu.memory_space<vmem>>, vector<1x96xbf16>
    %113 = arith.extf %112 : vector<1x96xbf16> to vector<1x96xf32>
    %114 = vector.shape_cast %113 : vector<1x96xf32> to vector<1x1x96xf32>
    %115 = vector.broadcast %114 : vector<1x1x96xf32> to vector<2x2x96xf32>
    %116 = arith.mulf %111, %115 : vector<2x2x96xf32>
    %117 = arith.addf %108, %116 : vector<2x2x96xf32>
    %c0_65 = arith.constant 0 : index
    %c2_66 = arith.constant 2 : index
    %c3_67 = arith.constant 3 : index
    %c0_68 = arith.constant 0 : index
    %118 = vector.load %arg1[%c0_65, %c2_66, %c3_67, %c0_68] : memref<1x6x6x96xbf16, #tpu.memory_space<vmem>>, vector<1x2x2x96xbf16>
    %119 = vector.shape_cast %118 : vector<1x2x2x96xbf16> to vector<2x2x96xbf16>
    %120 = arith.extf %119 : vector<2x2x96xbf16> to vector<2x2x96xf32>
    %c13 = arith.constant 13 : index
    %c0_69 = arith.constant 0 : index
    %121 = vector.load %arg2[%c13, %c0_69] : memref<25x96xbf16, #tpu.memory_space<vmem>>, vector<1x96xbf16>
    %122 = arith.extf %121 : vector<1x96xbf16> to vector<1x96xf32>
    %123 = vector.shape_cast %122 : vector<1x96xf32> to vector<1x1x96xf32>
    %124 = vector.broadcast %123 : vector<1x1x96xf32> to vector<2x2x96xf32>
    %125 = arith.mulf %120, %124 : vector<2x2x96xf32>
    %126 = arith.addf %117, %125 : vector<2x2x96xf32>
    %c0_70 = arith.constant 0 : index
    %c2_71 = arith.constant 2 : index
    %c4_72 = arith.constant 4 : index
    %c0_73 = arith.constant 0 : index
    %127 = vector.load %arg1[%c0_70, %c2_71, %c4_72, %c0_73] : memref<1x6x6x96xbf16, #tpu.memory_space<vmem>>, vector<1x2x2x96xbf16>
    %128 = vector.shape_cast %127 : vector<1x2x2x96xbf16> to vector<2x2x96xbf16>
    %129 = arith.extf %128 : vector<2x2x96xbf16> to vector<2x2x96xf32>
    %c14 = arith.constant 14 : index
    %c0_74 = arith.constant 0 : index
    %130 = vector.load %arg2[%c14, %c0_74] : memref<25x96xbf16, #tpu.memory_space<vmem>>, vector<1x96xbf16>
    %131 = arith.extf %130 : vector<1x96xbf16> to vector<1x96xf32>
    %132 = vector.shape_cast %131 : vector<1x96xf32> to vector<1x1x96xf32>
    %133 = vector.broadcast %132 : vector<1x1x96xf32> to vector<2x2x96xf32>
    %134 = arith.mulf %129, %133 : vector<2x2x96xf32>
    %135 = arith.addf %126, %134 : vector<2x2x96xf32>
    %c0_75 = arith.constant 0 : index
    %c3_76 = arith.constant 3 : index
    %c0_77 = arith.constant 0 : index
    %c0_78 = arith.constant 0 : index
    %136 = vector.load %arg1[%c0_75, %c3_76, %c0_77, %c0_78] : memref<1x6x6x96xbf16, #tpu.memory_space<vmem>>, vector<1x2x2x96xbf16>
    %137 = vector.shape_cast %136 : vector<1x2x2x96xbf16> to vector<2x2x96xbf16>
    %138 = arith.extf %137 : vector<2x2x96xbf16> to vector<2x2x96xf32>
    %c15 = arith.constant 15 : index
    %c0_79 = arith.constant 0 : index
    %139 = vector.load %arg2[%c15, %c0_79] : memref<25x96xbf16, #tpu.memory_space<vmem>>, vector<1x96xbf16>
    %140 = arith.extf %139 : vector<1x96xbf16> to vector<1x96xf32>
    %141 = vector.shape_cast %140 : vector<1x96xf32> to vector<1x1x96xf32>
    %142 = vector.broadcast %141 : vector<1x1x96xf32> to vector<2x2x96xf32>
    %143 = arith.mulf %138, %142 : vector<2x2x96xf32>
    %144 = arith.addf %135, %143 : vector<2x2x96xf32>
    %c0_80 = arith.constant 0 : index
    %c3_81 = arith.constant 3 : index
    %c1_82 = arith.constant 1 : index
    %c0_83 = arith.constant 0 : index
    %145 = vector.load %arg1[%c0_80, %c3_81, %c1_82, %c0_83] : memref<1x6x6x96xbf16, #tpu.memory_space<vmem>>, vector<1x2x2x96xbf16>
    %146 = vector.shape_cast %145 : vector<1x2x2x96xbf16> to vector<2x2x96xbf16>
    %147 = arith.extf %146 : vector<2x2x96xbf16> to vector<2x2x96xf32>
    %c16 = arith.constant 16 : index
    %c0_84 = arith.constant 0 : index
    %148 = vector.load %arg2[%c16, %c0_84] : memref<25x96xbf16, #tpu.memory_space<vmem>>, vector<1x96xbf16>
    %149 = arith.extf %148 : vector<1x96xbf16> to vector<1x96xf32>
    %150 = vector.shape_cast %149 : vector<1x96xf32> to vector<1x1x96xf32>
    %151 = vector.broadcast %150 : vector<1x1x96xf32> to vector<2x2x96xf32>
    %152 = arith.mulf %147, %151 : vector<2x2x96xf32>
    %153 = arith.addf %144, %152 : vector<2x2x96xf32>
    %c0_85 = arith.constant 0 : index
    %c3_86 = arith.constant 3 : index
    %c2_87 = arith.constant 2 : index
    %c0_88 = arith.constant 0 : index
    %154 = vector.load %arg1[%c0_85, %c3_86, %c2_87, %c0_88] : memref<1x6x6x96xbf16, #tpu.memory_space<vmem>>, vector<1x2x2x96xbf16>
    %155 = vector.shape_cast %154 : vector<1x2x2x96xbf16> to vector<2x2x96xbf16>
    %156 = arith.extf %155 : vector<2x2x96xbf16> to vector<2x2x96xf32>
    %c17 = arith.constant 17 : index
    %c0_89 = arith.constant 0 : index
    %157 = vector.load %arg2[%c17, %c0_89] : memref<25x96xbf16, #tpu.memory_space<vmem>>, vector<1x96xbf16>
    %158 = arith.extf %157 : vector<1x96xbf16> to vector<1x96xf32>
    %159 = vector.shape_cast %158 : vector<1x96xf32> to vector<1x1x96xf32>
    %160 = vector.broadcast %159 : vector<1x1x96xf32> to vector<2x2x96xf32>
    %161 = arith.mulf %156, %160 : vector<2x2x96xf32>
    %162 = arith.addf %153, %161 : vector<2x2x96xf32>
    %c0_90 = arith.constant 0 : index
    %c3_91 = arith.constant 3 : index
    %c3_92 = arith.constant 3 : index
    %c0_93 = arith.constant 0 : index
    %163 = vector.load %arg1[%c0_90, %c3_91, %c3_92, %c0_93] : memref<1x6x6x96xbf16, #tpu.memory_space<vmem>>, vector<1x2x2x96xbf16>
    %164 = vector.shape_cast %163 : vector<1x2x2x96xbf16> to vector<2x2x96xbf16>
    %165 = arith.extf %164 : vector<2x2x96xbf16> to vector<2x2x96xf32>
    %c18 = arith.constant 18 : index
    %c0_94 = arith.constant 0 : index
    %166 = vector.load %arg2[%c18, %c0_94] : memref<25x96xbf16, #tpu.memory_space<vmem>>, vector<1x96xbf16>
    %167 = arith.extf %166 : vector<1x96xbf16> to vector<1x96xf32>
    %168 = vector.shape_cast %167 : vector<1x96xf32> to vector<1x1x96xf32>
    %169 = vector.broadcast %168 : vector<1x1x96xf32> to vector<2x2x96xf32>
    %170 = arith.mulf %165, %169 : vector<2x2x96xf32>
    %171 = arith.addf %162, %170 : vector<2x2x96xf32>
    %c0_95 = arith.constant 0 : index
    %c3_96 = arith.constant 3 : index
    %c4_97 = arith.constant 4 : index
    %c0_98 = arith.constant 0 : index
    %172 = vector.load %arg1[%c0_95, %c3_96, %c4_97, %c0_98] : memref<1x6x6x96xbf16, #tpu.memory_space<vmem>>, vector<1x2x2x96xbf16>
    %173 = vector.shape_cast %172 : vector<1x2x2x96xbf16> to vector<2x2x96xbf16>
    %174 = arith.extf %173 : vector<2x2x96xbf16> to vector<2x2x96xf32>
    %c19 = arith.constant 19 : index
    %c0_99 = arith.constant 0 : index
    %175 = vector.load %arg2[%c19, %c0_99] : memref<25x96xbf16, #tpu.memory_space<vmem>>, vector<1x96xbf16>
    %176 = arith.extf %175 : vector<1x96xbf16> to vector<1x96xf32>
    %177 = vector.shape_cast %176 : vector<1x96xf32> to vector<1x1x96xf32>
    %178 = vector.broadcast %177 : vector<1x1x96xf32> to vector<2x2x96xf32>
    %179 = arith.mulf %174, %178 : vector<2x2x96xf32>
    %180 = arith.addf %171, %179 : vector<2x2x96xf32>
    %c0_100 = arith.constant 0 : index
    %c4_101 = arith.constant 4 : index
    %c0_102 = arith.constant 0 : index
    %c0_103 = arith.constant 0 : index
    %181 = vector.load %arg1[%c0_100, %c4_101, %c0_102, %c0_103] : memref<1x6x6x96xbf16, #tpu.memory_space<vmem>>, vector<1x2x2x96xbf16>
    %182 = vector.shape_cast %181 : vector<1x2x2x96xbf16> to vector<2x2x96xbf16>
    %183 = arith.extf %182 : vector<2x2x96xbf16> to vector<2x2x96xf32>
    %c20 = arith.constant 20 : index
    %c0_104 = arith.constant 0 : index
    %184 = vector.load %arg2[%c20, %c0_104] : memref<25x96xbf16, #tpu.memory_space<vmem>>, vector<1x96xbf16>
    %185 = arith.extf %184 : vector<1x96xbf16> to vector<1x96xf32>
    %186 = vector.shape_cast %185 : vector<1x96xf32> to vector<1x1x96xf32>
    %187 = vector.broadcast %186 : vector<1x1x96xf32> to vector<2x2x96xf32>
    %188 = arith.mulf %183, %187 : vector<2x2x96xf32>
    %189 = arith.addf %180, %188 : vector<2x2x96xf32>
    %c0_105 = arith.constant 0 : index
    %c4_106 = arith.constant 4 : index
    %c1_107 = arith.constant 1 : index
    %c0_108 = arith.constant 0 : index
    %190 = vector.load %arg1[%c0_105, %c4_106, %c1_107, %c0_108] : memref<1x6x6x96xbf16, #tpu.memory_space<vmem>>, vector<1x2x2x96xbf16>
    %191 = vector.shape_cast %190 : vector<1x2x2x96xbf16> to vector<2x2x96xbf16>
    %192 = arith.extf %191 : vector<2x2x96xbf16> to vector<2x2x96xf32>
    %c21 = arith.constant 21 : index
    %c0_109 = arith.constant 0 : index
    %193 = vector.load %arg2[%c21, %c0_109] : memref<25x96xbf16, #tpu.memory_space<vmem>>, vector<1x96xbf16>
    %194 = arith.extf %193 : vector<1x96xbf16> to vector<1x96xf32>
    %195 = vector.shape_cast %194 : vector<1x96xf32> to vector<1x1x96xf32>
    %196 = vector.broadcast %195 : vector<1x1x96xf32> to vector<2x2x96xf32>
    %197 = arith.mulf %192, %196 : vector<2x2x96xf32>
    %198 = arith.addf %189, %197 : vector<2x2x96xf32>
    %c0_110 = arith.constant 0 : index
    %c4_111 = arith.constant 4 : index
    %c2_112 = arith.constant 2 : index
    %c0_113 = arith.constant 0 : index
    %199 = vector.load %arg1[%c0_110, %c4_111, %c2_112, %c0_113] : memref<1x6x6x96xbf16, #tpu.memory_space<vmem>>, vector<1x2x2x96xbf16>
    %200 = vector.shape_cast %199 : vector<1x2x2x96xbf16> to vector<2x2x96xbf16>
    %201 = arith.extf %200 : vector<2x2x96xbf16> to vector<2x2x96xf32>
    %c22 = arith.constant 22 : index
    %c0_114 = arith.constant 0 : index
    %202 = vector.load %arg2[%c22, %c0_114] : memref<25x96xbf16, #tpu.memory_space<vmem>>, vector<1x96xbf16>
    %203 = arith.extf %202 : vector<1x96xbf16> to vector<1x96xf32>
    %204 = vector.shape_cast %203 : vector<1x96xf32> to vector<1x1x96xf32>
    %205 = vector.broadcast %204 : vector<1x1x96xf32> to vector<2x2x96xf32>
    %206 = arith.mulf %201, %205 : vector<2x2x96xf32>
    %207 = arith.addf %198, %206 : vector<2x2x96xf32>
    %c0_115 = arith.constant 0 : index
    %c4_116 = arith.constant 4 : index
    %c3_117 = arith.constant 3 : index
    %c0_118 = arith.constant 0 : index
    %208 = vector.load %arg1[%c0_115, %c4_116, %c3_117, %c0_118] : memref<1x6x6x96xbf16, #tpu.memory_space<vmem>>, vector<1x2x2x96xbf16>
    %209 = vector.shape_cast %208 : vector<1x2x2x96xbf16> to vector<2x2x96xbf16>
    %210 = arith.extf %209 : vector<2x2x96xbf16> to vector<2x2x96xf32>
    %c23 = arith.constant 23 : index
    %c0_119 = arith.constant 0 : index
    %211 = vector.load %arg2[%c23, %c0_119] : memref<25x96xbf16, #tpu.memory_space<vmem>>, vector<1x96xbf16>
    %212 = arith.extf %211 : vector<1x96xbf16> to vector<1x96xf32>
    %213 = vector.shape_cast %212 : vector<1x96xf32> to vector<1x1x96xf32>
    %214 = vector.broadcast %213 : vector<1x1x96xf32> to vector<2x2x96xf32>
    %215 = arith.mulf %210, %214 : vector<2x2x96xf32>
    %216 = arith.addf %207, %215 : vector<2x2x96xf32>
    %c0_120 = arith.constant 0 : index
    %c4_121 = arith.constant 4 : index
    %c4_122 = arith.constant 4 : index
    %c0_123 = arith.constant 0 : index
    %217 = vector.load %arg1[%c0_120, %c4_121, %c4_122, %c0_123] : memref<1x6x6x96xbf16, #tpu.memory_space<vmem>>, vector<1x2x2x96xbf16>
    %218 = vector.shape_cast %217 : vector<1x2x2x96xbf16> to vector<2x2x96xbf16>
    %219 = arith.extf %218 : vector<2x2x96xbf16> to vector<2x2x96xf32>
    %c24 = arith.constant 24 : index
    %c0_124 = arith.constant 0 : index
    %220 = vector.load %arg2[%c24, %c0_124] : memref<25x96xbf16, #tpu.memory_space<vmem>>, vector<1x96xbf16>
    %221 = arith.extf %220 : vector<1x96xbf16> to vector<1x96xf32>
    %222 = vector.shape_cast %221 : vector<1x96xf32> to vector<1x1x96xf32>
    %223 = vector.broadcast %222 : vector<1x1x96xf32> to vector<2x2x96xf32>
    %224 = arith.mulf %219, %223 : vector<2x2x96xf32>
    %225 = arith.addf %216, %224 : vector<2x2x96xf32>
    %c0_125 = arith.constant 0 : index
    %c0_126 = arith.constant 0 : index
    %226 = vector.load %arg3[%c0_125, %c0_126] : memref<1x96xf32, #tpu.memory_space<vmem>>, vector<1x96xf32>
    %227 = vector.shape_cast %226 : vector<1x96xf32> to vector<1x1x96xf32>
    %228 = vector.broadcast %227 : vector<1x1x96xf32> to vector<2x2x96xf32>
    %229 = arith.addf %225, %228 : vector<2x2x96xf32>
    %cst_127 = arith.constant 3.000000e+00 : f32
    %230 = vector.broadcast %cst_127 : f32 to vector<2x2x96xf32>
    %231 = arith.addf %229, %230 : vector<2x2x96xf32>
    %cst_128 = arith.constant 0.000000e+00 : f32
    %cst_129 = arith.constant 6.000000e+00 : f32
    %232 = vector.broadcast %cst_128 : f32 to vector<2x2x96xf32>
    %233 = arith.maximumf %232, %231 : vector<2x2x96xf32>
    %234 = vector.broadcast %cst_129 : f32 to vector<2x2x96xf32>
    %235 = arith.minimumf %234, %233 : vector<2x2x96xf32>
    %cst_130 = arith.constant 0.166666672 : f32
    %236 = vector.broadcast %cst_130 : f32 to vector<2x2x96xf32>
    %237 = arith.mulf %235, %236 : vector<2x2x96xf32>
    %238 = arith.mulf %229, %237 : vector<2x2x96xf32>
    %239 = arith.truncf %238 : vector<2x2x96xf32> to vector<2x2x96xbf16>
    %c0_131 = arith.constant 0 : index
    %c0_132 = arith.constant 0 : index
    %c0_133 = arith.constant 0 : index
    %c0_134 = arith.constant 0 : index
    %240 = vector.load %arg4[%c0_131, %c0_132, %c0_133, %c0_134] : memref<1x2x2x96xbf16, #tpu.memory_space<vmem>>, vector<1x2x2x96xbf16>
    %241 = vector.shape_cast %240 : vector<1x2x2x96xbf16> to vector<2x2x96xbf16>
    %242 = vector.shape_cast %239 : vector<2x2x96xbf16> to vector<1x2x2x96xbf16>
    tpu.vector_store %arg4[%c0_131, %c0_132, %c0_133, %c0_134], %242 {strides = array<i32>} : memref<1x2x2x96xbf16, #tpu.memory_space<vmem>>, vector<1x2x2x96xbf16>,
    %cst_135 = arith.constant dense<0.000000e+00> : vector<2x96xf32>
    %243 = vector.multi_reduction <add>, %238, %cst_135 [0] : vector<2x2x96xf32> to vector<2x96xf32>
    %cst_136 = arith.constant dense<0.000000e+00> : vector<96xf32>
    %244 = vector.multi_reduction <add>, %243, %cst_136 [0] : vector<2x96xf32> to vector<96xf32>
    %245 = vector.shape_cast %244 : vector<96xf32> to vector<1x96xf32>
    %cst_137 = arith.constant 2.500000e-01 : f32
    %246 = vector.broadcast %cst_137 : f32 to vector<1x96xf32>
    %247 = arith.mulf %245, %246 : vector<1x96xf32>
    %c0_138 = arith.constant 0 : index
    %c0_139 = arith.constant 0 : index
    %c0_140 = arith.constant 0 : index
    %248 = vector.load %arg5[%c0_138, %c0_139, %c0_140] : memref<1x1x96xf32, #tpu.memory_space<vmem>>, vector<1x1x96xf32>
    %249 = vector.shape_cast %248 : vector<1x1x96xf32> to vector<1x96xf32>
    %250 = vector.shape_cast %247 : vector<1x96xf32> to vector<1x1x96xf32>
    tpu.vector_store %arg5[%c0_138, %c0_139, %c0_140], %250 {strides = array<i32>} : memref<1x1x96xf32, #tpu.memory_space<vmem>>, vector<1x1x96xf32>,
    return
  }
  func.func @transform_0(%arg0: i32) -> (i32, i32, i32, i32) {
    %c0_i32 = arith.constant 0 : i32
    %c0_i32_0 = arith.constant 0 : i32
    %c0_i32_1 = arith.constant 0 : i32
    %c0_i32_2 = arith.constant 0 : i32
    return %arg0, %c0_i32, %c0_i32_0, %c0_i32_1 : i32, i32, i32, i32
  }
  func.func @transform_1(%arg0: i32) -> (i32, i32) {
    %c0_i32 = arith.constant 0 : i32
    %c0_i32_0 = arith.constant 0 : i32
    %c0_i32_1 = arith.constant 0 : i32
    return %c0_i32, %c0_i32_0 : i32, i32
  }
  func.func @transform_2(%arg0: i32) -> (i32, i32) {
    %c0_i32 = arith.constant 0 : i32
    %c0_i32_0 = arith.constant 0 : i32
    %c0_i32_1 = arith.constant 0 : i32
    return %c0_i32, %c0_i32_0 : i32, i32
  }
  func.func @transform_3(%arg0: i32) -> (i32, i32, i32, i32) {
    %c0_i32 = arith.constant 0 : i32
    %c0_i32_0 = arith.constant 0 : i32
    %c0_i32_1 = arith.constant 0 : i32
    %c0_i32_2 = arith.constant 0 : i32
    return %arg0, %c0_i32, %c0_i32_0, %c0_i32_1 : i32, i32, i32, i32
  }
  func.func @transform_4(%arg0: i32) -> (i32, i32, i32) {
    %c0_i32 = arith.constant 0 : i32
    %c0_i32_0 = arith.constant 0 : i32
    %c0_i32_1 = arith.constant 0 : i32
    return %arg0, %c0_i32, %c0_i32_0 : i32, i32, i32
  }
}

module attributes {stable_mosaic.version = 11 : i64} {
  func.func @_pw_se_kernel(%arg0: i32, %arg1: i32, %arg2: memref<1x4x96xbf16, #tpu.memory_space<vmem>>, %arg3: memref<96x40xbf16, #tpu.memory_space<vmem>>, %arg4: memref<1x40xf32, #tpu.memory_space<vmem>>, %arg5: memref<1x1x96xf32, #tpu.memory_space<vmem>>, %arg6: memref<1x4x40xbf16, #tpu.memory_space<vmem>>) attributes {dimension_semantics = [#tpu.dimension_semantics<parallel>, #tpu.dimension_semantics<parallel>], iteration_bounds = array<i64: 2, 1>, scalar_prefetch = 0 : i64, scratch_operands = 0 : i64, tpu.core_type = #tpu.core_type<tc>, window_params = [{transform_indices = @transform_0, window_bounds = array<i64: 1, 4, 96>}, {pipeline_mode = #tpu.pipeline_mode<synchronous>, transform_indices = @transform_1, window_bounds = array<i64: 96, 40>}, {pipeline_mode = #tpu.pipeline_mode<synchronous>, transform_indices = @transform_2, window_bounds = array<i64: 1, 40>}, {transform_indices = @transform_3, window_bounds = array<i64: 1, 1, 96>}, {transform_indices = @transform_4, window_bounds = array<i64: 1, 4, 40>}]} {
    %c0 = arith.constant 0 : index
    %c0_0 = arith.constant 0 : index
    %c0_1 = arith.constant 0 : index
    %0 = vector.load %arg2[%c0, %c0_0, %c0_1] : memref<1x4x96xbf16, #tpu.memory_space<vmem>>, vector<1x4x96xbf16>
    %1 = vector.shape_cast %0 : vector<1x4x96xbf16> to vector<4x96xbf16>
    %2 = arith.extf %1 : vector<4x96xbf16> to vector<4x96xf32>
    %c0_2 = arith.constant 0 : index
    %c0_3 = arith.constant 0 : index
    %c0_4 = arith.constant 0 : index
    %3 = vector.load %arg5[%c0_2, %c0_3, %c0_4] : memref<1x1x96xf32, #tpu.memory_space<vmem>>, vector<1x1x96xf32>
    %4 = vector.shape_cast %3 : vector<1x1x96xf32> to vector<1x96xf32>
    %5 = vector.broadcast %4 : vector<1x96xf32> to vector<4x96xf32>
    %6 = arith.mulf %2, %5 : vector<4x96xf32>
    %7 = arith.truncf %6 : vector<4x96xf32> to vector<4x96xbf16>
    %c0_5 = arith.constant 0 : index
    %c0_6 = arith.constant 0 : index
    %8 = vector.load %arg3[%c0_5, %c0_6] : memref<96x40xbf16, #tpu.memory_space<vmem>>, vector<96x40xbf16>
    %cst = arith.constant dense<0.000000e+00> : vector<4x40xf32>
    %9 = tpu.matmul %7, %8, %cst {dimension_numbers = #tpu.dot_dimension_numbers<[1], [0], [0], [1], [0, 0, 1, 1], [], []>} : vector<4x96xbf16>, vector<96x40xbf16>, vector<4x40xf32> -> vector<4x40xf32>
    %c0_7 = arith.constant 0 : index
    %c0_8 = arith.constant 0 : index
    %10 = vector.load %arg4[%c0_7, %c0_8] : memref<1x40xf32, #tpu.memory_space<vmem>>, vector<1x40xf32>
    %11 = vector.broadcast %10 : vector<1x40xf32> to vector<4x40xf32>
    %12 = arith.addf %9, %11 : vector<4x40xf32>
    %13 = arith.truncf %12 : vector<4x40xf32> to vector<4x40xbf16>
    %c0_9 = arith.constant 0 : index
    %c0_10 = arith.constant 0 : index
    %c0_11 = arith.constant 0 : index
    %14 = vector.load %arg6[%c0_9, %c0_10, %c0_11] : memref<1x4x40xbf16, #tpu.memory_space<vmem>>, vector<1x4x40xbf16>
    %15 = vector.shape_cast %14 : vector<1x4x40xbf16> to vector<4x40xbf16>
    %16 = vector.shape_cast %13 : vector<4x40xbf16> to vector<1x4x40xbf16>
    tpu.vector_store %arg6[%c0_9, %c0_10, %c0_11], %16 {strides = array<i32>} : memref<1x4x40xbf16, #tpu.memory_space<vmem>>, vector<1x4x40xbf16>,
    return
  }
  func.func @transform_0(%arg0: i32, %arg1: i32) -> (i32, i32, i32) {
    %c0_i32 = arith.constant 0 : i32
    %c0_i32_0 = arith.constant 0 : i32
    return %arg0, %arg1, %c0_i32 : i32, i32, i32
  }
  func.func @transform_1(%arg0: i32, %arg1: i32) -> (i32, i32) {
    %c0_i32 = arith.constant 0 : i32
    %c0_i32_0 = arith.constant 0 : i32
    %c0_i32_1 = arith.constant 0 : i32
    return %c0_i32, %c0_i32_0 : i32, i32
  }
  func.func @transform_2(%arg0: i32, %arg1: i32) -> (i32, i32) {
    %c0_i32 = arith.constant 0 : i32
    %c0_i32_0 = arith.constant 0 : i32
    %c0_i32_1 = arith.constant 0 : i32
    return %c0_i32, %c0_i32_0 : i32, i32
  }
  func.func @transform_3(%arg0: i32, %arg1: i32) -> (i32, i32, i32) {
    %c0_i32 = arith.constant 0 : i32
    %c0_i32_0 = arith.constant 0 : i32
    %c0_i32_1 = arith.constant 0 : i32
    return %arg0, %c0_i32, %c0_i32_0 : i32, i32, i32
  }
  func.func @transform_4(%arg0: i32, %arg1: i32) -> (i32, i32, i32) {
    %c0_i32 = arith.constant 0 : i32
    %c0_i32_0 = arith.constant 0 : i32
    return %arg0, %arg1, %c0_i32 : i32, i32, i32
  }
}

module attributes {stable_mosaic.version = 11 : i64} {
  func.func @_lastconv_gap_kernel(%arg0: i32, %arg1: memref<1x4x40xbf16, #tpu.memory_space<vmem>>, %arg2: memref<40x240xbf16, #tpu.memory_space<vmem>>, %arg3: memref<1x240xf32, #tpu.memory_space<vmem>>, %arg4: memref<1x1x240xf32, #tpu.memory_space<vmem>>) attributes {dimension_semantics = [#tpu.dimension_semantics<parallel>], iteration_bounds = array<i64: 2>, scalar_prefetch = 0 : i64, scratch_operands = 0 : i64, tpu.core_type = #tpu.core_type<tc>, window_params = [{transform_indices = @transform_0, window_bounds = array<i64: 1, 4, 40>}, {pipeline_mode = #tpu.pipeline_mode<synchronous>, transform_indices = @transform_1, window_bounds = array<i64: 40, 240>}, {pipeline_mode = #tpu.pipeline_mode<synchronous>, transform_indices = @transform_2, window_bounds = array<i64: 1, 240>}, {transform_indices = @transform_3, window_bounds = array<i64: 1, 1, 240>}]} {
    %c0 = arith.constant 0 : index
    %c0_0 = arith.constant 0 : index
    %c0_1 = arith.constant 0 : index
    %0 = vector.load %arg1[%c0, %c0_0, %c0_1] : memref<1x4x40xbf16, #tpu.memory_space<vmem>>, vector<1x4x40xbf16>
    %1 = vector.shape_cast %0 : vector<1x4x40xbf16> to vector<4x40xbf16>
    %c0_2 = arith.constant 0 : index
    %c0_3 = arith.constant 0 : index
    %2 = vector.load %arg2[%c0_2, %c0_3] : memref<40x240xbf16, #tpu.memory_space<vmem>>, vector<40x240xbf16>
    %cst = arith.constant dense<0.000000e+00> : vector<4x240xf32>
    %3 = tpu.matmul %1, %2, %cst {dimension_numbers = #tpu.dot_dimension_numbers<[1], [0], [0], [1], [0, 0, 1, 1], [], []>} : vector<4x40xbf16>, vector<40x240xbf16>, vector<4x240xf32> -> vector<4x240xf32>
    %c0_4 = arith.constant 0 : index
    %c0_5 = arith.constant 0 : index
    %4 = vector.load %arg3[%c0_4, %c0_5] : memref<1x240xf32, #tpu.memory_space<vmem>>, vector<1x240xf32>
    %5 = vector.broadcast %4 : vector<1x240xf32> to vector<4x240xf32>
    %6 = arith.addf %3, %5 : vector<4x240xf32>
    %cst_6 = arith.constant 3.000000e+00 : f32
    %7 = vector.broadcast %cst_6 : f32 to vector<4x240xf32>
    %8 = arith.addf %6, %7 : vector<4x240xf32>
    %cst_7 = arith.constant 0.000000e+00 : f32
    %cst_8 = arith.constant 6.000000e+00 : f32
    %9 = vector.broadcast %cst_7 : f32 to vector<4x240xf32>
    %10 = arith.maximumf %9, %8 : vector<4x240xf32>
    %11 = vector.broadcast %cst_8 : f32 to vector<4x240xf32>
    %12 = arith.minimumf %11, %10 : vector<4x240xf32>
    %cst_9 = arith.constant 0.166666672 : f32
    %13 = vector.broadcast %cst_9 : f32 to vector<4x240xf32>
    %14 = arith.mulf %12, %13 : vector<4x240xf32>
    %15 = arith.mulf %6, %14 : vector<4x240xf32>
    %cst_10 = arith.constant dense<0.000000e+00> : vector<240xf32>
    %16 = vector.multi_reduction <add>, %15, %cst_10 [0] : vector<4x240xf32> to vector<240xf32>
    %17 = vector.shape_cast %16 : vector<240xf32> to vector<1x240xf32>
    %cst_11 = arith.constant 2.500000e-01 : f32
    %18 = vector.broadcast %cst_11 : f32 to vector<1x240xf32>
    %19 = arith.mulf %17, %18 : vector<1x240xf32>
    %c0_12 = arith.constant 0 : index
    %c0_13 = arith.constant 0 : index
    %c0_14 = arith.constant 0 : index
    %20 = vector.load %arg4[%c0_12, %c0_13, %c0_14] : memref<1x1x240xf32, #tpu.memory_space<vmem>>, vector<1x1x240xf32>
    %21 = vector.shape_cast %20 : vector<1x1x240xf32> to vector<1x240xf32>
    %22 = vector.shape_cast %19 : vector<1x240xf32> to vector<1x1x240xf32>
    tpu.vector_store %arg4[%c0_12, %c0_13, %c0_14], %22 {strides = array<i32>} : memref<1x1x240xf32, #tpu.memory_space<vmem>>, vector<1x1x240xf32>,
    return
  }
  func.func @transform_0(%arg0: i32) -> (i32, i32, i32) {
    %c0_i32 = arith.constant 0 : i32
    %c0_i32_0 = arith.constant 0 : i32
    %c0_i32_1 = arith.constant 0 : i32
    return %arg0, %c0_i32, %c0_i32_0 : i32, i32, i32
  }
  func.func @transform_1(%arg0: i32) -> (i32, i32) {
    %c0_i32 = arith.constant 0 : i32
    %c0_i32_0 = arith.constant 0 : i32
    %c0_i32_1 = arith.constant 0 : i32
    return %c0_i32, %c0_i32_0 : i32, i32
  }
  func.func @transform_2(%arg0: i32) -> (i32, i32) {
    %c0_i32 = arith.constant 0 : i32
    %c0_i32_0 = arith.constant 0 : i32
    %c0_i32_1 = arith.constant 0 : i32
    return %c0_i32, %c0_i32_0 : i32, i32
  }
  func.func @transform_3(%arg0: i32) -> (i32, i32, i32) {
    %c0_i32 = arith.constant 0 : i32
    %c0_i32_0 = arith.constant 0 : i32
    %c0_i32_1 = arith.constant 0 : i32
    return %arg0, %c0_i32, %c0_i32_0 : i32, i32, i32
  }
}

module attributes {stable_mosaic.version = 11 : i64} {
  func.func @_classifier_kernel(%arg0: memref<2x240xf32, #tpu.memory_space<vmem>>, %arg1: memref<240x64xf32, #tpu.memory_space<vmem>>, %arg2: memref<1x64xf32, #tpu.memory_space<vmem>>, %arg3: memref<64x128xf32, #tpu.memory_space<vmem>>, %arg4: memref<1x128xf32, #tpu.memory_space<vmem>>, %arg5: memref<2x128xf32, #tpu.memory_space<vmem>>) attributes {dimension_semantics = [], scalar_prefetch = 0 : i64, scratch_operands = 0 : i64, tpu.core_type = #tpu.core_type<tc>} {
    %c0 = arith.constant 0 : index
    %c0_0 = arith.constant 0 : index
    %0 = vector.load %arg0[%c0, %c0_0] : memref<2x240xf32, #tpu.memory_space<vmem>>, vector<2x240xf32>
    %c0_1 = arith.constant 0 : index
    %c0_2 = arith.constant 0 : index
    %1 = vector.load %arg1[%c0_1, %c0_2] : memref<240x64xf32, #tpu.memory_space<vmem>>, vector<240x64xf32>
    %cst = arith.constant dense<0.000000e+00> : vector<2x64xf32>
    %2 = tpu.matmul %0, %1, %cst {dimension_numbers = #tpu.dot_dimension_numbers<[1], [0], [0], [1], [0, 0, 1, 1], [], []>} : vector<2x240xf32>, vector<240x64xf32>, vector<2x64xf32> -> vector<2x64xf32>
    %c0_3 = arith.constant 0 : index
    %c0_4 = arith.constant 0 : index
    %3 = vector.load %arg2[%c0_3, %c0_4] : memref<1x64xf32, #tpu.memory_space<vmem>>, vector<1x64xf32>
    %4 = vector.broadcast %3 : vector<1x64xf32> to vector<2x64xf32>
    %5 = arith.addf %2, %4 : vector<2x64xf32>
    %cst_5 = arith.constant 3.000000e+00 : f32
    %6 = vector.broadcast %cst_5 : f32 to vector<2x64xf32>
    %7 = arith.addf %5, %6 : vector<2x64xf32>
    %cst_6 = arith.constant 0.000000e+00 : f32
    %cst_7 = arith.constant 6.000000e+00 : f32
    %8 = vector.broadcast %cst_6 : f32 to vector<2x64xf32>
    %9 = arith.maximumf %8, %7 : vector<2x64xf32>
    %10 = vector.broadcast %cst_7 : f32 to vector<2x64xf32>
    %11 = arith.minimumf %10, %9 : vector<2x64xf32>
    %cst_8 = arith.constant 0.166666672 : f32
    %12 = vector.broadcast %cst_8 : f32 to vector<2x64xf32>
    %13 = arith.mulf %11, %12 : vector<2x64xf32>
    %14 = arith.mulf %5, %13 : vector<2x64xf32>
    %c0_9 = arith.constant 0 : index
    %c0_10 = arith.constant 0 : index
    %15 = vector.load %arg3[%c0_9, %c0_10] : memref<64x128xf32, #tpu.memory_space<vmem>>, vector<64x128xf32>
    %cst_11 = arith.constant dense<0.000000e+00> : vector<2x128xf32>
    %16 = tpu.matmul %14, %15, %cst_11 {dimension_numbers = #tpu.dot_dimension_numbers<[1], [0], [0], [1], [0, 0, 1, 1], [], []>} : vector<2x64xf32>, vector<64x128xf32>, vector<2x128xf32> -> vector<2x128xf32>
    %c0_12 = arith.constant 0 : index
    %c0_13 = arith.constant 0 : index
    %17 = vector.load %arg4[%c0_12, %c0_13] : memref<1x128xf32, #tpu.memory_space<vmem>>, vector<1x128xf32>
    %18 = vector.broadcast %17 : vector<1x128xf32> to vector<2x128xf32>
    %19 = arith.addf %16, %18 : vector<2x128xf32>
    %c0_14 = arith.constant 0 : index
    %c0_15 = arith.constant 0 : index
    %20 = vector.load %arg5[%c0_14, %c0_15] : memref<2x128xf32, #tpu.memory_space<vmem>>, vector<2x128xf32>
    tpu.vector_store %arg5[%c0_14, %c0_15], %19 {strides = array<i32>} : memref<2x128xf32, #tpu.memory_space<vmem>>, vector<2x128xf32>,
    return
  }
}

</mosaic_0001>

<bundles_post_ra>
// kernel: mobilenet_v3_forward.15
= control target key start
LH: loop header
LB: loop body
LE: loop exit
PB: predicated region body
PF: predicated region fallthrough
CT: control target
= control target key end

     0   :  { %s648_s15 = smov 0   ;;  %s813_s0 = inlined_call_operand.vmem [shape: bf16[8,5,5,16], index: 0, kind: input, shape index: {}]   ;;  %s814_s1 = inlined_call_operand.vmem [shape: bf16[9,16], index: 1, kind: input, shape index: {}]   ;;  %s815_s2 = inlined_call_operand.vmem [shape: f32[1,16], index: 2, kind: input, shape index: {}]   ;;  %s816_s3 = inlined_call_operand.vmem [shape: bf16[2,4,4,16], index: 3, kind: output, shape index: {0}]   ;;  %s817_s4 = inlined_call_operand.vmem [shape: f32[2,1,16], index: 4, kind: output, shape index: {1}]  }
   0x1 LB: > { %s654_s16 = sadd.s32 4294967295, %s621_s15   ;;  %p569_p0 = scmp.ge.s32.totalorder %s621_s15, 1  ;;  %s621_s15 = sphi %s648_s15, %s15_s15  }
   0x2   : > { %p167_p1 = scmp.lt.s32.totalorder %s621_s15, 3 }
   0x4   : > { %p168_p2 = pnand %p569_p0, %p167_p1 }
   0x5   : > { %s570_s17 = sshll.u32 (!%p168_p2), %s654_s16, 2  ;;  %p204_p4 = scmp.lt.s32.totalorder (!%p168_p2), %s654_s16, 1 }
   0x6   : > { %171 = sbr.rel (%p168_p2) target bundleno = 82 (0x52), region = 32  ;;  %p198_p3 = scmp.lt.s32.totalorder (!%p168_p2), %s570_s17, 7 }
   0xb   : > { %v220_v0 = vld [vmem:[%s814_s1] sm:$0x1]  ;;  %v222_v1 = vlaneseq  ;;  %v263_v2 = vld [vmem:[%s814_s1] sm:$0x2]  ;;  %v319_v4 = vld [vmem:[%s814_s1] sm:$0x4] }
   0xc   : > { %s819_s17 = smov (!%p198_p3, %s570_s17), 7  ;;  %v221_v5 = vunpack.c.l.bf16 %v220_v0  ;;  %v264_v6 = vunpack.c.l.bf16 %v263_v2  ;;  %v417_v7 = vld [vmem:[%s814_s1 + $0x4] sm:$0x1]  ;;  %v320_v12 = vunpack.c.l.bf16 %v319_v4  ;;  %v374_v14 = vld [vmem:[%s814_s1] sm:$0x8]  ;;  %vm462_vm0 = vcmask 123904  }
   0xd   : > { %v223_v3 = vshrl.u32 %v222_v1, 7  ;;  %s606_s26 = smul.u32 20, %s819_s17  ;;  %v418_v17 = vunpack.c.l.bf16 %v417_v7  ;;  %v375_v26 = vunpack.c.l.bf16 %v374_v14  ;;  %s821_s16 = smov (!%p204_p4, %s654_s16), 1  ;;  %vm467_vm1 = vcmask 125952  }
   0xe   : > { %s605_s8 = sshll.u32 %s821_s16, 3  ;;  %s211_s14 = scalar_lea.vmem %s817_s4, %s821_s16  ;;  %vm483_vm2 = vcmask 122880  }
   0xf   : > { %v224_v8 = vsub.s32 0, %v223_v3  ;;  %v245_v9 = vsub.s32 1, %v223_v3  ;;  %v267_v10 = vsub.s32 2, %v223_v3  ;;  %v300_v11 = vsub.s32 3, %v223_v3  ;;  %s677_s5 = scalar_lea.vmem %s813_s0, %s606_s26  ;;  %s776_s11 = scalar_lea.vmem %s816_s3, %s605_s8 }
  0x10   : > { %v343_v13 = vsub.s32 5, %v223_v3  ;;  %v323_v15 = vsub.s32 4, %v223_v3  ;;  %v378_v16 = vsub.s32 6, %v223_v3  ;;  %v399_v21 = vsub.s32 7, %v223_v3  ;;  %v212_v22 = vld [vmem:[%s677_s5] sm:$0x3] }
  0x11   : > { %v679_v18 = vrot.slane %v221_v5, %v224_v8  ;;  %v681_v19 = vrot.slane %v221_v5, %v245_v9  ;;  %v683_v20 = vrot.slane %v264_v6, %v267_v10  ;;  %v574_v23 = vld [vmem:[%s677_s5 + $0x14] sm:$0x3]  ;;  %v255_v24 = vld [vmem:[%s677_s5] sm:$0x7]  ;;  %v688_v25 = vrot.slane %v264_v6, %v300_v11  ;;  %v578_v30 = vld [vmem:[%s677_s5 + $0x28] sm:$0x3] }
  0x12   : > { %v216_v27 = vunpack.c.l.bf16 %v212_v22  ;;  %v239_v28 = vunpack.c.l.bf16 %v574_v23  ;;  %v259_v29 = vunpack.c.l.bf16 %v255_v24  ;;  %v582_v31 = vld [vmem:[%s677_s5 + $0x3c] sm:$0x3]  ;;  %v586_v32 = vld [vmem:[%s677_s5 + $0x28] sm:$0x7]  ;;  %v693_v33 = vrot.slane %v320_v12, %v343_v13  ;;  %v590_v38 = vld [vmem:[%s677_s5 + $0x4] sm:$0x3] }
  0x13   : > { %v294_v34 = vunpack.c.l.bf16 %v578_v30  ;;  %v315_v35 = vunpack.c.l.bf16 %v582_v31  ;;  %v695_v36 = vrot.slane %v320_v12, %v323_v15  ;;  %v337_v37 = vunpack.c.l.bf16 %v586_v32  ;;  %v598_v39 = vld [vmem:[%s677_s5 + $0x4] sm:$0x7]  ;;  %v594_v43 = vld [vmem:[%s677_s5 + $0x18] sm:$0x3]  ;;  %v579_v52 = vld [vmem:[%s677_s5 + $0x2c] sm:$0x3] }
  0x14   : > { %v226_v40 = vmul.f32 %v679_v18, %v216_v27  ;;  %v247_v41 = vmul.f32 %v681_v19, %v239_v28  ;;  %v269_v42 = vmul.f32 %v683_v20, %v259_v29  ;;  %v703_v44 = vrot.slane %v418_v17, %v224_v8  ;;  %v213_v45 = vld [vmem:[%s677_s5 + $0x4] sm:$0x3]  ;;  %v575_v46 = vld [vmem:[%s677_s5 + $0x18] sm:$0x3]  ;;  %v583_v57 = vld [vmem:[%s677_s5 + $0x40] sm:$0x3] }
  0x15   : > { %v302_v47 = vmul.f32 %v688_v25, %v294_v34  ;;  %v370_v48 = vunpack.c.l.bf16 %v590_v38  ;;  %v708_v49 = vrot.slane %v375_v26, %v378_v16  ;;  %v710_v50 = vrot.slane %v375_v26, %v399_v21  ;;  %v256_v51 = vld [vmem:[%s677_s5 + $0x4] sm:$0x7]  ;;  %v587_v58 = vld [vmem:[%s677_s5 + $0x2c] sm:$0x7]  ;;  %v591_v7 = vld [vmem:[%s677_s5 + $0x8] sm:$0x3] }
  0x16   : > { %v251_v53 = vadd.f32 %v247_v41, %v226_v40  ;;  %v277_v54 = vrot.slane %v269_v42, 1  ;;  %v345_v55 = vmul.f32 %v693_v33, %v337_v37  ;;  %v413_v56 = vunpack.c.l.bf16 %v598_v39  ;;  %v599_v8 = vld [vmem:[%s677_s5 + $0x8] sm:$0x7]  ;;  %v576_v14 = vld [vmem:[%s677_s5 + $0x1c] sm:$0x3] }
  0x17   : > { %v325_v59 = vmul.f32 %v695_v36, %v315_v35  ;;  %v393_v60 = vunpack.c.l.bf16 %v594_v43  ;;  %v217_v61 = vunpack.c.l.bf16 %v213_v45  ;;  %v240_v62 = vunpack.c.l.bf16 %v575_v46  ;;  %v214_v13 = vld [vmem:[%s677_s5 + $0x8] sm:$0x3]  ;;  %v595_v22 = vld [vmem:[%s677_s5 + $0x1c] sm:$0x3]  ;;  %v580_v29 = vld [vmem:[%s677_s5 + $0x30] sm:$0x3] }
  0x18   : > { %v285_v63 = vadd.f32 %v277_v54, %v251_v53  ;;  %v719_v0 = vmul.f32 %v703_v44, %v413_v56  ;;  %v260_v1 = vunpack.c.l.bf16 %v256_v51  ;;  %v295_v2 = vunpack.c.l.bf16 %v579_v52  ;;  %v257_v28 = vld [vmem:[%s677_s5 + $0x8] sm:$0x7]  ;;  %v584_v35 = vld [vmem:[%s677_s5 + $0x44] sm:$0x3]  ;;  %v588_v41 = vld [vmem:[%s677_s5 + $0x30] sm:$0x7] }
  0x19   : > { %v227_v3 = vmul.f32 %v679_v18, %v217_v61  ;;  %v248_v4 = vmul.f32 %v681_v19, %v240_v62  ;;  %v316_v5 = vunpack.c.l.bf16 %v583_v57  ;;  %v338_v6 = vunpack.c.l.bf16 %v587_v58  ;;  %v600_v53 = vld [vmem:[%s677_s5 + $0xc] sm:$0x7] }
  0x1a   : > { %v306_v9 = vadd.f32 %v302_v47, %v285_v63  ;;  %v353_v10 = vrot.slane %v345_v55, 1  ;;  %v380_v11 = vmul.f32 %v708_v49, %v370_v48  ;;  %v270_v12 = vmul.f32 %v683_v20, %v260_v1  ;;  %v215_v58 = vld [vmem:[%s677_s5 + $0xc] sm:$0x3]  ;;  %v758_v1 = vld [vmem:[%s815_s2] ss:$0 sm:$0xff] }
  0x1b   : > { %v401_v15 = vmul.f32 %v710_v50, %v393_v60  ;;  %v431_v16 = vrot.slane %v719_v0, 1  ;;  %v252_v17 = vadd.f32 %v248_v4, %v227_v3  ;;  %v303_v21 = vmul.f32 %v688_v25, %v295_v2  ;;  %v592_v63 = vld [vmem:[%s677_s5 + $0xc] sm:$0x3]  ;;  %v596_v0 = vld [vmem:[%s677_s5 + $0x20] sm:$0x3] }
  0x1c   : > { %v329_v23 = vadd.f32 %v325_v59, %v306_v9  ;;  %v278_v24 = vrot.slane %v270_v12, 1  ;;  %v346_v26 = vmul.f32 %v693_v33, %v338_v6  ;;  %v414_v27 = vunpack.c.l.bf16 %v599_v8  ;;  %v577_v6 = vld [vmem:[%s677_s5 + $0x20] sm:$0x3]  ;;  %v581_v12 = vld [vmem:[%s677_s5 + $0x34] sm:$0x3] }
  0x1d   : > { %v326_v30 = vmul.f32 %v695_v36, %v316_v5  ;;  %v371_v31 = vunpack.c.l.bf16 %v591_v7  ;;  %v218_v32 = vunpack.c.l.bf16 %v214_v13  ;;  %v241_v34 = vunpack.c.l.bf16 %v576_v14 }
  0x1e   : > { %v361_v37 = vadd.f32 %v353_v10, %v329_v23  ;;  %v286_v38 = vadd.f32 %v278_v24, %v252_v17  ;;  %v394_v39 = vunpack.c.l.bf16 %v595_v22  ;;  %v424_v40 = vmul.f32 %v703_v44, %v414_v27 }
  0x1f   : > { %v228_v42 = vmul.f32 %v679_v18, %v218_v32  ;;  %v249_v43 = vmul.f32 %v681_v19, %v241_v34  ;;  %v261_v45 = vunpack.c.l.bf16 %v257_v28  ;;  %v296_v46 = vunpack.c.l.bf16 %v580_v29 }
  0x20   : > { %v384_v47 = vadd.f32 %v380_v11, %v361_v37  ;;  %v307_v48 = vadd.f32 %v303_v21, %v286_v38  ;;  %v354_v51 = vrot.slane %v346_v26, 1  ;;  %v317_v52 = vunpack.c.l.bf16 %v584_v35  ;;  %v258_v11 = vld [vmem:[%s677_s5 + $0xc] sm:$0x7]  ;;  %v585_v21 = vld [vmem:[%s677_s5 + $0x48] sm:$0x3] }
  0x21   : > { %v381_v54 = vmul.f32 %v708_v49, %v371_v31  ;;  %v253_v55 = vadd.f32 %v249_v43, %v228_v42  ;;  %v271_v56 = vmul.f32 %v683_v20, %v261_v45  ;;  %v339_v57 = vunpack.c.l.bf16 %v588_v41  ;;  %v601_v45 = vld [vmem:[%s677_s5 + $0x10] sm:$0x7] }
  0x22   : > { %v405_v59 = vadd.f32 %v401_v15, %v384_v47  ;;  %v330_v60 = vadd.f32 %v326_v30, %v307_v48  ;;  %v402_v61 = vmul.f32 %v710_v50, %v394_v39  ;;  %v432_v62 = vrot.slane %v424_v40, 1 }
  0x23   : > { %v279_v2 = vrot.slane %v271_v56, 1  ;;  %v304_v3 = vmul.f32 %v688_v25, %v296_v46  ;;  %v347_v4 = vmul.f32 %v693_v33, %v339_v57  ;;  %v415_v5 = vunpack.c.l.bf16 %v600_v53 }
  0x24   : > { %v439_v7 = vadd.f32 %v431_v16, %v405_v59  ;;  %v362_v8 = vadd.f32 %v354_v51, %v330_v60  ;;  %v327_v9 = vmul.f32 %v695_v36, %v317_v52  ;;  %v219_v10 = vunpack.c.l.bf16 %v215_v58  ;;  %v589_v16 = vld [vmem:[%s677_s5 + $0x34] sm:$0x7] }
  0x25   : > { %v287_v13 = vadd.f32 %v279_v2, %v253_v55  ;;  %v355_v14 = vrot.slane %v347_v4, 1  ;;  %v372_v15 = vunpack.c.l.bf16 %v592_v63  ;;  %v395_v17 = vunpack.c.l.bf16 %v596_v0 }
  0x26   : > { %v450_v22 = vadd.f32 %v758_v1, %v439_v7  ;;  %v385_v23 = vadd.f32 %v381_v54, %v362_v8  ;;  %v229_v24 = vmul.f32 %v679_v18, %v219_v10  ;;  %v242_v26 = vunpack.c.l.bf16 %v577_v6  ;;  %v597_v54 = vld [vmem:[%s677_s5 + $0x24] sm:$0x3] }
  0x27   : > { %v308_v27 = vadd.f32 %v304_v3, %v287_v13  ;;  %v425_v28 = vmul.f32 %v703_v44, %v415_v5  ;;  %v262_v29 = vunpack.c.l.bf16 %v258_v11  ;;  %v297_v30 = vunpack.c.l.bf16 %v581_v12 }
  0x28   : > { %v454_v31 = vmax.f32 %v450_v22, 0.0  ;;  %v406_v32 = vadd.f32 %v402_v61, %v385_v23  ;;  %v250_v34 = vmul.f32 %v681_v19, %v242_v26  ;;  %v318_v35 = vunpack.c.l.bf16 %v585_v21  ;;  %v593_v19 = vld [vmem:[%s677_s5 + $0x10] sm:$0x3] }
  0x29   : > { %v331_v18 = vadd.f32 %v327_v9, %v308_v27  ;;  %v382_v37 = vmul.f32 %v708_v49, %v372_v15  ;;  %v272_v38 = vmul.f32 %v683_v20, %v262_v29  ;;  %v340_v39 = vunpack.c.l.bf16 %v589_v16 }
  0x2a   : > { %v458_v40 = vpack.c.bf16 %v454_v31, %v454_v31  ;;  %v440_v41 = vadd.f32 %v432_v62, %v406_v32  ;;  %v403_v42 = vmul.f32 %v710_v50, %v395_v17  ;;  %v254_v43 = vadd.f32 %v250_v34, %v229_v24 }
  0x2b   : > { %v363_v46 = vadd.f32 %v355_v14, %v331_v18  ;;  %v280_v47 = vrot.slane %v272_v38, 1  ;;  %v305_v48 = vmul.f32 %v688_v25, %v297_v30  ;;  %v348_v51 = vmul.f32 %v693_v33, %v340_v39 }
  0x2c   : > { %463 = vst.msk [vmem:[%s776_s11] sm:$0x3] %vm462_vm0, %v458_v40  ;;  %v451_v52 = vadd.f32 %v758_v1, %v440_v41  ;;  %v433_v20 = vrot.slane %v425_v28, 1  ;;  %v328_v53 = vmul.f32 %v695_v36, %v318_v35  ;;  %v373_v57 = vunpack.c.l.bf16 %v593_v19 }
  0x2d   : > { %v386_v55 = vadd.f32 %v382_v37, %v363_v46  ;;  %v288_v56 = vadd.f32 %v280_v47, %v254_v43  ;;  %v416_v58 = vunpack.c.l.bf16 %v601_v45  ;;  %v356_v62 = vrot.slane %v348_v51, 1 }
  0x2e   : > { %v455_v59 = vmax.f32 %v451_v52, 0.0  ;;  %v396_v25 = vunpack.c.l.bf16 %v597_v54  ;;  %v383_v2 = vmul.f32 %v708_v49, %v373_v57  ;;  %v468_v6 = vsel %vm467_vm1, %v454_v31, 0.0 }
  0x2f   : > { %v407_v60 = vadd.f32 %v403_v42, %v386_v55  ;;  %v309_v61 = vadd.f32 %v305_v48, %v288_v56  ;;  %v426_v36 = vmul.f32 %v703_v44, %v416_v58 }
  0x30   : > { %v459_v33 = vpack.c.bf16 %v455_v59, %v455_v59  ;;  %v404_v5 = vmul.f32 %v710_v50, %v396_v25  ;;  %v469_v7 = vsel %vm467_vm1, %v455_v59, 0.0 }
  0x31   : > { %v441_v63 = vadd.f32 %v433_v20, %v407_v60  ;;  %v332_v0 = vadd.f32 %v328_v53, %v309_v61  ;;  %v434_v10 = vrot.slane %v426_v36, 1  ;;  %v470_v49 = vadd.f32 %v469_v7, %v468_v6 }
  0x32   : > { %464 = vst.msk [vmem:[%s776_s11 + $0x2] sm:$0x3] %vm462_vm0, %v459_v33 }
  0x33   : > { %v452_v3 = vadd.f32 %v758_v1, %v441_v63  ;;  %v364_v4 = vadd.f32 %v356_v62, %v332_v0 }
  0x35   : > { %v456_v8 = vmax.f32 %v452_v3, 0.0  ;;  %v387_v9 = vadd.f32 %v383_v2, %v364_v4 }
  0x37   : > { %v460_v11 = vpack.c.bf16 %v456_v8, %v456_v8  ;;  %v408_v12 = vadd.f32 %v404_v5, %v387_v9  ;;  %v471_v44 = vsel %vm467_vm1, %v456_v8, 0.0 }
  0x38   : > { %v472_v50 = vadd.f32 %v471_v44, %v470_v49 }
  0x39   : > { %465 = vst.msk [vmem:[%s776_s11 + $0x4] sm:$0x3] %vm462_vm0, %v460_v11  ;;  %v442_v13 = vadd.f32 %v434_v10, %v408_v12 }
  0x3b   : > { %v453_v14 = vadd.f32 %v758_v1, %v442_v13 }
  0x3d   : > { %v457_v15 = vmax.f32 %v453_v14, 0.0 }
  0x3f   : > { %v461_v17 = vpack.c.bf16 %v457_v15, %v457_v15  ;;  %v473_v21 = vsel %vm467_vm1, %v457_v15, 0.0 }
  0x40   : > { %v474_v22 = vadd.f32 %v473_v21, %v472_v50 }
  0x41   : > { %466 = vst.msk [vmem:[%s776_s11 + $0x6] sm:$0x3] %vm462_vm0, %v461_v17 }
  0x42   : > { %v475_v23 = vsel %vm467_vm1, %v474_v22, 0.0 }
  0x43   : > { %v476_v24 = vrot.slane %v475_v23, 4 }
  0x45   : > { %v477_v26 = vadd.f32 %v476_v24, %v475_v23 }
  0x47   : > { %v478_v16 = vrot.slane %v477_v26, 2 }
  0x49   : > { %v479_v27 = vadd.f32 %v478_v16, %v477_v26 }
  0x4b   : > { %v480_v28 = vrot.slane %v479_v27, 1 }
  0x4d   : > { %v481_v29 = vadd.f32 %v480_v28, %v479_v27 }
  0x4f   : > { %v482_v1 = vmul.f32 0.0625, %v481_v29 }
  0x51   : > { %484 = vst.msk [vmem:[%s211_s14] sm:$0x1] %vm483_vm2, %v482_v1 }
  0x52 PF: > { %s15_s15 = sadd.s32 1, %s621_s15  }
  0x53   : > { %p12_p5 = scmp.ge.s32.totalorder %s15_s15, 4  }
  0x55   :  { %14 = sbr.rel (!%p12_p5) target bundleno = 1 (0x1), region = 79 }

// kernel: mobilenet_v3_forward.16
= control target key start
LH: loop header
LB: loop body
LE: loop exit
PB: predicated region body
PF: predicated region fallthrough
CT: control target
= control target key end

     0   :  { %s544_s15 = smov 0   ;;  %s546_s16 = smov 0   ;;  %s586_s0 = inlined_call_operand.vmem [shape: bf16[2,16,16], index: 0, kind: input, shape index: {}]   ;;  %s587_s1 = inlined_call_operand.vmem [shape: bf16[16,16], index: 1, kind: input, shape index: {}]   ;;  %s588_s2 = inlined_call_operand.vmem [shape: f32[1,16], index: 2, kind: input, shape index: {}]   ;;  %s589_s3 = inlined_call_operand.vmem [shape: f32[2,1,16], index: 3, kind: input, shape index: {}]   ;;  %s590_s4 = inlined_call_operand.vmem [shape: bf16[2,16,16], index: 4, kind: output, shape index: {}]  }
   0x1   :  { %s548_s17 = smov 0  }
   0x2 LB: > { %s26_s18 = sadd.s32 1, %s511_s16  ;;  %p437_p0 = scmp.ge.s32.totalorder %s515_s17, 1  ;;  %s515_s17 = sphi %s548_s17, %s14_s17   ;;  %s511_s16 = sphi %s546_s16, %s592_s16   ;;  %s507_s15 = sphi %s544_s15, %s591_s15  }
   0x3   : > { %p28_p1 = scmp.ge.s32.totalorder %s26_s18, 2  ;;  %p191_p2 = scmp.lt.s32.totalorder %s515_s17, 3 }
   0x5   : > { %s594_s18 = smov (%p28_p1, %s26_s18), 0  ;;  %p192_p3 = pnand %p437_p0, %p191_p2 }
   0x6   : > { %p229_p4 = scmp.lt.s32.totalorder (!%p192_p3), %s507_s15, 1 }
   0x7   : > { %195 = sbr.rel (%p192_p3) target bundleno = 224 (0xe0), region = 36 }
   0xc   : > { %v492_v0 = vld [vmem:[%s587_s1] sm:$0xff]   ;;  %v517_v1 = vmov 0.0   ;;  %vm518_vm0 = vmmov 0   ;;  %s596_s15 = smov (!%p229_p4, %s507_s15), 1  ;;  %vm281_vm1 = vcmask 130048   ;;  %vm334_vm2 = vcmask 125952  }
   0xd   : > { %460 = vmatprep.subr.bf16.mxu0 %v517_v1  ;;  %462 = vmatprep.mubr.msk.bf16.mxu0 %vm518_vm0, %v517_v1  ;;  %s450_s21 = sshll.u32 %s596_s15, 3  ;;  %s240_s24 = scalar_lea.vmem %s589_s3, %s596_s15  ;;  %v443_v9 = vld [vmem:[%s588_s2] ss:$0 sm:$0xff] }
   0xe   : > { %461 = vmatpush3.bf16.msra.mxu0 %v492_v0  ;;  %s236_s27 = scalar_lea.vmem %s586_s0, %s450_s21  ;;  %v442_v3 = vld [vmem:[%s240_s24] ss:$0 sm:$0xff]  ;;  %s249_s6 = scalar_lea.vmem %s590_s4, %s450_s21 }
   0xf   : > { %v455_v2 = vld [vmem:[%s236_s27] sm:$0xff]  }
  0x10   : > { %v456_v4 = vunpack.c.l.bf16 %v455_v2  ;;  %v457_v5 = vunpack.c.h.bf16 %v455_v2 }
  0x12   : > { %v263_v6 = vmul.f32 %v456_v4, %v442_v3  ;;  %v264_v7 = vmul.f32 %v457_v5, %v442_v3 }
  0x14   : > { %v265_v8 = vpack.c.bf16 %v264_v7, %v263_v6 }
  0x16   : > { %463 = vmatmul.mubr.msk.bf16.vlgmr.msra.gmra.mxu0 %vm281_vm1, %v265_v8 }
  0xd6   : > { %v319_v10 = vpop.f32.mrf.mxu0 }
  0xd7   : > { %v320_v11 = vadd.f32 %v443_v9, %v319_v10 }
  0xd8   : > { %v464_v12 = vpop.f32.mrf.mxu0 }
  0xd9   : > { %v452_v13 = vpack.c.bf16 %v320_v11, %v320_v11 }
  0xda   : > { %v322_v14 = vpop.f32.mrf.mxu0 }
  0xdb   : > { %335 = vst.msk [vmem:[%s249_s6] sm:$0xf] %vm334_vm2, %v452_v13  ;;  %v323_v15 = vadd.f32 %v443_v9, %v322_v14 }
  0xdc   : > { %v465_v16 = vpop.f32.mrf.mxu0 }
  0xdd   : > { %v453_v17 = vpack.c.bf16 %v323_v15, %v323_v15 }
  0xdf   : > { %336 = vst.msk [vmem:[%s249_s6 + $0x4] sm:$0xf] %vm334_vm2, %v453_v17 }
  0xe0 PF: > { %s14_s17 = sadd.s32 1, %s515_s17   ;;  %s591_s15 = smov %s511_s16 }
  0xe1   : > { %p11_p5 = scmp.ge.s32.totalorder %s14_s17, 4   ;;  %s592_s16 = smov %s594_s18 }
  0xe3   :  { %13 = sbr.rel (!%p11_p5) target bundleno = 2 (0x2), region = 69 }

// kernel: mobilenet_v3_forward.17
= control target key start
LH: loop header
LB: loop body
LE: loop exit
PB: predicated region body
PF: predicated region fallthrough
CT: control target
= control target key end

     0   :  { %vm44_vm0 = vcmask 130048   ;;  %vm120_vm1 = vcmask 584704   ;;  %s199_s1 = inlined_call_operand.vmem [shape: bf16[16,72], index: 1, kind: input, shape index: {}]   ;;  %s200_s0 = inlined_call_operand.vmem [shape: bf16[32,16], index: 0, kind: input, shape index: {}]   ;;  %s201_s2 = inlined_call_operand.vmem [shape: f32[1,72], index: 2, kind: input, shape index: {}]   ;;  %s202_s3 = inlined_call_operand.vmem [shape: bf16[32,72], index: 3, kind: output, shape index: {}]  }
   0x1   :  { %v152_v0 = vld [vmem:[%s199_s1] sm:$0xff]   ;;  %v154_v2 = vld [vmem:[%s200_s0 + $0x8] sm:$0xff]  }
   0x2   :  { %v153_v1 = vld [vmem:[%s200_s0] sm:$0xff]   ;;  %146 = vmatprep.subr.bf16.mxu0 %v152_v0 }
   0x3   :  { %147 = vmatpush3.bf16.msra.mxu0 %v152_v0  ;;  %148 = vmatprep.mubr.msk.bf16.mxu0 %vm44_vm0, %v153_v1  ;;  %v129_v3 = vld [vmem:[%s201_s2] ss:$0 sm:$0xff] }
   0x6   :  { %149 = vmatmul.mubr.msk.bf16.vlgmr.msra.gmra.mxu0 %vm44_vm0, %v154_v2 }
  0xc6   :  { %v150_v4 = vpop.f32.mrf.mxu0 }
  0xc7   :  { %v94_v5 = vadd.f32 %v150_v4, %v129_v3 }
  0xc8   :  { %v85_v6 = vpop.f32.mrf.mxu0 }
  0xc9   :  { %v102_v7 = vmax.f32 %v94_v5, 0.0  ;;  %v86_v8 = vadd.f32 %v129_v3, %v85_v6 }
  0xca   :  { %v151_v9 = vpop.f32.mrf.mxu0 }
  0xcb   :  { %v141_v10 = vpack.c.bf16 %v102_v7, %v102_v7  ;;  %v100_v11 = vmax.f32 %v86_v8, 0.0  ;;  %v97_v12 = vadd.f32 %v151_v9, %v129_v3 }
  0xcc   :  { %v88_v13 = vpop.f32.mrf.mxu0 }
  0xcd   :  { %123 = vst.msk [vmem:[%s202_s3 + $0x8] sm:$0xf] %vm120_vm1, %v141_v10  ;;  %v139_v14 = vpack.c.bf16 %v100_v11, %v100_v11  ;;  %v103_v15 = vmax.f32 %v97_v12, 0.0  ;;  %v89_v16 = vadd.f32 %v129_v3, %v88_v13 }
  0xcf   :  { %121 = vst.msk [vmem:[%s202_s3] sm:$0xf] %vm120_vm1, %v139_v14  ;;  %v142_v17 = vpack.c.bf16 %v103_v15, %v103_v15  ;;  %v101_v18 = vmax.f32 %v89_v16, 0.0 }
  0xd1   :  { %124 = vst.msk [vmem:[%s202_s3 + $0xc] sm:$0xf] %vm120_vm1, %v142_v17  ;;  %v140_v19 = vpack.c.bf16 %v101_v18, %v101_v18 }
  0xd3   :  { %122 = vst.msk [vmem:[%s202_s3 + $0x4] sm:$0xf] %vm120_vm1, %v140_v19 }

// kernel: mobilenet_v3_forward.14
= control target key start
LH: loop header
LB: loop body
LE: loop exit
PB: predicated region body
PF: predicated region fallthrough
CT: control target
= control target key end

     0   :  { %s3726_s12 = smov 0   ;;  %s5307_s0 = inlined_call_operand.vmem [shape: bf16[8,9,9,3], index: 0, kind: input, shape index: {}]   ;;  %s5308_s1 = inlined_call_operand.vmem [shape: f32[27,16], index: 1, kind: input, shape index: {}]   ;;  %s5309_s2 = inlined_call_operand.vmem [shape: f32[1,16], index: 2, kind: input, shape index: {}]   ;;  %s5310_s3 = inlined_call_operand.vmem [shape: bf16[2,8,8,16], index: 3, kind: output, shape index: {}]  }
   0x1 LB: > { %s3732_s13 = sadd.s32 4294967295, %s3701_s12   ;;  %p2824_p0 = scmp.ge.s32.totalorder %s3701_s12, 1  ;;  %s3701_s12 = sphi %s3726_s12, %s13_s12  }
   0x2   : > { %p139_p1 = scmp.lt.s32.totalorder %s3701_s12, 3 }
   0x4   : > { %p140_p2 = pnand %p2824_p0, %p139_p1 }
   0x6   : > { %143 = sbr.rel (%p140_p2) target bundleno = 536 (0x218), region = 32 }
   0xb   : > { %s2825_s14 = sshll.u32 %s3732_s13, 2  ;;  %v5315_v0 = vmov 0   ;;  %v5313_v26 = vmov 1   ;;  %v5311_v40 = vmov 2   ;;  %vm692_vm0 = vcmask 1046528   ;;  %p171_p4 = scmp.lt.s32.totalorder %s3732_s13, 1 }
   0xc   : > { %2955 = vset.pattern.permute.xlu1 %v5315_v0  ;;  %2944 = vset.pattern.permute.xlu0 %v5315_v0  ;;  %p165_p3 = scmp.lt.s32.totalorder %s2825_s14, 7  ;;  %vm2756_vm1 = vcmask 125952  }
   0xd   : > { %s5526_s13 = smov (!%p171_p4, %s3732_s13), 1 }
   0xe   : > { %s5524_s14 = smov (!%p165_p3, %s2825_s14), 7  ;;  %s2931_s27 = sshll.u32 %s5526_s13, 5 }
   0xf   : > { %s2932_s15 = smul.u32 72, %s5524_s14  ;;  %s5262_s29 = scalar_lea.vmem %s5310_s3, %s2931_s27 }
  0x11   : > { %s3742_s18 = scalar_lea.vmem %s5307_s0, %s2932_s15 }
  0x12   : > { %v180_v1 = vld [vmem:[%s3742_s18 + $0x20] ss:$8 sps:$4 sm:$0xff]   ;;  %v182_v3 = vld [vmem:[%s3742_s18 + $0x30] ss:$8 sps:$4 sm:$0xff]   ;;  %v546_v25 = vld [vmem:[%s3742_s18 + $0xc] sm:$0x1] }
  0x13   : > { %v176_v2 = vld [vmem:[%s3742_s18] ss:$8 sps:$4 sm:$0xff]   ;;  %v188_v4 = vunpack.c.l.bf16 %v180_v1  ;;  %v189_v5 = vunpack.c.h.bf16 %v180_v1  ;;  %v178_v8 = vld [vmem:[%s3742_s18 + $0x10] ss:$8 sps:$4 sm:$0xff]   ;;  %v190_v9 = vunpack.c.l.bf16 %v182_v3  ;;  %v191_v10 = vunpack.c.h.bf16 %v182_v3  ;;  %v552_v30 = vld [vmem:[%s3742_s18 + $0x24] sm:$0x1] }
  0x14   : > { %v184_v6 = vunpack.c.l.bf16 %v176_v2  ;;  %v185_v7 = vunpack.c.h.bf16 %v176_v2  ;;  %v186_v11 = vunpack.c.l.bf16 %v178_v8  ;;  %v187_v12 = vunpack.c.h.bf16 %v178_v8  ;;  %v2832_v13 = vld [vmem:[%s3742_s18 + $0x48] ss:$8 sps:$4 sm:$0xff]   ;;  %v2838_v20 = vld [vmem:[%s3742_s18 + $0x78] ss:$8 sps:$4 sm:$0xff]   ;;  %v556_v35 = vld [vmem:[%s3742_s18 + $0x34] sm:$0x1] }
  0x15   : > { %v2956_v14 = vpack.i.bf16 %v189_v5, %v188_v4  ;;  %v3752_v16 = vpack.i.bf16 %v191_v10, %v190_v9  ;;  %v368_v18 = vunpack.c.l.bf16 %v2832_v13  ;;  %v369_v19 = vunpack.c.h.bf16 %v2832_v13  ;;  %v545_v24 = vld [vmem:[%s3742_s18 + $0x8] ss:$24 sps:$4 sm:$0xff]   ;;  %v555_v34 = vld [vmem:[%s3742_s18 + $0x30] ss:$104 sps:$4 sm:$0xff]   ;;  %v2869_v60 = vld [vmem:[%s3742_s18 + $0x94] sm:$0x1] }
  0x16   : > { %v3749_v15 = vpack.i.bf16 %v185_v7, %v184_v6  ;;  %v3754_v17 = vpack.i.bf16 %v187_v12, %v186_v11  ;;  %v374_v22 = vunpack.c.l.bf16 %v2838_v20  ;;  %v375_v23 = vunpack.c.h.bf16 %v2838_v20  ;;  %v2846_v39 = vld [vmem:[%s3742_s18 + $0x58] ss:$56 sps:$4 sm:$0xff]   ;;  %v2835_v44 = vld [vmem:[%s3742_s18 + $0x60] ss:$104 sps:$4 sm:$0xff]   ;;  %v2875_v2 = vld [vmem:[%s3742_s18 + $0xac] sm:$0x1] }
  0x17   : > { %2957 = vperm.xlu1 %2955, %v2956_v14   ;;  %v3759_v21 = vpack.i.bf16 %v369_v19, %v368_v18  ;;  %v561_v28 = vunpack.c.l.bf16 %v545_v24  ;;  %v562_v29 = vunpack.c.l.bf16 %v546_v25  ;;  %v567_v32 = vunpack.c.h.bf16 %v545_v24  ;;  %v2852_v45 = vld [vmem:[%s3742_s18 + $0x68] ss:$88 sps:$4 sm:$0xff]   ;;  %v2868_v59 = vld [vmem:[%s3742_s18 + $0x90] ss:$40 sps:$4 sm:$0xff]   ;;  %v2879_v6 = vld [vmem:[%s3742_s18 + $0xbc] sm:$0x1] }
  0x18   : > { %2946 = vperm.xlu0 %2944, %v3749_v15   ;;  %v3765_v27 = vpack.i.bf16 %v375_v23, %v374_v22  ;;  %v568_v33 = vunpack.c.l.bf16 %v552_v30  ;;  %v571_v37 = vunpack.c.l.bf16 %v555_v34  ;;  %v572_v38 = vunpack.c.l.bf16 %v556_v35  ;;  %v2837_v51 = vld [vmem:[%s3742_s18 + $0x70] ss:$120 sps:$4 sm:$0xff]   ;;  %v2883_v11 = vld [vmem:[%s3742_s18 + $0xcc] sm:$0x1]  ;;  %v2899_v24 = vld [vmem:[%s3742_s18] ss:$88 sps:$4 sm:$0xff]  }
  0x19   : > { %v3770_v31 = vpack.i.bf16 %v562_v29, %v561_v28  ;;  %v1024_v41 = vunpack.c.h.bf16 %v2846_v39  ;;  %v1025_v43 = vunpack.c.h.bf16 %v555_v34  ;;  %v370_v46 = vunpack.c.l.bf16 %v2846_v39  ;;  %v2860_v52 = vld [vmem:[%s3742_s18 + $0xa8] ss:$72 sps:$4 sm:$0xff]   ;;  %v544_v28 = vld [vmem:[%s3742_s18 + $0x4] sm:$0x1] }
  0x1a   : > { %v3775_v36 = vpack.i.bf16 %v568_v33, %v567_v32  ;;  %v3781_v42 = vpack.i.bf16 %v572_v38, %v571_v37  ;;  %v371_v47 = vunpack.c.l.bf16 %v2835_v44  ;;  %v1030_v49 = vunpack.c.h.bf16 %v2852_v45  ;;  %v2882_v10 = vld [vmem:[%s3742_s18 + $0x18] ss:$176 sps:$4 sm:$0xff]   ;;  %v2890_v18 = vld [vmem:[%s3742_s18 + $0x20] ss:$48 sps:$4 sm:$0xff]  }
  0x1b   : > { %2962 = vperm.xlu1 %2955, %v3752_v16   ;;  %v3786_v48 = vpack.i.bf16 %v1025_v43, %v1024_v41  ;;  %v1031_v50 = vunpack.c.h.bf16 %v2835_v44  ;;  %v372_v54 = vunpack.c.l.bf16 %v2852_v45  ;;  %v373_v55 = vunpack.c.l.bf16 %v2837_v51  ;;  %v3824_v23 = vld [vmem:[%s3742_s18 + $0x98] ss:$120 sps:$4 sm:$0xff]   ;;  %v3828_v25 = vld [vmem:[%s3742_s18 + $0xe0] ss:$40 sps:$4 sm:$0xff]   ;;  %v548_v43 = vld [vmem:[%s3742_s18 + $0x14] sm:$0x1] }
  0x1c   : > { %2951 = vperm.xlu0 %2944, %v3754_v17   ;;  %v3791_v53 = vpack.i.bf16 %v371_v47, %v370_v46  ;;  %v1210_v57 = vunpack.c.h.bf16 %v2837_v51  ;;  %v1211_v58 = vunpack.c.h.bf16 %v2860_v52  ;;  %v1399_v63 = vunpack.c.l.bf16 %v2868_v59  ;;  %v2904_v35 = vld [vmem:[%s3742_s18 + $0x80] ss:$8 sps:$4 sm:$0xff]   ;;  %v547_v41 = vld [vmem:[%s3742_s18 + $0x10] ss:$8 sps:$4 sm:$0xff]  }
  0x1d   : > { %v3794_v56 = vpack.i.bf16 %v1031_v50, %v1030_v49  ;;  %v3004_v61 = vpack.i.bf16 %v373_v55, %v372_v54  ;;  %v1400_v1 = vunpack.c.l.bf16 %v2869_v60  ;;  %v1405_v4 = vunpack.c.l.bf16 %v2860_v52  ;;  %v2911_v47 = vld [vmem:[%s3742_s18 + $0x10] ss:$24 sps:$4 sm:$0xff]   ;;  %v2912_v49 = vld [vmem:[%s3742_s18 + $0x14] sm:$0x1]  ;;  %v550_v54 = vld [vmem:[%s3742_s18 + $0x1c] sm:$0x1] }
  0x1e   : > { %v3801_v62 = vpack.i.bf16 %v1211_v58, %v1210_v57  ;;  %v1406_v5 = vunpack.c.l.bf16 %v2875_v2  ;;  %v1409_v8 = vunpack.c.h.bf16 %v2868_v59  ;;  %v1410_v9 = vunpack.c.l.bf16 %v2879_v6  ;;  %v2918_v59 = vld [vmem:[%s3742_s18 + $0x2c] sm:$0x1] }
  0x1f   : > { %2966 = vset.pattern.permute.xlu1 %v5313_v26  ;;  %v3805_v3 = vpack.i.bf16 %v1400_v1, %v1399_v63  ;;  %v1413_v13 = vunpack.c.h.bf16 %v2882_v10  ;;  %v1865_v20 = vunpack.c.l.bf16 %v2882_v10  ;;  %v1866_v22 = vunpack.c.l.bf16 %v2890_v18  ;;  %v553_v1 = vld [vmem:[%s3742_s18 + $0x28] ss:$16 sps:$4 sm:$0xff]   ;;  %v554_v2 = vld [vmem:[%s3742_s18 + $0x2c] sm:$0x1] }
  0x20   : > { %2994 = vperm.xlu0 %2944, %v3759_v21   ;;  %2968 = vperm.xlu1 %2966, %v3754_v17   ;;  %v3811_v7 = vpack.i.bf16 %v1406_v5, %v1405_v4  ;;  %v3816_v12 = vpack.i.bf16 %v1410_v9, %v1409_v8  ;;  %v1214_v29 = vunpack.c.h.bf16 %v3828_v25  ;;  %v1215_v30 = vunpack.c.h.bf16 %v3824_v23  ;;  %v2922_v8 = vld [vmem:[%s3742_s18 + $0x3c] sm:$0x1] }
  0x21   : > { %v3835_v32 = vpack.i.bf16 %v1866_v22, %v1865_v20  ;;  %v2047_v33 = vunpack.c.h.bf16 %v2890_v18  ;;  %v2048_v34 = vunpack.c.h.bf16 %v2899_v24  ;;  %v559_v38 = vunpack.c.l.bf16 %v2899_v24 }
  0x22   : > { %v3839_v37 = vpack.i.bf16 %v1215_v30, %v1214_v29  ;;  %v560_v39 = vunpack.c.l.bf16 %v544_v28  ;;  %v2053_v45 = vunpack.c.l.bf16 %v2904_v35  ;;  %v2054_v46 = vunpack.c.h.bf16 %v2904_v35 }
  0x23   : > { %v3844_v44 = vpack.i.bf16 %v2048_v34, %v2047_v33  ;;  %v563_v51 = vunpack.c.l.bf16 %v547_v41  ;;  %v564_v52 = vunpack.c.l.bf16 %v548_v43  ;;  %v2240_v57 = vunpack.c.l.bf16 %v2911_v47  ;;  %v2849_v34 = vld [vmem:[%s3742_s18 + $0xa8] ss:$48 sps:$4 sm:$0xff]  }
  0x24   : > { %3010 = vperm.xlu0 %2944, %v3765_v27   ;;  %2973 = vperm.xlu1 %2966, %v2956_v14   ;;  %v3042_v50 = vpack.i.bf16 %v560_v39, %v559_v38  ;;  %v3850_v55 = vpack.i.bf16 %v2054_v46, %v2053_v45  ;;  %v2241_v58 = vunpack.c.l.bf16 %v2912_v49  ;;  %v566_v63 = vunpack.c.l.bf16 %v550_v54  ;;  %v2850_v46 = vld [vmem:[%s3742_s18 + $0xb0] ss:$8 sps:$4 sm:$0xff]   ;;  %v2877_v49 = vld [vmem:[%s3742_s18 + $0xb4] sm:$0x1] }
  0x25   : > { %v3052_v60 = vpack.i.bf16 %v564_v52, %v563_v51  ;;  %v2246_v5 = vunpack.c.h.bf16 %v2911_v47  ;;  %v2247_v6 = vunpack.c.l.bf16 %v2918_v59  ;;  %v569_v10 = vunpack.c.l.bf16 %v553_v1  ;;  %v2876_v47 = vld [vmem:[%s3742_s18 + $0xb0] ss:$16 sps:$4 sm:$0xff]  }
  0x26   : > { %5365 = vst [vmem:[#allocation2_spill] sm:$0xff] %v3850_v55  ;;  %v3857_v4 = vpack.i.bf16 %v2241_v58, %v2240_v57  ;;  %v2250_v20 = vunpack.c.h.bf16 %v553_v1  ;;  %v2251_v22 = vunpack.c.l.bf16 %v2922_v8  ;;  %v1027_v35 = vunpack.c.l.bf16 %v2849_v34  ;;  %v2881_v57 = vld [vmem:[%s3742_s18 + $0xc4] sm:$0x1]  ;;  %v2893_v8 = vld [vmem:[%s3742_s18 + $0x38] ss:$8 sps:$4 sm:$0xff]  }
  0x27   : > { %v3863_v18 = vpack.i.bf16 %v2247_v6, %v2246_v5  ;;  %v1209_v38 = vunpack.c.l.bf16 %v3828_v25  ;;  %v1401_v43 = vunpack.c.l.bf16 %v3824_v23  ;;  %v1029_v51 = vunpack.c.h.bf16 %v2850_v46 }
  0x28   : > { %3048 = vperm.xlu0 %2944, %v3770_v31   ;;  %2977 = vset.pattern.permute.xlu1 %v5311_v40  ;;  %5366 = vst [vmem:[#allocation3_spill] sm:$0xff] %v3857_v4  ;;  %v3866_v30 = vpack.i.bf16 %v2251_v22, %v2250_v20  ;;  %v1407_v52 = vunpack.c.l.bf16 %v2876_v47  ;;  %v1408_v54 = vunpack.c.l.bf16 %v2877_v49  ;;  %v1411_v59 = vunpack.c.h.bf16 %v2876_v47  ;;  %v2900_v20 = vld [vmem:[%s3742_s18 + $0x60] ss:$8 sps:$4 sm:$0xff]  }
  0x29   : > { %2979 = vperm.xlu1 %2977, %v3749_v15   ;;  %5367 = vst [vmem:[#allocation4_spill] sm:$0xff] %v3863_v18 }
  0x2a   : > { %5368 = vst [vmem:[#allocation5_spill] sm:$0xff] %v3866_v30  ;;  %v3898_v58 = vpack.i.bf16 %v1408_v54, %v1407_v52  ;;  %v2919_v52 = vld [vmem:[%s3742_s18 + $0x30] ss:$200 sps:$4 sm:$0xff]   ;;  %v2920_v54 = vld [vmem:[%s3742_s18 + $0x34] sm:$0x1] }
  0x2c   : > { %3063 = vperm.xlu0 %2944, %v3775_v36  }
  0x2d   : > { %2984 = vperm.xlu1 %2977, %v2956_v14   ;;  %v1414_v14 = vunpack.c.l.bf16 %v2883_v11  ;;  %v570_v11 = vunpack.c.l.bf16 %v554_v2 }
  0x2f   : > { %v3821_v19 = vpack.i.bf16 %v1414_v14, %v1413_v13  ;;  %v557_v13 = vld [vmem:[%s3742_s18 + $0x38] ss:$104 sps:$4 sm:$0xff]   ;;  %v558_v14 = vld [vmem:[%s3742_s18 + $0x3c] sm:$0x1]  ;;  %v3067_v24 = vpack.i.bf16 %v570_v11, %v569_v10 }
  0x30   : > { %3073 = vperm.xlu0 %2944, %v3781_v42   ;;  %v573_v28 = vunpack.c.l.bf16 %v557_v13  ;;  %v574_v29 = vunpack.c.l.bf16 %v558_v14  ;;  %v1870_v14 = vunpack.c.h.bf16 %v2893_v8 }
  0x31   : > { %2989 = vperm.xlu1 %2977, %v3752_v16  }
  0x32   : > { %v3077_v33 = vpack.i.bf16 %v574_v29, %v573_v28  ;;  %v2049_v29 = vunpack.c.l.bf16 %v2900_v20 }
  0x34   : > { %3130 = vperm.xlu0 %2944, %v3786_v48  }
  0x35   : > { %2998 = vset.pattern.permute.xlu1 %v5315_v0 }
  0x36   : > { %3000 = vperm.xlu1 %2998, %v3791_v53  }
  0x38   : > { %3146 = vperm.xlu0 %2944, %v3794_v56  }
  0x3a   : > { %3005 = vperm.xlu1 %2998, %v3004_v61  }
  0x3c   : > { %3184 = vperm.xlu0 %2944, %v3801_v62  }
  0x3e   : > { %3014 = vset.pattern.permute.xlu1 %v5313_v26 }
  0x3f   : > { %3016 = vperm.xlu1 %3014, %v3759_v21  }
  0x40   : > { %3226 = vperm.xlu0 %2944, %v3805_v3  }
  0x43   : > { %3021 = vperm.xlu1 %3014, %v3004_v61  }
  0x44   : > { %3242 = vperm.xlu0 %2944, %v3811_v7  }
  0x47   : > { %3026 = vperm.xlu1 %3014, %v3765_v27  }
  0x48   : > { %3252 = vperm.xlu0 %2944, %v3816_v12  }
  0x4b   : > { %3030 = vset.pattern.permute.xlu1 %v5311_v40 }
  0x4c   : > { %3262 = vperm.xlu0 %2944, %v3821_v19   ;;  %3032 = vperm.xlu1 %3030, %v3791_v53  }
  0x50   : > { %3320 = vperm.xlu0 %2944, %v3835_v32   ;;  %3037 = vperm.xlu1 %3030, %v3004_v61   ;;  %v565_v61 = vunpack.c.h.bf16 %v547_v41  ;;  %v2871_v41 = vld [vmem:[%s3742_s18 + $0x9c] sm:$0x1] }
  0x51   : > { %v1402_v45 = vunpack.c.l.bf16 %v2871_v41 }
  0x52   : > { %v3057_v9 = vpack.i.bf16 %v566_v63, %v565_v61  ;;  %v2887_v61 = vld [vmem:[%s3742_s18 + $0x8] ss:$8 sps:$4 sm:$0xff]  }
  0x53   : > { %v3892_v25 = vpack.i.bf16 %v1402_v45, %v1401_v43  ;;  %v1863_v5 = vunpack.c.l.bf16 %v2887_v61  ;;  %v1864_v6 = vunpack.c.h.bf16 %v2887_v61  ;;  %v2916_v45 = vld [vmem:[%s3742_s18 + $0x24] sm:$0x1]  ;;  %v2248_v61 = vunpack.c.l.bf16 %v2919_v52 }
  0x54   : > { %3362 = vperm.xlu0 %2944, %v3844_v44   ;;  %3041 = vset.pattern.permute.xlu1 %v5315_v0 }
  0x55   : > { %3043 = vperm.xlu1 %3041, %v3042_v50   ;;  %v3915_v11 = vpack.i.bf16 %v1864_v6, %v1863_v5  ;;  %v2249_v5 = vunpack.c.l.bf16 %v2920_v54  ;;  %v2862_v6 = vld [vmem:[%s3742_s18 + $0x100] sm:$0xf] }
  0x57   : > { %5369 = vst [vmem:[#allocation6_spill] sm:$0xff] %v3915_v11 }
  0x58   : > { %3378 = vperm.xlu0 %2944, %v3850_v55  }
  0x59   : > { %3053 = vperm.xlu1 %3041, %v3052_v60  }
  0x5c   : > { %3416 = vperm.xlu0 %2944, %v3857_v4  }
  0x5d   : > { %3058 = vperm.xlu1 %3041, %v3057_v9  }
  0x60   : > { %3431 = vperm.xlu0 %2944, %v3863_v18  }
  0x61   : > { %3068 = vperm.xlu1 %3041, %v3067_v24  }
  0x64   : > { %3441 = vperm.xlu0 %2944, %v3866_v30  }
  0x65   : > { %3078 = vperm.xlu1 %3041, %v3077_v33  }
  0x68   : > { %3445 = vset.pattern.permute.xlu0 %v5313_v26 }
  0x69   : > { %3447 = vperm.xlu0 %3445, %v3749_v15   ;;  %3082 = vset.pattern.permute.xlu1 %v5313_v26  ;;  %v1026_v15 = vunpack.c.h.bf16 %v557_v13  ;;  %v1869_v13 = vunpack.c.l.bf16 %v2893_v8  ;;  %v2923_v8 = vld [vmem:[%s3742_s18 + $0x40] sm:$0xf] }
  0x6a   : > { %3084 = vperm.xlu1 %3082, %v3770_v31  }
  0x6b   : > { %v3924_v28 = vpack.i.bf16 %v1870_v14, %v1869_v13  ;;  %v2924_v13 = vld [vmem:[%s3742_s18 + $0x44] sm:$0x1] }
  0x6d   : > { %3452 = vperm.xlu0 %3445, %v3752_v16   ;;  %v3879_v16 = vpack.i.bf16 %v1027_v35, %v1026_v15  ;;  %5370 = vst [vmem:[#allocation7_spill] sm:$0xff] %v3924_v28  ;;  %v2910_v15 = vld [vmem:[%s3742_s18 + $0xc] sm:$0x1] }
  0x6e   : > { %3089 = vperm.xlu1 %3082, %v3052_v60   ;;  %v2239_v43 = vunpack.c.l.bf16 %v2910_v15  ;;  %v2253_v15 = vunpack.c.l.bf16 %v2924_v13 }
  0x71   : > { %3457 = vperm.xlu0 %3445, %v3791_v53   ;;  %v1208_v53 = vunpack.c.h.bf16 %v2849_v34  ;;  %v2909_v34 = vld [vmem:[%s3742_s18 + $0x8] ss:$24 sps:$4 sm:$0xff]  }
  0x72   : > { %3094 = vperm.xlu1 %3082, %v3775_v36   ;;  %v2238_v41 = vunpack.c.l.bf16 %v2909_v34 }
  0x73   : > { %v3883_v39 = vpack.i.bf16 %v1209_v38, %v1208_v53 }
  0x74   : > { %v3942_v49 = vpack.i.bf16 %v2239_v43, %v2238_v41 }
  0x75   : > { %3462 = vperm.xlu0 %3445, %v3042_v50  }
  0x76   : > { %3099 = vperm.xlu1 %3082, %v3781_v42   ;;  %5372 = vst [vmem:[#allocation9_spill] sm:$0xff] %v3942_v49 }
  0x79   : > { %3467 = vperm.xlu0 %3445, %v3057_v9  }
  0x7a   : > { %3103 = vset.pattern.permute.xlu1 %v5311_v40 }
  0x7b   : > { %3105 = vperm.xlu1 %3103, %v3042_v50   ;;  %v1028_v50 = vunpack.c.l.bf16 %v2850_v46 }
  0x7d   : > { %3472 = vperm.xlu0 %3445, %v3067_v24   ;;  %v3140_v23 = vpack.i.bf16 %v1029_v51, %v1028_v50  ;;  %v2244_v50 = vunpack.c.h.bf16 %v2909_v34  ;;  %v2245_v51 = vunpack.c.l.bf16 %v2916_v45  ;;  %v2252_v34 = vunpack.c.l.bf16 %v2923_v8 }
  0x7f   : > { %3110 = vperm.xlu1 %3103, %v3052_v60   ;;  %v1412_v60 = vunpack.c.l.bf16 %v2881_v57 }
  0x81   : > { %3477 = vperm.xlu0 %3445, %v3077_v33   ;;  %v3906_v2 = vpack.i.bf16 %v1412_v60, %v1411_v59  ;;  %v3953_v60 = vpack.i.bf16 %v2245_v51, %v2244_v50 }
  0x83   : > { %3115 = vperm.xlu1 %3103, %v3057_v9   ;;  %5373 = vst [vmem:[#allocation10_spill] sm:$0xff] %v3953_v60 }
  0x85   : > { %3482 = vperm.xlu0 %3445, %v3879_v16  }
  0x87   : > { %3120 = vperm.xlu1 %3103, %v3067_v24  }
  0x89   : > { %3487 = vperm.xlu0 %3445, %v3883_v39  }
  0x8b   : > { %3125 = vperm.xlu1 %3103, %v3077_v33   ;;  %v2050_v33 = vunpack.c.h.bf16 %v2900_v20  ;;  %v1212_v20 = vunpack.c.h.bf16 %v2919_v52 }
  0x8d   : > { %3492 = vperm.xlu0 %3445, %v3839_v37   ;;  %v3933_v38 = vpack.i.bf16 %v2050_v33, %v2049_v29  ;;  %v1213_v29 = vunpack.c.l.bf16 %v2862_v6 }
  0x8f   : > { %3134 = vset.pattern.permute.xlu1 %v5315_v0  ;;  %5371 = vst [vmem:[#allocation8_spill] sm:$0xff] %v3933_v38  ;;  %v3188_v43 = vpack.i.bf16 %v1213_v29, %v1212_v20  ;;  %v2872_v20 = vld [vmem:[%s3742_s18 + $0x28] ss:$120 sps:$4 sm:$0xff]   ;;  %v2873_v29 = vld [vmem:[%s3742_s18 + $0xa4] sm:$0x1] }
  0x90   : > { %3136 = vperm.xlu1 %3134, %v3879_v16  }
  0x91   : > { %3497 = vperm.xlu0 %3445, %v3892_v25  }
  0x92   : > { %v3901_v63 = vpop.permute.xlu1 %2957 }
  0x93   : > { %v3903_v1 = vpop.permute.xlu0 %2946 }
  0x94   : > { %3141 = vperm.xlu1 %3134, %v3140_v23  }
  0x95   : > { %3502 = vperm.xlu0 %3445, %v3898_v58  }
  0x96   : > { %v3909_v9 = vpop.permute.xlu1 %2962 }
  0x97   : > { %v3911_v10 = vpop.permute.xlu0 %2951 }
  0x98   : > { %3150 = vset.pattern.permute.xlu1 %v5313_v26 }
  0x99   : > { %3507 = vperm.xlu0 %3445, %v3906_v2   ;;  %3152 = vperm.xlu1 %3150, %v3786_v48  }
  0x9b   : > { %v3919_v22 = vpop.permute.xlu0 %2994  ;;  %v3921_v24 = vpop.permute.xlu1 %2968 }
  0x9c   : > { %v2997_v30 = vunpack.i.h.bf16 %v3919_v22 }
  0x9d   : > { %3512 = vperm.xlu0 %3445, %v3915_v11   ;;  %3157 = vperm.xlu1 %3150, %v3140_v23  }
  0x9f   : > { %v3928_v35 = vpop.permute.xlu0 %3010  ;;  %v3930_v53 = vpop.permute.xlu1 %2973 }
  0xa1   : > { %3517 = vperm.xlu0 %3445, %v3924_v28   ;;  %3162 = vperm.xlu1 %3150, %v3794_v56   ;;  %v2954_v28 = vunpack.i.h.bf16 %v3911_v10 }
  0xa3   : > { %v3937_v46 = vpop.permute.xlu0 %3048 }
  0xa4   : > { %v3939_v47 = vpop.permute.xlu1 %2979 }
  0xa5   : > { %3522 = vperm.xlu0 %3445, %v3933_v38   ;;  %3166 = vset.pattern.permute.xlu1 %v5311_v40 }
  0xa6   : > { %3168 = vperm.xlu1 %3166, %v3879_v16   ;;  %v3963_v16 = vpack.i.bf16 %v2249_v5, %v2248_v61 }
  0xa7   : > { %v3948_v57 = vpop.permute.xlu0 %3063 }
  0xa8   : > { %v3950_v59 = vpop.permute.xlu1 %2984  ;;  %5374 = vst [vmem:[#allocation11_spill] sm:$0xff] %v3963_v16 }
  0xa9   : > { %3532 = vperm.xlu0 %3445, %v3942_v49  }
  0xaa   : > { %3173 = vperm.xlu1 %3166, %v3140_v23   ;;  %v3970_v23 = vpack.i.bf16 %v2253_v15, %v2252_v34  ;;  %v1403_v15 = vunpack.c.h.bf16 %v2872_v20 }
  0xab   : > { %v3958_v14 = vpop.permute.xlu0 %3073 }
  0xac   : > { %v3960_v33 = vpop.permute.xlu1 %2989  ;;  %5375 = vst [vmem:[#allocation12_spill] sm:$0xff] %v3970_v23 }
  0xad   : > { %3548 = vperm.xlu0 %3445, %v3953_v60  }
  0xae   : > { %3177 = vset.pattern.permute.xlu1 %v5315_v0 }
  0xaf   : > { %v3966_v41 = vpop.permute.xlu0 %3130  ;;  %3179 = vperm.xlu1 %3177, %v3883_v39  }
  0xb1   : > { %3558 = vperm.xlu0 %3445, %v3963_v16   ;;  %v3972_v45 = vpop.permute.xlu1 %3000  ;;  %v2965_v16 = vunpack.i.h.bf16 %v3909_v9 }
  0xb3   : > { %v3974_v50 = vpop.permute.xlu0 %3146  ;;  %3189 = vperm.xlu1 %3177, %v3188_v43  }
  0xb5   : > { %3568 = vperm.xlu0 %3445, %v3970_v23   ;;  %v3977_v51 = vpop.permute.xlu1 %3005 }
  0xb7   : > { %v3979_v52 = vpop.permute.xlu0 %3184  ;;  %3194 = vperm.xlu1 %3177, %v3839_v37  }
  0xb9   : > { %3572 = vset.pattern.permute.xlu0 %v5311_v40 }
  0xba   : > { %3574 = vperm.xlu0 %3572, %v3754_v17   ;;  %v3984_v54 = vpop.permute.xlu1 %3016 }
  0xbb   : > { %v3986_v61 = vpop.permute.xlu0 %3226  ;;  %3198 = vset.pattern.permute.xlu1 %v5313_v26  ;;  %v4021_v26 = vld [vmem:[%s3742_s18 + $0x30] ss:$72 sps:$4 sm:$0xff]  }
  0xbc   : > { %3200 = vperm.xlu1 %3198, %v3801_v62  }
  0xbe   : > { %3579 = vperm.xlu0 %3572, %v3759_v21   ;;  %v3991_v5 = vpop.permute.xlu1 %3021 }
  0xbf   : > { %v3993_v6 = vpop.permute.xlu0 %3242 }
  0xc0   : > { %3205 = vperm.xlu1 %3198, %v3188_v43  }
  0xc2   : > { %3584 = vperm.xlu0 %3572, %v3765_v27   ;;  %v3996_v17 = vpop.permute.xlu1 %3026 }
  0xc3   : > { %v3998_v8 = vpop.permute.xlu0 %3252 }
  0xc4   : > { %3209 = vset.pattern.permute.xlu1 %v5311_v40  ;;  %v1404_v40 = vunpack.c.l.bf16 %v2873_v29  ;;  %v1867_v29 = vunpack.c.l.bf16 %v2872_v20  ;;  %v2953_v20 = vunpack.i.l.bf16 %v3911_v10 }
  0xc5   : > { %3211 = vperm.xlu1 %3209, %v3883_v39  }
  0xc6   : > { %3589 = vperm.xlu0 %3572, %v3770_v31   ;;  %v4018_v39 = vpack.i.bf16 %v1404_v40, %v1403_v15  ;;  %v2959_v40 = vunpack.i.l.bf16 %v3901_v63  ;;  %v2829_v15 = vld [vmem:[%s5308_s1] ss:$0 sm:$0xff] }
  0xc7   : > { %v4003_v13 = vpop.permute.xlu0 %3262  ;;  %v4005_v21 = vpop.permute.xlu1 %3032  ;;  %v4065_v10 = vmul.f32 %v2965_v16, %v2829_v15  ;;  %v4078_v16 = vld [vmem:[%s5308_s1 + $0x3] ss:$0 sm:$0xff] }
  0xc8   : > { %v241_v38 = vmul.f32 %v2959_v40, %v2829_v15  ;;  %v239_v40 = vmul.f32 %v2953_v20, %v2829_v15 }
  0xc9   : > { %3216 = vperm.xlu1 %3209, %v3188_v43   ;;  %v5378_v43 = vmov 0   ;;  %5384 = vst [vmem:[#allocation20_spill] sm:$0xff] %v4065_v10  ;;  %v3066_v10 = vunpack.i.h.bf16 %v3948_v57 }
  0xca   : > { %3594 = vperm.xlu0 %3572, %v3775_v36  }
  0xcb   : > { %v4010_v27 = vpop.permute.xlu0 %3320  ;;  %v4012_v34 = vpop.permute.xlu1 %3037 }
  0xcc   : > { %5376 = vst [vmem:[#allocation13_spill] sm:$0xff] %v4010_v27  ;;  %v5417_v27 = vld [vmem:[#allocation5_spill] sm:$0xff] }
  0xcd   : > { %3221 = vperm.xlu1 %3209, %v3839_v37   ;;  %v1868_v37 = vunpack.c.l.bf16 %v4021_v26 }
  0xce   : > { %3599 = vperm.xlu0 %3572, %v3781_v42   ;;  %v2960_v42 = vunpack.i.h.bf16 %v3901_v63 }
  0xcf   : > { %v4016_v31 = vpop.permute.xlu0 %3362  ;;  %v4047_v60 = vpack.i.bf16 %v1868_v37, %v1867_v29  ;;  %v2996_v29 = vunpack.i.l.bf16 %v3919_v22  ;;  %v240_v22 = vmul.f32 %v2954_v28, %v2829_v15 }
  0xd0   : > { %5377 = vst [vmem:[#allocation14_spill] sm:$0xff] %v4016_v31  ;;  %v4023_v0 = vpop.permute.xlu1 %3043  ;;  %v2949_v31 = vunpack.i.h.bf16 %v3903_v1  ;;  %v242_v49 = vmul.f32 %v2960_v42, %v2829_v15 }
  0xd1   : > { %3230 = vset.pattern.permute.xlu1 %v5378_v43  ;;  %5381 = vst [vmem:[#allocation17_spill] sm:$0xff] %v4047_v60  ;;  %v2964_v43 = vunpack.i.l.bf16 %v3909_v9  ;;  %v4088_v20 = vmul.f32 %v2996_v29, %v4078_v16 }
  0xd2   : > { %3604 = vperm.xlu0 %3572, %v3786_v48   ;;  %3232 = vperm.xlu1 %3230, %v3892_v25   ;;  %v2948_v48 = vunpack.i.l.bf16 %v3903_v1  ;;  %v4053_v1 = vld [vmem:[%s5308_s1 + $0x1] ss:$0 sm:$0xff]  ;;  %v4056_v11 = vmul.f32 %v2949_v31, %v2829_v15  ;;  %v3050_v31 = vunpack.i.l.bf16 %v3937_v46 }
  0xd3   : > { %v4028_v36 = vpop.permute.xlu0 %3378  ;;  %5388 = vst [vmem:[#allocation24_spill] sm:$0xff] %v4088_v20 }
  0xd4   : > { %5379 = vst [vmem:[#allocation15_spill] sm:$0xff] %v4028_v36  ;;  %v4037_v23 = vpop.permute.xlu1 %3053  ;;  %v2970_v36 = vunpack.i.l.bf16 %v3921_v24  ;;  %5382 = vst [vmem:[#allocation18_spill] sm:$0xff] %v4056_v11  ;;  %v4063_v42 = vmul.f32 %v2948_v48, %v2829_v15  ;;  %v4082_v48 = vmul.f32 %v2964_v43, %v2829_v15  ;;  %v3012_v43 = vunpack.i.l.bf16 %v3928_v35 }
  0xd5   : > { %v2987_v11 = vunpack.i.h.bf16 %v3950_v59 }
  0xd6   : > { %3609 = vperm.xlu0 %3572, %v3794_v56   ;;  %3237 = vperm.xlu1 %3230, %v4018_v39   ;;  %v2971_v56 = vunpack.i.h.bf16 %v3921_v24  ;;  %5383 = vst [vmem:[#allocation19_spill] sm:$0xff] %v4063_v42  ;;  %v3051_v24 = vunpack.i.h.bf16 %v3937_v46  ;;  %5386 = vst [vmem:[#allocation22_spill] sm:$0xff] %v4082_v48  ;;  %v4085_v46 = vmul.f32 %v2997_v30, %v4078_v16 }
  0xd7   : > { %v4045_v63 = vpop.permute.xlu0 %3416 }
  0xd8   : > { %5380 = vst [vmem:[#allocation16_spill] sm:$0xff] %v4045_v63  ;;  %v4061_v37 = vpop.permute.xlu1 %3058  ;;  %v292_v63 = vmul.f32 %v2970_v36, %v4053_v1  ;;  %v293_v60 = vmul.f32 %v2971_v56, %v4053_v1  ;;  %v2975_v36 = vunpack.i.l.bf16 %v3930_v53  ;;  %5387 = vst [vmem:[#allocation23_spill] sm:$0xff] %v4085_v46  ;;  %v3013_v56 = vunpack.i.h.bf16 %v3928_v35 }
  0xd9   : > { %v2981_v35 = vunpack.i.l.bf16 %v3939_v47 }
  0xda   : > { %3614 = vperm.xlu0 %3572, %v3801_v62   ;;  %3247 = vperm.xlu1 %3230, %v3898_v58   ;;  %v2976_v62 = vunpack.i.h.bf16 %v3930_v53  ;;  %v3065_v53 = vunpack.i.l.bf16 %v3948_v57  ;;  %v4101_v30 = vadd.f32 %v292_v63, %v239_v40  ;;  %v4109_v20 = vadd.f32 %v293_v60, %v240_v22  ;;  %v4126_v60 = vld [vmem:[%s5308_s1 + $0x2] ss:$0 sm:$0xff] }
  0xdb   : > { %v4072_v9 = vpop.permute.xlu0 %3431  ;;  %v294_v57 = vmul.f32 %v2975_v36, %v4053_v1  ;;  %v2982_v63 = vunpack.i.h.bf16 %v3939_v47  ;;  %v3076_v40 = vunpack.i.h.bf16 %v3958_v14  ;;  %5393 = vst [vmem:[#allocation29_spill] sm:$0xff] %v4126_v60  ;;  %v2986_v47 = vunpack.i.l.bf16 %v3950_v59 }
  0xdc   : > { %5385 = vst [vmem:[#allocation21_spill] sm:$0xff] %v4072_v9  ;;  %v4090_v28 = vpop.permute.xlu1 %3068  ;;  %v4096_v9 = vld [vmem:[%s5308_s1 + $0x6] ss:$0 sm:$0xff]  ;;  %5389 = vst [vmem:[#allocation25_spill] sm:$0xff] %v4101_v30  ;;  %v295_v48 = vmul.f32 %v2976_v62, %v4053_v1  ;;  %v348_v42 = vmul.f32 %v2987_v11, %v4126_v60  ;;  %v4144_v59 = vmul.f32 %v2981_v35, %v4126_v60 }
  0xdd   : > { %v663_v15 = vmul.f32 %v3051_v24, %v4096_v9  ;;  %v662_v29 = vmul.f32 %v3050_v31, %v4096_v9  ;;  %5391 = vst [vmem:[#allocation27_spill] sm:$0xff] %v4109_v20  ;;  %v3075_v24 = vunpack.i.l.bf16 %v3958_v14  ;;  %v669_v22 = vmul.f32 %v3066_v10, %v4096_v9 }
  0xde   : > { %3619 = vperm.xlu0 %3572, %v3805_v3   ;;  %3257 = vperm.xlu1 %3230, %v3906_v2   ;;  %v668_v62 = vmul.f32 %v3065_v53, %v4096_v9  ;;  %v4133_v14 = vmul.f32 %v3012_v43, %v4078_v16  ;;  %v5395_v20 = vmov 1   ;;  %v303_v30 = vadd.f32 %v295_v48, %v242_v49 }
  0xdf   : > { %v4107_v46 = vpop.permute.xlu0 %3441  ;;  %v697_v36 = vrot.slane %v663_v15, 1  ;;  %v4141_v53 = vmul.f32 %v2982_v63, %v4126_v60  ;;  %v673_v43 = vmul.f32 %v3076_v40, %v4096_v9  ;;  %v672_v15 = vmul.f32 %v3075_v24, %v4096_v9 }
  0xe0   : > { %5390 = vst [vmem:[#allocation26_spill] sm:$0xff] %v4107_v46  ;;  %v4118_v31 = vpop.permute.xlu1 %3078  ;;  %v4121_v46 = vmul.f32 %v3013_v56, %v4078_v16  ;;  %5394 = vst [vmem:[#allocation30_spill] sm:$0xff] %v4133_v14  ;;  %v696_v56 = vrot.slane %v662_v29, 1  ;;  %v4149_v29 = vld [vmem:[%s3742_s18 + $0x18] ss:$88 sps:$4 sm:$0xff]   ;;  %v706_v49 = vrot.slane %v669_v22, 1  ;;  %v347_v11 = vmul.f32 %v2986_v47, %v4126_v60 }
  0xe1   : > { %5396 = vst [vmem:[#allocation31_spill] sm:$0xff] %v4141_v53  ;;  %v356_v35 = vadd.f32 %v348_v42, %v303_v30  ;;  %v3133_v40 = vunpack.i.h.bf16 %v3966_v41  ;;  %v2051_v22 = vunpack.c.h.bf16 %v4149_v29  ;;  %v711_v47 = vrot.slane %v672_v15, 1 }
  0xe2   : > { %5392 = vst [vmem:[#allocation28_spill] sm:$0xff] %v4121_v46  ;;  %3624 = vperm.xlu0 %3572, %v3811_v7   ;;  %3266 = vset.pattern.permute.xlu1 %v5395_v20  ;;  %v302_v46 = vadd.f32 %v294_v57, %v241_v38  ;;  %v705_v38 = vrot.slane %v668_v62, 1  ;;  %v2991_v57 = vunpack.i.l.bf16 %v3960_v33  ;;  %v4158_v63 = vsel %vm692_vm0, %v696_v56, %v697_v36 }
  0xe3   : > { %3268 = vperm.xlu1 %3266, %v3805_v3   ;;  %v2992_v3 = vunpack.i.h.bf16 %v3960_v33  ;;  %5397 = vst [vmem:[#allocation32_spill] sm:$0xff] %v4158_v63  ;;  %v712_v62 = vrot.slane %v673_v43, 1  ;;  %v3132_v14 = vunpack.i.l.bf16 %v3966_v41  ;;  %v2052_v20 = vunpack.c.h.bf16 %v4021_v26  ;;  %v4184_v26 = vld [vmem:[%s5308_s1 + $0x9] ss:$0 sm:$0xff] }
  0xe4   : > { %v4138_v10 = vpop.permute.xlu0 %3447  ;;  %v355_v53 = vadd.f32 %v347_v11, %v302_v46  ;;  %v3003_v33 = vunpack.i.h.bf16 %v3972_v45  ;;  %v3002_v36 = vunpack.i.l.bf16 %v3972_v45  ;;  %v4170_v42 = vsel %vm692_vm0, %v705_v38, %v706_v49 }
  0xe5   : > { %v4152_v48 = vpop.permute.xlu1 %3084  ;;  %v4176_v56 = vmul.f32 %v2992_v3, %v4126_v60  ;;  %v4179_v43 = vmul.f32 %v2991_v57, %v4126_v60  ;;  %v3007_v41 = vunpack.i.l.bf16 %v3977_v51  ;;  %v4188_v45 = vmul.f32 %v3133_v40, %v4184_v26  ;;  %v4203_v57 = vld [vmem:[%s5308_s1 + $0xf] ss:$0 sm:$0xff] }
  0xe6   : > { %3629 = vperm.xlu0 %3572, %v3816_v12   ;;  %v3008_v46 = vunpack.i.h.bf16 %v3977_v51  ;;  %v3229_v15 = vunpack.i.h.bf16 %v3986_v61  ;;  %v3228_v49 = vunpack.i.l.bf16 %v3986_v61  ;;  %v4197_v11 = vmul.f32 %v3132_v14, %v4184_v26  ;;  %5400 = vst [vmem:[#allocation35_spill] sm:$0xff] %v4203_v57 }
  0xe7   : > { %3273 = vperm.xlu1 %3266, %v4018_v39   ;;  %5398 = vst [vmem:[#allocation33_spill] sm:$0xff] %v4188_v45  ;;  %v3149_v3 = vunpack.i.h.bf16 %v3974_v50  ;;  %v4205_v40 = vpack.i.bf16 %v2052_v20, %v2051_v22  ;;  %v4208_v51 = vsel %vm692_vm0, %v711_v47, %v712_v62  ;;  %v4211_v61 = vmul.f32 %v3003_v33, %v4078_v16  ;;  %v4225_v22 = vld [vmem:[%s5308_s1 + $0xc] ss:$0 sm:$0xff] }
  0xe8   : > { %v4162_v24 = vpop.permute.xlu0 %3452  ;;  %5399 = vst [vmem:[#allocation34_spill] sm:$0xff] %v4197_v11  ;;  %5401 = vst [vmem:[#allocation36_spill] sm:$0xff] %v4208_v51  ;;  %v3148_v14 = vunpack.i.l.bf16 %v3974_v50  ;;  %v3187_v11 = vunpack.i.h.bf16 %v3979_v52  ;;  %v425_v20 = vmul.f32 %v3007_v41, %v4078_v16  ;;  %v3186_v62 = vunpack.i.l.bf16 %v3979_v52 }
  0xe9   : > { %v4172_v30 = vpop.permute.xlu1 %3089  ;;  %5402 = vst [vmem:[#allocation37_spill] sm:$0xff] %v4211_v61  ;;  %v426_v47 = vmul.f32 %v3008_v46, %v4078_v16  ;;  %v1501_v33 = vmul.f32 %v3229_v15, %v4203_v57  ;;  %v1500_v50 = vmul.f32 %v3228_v49, %v4203_v57  ;;  %v4236_v41 = vmul.f32 %v3149_v3, %v4184_v26 }
  0xea   : > { %3634 = vperm.xlu0 %3572, %v3821_v19   ;;  %v3024_v63 = vunpack.i.h.bf16 %v3991_v5  ;;  %v3245_v61 = vunpack.i.h.bf16 %v3993_v6  ;;  %v3244_v52 = vunpack.i.l.bf16 %v3993_v6  ;;  %v4245_v46 = vmul.f32 %v3187_v11, %v4225_v22  ;;  %v4258_v6 = vld [vmem:[%s5308_s1 + $0x4] ss:$0 sm:$0xff] }
  0xeb   : > { %3278 = vperm.xlu1 %3266, %v3811_v7   ;;  %v4214_v7 = vmul.f32 %v3002_v36, %v4078_v16  ;;  %v3023_v36 = vunpack.i.l.bf16 %v3991_v5  ;;  %5404 = vst [vmem:[#allocation39_spill] sm:$0xff] %v4236_v41  ;;  %v4242_v16 = vmul.f32 %v3148_v14, %v4184_v26  ;;  %v3255_v15 = vunpack.i.h.bf16 %v3998_v8 }
  0xec   : > { %v4194_v38 = vpop.permute.xlu0 %3457  ;;  %5406 = vst [vmem:[#allocation41_spill] sm:$0xff] %v4245_v46  ;;  %v433_v3 = vadd.f32 %v425_v20, %v355_v53  ;;  %v4253_v5 = vmul.f32 %v3186_v62, %v4225_v22  ;;  %v3019_v11 = vunpack.i.h.bf16 %v3984_v54  ;;  %v3018_v14 = vunpack.i.l.bf16 %v3984_v54 }
  0xed   : > { %5403 = vst [vmem:[#allocation38_spill] sm:$0xff] %v4214_v7  ;;  %v4218_v45 = vpop.permute.xlu1 %3094  ;;  %5405 = vst [vmem:[#allocation40_spill] sm:$0xff] %v4242_v16  ;;  %v434_v41 = vadd.f32 %v426_v47, %v356_v35  ;;  %v1533_v16 = vrot.slane %v1501_v33, 1  ;;  %v478_v46 = vmul.f32 %v3023_v36, %v4258_v6  ;;  %v479_v20 = vmul.f32 %v3024_v63, %v4258_v6 }
  0xee   : > { %3639 = vperm.xlu0 %3572, %v3835_v32   ;;  %5407 = vst [vmem:[#allocation42_spill] sm:$0xff] %v4253_v5  ;;  %v1507_v62 = vmul.f32 %v3245_v61, %v4203_v57  ;;  %v1506_v5 = vmul.f32 %v3244_v52, %v4203_v57  ;;  %v3029_v7 = vunpack.i.h.bf16 %v3996_v17  ;;  %v1511_v60 = vmul.f32 %v3255_v15, %v4203_v57 }
  0xef   : > { %3283 = vperm.xlu1 %3266, %v3816_v12   ;;  %v3254_v12 = vunpack.i.l.bf16 %v3998_v8  ;;  %v1532_v8 = vrot.slane %v1500_v50, 1  ;;  %v4274_v35 = vmul.f32 %v3019_v11, %v4258_v6  ;;  %v3028_v63 = vunpack.i.l.bf16 %v3996_v17 }
  0xf0   : > { %v4233_v51 = vpop.permute.xlu0 %3462  ;;  %v3265_v61 = vunpack.i.h.bf16 %v4003_v13  ;;  %v486_v50 = vadd.f32 %v478_v46, %v433_v3  ;;  %v3264_v36 = vunpack.i.l.bf16 %v4003_v13  ;;  %v5409_v52 = vmov 2   ;;  %v4300_v13 = vld [vmem:[%s5308_s1 + $0x5] ss:$0 sm:$0xff] }
  0xf1   : > { %v4249_v49 = vpop.permute.xlu1 %3099  ;;  %v1510_v54 = vmul.f32 %v3254_v12, %v4203_v57  ;;  %v4284_v33 = vsel %vm692_vm0, %v1532_v8, %v1533_v16  ;;  %v4290_v12 = vadd.f32 %v479_v20, %v434_v41  ;;  %v1542_v11 = vrot.slane %v1507_v62, 1  ;;  %5410 = vst [vmem:[#allocation44_spill] sm:$0xff] %v4300_v13 }
  0xf2   : > { %3644 = vperm.xlu0 %3572, %v3844_v44   ;;  %5408 = vst [vmem:[#allocation43_spill] sm:$0xff] %v4284_v33  ;;  %v3035_v17 = vunpack.i.h.bf16 %v4005_v21  ;;  %v1548_v16 = vrot.slane %v1511_v60, 1  ;;  %v3034_v46 = vunpack.i.l.bf16 %v4005_v21  ;;  %v4305_v41 = vmul.f32 %v3028_v63, %v4258_v6 }
  0xf3   : > { %3288 = vperm.xlu1 %3266, %v3821_v19   ;;  %v4277_v19 = vmul.f32 %v3018_v14, %v4258_v6  ;;  %v1541_v14 = vrot.slane %v1506_v5, 1  ;;  %v1547_v8 = vrot.slane %v1510_v54, 1  ;;  %v4308_v3 = vmul.f32 %v3265_v61, %v4203_v57 }
  0xf4   : > { %v4264_v53 = vpop.permute.xlu0 %3467  ;;  %v3046_v60 = vunpack.i.h.bf16 %v4023_v0  ;;  %v4315_v5 = vmul.f32 %v3264_v36, %v4203_v57  ;;  %v3040_v20 = vunpack.i.h.bf16 %v4012_v34  ;;  %v3045_v21 = vunpack.i.l.bf16 %v4023_v0 }
  0xf5   : > { %5411 = vst [vmem:[#allocation45_spill] sm:$0xff] %v4308_v3  ;;  %v4322_v54 = vmul.f32 %v3035_v17, %v4300_v13  ;;  %v3056_v63 = vunpack.i.h.bf16 %v4037_v23  ;;  %v3055_v61 = vunpack.i.l.bf16 %v4037_v23  ;;  %v4328_v33 = vsel %vm692_vm0, %v1541_v14, %v1542_v11  ;;  %v2914_v23 = vld [vmem:[%s3742_s18 + $0x1c] sm:$0x1] }
  0xf6   : > { %3649 = vperm.xlu0 %3572, %v3850_v55   ;;  %v4281_v47 = vpop.permute.xlu1 %3105  ;;  %v4295_v55 = vmul.f32 %v3029_v7, %v4258_v6  ;;  %5412 = vst [vmem:[#allocation46_spill] sm:$0xff] %v4315_v5  ;;  %5414 = vst [vmem:[#allocation48_spill] sm:$0xff] %v4328_v33  ;;  %v4331_v36 = vmul.f32 %v3034_v46, %v4300_v13  ;;  %v3070_v0 = vunpack.i.l.bf16 %v4090_v28 }
  0xf7   : > { %3292 = vset.pattern.permute.xlu1 %v5409_v52  ;;  %5413 = vst [vmem:[#allocation47_spill] sm:$0xff] %v4322_v54  ;;  %v4337_v17 = vsel %vm692_vm0, %v1547_v8, %v1548_v16  ;;  %v661_v11 = vmul.f32 %v3046_v60, %v4096_v9  ;;  %v665_v16 = vmul.f32 %v3056_v63, %v4096_v9  ;;  %v3060_v60 = vunpack.i.l.bf16 %v4061_v37 }
  0xf8   : > { %v4288_v15 = vpop.permute.xlu0 %3472  ;;  %3294 = vperm.xlu1 %3292, %v3892_v25   ;;  %v3039_v25 = vunpack.i.l.bf16 %v4012_v34  ;;  %5415 = vst [vmem:[#allocation49_spill] sm:$0xff] %v4331_v36  ;;  %v3071_v34 = vunpack.i.h.bf16 %v4090_v28  ;;  %5416 = vst [vmem:[#allocation50_spill] sm:$0xff] %v4337_v17  ;;  %v664_v8 = vmul.f32 %v3055_v61, %v4096_v9  ;;  %v3081_v28 = vunpack.i.h.bf16 %v4118_v31 }
  0xf9   : > { %v694_v5 = vrot.slane %v661_v11, 1  ;;  %v3080_v61 = vunpack.i.l.bf16 %v4118_v31  ;;  %v700_v17 = vrot.slane %v665_v16, 1  ;;  %v3087_v11 = vunpack.i.h.bf16 %v4152_v48 }
  0xfa   : > { %3660 = vperm.xlu0 %3572, %v3857_v4   ;;  %v4312_v7 = vpop.permute.xlu1 %3110  ;;  %v532_v4 = vmul.f32 %v3040_v20, %v4300_v13  ;;  %v671_v46 = vmul.f32 %v3071_v34, %v4096_v9  ;;  %v670_v20 = vmul.f32 %v3070_v0, %v4096_v9  ;;  %v2242_v34 = vunpack.c.l.bf16 %v4149_v29 }
  0xfb   : > { %v2243_v0 = vunpack.c.l.bf16 %v2914_v23  ;;  %v699_v54 = vrot.slane %v664_v8, 1  ;;  %v3086_v29 = vunpack.i.l.bf16 %v4152_v48  ;;  %v3454_v23 = vunpack.i.l.bf16 %v4162_v24 }
  0xfc   : > { %v4319_v62 = vpop.permute.xlu0 %3477  ;;  %3299 = vperm.xlu1 %3292, %v4018_v39   ;;  %v531_v39 = vmul.f32 %v3039_v25, %v4300_v13  ;;  %v3061_v25 = vunpack.i.h.bf16 %v4061_v37  ;;  %v708_v31 = vrot.slane %v670_v20, 1  ;;  %v540_v8 = vadd.f32 %v532_v4, %v4290_v12  ;;  %v5423_v13 = vld [vmem:[#allocation6_spill] sm:$0xff] }
  0xfd   : > { %v5420_v12 = vmov 0  }
  0xfe   : > { %3675 = vperm.xlu0 %3572, %v3863_v18   ;;  %v4342_v14 = vpop.permute.xlu1 %3115  ;;  %v660_v18 = vmul.f32 %v3045_v21, %v4096_v9  ;;  %v3449_v21 = vunpack.i.l.bf16 %v4138_v10  ;;  %v539_v63 = vadd.f32 %v531_v39, %v486_v50  ;;  %v667_v36 = vmul.f32 %v3061_v25, %v4096_v9 }
  0xff   : > { %v709_v50 = vrot.slane %v671_v46, 1  ;;  %v675_v39 = vmul.f32 %v3081_v28, %v4096_v9  ;;  %v4387_v28 = vld [vmem:[%s5308_s1 + $0x7] ss:$0 sm:$0xff]  ;;  %v4395_v25 = vsel %vm692_vm0, %v699_v54, %v700_v17 }
 0x100   : > { %v4348_v33 = vpop.permute.xlu0 %3482  ;;  %3304 = vperm.xlu1 %3292, %v3898_v58   ;;  %v693_v37 = vrot.slane %v660_v18, 1  ;;  %v3450_v58 = vunpack.i.h.bf16 %v4138_v10  ;;  %v290_v18 = vmul.f32 %v3449_v21, %v4053_v1  ;;  %v674_v10 = vmul.f32 %v3080_v61, %v4096_v9  ;;  %5419 = vst [vmem:[#allocation52_spill] sm:$0xff] %v4395_v25  ;;  %v5429_v25 = vld [vmem:[#allocation31_spill] sm:$0xff] }
 0x101   : > { %v710_v20 = vsel %vm692_vm0, %v708_v31, %v709_v50  ;;  %v715_v21 = vrot.slane %v675_v39, 1  ;;  %v804_v54 = vmul.f32 %v3086_v29, %v4387_v28  ;;  %v3097_v50 = vunpack.i.h.bf16 %v4218_v45 }
 0x102   : > { %3685 = vperm.xlu0 %3572, %v5417_v27   ;;  %v4362_v3 = vpop.permute.xlu1 %3120  ;;  %v666_v27 = vmul.f32 %v3060_v60, %v4096_v9  ;;  %v291_v46 = vmul.f32 %v3450_v58, %v4053_v1  ;;  %v4392_v48 = vsel %vm692_vm0, %v693_v37, %v694_v5  ;;  %v703_v60 = vrot.slane %v667_v36, 1  ;;  %v5424_v36 = vld [vmem:[#allocation18_spill] sm:$0xff] }
 0x103   : > { %5418 = vst [vmem:[#allocation51_spill] sm:$0xff] %v4392_v48  ;;  %v3455_v58 = vunpack.i.h.bf16 %v4162_v24  ;;  %v714_v5 = vrot.slane %v674_v10, 1  ;;  %v805_v37 = vmul.f32 %v3087_v11, %v4387_v28  ;;  %v4419_v10 = vadd.f32 %v710_v20, %v540_v8 }
 0x104   : > { %v4365_v57 = vpop.permute.xlu0 %3487  ;;  %3309 = vperm.xlu1 %3292, %v3906_v2   ;;  %v4381_v2 = vadd.f32 %v4170_v42, %v539_v63  ;;  %v702_v4 = vrot.slane %v666_v27, 1  ;;  %v4398_v42 = vpack.i.bf16 %v2243_v0, %v2242_v34  ;;  %v5422_v63 = vld [vmem:[#allocation19_spill] sm:$0xff]  ;;  %v296_v27 = vmul.f32 %v3454_v23, %v4053_v1  ;;  %v5426_v23 = vld [vmem:[#allocation17_spill] sm:$0xff] }
 0x105   : > { %v298_v61 = vadd.f32 %v290_v18, %v5422_v63  ;;  %v299_v17 = vadd.f32 %v291_v46, %v5424_v36  ;;  %v3092_v34 = vunpack.i.h.bf16 %v4172_v30  ;;  %v3091_v0 = vunpack.i.l.bf16 %v4172_v30  ;;  %v5427_v63 = vld [vmem:[#allocation22_spill] sm:$0xff] }
 0x106   : > { %v4377_v16 = vpop.permute.xlu1 %3125  ;;  %5421 = vst [vmem:[#allocation53_spill] sm:$0xff] %v4398_v42  ;;  %v4416_v39 = vsel %vm692_vm0, %v702_v4, %v703_v60  ;;  %v3096_v18 = vunpack.i.l.bf16 %v4218_v45  ;;  %v297_v29 = vmul.f32 %v3455_v58, %v4053_v1  ;;  %v838_v30 = vrot.slane %v805_v37, 1 }
 0x107   : > { %5425 = vst [vmem:[#allocation19_spill] sm:$0xff] %v4416_v39  ;;  %v351_v11 = vadd.f32 %v4144_v59, %v298_v61  ;;  %v837_v46 = vrot.slane %v804_v54, 1  ;;  %v304_v36 = vadd.f32 %v296_v27, %v5427_v63  ;;  %v4426_v42 = vsel %vm692_vm0, %v714_v5, %v715_v21  ;;  %v5431_v21 = vld [vmem:[#allocation20_spill] sm:$0xff]  ;;  %v5432_v54 = vld [vmem:[#allocation7_spill] sm:$0xff] }
 0x108   : > { %v4389_v9 = vpop.permute.xlu0 %3492  ;;  %3313 = vset.pattern.permute.xlu1 %v5420_v12  ;;  %5428 = vst [vmem:[#allocation6_spill] sm:$0xff] %v4426_v42  ;;  %v352_v60 = vadd.f32 %v5429_v25, %v299_v17  ;;  %v807_v4 = vmul.f32 %v3092_v34, %v4387_v28  ;;  %v806_v45 = vmul.f32 %v3091_v0, %v4387_v28  ;;  %v3465_v61 = vunpack.i.h.bf16 %v4233_v51  ;;  %v5433_v27 = vld [vmem:[#allocation24_spill] sm:$0xff]  ;;  %v5435_v42 = vld [vmem:[#allocation23_spill] sm:$0xff] }
 0x109   : > { %3315 = vperm.xlu1 %3313, %v5423_v13   ;;  %v811_v8 = vmul.f32 %v3097_v50, %v4387_v28  ;;  %v810_v20 = vmul.f32 %v3096_v18, %v4387_v28  ;;  %v3464_v58 = vunpack.i.l.bf16 %v4233_v51  ;;  %v305_v5 = vadd.f32 %v297_v29, %v5431_v21 }
 0x10a   : > { %v3460_v25 = vunpack.i.h.bf16 %v4194_v38  ;;  %v3459_v37 = vunpack.i.l.bf16 %v4194_v38  ;;  %v429_v17 = vadd.f32 %v5433_v27, %v351_v11  ;;  %v4445_v34 = vsel %vm692_vm0, %v837_v46, %v838_v30 }
 0x10b   : > { %v4411_v31 = vpop.permute.xlu1 %3136  ;;  %v357_v0 = vadd.f32 %v4179_v43, %v304_v36  ;;  %v3102_v50 = vunpack.i.h.bf16 %v4249_v49  ;;  %v3101_v18 = vunpack.i.l.bf16 %v4249_v49  ;;  %v841_v51 = vrot.slane %v807_v4, 1 }
 0x10c   : > { %v4413_v24 = vpop.permute.xlu0 %3497  ;;  %v840_v63 = vrot.slane %v806_v45, 1  ;;  %v847_v29 = vrot.slane %v811_v8, 1  ;;  %v430_v38 = vadd.f32 %v5435_v42, %v352_v60  ;;  %v846_v39 = vrot.slane %v810_v20, 1 }
 0x10d   : > { %3325 = vperm.xlu1 %3313, %v5426_v23   ;;  %v803_v48 = vmul.f32 %v3465_v61, %v4387_v28  ;;  %v802_v11 = vmul.f32 %v3464_v58, %v4387_v28  ;;  %v3470_v30 = vunpack.i.h.bf16 %v4264_v53  ;;  %v358_v43 = vadd.f32 %v4176_v56, %v305_v5  ;;  %v5438_v58 = vld [vmem:[#allocation30_spill] sm:$0xff] }
 0x10e   : > { %v4460_v49 = vmul.f32 %v3460_v25, %v4258_v6  ;;  %v4463_v36 = vmul.f32 %v3459_v37, %v4258_v6  ;;  %v3469_v4 = vunpack.i.l.bf16 %v4264_v53  ;;  %v5436_v42 = vmov 1  }
 0x10f   : > { %v4432_v59 = vpop.permute.xlu1 %3141  ;;  %v815_v60 = vmul.f32 %v3102_v50, %v4387_v28  ;;  %v814_v45 = vmul.f32 %v3101_v18, %v4387_v28  ;;  %v3475_v8 = vunpack.i.h.bf16 %v4288_v15  ;;  %v3474_v20 = vunpack.i.l.bf16 %v4288_v15 }
 0x110   : > { %v4434_v1 = vpop.permute.xlu0 %3502  ;;  %v4473_v56 = vsel %vm692_vm0, %v840_v63, %v841_v51  ;;  %v4478_v6 = vadd.f32 %v4277_v19, %v429_v17  ;;  %v4481_v53 = vadd.f32 %v4274_v35, %v430_v38  ;;  %v435_v5 = vadd.f32 %v5438_v58, %v357_v0  ;;  %v5439_v17 = vld [vmem:[#allocation28_spill] sm:$0xff] }
 0x111   : > { %5430 = vst [vmem:[#allocation18_spill] sm:$0xff] %v4434_v1  ;;  %3330 = vperm.xlu1 %3313, %v5432_v54   ;;  %v848_v25 = vsel %vm692_vm0, %v846_v39, %v847_v29  ;;  %v835_v37 = vrot.slane %v803_v48, 1  ;;  %v834_v27 = vrot.slane %v802_v11, 1  ;;  %v809_v15 = vmul.f32 %v3470_v30, %v4387_v28  ;;  %v4495_v39 = vld [vmem:[%s5308_s1 + $0x8] ss:$0 sm:$0xff]  ;;  %v5455_v1 = vld [vmem:[#allocation25_spill] sm:$0xff] }
 0x112   : > { %v808_v50 = vmul.f32 %v3469_v4, %v4387_v28  ;;  %v3108_v18 = vunpack.i.h.bf16 %v4281_v47  ;;  %v3107_v19 = vunpack.i.l.bf16 %v4281_v47  ;;  %v436_v51 = vadd.f32 %v5439_v17, %v358_v43 }
 0x113   : > { %v853_v35 = vrot.slane %v815_v60, 1  ;;  %v852_v63 = vrot.slane %v814_v45, 1  ;;  %v813_v48 = vmul.f32 %v3475_v8, %v4387_v28  ;;  %v812_v0 = vmul.f32 %v3474_v20, %v4387_v28 }
 0x114   : > { %v4450_v21 = vpop.permute.xlu0 %3507  ;;  %v4456_v46 = vpop.permute.xlu1 %3152  ;;  %v4501_v29 = vadd.f32 %v848_v25, %v4381_v2  ;;  %v3113_v47 = vunpack.i.h.bf16 %v4312_v7  ;;  %v3112_v38 = vunpack.i.l.bf16 %v4312_v7  ;;  %v4508_v30 = vadd.f32 %v4305_v41, %v435_v5 }
 0x115   : > { %5434 = vst [vmem:[#allocation17_spill] sm:$0xff] %v4450_v21  ;;  %3334 = vset.pattern.permute.xlu1 %v5436_v42  ;;  %v4511_v43 = vsel %vm692_vm0, %v834_v27, %v835_v37  ;;  %v844_v4 = vrot.slane %v809_v15, 1  ;;  %v3123_v60 = vunpack.i.h.bf16 %v4362_v3  ;;  %v3122_v45 = vunpack.i.l.bf16 %v4362_v3 }
 0x116   : > { %3336 = vperm.xlu1 %3334, %v3835_v32   ;;  %v843_v2 = vrot.slane %v808_v50, 1  ;;  %v944_v20 = vmul.f32 %v3108_v18, %v4495_v39  ;;  %v943_v7 = vmul.f32 %v3107_v19, %v4495_v39  ;;  %v4520_v58 = vadd.f32 %v4295_v55, %v436_v51 }
 0x117   : > { %v4523_v41 = vsel %vm692_vm0, %v852_v63, %v853_v35  ;;  %v850_v5 = vrot.slane %v813_v48, 1  ;;  %v849_v25 = vrot.slane %v812_v0, 1  ;;  %v3480_v37 = vunpack.i.h.bf16 %v4319_v62 }
 0x118   : > { %v4475_v61 = vpop.permute.xlu0 %3512  ;;  %v4486_v32 = vpop.permute.xlu1 %3157  ;;  %v948_v3 = vmul.f32 %v3113_v47, %v4495_v39  ;;  %v947_v27 = vmul.f32 %v3112_v38, %v4495_v39  ;;  %v3479_v15 = vunpack.i.l.bf16 %v4319_v62  ;;  %v3118_v55 = vunpack.i.h.bf16 %v4342_v14 }
 0x119   : > { %5437 = vst [vmem:[#allocation22_spill] sm:$0xff] %v4475_v61  ;;  %v3117_v18 = vunpack.i.l.bf16 %v4342_v14  ;;  %v954_v19 = vmul.f32 %v3123_v60, %v4495_v39  ;;  %v953_v17 = vmul.f32 %v3122_v45, %v4495_v39  ;;  %v4538_v51 = vsel %vm692_vm0, %v843_v2, %v844_v4 }
 0x11a   : > { %3341 = vperm.xlu1 %3334, %v5426_v23   ;;  %v976_v35 = vrot.slane %v944_v20, 1  ;;  %v975_v63 = vrot.slane %v943_v7, 1  ;;  %v851_v62 = vsel %vm692_vm0, %v849_v25, %v850_v5  ;;  %v3128_v0 = vunpack.i.h.bf16 %v4377_v16 }
 0x11b   : > { %v3127_v47 = vunpack.i.l.bf16 %v4377_v16  ;;  %v982_v14 = vrot.slane %v948_v3, 1  ;;  %v981_v38 = vrot.slane %v947_v27, 1  ;;  %v816_v60 = vmul.f32 %v3479_v15, %v4387_v28 }
 0x11c   : > { %v4505_v11 = vpop.permute.xlu0 %3517  ;;  %v4515_v8 = vpop.permute.xlu1 %3162  ;;  %v3485_v45 = vunpack.i.h.bf16 %v4348_v33  ;;  %v950_v2 = vmul.f32 %v3118_v55, %v4495_v39  ;;  %v949_v20 = vmul.f32 %v3117_v18, %v4495_v39  ;;  %v991_v7 = vrot.slane %v954_v19, 1  ;;  %v4568_v18 = vld [vmem:[%s5308_s1 + $0xa] ss:$0 sm:$0xff] }
 0x11d   : > { %5440 = vst [vmem:[#allocation31_spill] sm:$0xff] %v4505_v11  ;;  %v990_v5 = vrot.slane %v953_v17, 1  ;;  %v4554_v25 = vsel %vm692_vm0, %v975_v63, %v976_v35  ;;  %v3144_v16 = vunpack.i.h.bf16 %v4432_v59  ;;  %v957_v27 = vmul.f32 %v3127_v47, %v4495_v39 }
 0x11e   : > { %3345 = vset.pattern.permute.xlu1 %v5409_v52  ;;  %v4563_v15 = vsel %vm692_vm0, %v981_v38, %v982_v14  ;;  %v855_v55 = vrot.slane %v816_v60, 1  ;;  %v3484_v19 = vunpack.i.l.bf16 %v4348_v33  ;;  %v3160_v17 = vunpack.i.h.bf16 %v4486_v32 }
 0x11f   : > { %3347 = vperm.xlu1 %3345, %v5423_v13   ;;  %v817_v13 = vmul.f32 %v3480_v37, %v4387_v28  ;;  %v871_v28 = vadd.f32 %v851_v62, %v4419_v10  ;;  %v985_v35 = vrot.slane %v950_v2, 1  ;;  %v984_v63 = vrot.slane %v949_v20, 1 }
 0x120   : > { %v4531_v50 = vpop.permute.xlu0 %3522  ;;  %v4576_v62 = vmul.f32 %v3485_v45, %v4568_v18  ;;  %v3489_v47 = vunpack.i.l.bf16 %v4365_v57  ;;  %v1082_v14 = vmul.f32 %v3144_v16, %v4184_v26  ;;  %v996_v60 = vrot.slane %v957_v27, 1 }
 0x121   : > { %5441 = vst [vmem:[#allocation20_spill] sm:$0xff] %v4531_v50  ;;  %v4540_v48 = vpop.permute.xlu1 %3168  ;;  %v856_v3 = vrot.slane %v817_v13, 1  ;;  %v992_v13 = vsel %vm692_vm0, %v990_v5, %v991_v7  ;;  %v3494_v2 = vunpack.i.l.bf16 %v4389_v9  ;;  %v3139_v7 = vunpack.i.h.bf16 %v4411_v31 }
 0x122   : > { %v1012_v5 = vadd.f32 %v992_v13, %v871_v28  ;;  %v4599_v27 = vmul.f32 %v3484_v19, %v4568_v18  ;;  %v3500_v28 = vunpack.i.h.bf16 %v4413_v24  ;;  %v3143_v11 = vunpack.i.l.bf16 %v4432_v59 }
 0x123   : > { %3352 = vperm.xlu1 %3345, %v5426_v23   ;;  %v958_v23 = vmul.f32 %v3128_v0, %v4495_v39  ;;  %v3490_v0 = vunpack.i.h.bf16 %v4365_v57  ;;  %v4588_v45 = vsel %vm692_vm0, %v855_v55, %v856_v3  ;;  %v1135_v57 = vmul.f32 %v3160_v17, %v4568_v18  ;;  %v4611_v55 = vld [vmem:[%s5308_s1 + $0xb] ss:$0 sm:$0xff]  ;;  %v5445_v17 = vld [vmem:[#allocation8_spill] sm:$0xff] }
 0x124   : > { %v4549_v4 = vpop.permute.xlu0 %3532  ;;  %v3138_v3 = vunpack.i.l.bf16 %v4411_v31  ;;  %v1090_v31 = vadd.f32 %v1082_v14, %v1012_v5  ;;  %v4637_v50 = vmul.f32 %v3139_v7, %v4184_v26  ;;  %v3165_v59 = vunpack.i.h.bf16 %v4515_v8 }
 0x125   : > { %5442 = vst [vmem:[#allocation7_spill] sm:$0xff] %v4549_v4  ;;  %v4557_v37 = vpop.permute.xlu1 %3173  ;;  %v997_v38 = vrot.slane %v958_v23, 1  ;;  %v4596_v23 = vsel %vm692_vm0, %v984_v63, %v985_v35  ;;  %v4623_v63 = vld [vmem:[%s5308_s1 + $0x10] ss:$0 sm:$0xff]  ;;  %v3170_v21 = vunpack.i.l.bf16 %v4540_v48 }
 0x126   : > { %v3176_v33 = vunpack.i.h.bf16 %v4557_v37  ;;  %5447 = vst [vmem:[#allocation28_spill] sm:$0xff] %v4623_v63  ;;  %v1143_v14 = vadd.f32 %v1135_v57, %v1090_v31 }
 0x127   : > { %3357 = vperm.xlu1 %3345, %v5432_v54   ;;  %v3495_v54 = vunpack.i.h.bf16 %v4389_v9  ;;  %v4604_v9 = vld [vmem:[%s5308_s1 + $0xd] ss:$0 sm:$0xff] }
 0x128   : > { %v4573_v10 = vpop.permute.xlu0 %3548  ;;  %v4615_v35 = vmul.f32 %v3490_v0, %v4604_v9  ;;  %v4618_v19 = vmul.f32 %v3489_v47, %v4604_v9  ;;  %v1188_v13 = vmul.f32 %v3176_v33, %v4611_v55  ;;  %v4633_v0 = vmul.f32 %v3494_v2, %v4604_v9 }
 0x129   : > { %5443 = vst [vmem:[#allocation24_spill] sm:$0xff] %v4573_v10  ;;  %v4630_v10 = vmul.f32 %v3495_v54, %v4604_v9  ;;  %v3499_v47 = vunpack.i.l.bf16 %v4413_v24  ;;  %v3155_v54 = vunpack.i.h.bf16 %v4456_v46  ;;  %v3154_v24 = vunpack.i.l.bf16 %v4456_v46 }
 0x12a   : > { %v4585_v20 = vpop.permute.xlu1 %3179  ;;  %5446 = vst [vmem:[#allocation30_spill] sm:$0xff] %v4618_v19  ;;  %5449 = vst [vmem:[#allocation54_spill] sm:$0xff] %v4633_v0  ;;  %v3159_v2 = vunpack.i.l.bf16 %v4486_v32  ;;  %v1196_v7 = vadd.f32 %v1188_v13, %v1143_v14  ;;  %v4661_v46 = vmul.f32 %v3143_v11, %v4184_v26  ;;  %v3171_v32 = vunpack.i.h.bf16 %v4540_v48  ;;  %v5460_v0 = vld [vmem:[#allocation37_spill] sm:$0xff] }
 0x12b   : > { %3366 = vset.pattern.permute.xlu1 %v5420_v12  ;;  %5448 = vst [vmem:[#allocation8_spill] sm:$0xff] %v4630_v10  ;;  %v4655_v31 = vmul.f32 %v3499_v47, %v4623_v63  ;;  %v4666_v14 = vmul.f32 %v3155_v54, %v4568_v18  ;;  %v4669_v47 = vmul.f32 %v3154_v24, %v4568_v18 }
 0x12c   : > { %v4593_v16 = vpop.permute.xlu0 %3558  ;;  %3368 = vperm.xlu1 %3366, %v5445_v17   ;;  %v4678_v11 = vmul.f32 %v3165_v59, %v4568_v18 }
 0x12d   : > { %5444 = vst [vmem:[#allocation23_spill] sm:$0xff] %v4593_v16  ;;  %v4627_v16 = vsel %vm692_vm0, %v996_v60, %v997_v38  ;;  %v4643_v38 = vmul.f32 %v3138_v3, %v4184_v26  ;;  %v4646_v60 = vmul.f32 %v3500_v28, %v4623_v63  ;;  %5452 = vst [vmem:[#allocation57_spill] sm:$0xff] %v4655_v31  ;;  %v3182_v28 = vunpack.i.h.bf16 %v4585_v20  ;;  %v5454_v31 = vld [vmem:[#allocation29_spill] sm:$0xff]  ;;  %v5456_v63 = vld [vmem:[#allocation27_spill] sm:$0xff] }
 0x12e   : > { %v3190_v4 = vpop.permute.xlu1 %3189  ;;  %v4675_v26 = vmul.f32 %v3159_v2, %v4568_v18  ;;  %5453 = vst [vmem:[#allocation58_spill] sm:$0xff] %v4678_v11  ;;  %v4686_v3 = vmul.f32 %v3171_v32, %v4611_v55  ;;  %v4689_v2 = vmul.f32 %v3170_v21, %v4611_v55  ;;  %v5469_v11 = vld [vmem:[#allocation19_spill] sm:$0xff] }
 0x12f   : > { %v3192_v5 = vunpack.i.h.bf16 %v3190_v4  ;;  %5451 = vst [vmem:[#allocation56_spill] sm:$0xff] %v4646_v60  ;;  %v3191_v24 = vunpack.i.l.bf16 %v3190_v4 }
 0x130   : > { %v4640_v33 = vpop.permute.xlu0 %3568  ;;  %3373 = vperm.xlu1 %3366, %v4205_v40  }
 0x131   : > { %5450 = vst [vmem:[#allocation55_spill] sm:$0xff] %v4640_v33  ;;  %v1266_v57 = vmul.f32 %v3192_v5, %v4225_v22  ;;  %v3164_v33 = vunpack.i.l.bf16 %v4515_v8  ;;  %v3175_v5 = vunpack.i.l.bf16 %v4557_v37  ;;  %v3181_v37 = vunpack.i.l.bf16 %v4585_v20 }
 0x132   : > { %v3195_v61 = vpop.permute.xlu1 %3194 }
 0x133   : > { %v1274_v13 = vadd.f32 %v1266_v57, %v1196_v7  ;;  %v4682_v54 = vmul.f32 %v3164_v33, %v4568_v18  ;;  %v3197_v57 = vunpack.i.h.bf16 %v3195_v61  ;;  %v4697_v18 = vmul.f32 %v3182_v28, %v4225_v22 }
 0x134   : > { %3382 = vset.pattern.permute.xlu1 %v5436_v42  ;;  %v3196_v20 = vunpack.i.l.bf16 %v3195_v61 }
 0x135   : > { %v3575_v8 = vpop.permute.xlu0 %3574  ;;  %3384 = vperm.xlu1 %3382, %v3844_v44   ;;  %v4694_v44 = vmul.f32 %v3175_v5, %v4611_v55  ;;  %v4706_v5 = vmul.f32 %v3191_v24, %v4225_v22  ;;  %v4709_v28 = vmul.f32 %v3197_v57, %v4225_v22 }
 0x136   : > { %v3577_v48 = vunpack.i.h.bf16 %v3575_v8  ;;  %v3576_v7 = vunpack.i.l.bf16 %v3575_v8  ;;  %v4716_v19 = vmul.f32 %v3196_v20, %v4225_v22 }
 0x137   : > { %v3201_v8 = vpop.permute.xlu1 %3200  ;;  %5457 = vst [vmem:[#allocation29_spill] sm:$0xff] %v4706_v5  ;;  %5458 = vst [vmem:[#allocation25_spill] sm:$0xff] %v4709_v28  ;;  %v5465_v28 = vld [vmem:[#allocation47_spill] sm:$0xff] }
 0x138   : > { %v346_v59 = vmul.f32 %v3577_v48, %v5454_v31  ;;  %v345_v60 = vmul.f32 %v3576_v7, %v5454_v31  ;;  %v3203_v4 = vunpack.i.h.bf16 %v3201_v8  ;;  %v4703_v31 = vmul.f32 %v3181_v37, %v4225_v22  ;;  %v5459_v48 = vld [vmem:[#allocation38_spill] sm:$0xff]  ;;  %5462 = vst [vmem:[#allocation27_spill] sm:$0xff] %v4716_v19 }
 0x139   : > { %v3580_v33 = vpop.permute.xlu0 %3579  ;;  %3389 = vperm.xlu1 %3382, %v4205_v40   ;;  %v3202_v61 = vunpack.i.l.bf16 %v3201_v8 }
 0x13a   : > { %v353_v32 = vadd.f32 %v345_v60, %v5455_v1  ;;  %v354_v42 = vadd.f32 %v346_v59, %v5456_v63  ;;  %v3582_v21 = vunpack.i.h.bf16 %v3580_v33  ;;  %v3581_v10 = vunpack.i.l.bf16 %v3580_v33  ;;  %v5461_v60 = vld [vmem:[#allocation44_spill] sm:$0xff] }
 0x13b   : > { %v3206_v33 = vpop.permute.xlu1 %3205  ;;  %v4719_v37 = vmul.f32 %v3203_v4, %v4604_v9 }
 0x13c   : > { %v431_v7 = vadd.f32 %v5459_v48, %v353_v32  ;;  %v432_v1 = vadd.f32 %v5460_v0, %v354_v42  ;;  %v528_v63 = vmul.f32 %v3582_v21, %v5461_v60  ;;  %v527_v59 = vmul.f32 %v3581_v10, %v5461_v60  ;;  %v5463_v21 = vld [vmem:[#allocation2_spill] sm:$0xff]  ;;  %v5464_v48 = vld [vmem:[#allocation49_spill] sm:$0xff] }
 0x13d   : > { %v3208_v24 = vunpack.i.h.bf16 %v3206_v33  ;;  %v3207_v5 = vunpack.i.l.bf16 %v3206_v33  ;;  %v3585_v57 = vpop.permute.xlu0 %3584  ;;  %3394 = vperm.xlu1 %3382, %v5463_v21   ;;  %v4727_v10 = vmul.f32 %v3202_v61, %v4604_v9  ;;  %v5468_v21 = vld [vmem:[#allocation52_spill] sm:$0xff] }
 0x13e   : > { %v484_v8 = vadd.f32 %v4463_v36, %v431_v7  ;;  %v485_v32 = vadd.f32 %v4460_v49, %v432_v1  ;;  %v535_v42 = vadd.f32 %v527_v59, %v4478_v6  ;;  %v536_v0 = vadd.f32 %v528_v63, %v4481_v53  ;;  %v5466_v36 = vld [vmem:[#allocation51_spill] sm:$0xff]  ;;  %v5467_v49 = vld [vmem:[#allocation32_spill] sm:$0xff] }
 0x13f   : > { %v1319_v22 = vmul.f32 %v3208_v24, %v4604_v9  ;;  %v3587_v20 = vunpack.i.h.bf16 %v3585_v57  ;;  %v3586_v4 = vunpack.i.l.bf16 %v3585_v57  ;;  %v4735_v6 = vmul.f32 %v3207_v5, %v4604_v9  ;;  %v4748_v9 = vld [vmem:[%s5308_s1 + $0xe] ss:$0 sm:$0xff] }
 0x140   : > { %v537_v33 = vadd.f32 %v5464_v48, %v484_v8  ;;  %v538_v19 = vadd.f32 %v5465_v28, %v485_v32  ;;  %v725_v7 = vadd.f32 %v5466_v36, %v535_v42  ;;  %v726_v1 = vadd.f32 %v5467_v49, %v536_v0  ;;  %v3212_v59 = vpop.permute.xlu1 %3211  ;;  %v5470_v0 = vld [vmem:[#allocation36_spill] sm:$0xff] }
 0x141   : > { %v1327_v53 = vadd.f32 %v1319_v22, %v1274_v13  ;;  %v534_v63 = vmul.f32 %v3587_v20, %v5461_v60  ;;  %v533_v61 = vmul.f32 %v3586_v4, %v5461_v60  ;;  %v3590_v24 = vpop.permute.xlu0 %3589  ;;  %3398 = vset.pattern.permute.xlu1 %v5409_v52  ;;  %v3214_v60 = vunpack.i.h.bf16 %v3212_v59  ;;  %v5471_v20 = vld [vmem:[#allocation6_spill] sm:$0xff] }
 0x142   : > { %v727_v57 = vadd.f32 %v5468_v21, %v537_v33  ;;  %v728_v8 = vadd.f32 %v5469_v11, %v538_v19  ;;  %v4742_v28 = vadd.f32 %v4511_v43, %v725_v7  ;;  %v867_v32 = vadd.f32 %v4445_v34, %v726_v1  ;;  %3400 = vperm.xlu1 %3398, %v5445_v17  }
 0x143   : > { %v541_v13 = vadd.f32 %v533_v61, %v4508_v30  ;;  %v542_v5 = vadd.f32 %v534_v63, %v4520_v58  ;;  %v3213_v42 = vunpack.i.l.bf16 %v3212_v59  ;;  %v3592_v34 = vunpack.i.h.bf16 %v3590_v24 }
 0x144   : > { %v868_v43 = vadd.f32 %v4473_v56, %v727_v57  ;;  %v869_v19 = vadd.f32 %v4538_v51, %v728_v8  ;;  %v3591_v11 = vunpack.i.l.bf16 %v3590_v24  ;;  %v4759_v48 = vmul.f32 %v3214_v60, %v4748_v9  ;;  %v3217_v58 = vpop.permute.xlu1 %3216 }
 0x145   : > { %v731_v22 = vadd.f32 %v5470_v0, %v541_v13  ;;  %v732_v4 = vadd.f32 %v5471_v20, %v542_v5  ;;  %v4762_v30 = vmul.f32 %v3213_v42, %v4748_v9  ;;  %v3595_v33 = vpop.permute.xlu0 %3594  ;;  %v946_v51 = vmul.f32 %v3592_v34, %v4495_v39  ;;  %v5473_v0 = vld [vmem:[#allocation50_spill] sm:$0xff] }
 0x146   : > { %v1009_v17 = vadd.f32 %v4563_v15, %v868_v43  ;;  %v1010_v56 = vadd.f32 %v4596_v23, %v869_v19  ;;  %v945_v36 = vmul.f32 %v3591_v11, %v4495_v39  ;;  %v3219_v1 = vunpack.i.h.bf16 %v3217_v58  ;;  %3405 = vperm.xlu1 %3398, %v4205_v40  }
 0x147   : > { %v4769_v7 = vadd.f32 %v4523_v41, %v731_v22  ;;  %v4772_v49 = vadd.f32 %v4588_v45, %v732_v4  ;;  %v3218_v63 = vunpack.i.l.bf16 %v3217_v58  ;;  %v979_v59 = vrot.slane %v946_v51, 1  ;;  %v5474_v58 = vld [vmem:[#allocation42_spill] sm:$0xff] }
 0x148   : > { %v1087_v61 = vadd.f32 %v4643_v38, %v1009_v17  ;;  %v1088_v15 = vadd.f32 %v4637_v50, %v1010_v56  ;;  %v978_v23 = vrot.slane %v945_v36, 1  ;;  %v1372_v24 = vmul.f32 %v3219_v1, %v4748_v9  ;;  %v3222_v8 = vpop.permute.xlu1 %3221 }
 0x149   : > { %v4779_v21 = vmul.f32 %v3218_v63, %v4748_v9  ;;  %v3597_v41 = vunpack.i.h.bf16 %v3595_v33  ;;  %v3596_v57 = vunpack.i.l.bf16 %v3595_v33  ;;  %v3600_v45 = vpop.permute.xlu0 %3599  ;;  %v3224_v38 = vunpack.i.h.bf16 %v3222_v8 }
 0x14a   : > { %v1140_v13 = vadd.f32 %v4599_v27, %v1087_v61  ;;  %v1141_v5 = vadd.f32 %v4576_v62, %v1088_v15  ;;  %v980_v40 = vsel %vm692_vm0, %v978_v23, %v979_v59  ;;  %v1380_v50 = vadd.f32 %v1372_v24, %v1327_v53  ;;  %3409 = vset.pattern.permute.xlu1 %v5420_v12  ;;  %v5472_v62 = vld [vmem:[#allocation9_spill] sm:$0xff] }
 0x14b   : > { %v1008_v60 = vadd.f32 %v980_v40, %v867_v32  ;;  %v952_v42 = vmul.f32 %v3597_v41, %v4495_v39  ;;  %v951_v43 = vmul.f32 %v3596_v57, %v4495_v39  ;;  %v4790_v11 = vmul.f32 %v3224_v38, %v4748_v9  ;;  %3411 = vperm.xlu1 %3409, %v5472_v62   ;;  %v5475_v12 = vld [vmem:[#allocation41_spill] sm:$0xff] }
 0x14c   : > { %v1193_v19 = vadd.f32 %v4689_v2, %v1140_v13  ;;  %v1194_v34 = vadd.f32 %v4686_v3, %v1141_v5  ;;  %v3223_v27 = vunpack.i.l.bf16 %v3222_v8  ;;  %v4794_v22 = vadd.f32 %v5473_v0, %v1380_v50  ;;  %v5476_v24 = vld [vmem:[#allocation53_spill] sm:$0xff]  ;;  %v5478_v50 = vld [vmem:[#allocation34_spill] sm:$0xff] }
 0x14d   : > { %v988_v53 = vrot.slane %v952_v42, 1  ;;  %v987_v32 = vrot.slane %v951_v43, 1  ;;  %v3602_v20 = vunpack.i.h.bf16 %v3600_v45  ;;  %v3605_v4 = vpop.permute.xlu0 %3604  ;;  %v3601_v3 = vunpack.i.l.bf16 %v3600_v45  ;;  %v3233_v56 = vpop.permute.xlu1 %3232  ;;  %v5477_v45 = vld [vmem:[#allocation33_spill] sm:$0xff]  ;;  %v5480_v0 = vld [vmem:[#allocation10_spill] sm:$0xff] }
 0x14e   : > { %v1271_v33 = vadd.f32 %v5474_v58, %v1193_v19  ;;  %v1272_v17 = vadd.f32 %v5475_v12, %v1194_v34  ;;  %v4799_v2 = vmul.f32 %v3223_v27, %v4748_v9  ;;  %v3607_v1 = vunpack.i.h.bf16 %v3605_v4 }
 0x14f   : > { %v989_v51 = vsel %vm692_vm0, %v987_v32, %v988_v53  ;;  %v956_v36 = vmul.f32 %v3602_v20, %v4495_v39  ;;  %v3606_v63 = vunpack.i.l.bf16 %v3605_v4  ;;  %v955_v23 = vmul.f32 %v3601_v3, %v4495_v39  ;;  %3421 = vperm.xlu1 %3409, %v5476_v24   ;;  %v5481_v3 = vld [vmem:[#allocation40_spill] sm:$0xff] }
 0x150   : > { %v4804_v61 = vadd.f32 %v4727_v10, %v1271_v33  ;;  %v4807_v15 = vadd.f32 %v4719_v37, %v1272_v17  ;;  %v1011_v59 = vadd.f32 %v989_v51, %v4501_v29  ;;  %v1184_v57 = vmul.f32 %v3607_v1, %v4611_v55 }
 0x151   : > { %v994_v41 = vrot.slane %v956_v36, 1  ;;  %v1007_v8 = vadd.f32 %v4554_v25, %v4742_v28  ;;  %v1086_v13 = vadd.f32 %v5477_v45, %v1008_v60  ;;  %v3610_v5 = vpop.permute.xlu0 %3609  ;;  %v993_v40 = vrot.slane %v955_v23, 1  ;;  %v3238_v29 = vpop.permute.xlu1 %3237  ;;  %v5479_v28 = vld [vmem:[#allocation35_spill] sm:$0xff] }
 0x152   : > { %v1089_v10 = vadd.f32 %v4661_v46, %v1011_v59  ;;  %v1183_v37 = vmul.f32 %v3606_v63, %v4611_v55  ;;  %v3235_v38 = vunpack.i.h.bf16 %v3233_v56  ;;  %v3234_v43 = vunpack.i.l.bf16 %v3233_v56  ;;  %v5482_v36 = vld [vmem:[#allocation39_spill] sm:$0xff] }
 0x153   : > { %v1085_v39 = vadd.f32 %v5478_v50, %v1007_v8  ;;  %v1139_v42 = vadd.f32 %v4666_v14, %v1086_v13  ;;  %v3612_v19 = vunpack.i.h.bf16 %v3610_v5  ;;  %v995_v25 = vsel %vm692_vm0, %v993_v40, %v994_v41  ;;  %3426 = vperm.xlu1 %3409, %v5480_v0   ;;  %v4829_v14 = vld [vmem:[%s5308_s1 + $0xf] ss:$0 sm:$0xff] }
 0x154   : > { %v1142_v34 = vadd.f32 %v4675_v26, %v1089_v10  ;;  %v1503_v60 = vmul.f32 %v3235_v38, %v5479_v28  ;;  %v3611_v27 = vunpack.i.l.bf16 %v3610_v5  ;;  %v1013_v46 = vadd.f32 %v995_v25, %v4769_v7  ;;  %v5483_v23 = vld [vmem:[#allocation11_spill] sm:$0xff]  ;;  %v5485_v10 = vld [vmem:[#allocation30_spill] sm:$0xff]  ;;  %v5488_v28 = vld [vmem:[#allocation25_spill] sm:$0xff] }
 0x155   : > { %v1138_v53 = vadd.f32 %v4669_v47, %v1085_v39  ;;  %v1192_v32 = vadd.f32 %v1184_v57, %v1139_v42  ;;  %v1502_v20 = vmul.f32 %v4829_v14, %v3234_v43  ;;  %v1190_v58 = vmul.f32 %v3612_v19, %v4611_v55  ;;  %v3248_v12 = vpop.permute.xlu1 %3247  ;;  %v3615_v51 = vpop.permute.xlu0 %3614  ;;  %v5484_v57 = vld [vmem:[#allocation58_spill] sm:$0xff]  ;;  %v5487_v19 = vld [vmem:[#allocation27_spill] sm:$0xff] }
 0x156   : > { %v1195_v26 = vadd.f32 %v4694_v44, %v1142_v34  ;;  %v1536_v4 = vrot.slane %v1503_v60, 1  ;;  %v1014_v33 = vadd.f32 %v4627_v16, %v4772_v49  ;;  %v1091_v56 = vadd.f32 %v5481_v3, %v1013_v46 }
 0x157   : > { %v1191_v7 = vadd.f32 %v1183_v37, %v1138_v53  ;;  %v1270_v47 = vadd.f32 %v4697_v18, %v1192_v32  ;;  %v1535_v17 = vrot.slane %v1502_v20, 1  ;;  %v1189_v63 = vmul.f32 %v3611_v27, %v4611_v55  ;;  %3436 = vperm.xlu1 %3409, %v5483_v23   ;;  %v5489_v53 = vld [vmem:[#allocation54_spill] sm:$0xff] }
 0x158   : > { %v1092_v1 = vadd.f32 %v5482_v36, %v1014_v33  ;;  %v3240_v59 = vunpack.i.h.bf16 %v3238_v29  ;;  %v3239_v44 = vunpack.i.l.bf16 %v3238_v29  ;;  %v1144_v18 = vadd.f32 %v4682_v54, %v1091_v56  ;;  %v5486_v54 = vld [vmem:[#allocation12_spill] sm:$0xff] }
 0x159   : > { %v1269_v41 = vadd.f32 %v4703_v31, %v1191_v7  ;;  %v1323_v16 = vadd.f32 %v4615_v35, %v1270_v47  ;;  %v1537_v49 = vsel %vm692_vm0, %v1535_v17, %v1536_v4  ;;  %v3617_v5 = vunpack.i.h.bf16 %v3615_v51  ;;  %v3258_v55 = vpop.permute.xlu1 %3257  ;;  %v5491_v7 = vld [vmem:[#allocation8_spill] sm:$0xff] }
 0x15a   : > { %v1145_v8 = vadd.f32 %v5484_v57, %v1092_v1  ;;  %v1505_v45 = vmul.f32 %v4829_v14, %v3240_v59  ;;  %v1504_v13 = vmul.f32 %v4829_v14, %v3239_v44  ;;  %v1197_v38 = vadd.f32 %v1189_v63, %v1144_v18  ;;  %v5492_v17 = vld [vmem:[#allocation48_spill] sm:$0xff]  ;;  %v5494_v1 = vld [vmem:[#allocation3_spill] sm:$0xff] }
 0x15b   : > { %v1322_v40 = vadd.f32 %v5485_v10, %v1269_v41  ;;  %v1376_v37 = vadd.f32 %v4759_v48, %v1323_v16  ;;  %v3616_v31 = vunpack.i.l.bf16 %v3615_v51  ;;  %v1370_v39 = vmul.f32 %v3617_v5, %v4748_v9  ;;  %3527 = vperm.xlu1 %3409, %v5486_v54  }
 0x15c   : > { %v1198_v29 = vadd.f32 %v1190_v58, %v1145_v8  ;;  %v1539_v35 = vrot.slane %v1505_v45, 1  ;;  %v1538_v50 = vrot.slane %v1504_v13, 1  ;;  %v1275_v34 = vadd.f32 %v5487_v19, %v1197_v38  ;;  %v5495_v8 = vld [vmem:[#allocation28_spill] sm:$0xff]  ;;  %v5496_v45 = vld [vmem:[#allocation18_spill] sm:$0xff] }
 0x15d   : > { %v4853_v42 = vadd.f32 %v4762_v30, %v1322_v40  ;;  %v4855_v43 = vadd.f32 %v1537_v49, %v1376_v37  ;;  %v1369_v25 = vmul.f32 %v3616_v31, %v4748_v9  ;;  %v1378_v27 = vadd.f32 %v1370_v39, %v4807_v15  ;;  %v5490_v30 = vld [vmem:[#allocation29_spill] sm:$0xff] }
 0x15e   : > { %v1276_v48 = vadd.f32 %v5488_v28, %v1198_v29  ;;  %v1540_v60 = vsel %vm692_vm0, %v1538_v50, %v1539_v35  ;;  %v3250_v46 = vunpack.i.h.bf16 %v3248_v12  ;;  %v1328_v32 = vadd.f32 %v5489_v53, %v1275_v34  ;;  %v3269_v33 = vpop.permute.xlu1 %3268  ;;  %v5500_v31 = vld [vmem:[#allocation57_spill] sm:$0xff] }
 0x15f   : > { %v1377_v20 = vadd.f32 %v1369_v25, %v4804_v61  ;;  %v3249_v4 = vunpack.i.l.bf16 %v3248_v12  ;;  %v1273_v58 = vadd.f32 %v5490_v30, %v1195_v26  ;;  %v4867_v3 = vadd.f32 %v5492_v17, %v1378_v27  ;;  %v5501_v35 = vld [vmem:[#allocation17_spill] sm:$0xff] }
 0x160   : > { %v1329_v47 = vadd.f32 %v5491_v7, %v1276_v48  ;;  %v1509_v9 = vmul.f32 %v4829_v14, %v3250_v46  ;;  %v3260_v56 = vunpack.i.h.bf16 %v3258_v55  ;;  %v5493_v51 = vmov 1   ;;  %v5502_v7 = vld [vmem:[#allocation4_spill] sm:$0xff] }
 0x161   : > { %3536 = vset.pattern.permute.xlu1 %v5493_v51  ;;  %v4871_v15 = vadd.f32 %v1540_v60, %v1377_v20  ;;  %v1326_v36 = vadd.f32 %v4735_v6, %v1273_v58  ;;  %v1508_v61 = vmul.f32 %v4829_v14, %v3249_v4  ;;  %v3259_v12 = vunpack.i.l.bf16 %v3258_v55  ;;  %v4883_v6 = vpop.permute.xlu0 %3619 }
 0x162   : > { %3538 = vperm.xlu1 %3536, %v5494_v1   ;;  %v4877_v26 = vadd.f32 %v4790_v11, %v1329_v47  ;;  %v1545_v63 = vrot.slane %v1509_v9, 1  ;;  %v1513_v59 = vmul.f32 %v4829_v14, %v3260_v56  ;;  %v1381_v44 = vadd.f32 %v4799_v2, %v1328_v32  ;;  %v3274_v57 = vpop.permute.xlu1 %3273  ;;  %v5499_v2 = vld [vmem:[#allocation56_spill] sm:$0xff] }
 0x163   : > { %v1379_v41 = vadd.f32 %v4779_v21, %v1326_v36  ;;  %v1544_v16 = vrot.slane %v1508_v61, 1  ;;  %v1512_v49 = vmul.f32 %v4829_v14, %v3259_v12  ;;  %v3271_v18 = vunpack.i.h.bf16 %v3269_v33  ;;  %v4912_v36 = vld [vmem:[%s5308_s1 + $0x11] ss:$0 sm:$0xff] }
 0x164   : > { %v5497_v13 = vunpack.i.h.bf16 %v5496_v45  ;;  %v5498_v11 = vunpack.i.l.bf16 %v5496_v45  ;;  %v1551_v10 = vrot.slane %v1513_v59, 1  ;;  %v3270_v40 = vunpack.i.l.bf16 %v3269_v33 }
 0x165   : > { %v1677_v37 = vrot.slane %v5499_v2, 1  ;;  %v1546_v21 = vsel %vm692_vm0, %v1544_v16, %v1545_v63  ;;  %v1550_v38 = vrot.slane %v1512_v49, 1  ;;  %v3276_v14 = vunpack.i.h.bf16 %v3274_v57  ;;  %v3625_v27 = vpop.permute.xlu0 %3624 }
 0x166   : > { %v1650_v5 = vmul.f32 %v5497_v13, %v5495_v8  ;;  %v1649_v55 = vmul.f32 %v5498_v11, %v5495_v8  ;;  %3543 = vperm.xlu1 %3536, %v5476_v24   ;;  %v1676_v29 = vrot.slane %v5500_v31, 1  ;;  %v3510_v50 = vunpack.i.h.bf16 %v5501_v35  ;;  %v3279_v60 = vpop.permute.xlu1 %3278  ;;  %v5503_v13 = vld [vmem:[#allocation5_spill] sm:$0xff] }
 0x167   : > { %v3509_v39 = vunpack.i.l.bf16 %v5501_v35  ;;  %v4897_v19 = vadd.f32 %v1546_v21, %v1379_v41  ;;  %v1552_v34 = vsel %vm692_vm0, %v1550_v38, %v1551_v10  ;;  %v1642_v25 = vmul.f32 %v3271_v18, %v5495_v8 }
 0x168   : > { %v1646_v28 = vmul.f32 %v3276_v14, %v5495_v8  ;;  %v3275_v48 = vunpack.i.l.bf16 %v3274_v57  ;;  %v1686_v46 = vrot.slane %v1650_v5, 1  ;;  %v1685_v53 = vrot.slane %v1649_v55, 1 }
 0x169   : > { %v4902_v32 = vadd.f32 %v1552_v34, %v1381_v44  ;;  %v1641_v20 = vmul.f32 %v3270_v40, %v5495_v8  ;;  %v3281_v58 = vunpack.i.h.bf16 %v3279_v60  ;;  %v3280_v33 = vunpack.i.l.bf16 %v3279_v60 }
 0x16a   : > { %v1680_v4 = vrot.slane %v1646_v28, 1  ;;  %v1645_v30 = vmul.f32 %v3275_v48, %v5495_v8  ;;  %3553 = vperm.xlu1 %3536, %v5502_v7   ;;  %v1654_v47 = vmul.f32 %v3510_v50, %v5495_v8  ;;  %v1653_v17 = vmul.f32 %v3509_v39, %v5495_v8  ;;  %v3284_v63 = vpop.permute.xlu1 %3283  ;;  %v5504_v28 = vld [vmem:[#allocation43_spill] sm:$0xff] }
 0x16b   : > { %v3627_v9 = vunpack.i.h.bf16 %v3625_v27  ;;  %v3626_v56 = vunpack.i.l.bf16 %v3625_v27  ;;  %v1674_v51 = vrot.slane %v1642_v25, 1  ;;  %v1648_v12 = vmul.f32 %v3281_v58, %v5495_v8  ;;  %v5505_v27 = vld [vmem:[#allocation45_spill] sm:$0xff] }
 0x16c   : > { %v1679_v61 = vrot.slane %v1645_v30, 1  ;;  %v1647_v1 = vmul.f32 %v3280_v33, %v5495_v8  ;;  %v1673_v59 = vrot.slane %v1641_v20, 1  ;;  %v3286_v41 = vunpack.i.h.bf16 %v3284_v63 }
 0x16d   : > { %v1789_v44 = vmul.f32 %v3627_v9, %v4912_v36  ;;  %v3285_v16 = vunpack.i.l.bf16 %v3284_v63  ;;  %v1683_v18 = vrot.slane %v1648_v12, 1  ;;  %v1788_v45 = vmul.f32 %v3626_v56, %v4912_v36 }
 0x16e   : > { %v1681_v49 = vsel %vm692_vm0, %v1679_v61, %v1680_v4  ;;  %v1682_v57 = vrot.slane %v1647_v1, 1  ;;  %3563 = vperm.xlu1 %3536, %v5503_v13   ;;  %v1678_v5 = vsel %vm692_vm0, %v1676_v29, %v1677_v37  ;;  %v1687_v11 = vsel %vm692_vm0, %v1685_v53, %v1686_v46  ;;  %v3289_v14 = vpop.permute.xlu1 %3288  ;;  %v5509_v4 = vld [vmem:[#allocation13_spill] sm:$0xff] }
 0x16f   : > { %v4923_v55 = vadd.f32 %v1681_v49, %v4871_v15  ;;  %v1652_v10 = vmul.f32 %v3286_v41, %v5495_v8  ;;  %v1692_v40 = vrot.slane %v1654_v47, 1  ;;  %v1691_v2 = vrot.slane %v1653_v17, 1 }
 0x170   : > { %v1684_v21 = vsel %vm692_vm0, %v1682_v57, %v1683_v18  ;;  %v1651_v38 = vmul.f32 %v3285_v16, %v5495_v8  ;;  %v1675_v31 = vsel %vm692_vm0, %v1673_v59, %v1674_v51  ;;  %v3291_v37 = vunpack.i.h.bf16 %v3289_v14 }
 0x171   : > { %v1708_v35 = vadd.f32 %v1684_v21, %v4867_v3  ;;  %v1689_v50 = vrot.slane %v1652_v10, 1  ;;  %v1824_v29 = vrot.slane %v1789_v44, 1  ;;  %v1823_v39 = vrot.slane %v1788_v45, 1  ;;  %v5507_v3 = vld [vmem:[#allocation46_spill] sm:$0xff] }
 0x172   : > { %v1688_v34 = vrot.slane %v1651_v38, 1  ;;  %v3290_v15 = vunpack.i.l.bf16 %v3289_v14  ;;  %3653 = vset.pattern.permute.xlu1 %v5409_v52  ;;  %v1656_v25 = vmul.f32 %v3291_v37, %v5495_v8  ;;  %v1564_v48 = vadd.f32 %v5504_v28, %v4853_v42 }
 0x173   : > { %3655 = vperm.xlu1 %3653, %v5472_v62   ;;  %v1706_v60 = vadd.f32 %v1678_v5, %v4855_v43  ;;  %v5506_v46 = vrot.slane %v5505_v27, 1  ;;  %v5508_v53 = vrot.slane %v5507_v3, 1  ;;  %v3322_v30 = vunpack.i.l.bf16 %v5509_v4  ;;  %v3295_v7 = vpop.permute.xlu1 %3294  ;;  %v4953_v43 = vld [vmem:[%s5308_s1 + $0x12] ss:$0 sm:$0xff] }
 0x174   : > { %v1690_v58 = vsel %vm692_vm0, %v1688_v34, %v1689_v50  ;;  %v1655_v52 = vmul.f32 %v3290_v15, %v5495_v8  ;;  %v1693_v33 = vsel %vm692_vm0, %v1691_v2, %v1692_v40  ;;  %v1695_v62 = vrot.slane %v1656_v25, 1 }
 0x175   : > { %v1555_v20 = vsel %vm692_vm0, %v5508_v53, %v5506_v46  ;;  %v4945_v47 = vadd.f32 %v1675_v31, %v1564_v48  ;;  %v4948_v42 = vadd.f32 %v1687_v11, %v4897_v19  ;;  %v1825_v17 = vsel %vm692_vm0, %v1823_v39, %v1824_v29  ;;  %v3630_v19 = vpop.permute.xlu0 %3629 }
 0x176   : > { %v1694_v9 = vrot.slane %v1655_v52, 1  ;;  %v3297_v56 = vunpack.i.h.bf16 %v3295_v7  ;;  %v3296_v51 = vunpack.i.l.bf16 %v3295_v7  ;;  %v3622_v8 = vunpack.i.h.bf16 %v4883_v6 }
 0x177   : > { %v3621_v61 = vunpack.i.l.bf16 %v4883_v6  ;;  %3665 = vperm.xlu1 %3653, %v5476_v24   ;;  %v4960_v12 = vadd.f32 %v1690_v58, %v4794_v22  ;;  %v1571_v44 = vadd.f32 %v1555_v20, %v4877_v26  ;;  %v5510_v41 = vunpack.i.h.bf16 %v5509_v4  ;;  %v3300_v49 = vpop.permute.xlu1 %3299 }
 0x178   : > { %v1696_v1 = vsel %vm692_vm0, %v1694_v9, %v1695_v62  ;;  %v1785_v63 = vmul.f32 %v3297_v56, %v4912_v36  ;;  %v1784_v59 = vmul.f32 %v3296_v51, %v4912_v36  ;;  %v4970_v6 = vadd.f32 %v1693_v33, %v4902_v32 }
 0x179   : > { %v1919_v16 = vmul.f32 %v5510_v41, %v4953_v43  ;;  %v1849_v24 = vadd.f32 %v1825_v17, %v1708_v35  ;;  %v3302_v57 = vunpack.i.h.bf16 %v3300_v49  ;;  %v3301_v45 = vunpack.i.l.bf16 %v3300_v49  ;;  %v3635_v31 = vpop.permute.xlu0 %3634 }
 0x17a   : > { %v1818_v22 = vrot.slane %v1785_v63, 1  ;;  %v1817_v18 = vrot.slane %v1784_v59, 1  ;;  %v1783_v13 = vmul.f32 %v3622_v8, %v4912_v36  ;;  %v1782_v5 = vmul.f32 %v3621_v61, %v4912_v36  ;;  %v5003_v59 = vld [vmem:[%s5308_s1 + $0x13] ss:$0 sm:$0xff] }
 0x17b   : > { %3670 = vperm.xlu1 %3653, %v5480_v0   ;;  %v4975_v26 = vadd.f32 %v1696_v1, %v1571_v44  ;;  %v4977_v11 = vadd.f32 %v1919_v16, %v1849_v24  ;;  %v3632_v10 = vunpack.i.h.bf16 %v3630_v19  ;;  %v1787_v40 = vmul.f32 %v3302_v57, %v4912_v36  ;;  %v3305_v38 = vpop.permute.xlu1 %3304 }
 0x17c   : > { %v1786_v32 = vmul.f32 %v3301_v45, %v4912_v36  ;;  %v1819_v2 = vsel %vm692_vm0, %v1817_v18, %v1818_v22  ;;  %v3631_v21 = vunpack.i.l.bf16 %v3630_v19  ;;  %v3307_v37 = vunpack.i.h.bf16 %v3305_v38 }
 0x17d   : > { %v1847_v14 = vadd.f32 %v1819_v2, %v1706_v60  ;;  %v1821_v35 = vrot.slane %v1787_v40, 1  ;;  %v3306_v29 = vunpack.i.l.bf16 %v3305_v38  ;;  %v1918_v0 = vmul.f32 %v3322_v30, %v4953_v43 }
 0x17e   : > { %v1820_v50 = vrot.slane %v1786_v32, 1  ;;  %v1815_v39 = vrot.slane %v1783_v13, 1  ;;  %v1814_v34 = vrot.slane %v1782_v5, 1  ;;  %v1793_v15 = vmul.f32 %v3632_v10, %v4912_v36 }
 0x17f   : > { %3680 = vperm.xlu1 %3653, %v5483_v23   ;;  %v1791_v28 = vmul.f32 %v3307_v37, %v4912_v36  ;;  %v1790_v48 = vmul.f32 %v3306_v29, %v4912_v36  ;;  %v1792_v60 = vmul.f32 %v3631_v21, %v4912_v36  ;;  %v3637_v27 = vunpack.i.h.bf16 %v3635_v31  ;;  %v3310_v3 = vpop.permute.xlu1 %3309  ;;  %v5511_v23 = vld [vmem:[#allocation22_spill] sm:$0xff] }
 0x180   : > { %v1822_v25 = vsel %vm692_vm0, %v1820_v50, %v1821_v35  ;;  %v3636_v46 = vunpack.i.l.bf16 %v3635_v31  ;;  %v3312_v30 = vunpack.i.h.bf16 %v3310_v3  ;;  %v3311_v58 = vunpack.i.l.bf16 %v3310_v3 }
 0x181   : > { %v1848_v53 = vadd.f32 %v1822_v25, %v4923_v55  ;;  %v1827_v20 = vrot.slane %v1791_v28, 1  ;;  %v1826_v4 = vrot.slane %v1790_v48, 1  ;;  %v3515_v52 = vunpack.i.h.bf16 %v5511_v23 }
 0x182   : > { %v3514_v62 = vunpack.i.l.bf16 %v5511_v23  ;;  %v1795_v7 = vmul.f32 %v3312_v30, %v4912_v36  ;;  %v1794_v17 = vmul.f32 %v3311_v58, %v4912_v36  ;;  %v1830_v56 = vrot.slane %v1793_v15, 1 }
 0x183   : > { %3690 = vperm.xlu1 %3653, %v5486_v54   ;;  %v1926_v33 = vadd.f32 %v1918_v0, %v1848_v53  ;;  %v1828_v9 = vsel %vm692_vm0, %v1826_v4, %v1827_v20  ;;  %v1829_v51 = vrot.slane %v1792_v60, 1  ;;  %v1816_v55 = vsel %vm692_vm0, %v1814_v34, %v1815_v39 }
 0x184   : > { %v1850_v8 = vadd.f32 %v1828_v9, %v4948_v42  ;;  %v1797_v61 = vmul.f32 %v3637_v27, %v4912_v36  ;;  %v1796_v19 = vmul.f32 %v3636_v46, %v4912_v36  ;;  %v1833_v54 = vrot.slane %v1795_v7, 1  ;;  %v3316_v63 = vpop.permute.xlu1 %3315 }
 0x185   : > { %v1832_v1 = vrot.slane %v1794_v17, 1  ;;  %v3318_v44 = vunpack.i.h.bf16 %v3316_v63  ;;  %v3317_v41 = vunpack.i.l.bf16 %v3316_v63  ;;  %v1846_v16 = vadd.f32 %v1816_v55, %v4945_v47  ;;  %v5513_v17 = vld [vmem:[#allocation14_spill] sm:$0xff]  ;;  %v5037_v55 = vld [vmem:[%s5308_s1 + $0x15] ss:$0 sm:$0xff] }
 0x186   : > { %v1831_v36 = vsel %vm692_vm0, %v1829_v51, %v1830_v56  ;;  %v1970_v18 = vmul.f32 %v3515_v52, %v5003_v59  ;;  %v1969_v57 = vmul.f32 %v3514_v62, %v5003_v59  ;;  %v1836_v45 = vrot.slane %v1797_v61, 1 }
 0x187   : > { %v1834_v49 = vsel %vm692_vm0, %v1832_v1, %v1833_v54  ;;  %v1917_v42 = vmul.f32 %v3318_v44, %v4953_v43  ;;  %v1916_v24 = vmul.f32 %v3317_v41, %v4953_v43  ;;  %v1835_v13 = vrot.slane %v1796_v19, 1  ;;  %v3640_v41 = vpop.permute.xlu0 %3639 }
 0x188   : > { %v1852_v22 = vadd.f32 %v1834_v49, %v4970_v6  ;;  %v3326_v5 = vpop.permute.xlu1 %3325  ;;  %v1851_v2 = vadd.f32 %v1831_v36, %v4960_v12  ;;  %v5512_v6 = vld [vmem:[#allocation31_spill] sm:$0xff]  ;;  %v3365_v9 = vunpack.i.h.bf16 %v5513_v17 }
 0x189   : > { %v1924_v10 = vadd.f32 %v1916_v24, %v1846_v16  ;;  %v1925_v40 = vadd.f32 %v1917_v42, %v1847_v14  ;;  %v3328_v47 = vunpack.i.h.bf16 %v3326_v5  ;;  %v3327_v32 = vunpack.i.l.bf16 %v3326_v5 }
 0x18a   : > { %v3520_v50 = vunpack.i.h.bf16 %v5512_v6  ;;  %v3519_v37 = vunpack.i.l.bf16 %v5512_v6  ;;  %v1837_v0 = vsel %vm692_vm0, %v1835_v13, %v1836_v45  ;;  %v2101_v1 = vmul.f32 %v3365_v9, %v5037_v55 }
 0x18b   : > { %v1921_v21 = vmul.f32 %v3328_v47, %v4953_v43  ;;  %v1920_v38 = vmul.f32 %v3327_v32, %v4953_v43  ;;  %v1977_v31 = vadd.f32 %v1969_v57, %v1924_v10  ;;  %v1978_v35 = vadd.f32 %v1970_v18, %v1925_v40  ;;  %v5514_v18 = vld [vmem:[#allocation15_spill] sm:$0xff] }
 0x18c   : > { %v3331_v29 = vpop.permute.xlu1 %3330  ;;  %v1853_v25 = vadd.f32 %v1837_v0, %v4975_v26  ;;  %v1976_v48 = vmul.f32 %v3520_v50, %v5003_v59  ;;  %v1975_v60 = vmul.f32 %v3519_v37, %v5003_v59  ;;  %v3381_v57 = vunpack.i.h.bf16 %v5514_v18  ;;  %v5515_v50 = vld [vmem:[#allocation20_spill] sm:$0xff] }
 0x18d   : > { %v5019_v39 = vadd.f32 %v1920_v38, %v1850_v8  ;;  %v1929_v14 = vadd.f32 %v1921_v21, %v1851_v2  ;;  %v3333_v34 = vunpack.i.h.bf16 %v3331_v29  ;;  %v3332_v15 = vunpack.i.l.bf16 %v3331_v29 }
 0x18e   : > { %v3364_v8 = vunpack.i.l.bf16 %v5513_v17  ;;  %v3642_v45 = vunpack.i.h.bf16 %v3640_v41  ;;  %v3641_v13 = vunpack.i.l.bf16 %v3640_v41  ;;  %v3380_v10 = vunpack.i.l.bf16 %v5514_v18  ;;  %v5517_v18 = vld [vmem:[#allocation26_spill] sm:$0xff] }
 0x18f   : > { %v1923_v12 = vmul.f32 %v3333_v34, %v4953_v43  ;;  %v1922_v28 = vmul.f32 %v3332_v15, %v4953_v43  ;;  %v2107_v38 = vmul.f32 %v3381_v57, %v5037_v55  ;;  %v3525_v37 = vunpack.i.h.bf16 %v5515_v50  ;;  %v5067_v34 = vld [vmem:[%s5308_s1 + $0x16] ss:$0 sm:$0xff] }
 0x190   : > { %v2100_v44 = vmul.f32 %v3364_v8, %v5037_v55  ;;  %v2106_v6 = vmul.f32 %v3380_v10, %v5037_v55  ;;  %v3524_v15 = vunpack.i.l.bf16 %v5515_v50  ;;  %v3444_v57 = vunpack.i.h.bf16 %v5517_v18 }
 0x191   : > { %v1930_v27 = vadd.f32 %v1922_v28, %v1852_v22  ;;  %v1931_v46 = vadd.f32 %v1923_v12, %v1853_v25  ;;  %v3337_v3 = vpop.permute.xlu1 %3336 }
 0x192   : > { %v3339_v53 = vunpack.i.h.bf16 %v3337_v3  ;;  %v3338_v20 = vunpack.i.l.bf16 %v3337_v3 }
 0x193   : > { %v1983_v4 = vadd.f32 %v1975_v60, %v1930_v27  ;;  %v1984_v30 = vadd.f32 %v1976_v48, %v1931_v46 }
 0x194   : > { %v1972_v58 = vmul.f32 %v3339_v53, %v5003_v59  ;;  %v1971_v23 = vmul.f32 %v3338_v20, %v5003_v59  ;;  %v5516_v53 = vld [vmem:[#allocation16_spill] sm:$0xff] }
 0x195   : > { %v5028_v52 = vpop.permute.xlu1 %3341  ;;  %v3419_v20 = vunpack.i.h.bf16 %v5516_v53 }
 0x196   : > { %v1979_v26 = vadd.f32 %v1971_v23, %v1926_v33  ;;  %v1980_v43 = vadd.f32 %v1972_v58, %v4977_v11  ;;  %v3344_v62 = vunpack.i.h.bf16 %v5028_v52  ;;  %v5043_v11 = vld [vmem:[%s5308_s1 + $0x14] ss:$0 sm:$0xff]  ;;  %v2155_v23 = vmul.f32 %v3524_v15, %v5067_v34 }
 0x198   : > { %v1974_v7 = vmul.f32 %v3344_v62, %v5003_v59 }
 0x19a   : > { %v1982_v56 = vadd.f32 %v1974_v7, %v1929_v14  ;;  %v3348_v51 = vpop.permute.xlu1 %3347 }
 0x19b   : > { %v3350_v61 = vunpack.i.h.bf16 %v3348_v51  ;;  %v3349_v19 = vunpack.i.l.bf16 %v3348_v51 }
 0x19d   : > { %v2023_v33 = vmul.f32 %v3350_v61, %v5043_v11  ;;  %v2022_v54 = vmul.f32 %v3349_v19, %v5043_v11 }
 0x19e   : > { %v5048_v63 = vpop.permute.xlu1 %3352 }
 0x19f   : > { %v2030_v16 = vadd.f32 %v2022_v54, %v1977_v31  ;;  %v2031_v49 = vadd.f32 %v2023_v33, %v1978_v35  ;;  %v3355_v42 = vunpack.i.h.bf16 %v5048_v63  ;;  %v2025_v31 = vmul.f32 %v3642_v45, %v5043_v11  ;;  %v5096_v33 = vld [vmem:[%s5308_s1 + $0x17] ss:$0 sm:$0xff] }
 0x1a0   : > { %v2024_v35 = vmul.f32 %v3641_v13, %v5043_v11  ;;  %v3443_v45 = vunpack.i.l.bf16 %v5517_v18 }
 0x1a1   : > { %v2027_v24 = vmul.f32 %v3355_v42, %v5043_v11  ;;  %v5053_v36 = vadd.f32 %v2100_v44, %v2030_v16  ;;  %v2109_v22 = vadd.f32 %v2101_v1, %v2031_v49  ;;  %v2033_v27 = vadd.f32 %v2025_v31, %v1980_v43  ;;  %v5083_v43 = vpop.permute.xlu0 %3644 }
 0x1a2   : > { %v3358_v5 = vpop.permute.xlu1 %3357  ;;  %v2032_v60 = vadd.f32 %v2024_v35, %v1979_v26  ;;  %v5081_v26 = vld [vmem:[%s5308_s1 + $0x18] ss:$0 sm:$0xff]  ;;  %v3647_v8 = vunpack.i.h.bf16 %v5083_v43 }
 0x1a3   : > { %v2035_v40 = vadd.f32 %v2027_v24, %v1982_v56  ;;  %v3360_v47 = vunpack.i.h.bf16 %v3358_v5  ;;  %v3359_v32 = vunpack.i.l.bf16 %v3358_v5  ;;  %v2342_v61 = vmul.f32 %v3419_v20, %v5081_v26  ;;  %v5518_v35 = vld [vmem:[#allocation21_spill] sm:$0xff] }
 0x1a4   : > { %v2207_v41 = vmul.f32 %v3647_v8, %v5096_v33  ;;  %v3343_v5 = vunpack.i.l.bf16 %v5028_v52 }
 0x1a5   : > { %v2029_v2 = vmul.f32 %v3360_v47, %v5043_v11  ;;  %v2028_v21 = vmul.f32 %v3359_v32, %v5043_v11  ;;  %v2375_v49 = vrot.slane %v2342_v61, 1  ;;  %v2352_v32 = vmul.f32 %v3444_v57, %v5081_v26 }
 0x1a7   : > { %v2036_v29 = vadd.f32 %v2028_v21, %v1983_v4  ;;  %v2037_v0 = vadd.f32 %v2029_v2, %v1984_v30  ;;  %v3369_v14 = vpop.permute.xlu1 %3368  ;;  %v3418_v4 = vunpack.i.l.bf16 %v5516_v53  ;;  %v2156_v30 = vmul.f32 %v3525_v37, %v5067_v34 }
 0x1a8   : > { %v3371_v12 = vunpack.i.h.bf16 %v3369_v14  ;;  %v3370_v25 = vunpack.i.l.bf16 %v3369_v14  ;;  %v2351_v2 = vmul.f32 %v3443_v45, %v5081_v26  ;;  %v3354_v21 = vunpack.i.l.bf16 %v5048_v63 }
 0x1a9   : > { %v2114_v28 = vadd.f32 %v2106_v6, %v2036_v29  ;;  %v5070_v48 = vadd.f32 %v2107_v38, %v2037_v0  ;;  %v2341_v19 = vmul.f32 %v3418_v4, %v5081_v26  ;;  %v5113_v38 = vpop.permute.xlu0 %3649  ;;  %v3434_v6 = vunpack.i.h.bf16 %v5518_v35 }
 0x1aa   : > { %v2103_v46 = vmul.f32 %v3371_v12, %v5037_v55  ;;  %v2102_v3 = vmul.f32 %v3370_v25, %v5037_v55  ;;  %v3651_v52 = vunpack.i.l.bf16 %v5113_v38  ;;  %v1973_v37 = vmul.f32 %v3343_v5, %v5003_v59 }
 0x1ab   : > { %v3374_v58 = vpop.permute.xlu1 %3373  ;;  %v2374_v42 = vrot.slane %v2341_v19, 1  ;;  %v2390_v14 = vrot.slane %v2352_v32, 1  ;;  %v2389_v15 = vrot.slane %v2351_v2, 1  ;;  %v2026_v63 = vmul.f32 %v3354_v21, %v5043_v11  ;;  %v5520_v19 = vld [vmem:[#allocation24_spill] sm:$0xff] }
 0x1ac   : > { %v2110_v62 = vadd.f32 %v2102_v3, %v2032_v60  ;;  %v2111_v7 = vadd.f32 %v2103_v46, %v2033_v27  ;;  %v3376_v17 = vunpack.i.h.bf16 %v3374_v58  ;;  %v3375_v29 = vunpack.i.l.bf16 %v3374_v58 }
 0x1ad   : > { %v2348_v60 = vmul.f32 %v3434_v6, %v5081_v26  ;;  %v2212_v46 = vmul.f32 %v3651_v52, %v5096_v33  ;;  %v1981_v59 = vadd.f32 %v1973_v37, %v5019_v39  ;;  %v5142_v39 = vld [vmem:[%s5308_s1 + $0x19] ss:$0 sm:$0xff] }
 0x1ae   : > { %v2105_v9 = vmul.f32 %v3376_v17, %v5037_v55  ;;  %v5086_v56 = vadd.f32 %v2155_v23, %v2110_v62  ;;  %v5088_v51 = vadd.f32 %v2156_v30, %v2111_v7  ;;  %v2104_v53 = vmul.f32 %v3375_v29, %v5037_v55  ;;  %v5519_v17 = vld [vmem:[#allocation7_spill] sm:$0xff] }
 0x1af   : > { %v2391_v30 = vsel %vm692_vm0, %v2389_v15, %v2390_v14  ;;  %v2034_v11 = vadd.f32 %v2026_v63, %v1981_v59  ;;  %v2384_v62 = vrot.slane %v2348_v60, 1  ;;  %v3534_v55 = vunpack.i.l.bf16 %v5519_v17 }
 0x1b0   : > { %v5098_v54 = vadd.f32 %v2105_v9, %v2035_v40  ;;  %v3385_v1 = vpop.permute.xlu1 %3384  ;;  %v2376_v40 = vsel %vm692_vm0, %v2374_v42, %v2375_v49  ;;  %v3535_v9 = vunpack.i.h.bf16 %v5519_v17 }
 0x1b1   : > { %v3387_v44 = vunpack.i.h.bf16 %v3385_v1  ;;  %v3386_v20 = vunpack.i.l.bf16 %v3385_v1  ;;  %v3551_v1 = vunpack.i.h.bf16 %v5520_v19 }
 0x1b2   : > { %v2481_v18 = vmul.f32 %v3535_v9, %v5142_v39 }
 0x1b3   : > { %v2154_v16 = vmul.f32 %v3387_v44, %v5067_v34  ;;  %v3550_v44 = vunpack.i.l.bf16 %v5520_v19  ;;  %v2487_v32 = vmul.f32 %v3551_v1, %v5142_v39 }
 0x1b4   : > { %v5102_v24 = vpop.permute.xlu1 %3389 }
 0x1b5   : > { %v2162_v13 = vadd.f32 %v2154_v16, %v2109_v22  ;;  %v3433_v22 = vunpack.i.l.bf16 %v5518_v35  ;;  %v3391_v12 = vunpack.i.l.bf16 %v5102_v24  ;;  %v2153_v16 = vmul.f32 %v3386_v20, %v5067_v34  ;;  %v5521_v35 = vld [vmem:[#allocation23_spill] sm:$0xff] }
 0x1b6   : > { %v2486_v2 = vmul.f32 %v3550_v44, %v5142_v39  ;;  %v3561_v6 = vunpack.i.h.bf16 %v5521_v35  ;;  %v3560_v37 = vunpack.i.l.bf16 %v5521_v35 }
 0x1b7   : > { %v2215_v10 = vadd.f32 %v2207_v41, %v2162_v13  ;;  %v2347_v27 = vmul.f32 %v3433_v22, %v5081_v26  ;;  %v2157_v58 = vmul.f32 %v3391_v12, %v5067_v34  ;;  %v3646_v41 = vunpack.i.l.bf16 %v5083_v43 }
 0x1b8   : > { %v5108_v47 = vpop.permute.xlu1 %3394  ;;  %v2480_v13 = vmul.f32 %v3534_v55, %v5142_v39  ;;  %v2161_v21 = vadd.f32 %v2153_v16, %v5053_v36  ;;  %v2522_v36 = vrot.slane %v2487_v32, 1  ;;  %v2490_v59 = vmul.f32 %v3560_v37, %v5142_v39 }
 0x1b9   : > { %v5115_v31 = vadd.f32 %v2376_v40, %v2215_v10  ;;  %v3396_v50 = vunpack.i.l.bf16 %v5108_v47  ;;  %v2383_v7 = vrot.slane %v2347_v27, 1  ;;  %v2206_v43 = vmul.f32 %v3646_v41, %v5096_v33 }
 0x1ba   : > { %v2512_v14 = vrot.slane %v2480_v13, 1  ;;  %v2521_v27 = vrot.slane %v2486_v2, 1  ;;  %v3397_v9 = vunpack.i.h.bf16 %v5108_v47  ;;  %v2527_v41 = vrot.slane %v2490_v59, 1  ;;  %v3661_v47 = vpop.permute.xlu0 %3660 }
 0x1bb   : > { %v2159_v0 = vmul.f32 %v3396_v50, %v5067_v34  ;;  %v2385_v57 = vsel %vm692_vm0, %v2383_v7, %v2384_v62  ;;  %v2214_v12 = vadd.f32 %v2206_v43, %v2161_v21  ;;  %v3652_v32 = vunpack.i.h.bf16 %v5113_v38  ;;  %v5196_v38 = vld [vmem:[%s5308_s1 + $0x1a] ss:$0 sm:$0xff] }
 0x1bc   : > { %v2523_v19 = vsel %vm692_vm0, %v2521_v27, %v2522_v36  ;;  %v3663_v35 = vunpack.i.h.bf16 %v3661_v47 }
 0x1bd   : > { %v5125_v25 = vpop.permute.xlu1 %3400  ;;  %v2167_v3 = vadd.f32 %v2159_v0, %v2114_v28  ;;  %v2112_v28 = vadd.f32 %v2104_v53, %v2034_v11  ;;  %v2513_v0 = vrot.slane %v2481_v18, 1  ;;  %v5522_v53 = vld [vmem:[#allocation55_spill] sm:$0xff] }
 0x1be   : > { %v3403_v60 = vunpack.i.h.bf16 %v5125_v25  ;;  %v3571_v20 = vunpack.i.h.bf16 %v5522_v53  ;;  %v3570_v62 = vunpack.i.l.bf16 %v5522_v53  ;;  %v3676_v36 = vpop.permute.xlu0 %3675  ;;  %v2213_v53 = vmul.f32 %v3652_v32, %v5096_v33 }
 0x1bf   : > { %v2220_v4 = vadd.f32 %v2212_v46, %v2167_v3  ;;  %v2165_v49 = vadd.f32 %v2157_v58, %v2112_v28  ;;  %v2491_v46 = vmul.f32 %v3561_v6, %v5142_v39  ;;  %v2514_v58 = vsel %vm692_vm0, %v2512_v14, %v2513_v0 }
 0x1c0   : > { %v2209_v55 = vmul.f32 %v3403_v60, %v5096_v33  ;;  %v2495_v16 = vmul.f32 %v3571_v20, %v5142_v39  ;;  %v2494_v13 = vmul.f32 %v3570_v62, %v5142_v39  ;;  %v3662_v6 = vunpack.i.l.bf16 %v3661_v47 }
 0x1c1   : > { %v5134_v23 = vpop.permute.xlu1 %3405  ;;  %v5137_v8 = vadd.f32 %v2391_v30, %v2220_v4  ;;  %v3392_v4 = vunpack.i.h.bf16 %v5102_v24  ;;  %v2528_v44 = vrot.slane %v2491_v46, 1 }
 0x1c2   : > { %v3407_v61 = vunpack.i.l.bf16 %v5134_v23  ;;  %v3408_v28 = vunpack.i.h.bf16 %v5134_v23  ;;  %v2533_v59 = vrot.slane %v2494_v13, 1 }
 0x1c3   : > { %v2529_v60 = vsel %vm692_vm0, %v2527_v41, %v2528_v44 }
 0x1c4   : > { %v2210_v42 = vmul.f32 %v3407_v61, %v5096_v33 }
 0x1c6   : > { %v3412_v45 = vpop.permute.xlu1 %3411  ;;  %v2218_v5 = vadd.f32 %v2210_v42, %v2165_v49  ;;  %v2158_v49 = vmul.f32 %v3392_v4, %v5067_v34  ;;  %v2624_v4 = vmul.f32 %v3663_v35, %v5196_v38 }
 0x1c7   : > { %v3414_v10 = vunpack.i.h.bf16 %v3412_v45  ;;  %v3413_v40 = vunpack.i.l.bf16 %v3412_v45 }
 0x1c8   : > { %v5159_v22 = vadd.f32 %v2385_v57, %v2218_v5  ;;  %v2160_v5 = vmul.f32 %v3397_v9, %v5067_v34 }
 0x1c9   : > { %v2340_v52 = vmul.f32 %v3414_v10, %v5081_v26  ;;  %v2339_v50 = vmul.f32 %v3413_v40, %v5081_v26  ;;  %v2217_v10 = vadd.f32 %v2209_v55, %v5088_v51  ;;  %v2211_v40 = vmul.f32 %v3408_v28, %v5096_v33 }
 0x1ca   : > { %v5164_v29 = vpop.permute.xlu1 %3421  ;;  %v3678_v55 = vunpack.i.h.bf16 %v3676_v36  ;;  %v3677_v28 = vunpack.i.l.bf16 %v3676_v36 }
 0x1cb   : > { %v2372_v15 = vrot.slane %v2340_v52, 1  ;;  %v2371_v63 = vrot.slane %v2339_v50, 1  ;;  %v2166_v52 = vadd.f32 %v2158_v49, %v5098_v54  ;;  %v3424_v32 = vunpack.i.h.bf16 %v5164_v29 }
 0x1cd   : > { %v2373_v3 = vsel %vm692_vm0, %v2371_v63, %v2372_v15  ;;  %v2168_v15 = vadd.f32 %v2160_v5, %v5070_v48  ;;  %v2219_v63 = vadd.f32 %v2211_v40, %v2166_v52  ;;  %v2623_v48 = vmul.f32 %v3662_v6, %v5196_v38  ;;  %v5226_v6 = vld [vmem:[%s5309_s2] ss:$0 sm:$0xff] }
 0x1ce   : > { %v2403_v30 = vadd.f32 %v2373_v3, %v2214_v12  ;;  %v3427_v11 = vpop.permute.xlu1 %3426  ;;  %v2534_v3 = vrot.slane %v2495_v16, 1  ;;  %v3686_v16 = vpop.permute.xlu0 %3685 }
 0x1cf   : > { %v3429_v7 = vunpack.i.h.bf16 %v3427_v11  ;;  %v3428_v17 = vunpack.i.l.bf16 %v3427_v11  ;;  %v2221_v62 = vadd.f32 %v2213_v53, %v2168_v15  ;;  %v2656_v47 = vrot.slane %v2623_v48, 1 }
 0x1d0   : > { %v5177_v61 = vadd.f32 %v2514_v58, %v2403_v30  ;;  %v2535_v41 = vsel %vm692_vm0, %v2533_v59, %v2534_v3  ;;  %v3688_v5 = vunpack.i.h.bf16 %v3686_v16  ;;  %v3687_v40 = vunpack.i.l.bf16 %v3686_v16 }
 0x1d1   : > { %v2346_v24 = vmul.f32 %v3429_v7, %v5081_v26  ;;  %v2345_v1 = vmul.f32 %v3428_v17, %v5081_v26 }
 0x1d2   : > { %v3437_v42 = vpop.permute.xlu1 %3436 }
 0x1d3   : > { %v2381_v18 = vrot.slane %v2346_v24, 1  ;;  %v2380_v57 = vrot.slane %v2345_v1, 1  ;;  %v3439_v45 = vunpack.i.h.bf16 %v3437_v42  ;;  %v3438_v23 = vunpack.i.l.bf16 %v3437_v42 }
 0x1d4   : > { %v2657_v42 = vrot.slane %v2624_v4, 1  ;;  %v3402_v4 = vunpack.i.l.bf16 %v5125_v25 }
 0x1d5   : > { %v2382_v2 = vsel %vm692_vm0, %v2380_v57, %v2381_v18  ;;  %v2350_v43 = vmul.f32 %v3439_v45, %v5081_v26  ;;  %v2349_v21 = vmul.f32 %v3438_v23, %v5081_v26  ;;  %v2630_v45 = vmul.f32 %v3678_v55, %v5196_v38 }
 0x1d6   : > { %v2406_v50 = vadd.f32 %v2382_v2, %v2217_v10  ;;  %v3528_v37 = vpop.permute.xlu1 %3527  ;;  %v2629_v23 = vmul.f32 %v3677_v28, %v5196_v38  ;;  %v3423_v2 = vunpack.i.l.bf16 %v5164_v29  ;;  %v2658_v35 = vsel %vm692_vm0, %v2656_v47, %v2657_v42 }
 0x1d7   : > { %v2387_v0 = vrot.slane %v2350_v43, 1  ;;  %v2386_v34 = vrot.slane %v2349_v21, 1  ;;  %v3530_v14 = vunpack.i.h.bf16 %v3528_v37  ;;  %v3529_v51 = vunpack.i.l.bf16 %v3528_v37 }
 0x1d8   : > { %v5199_v12 = vadd.f32 %v2523_v19, %v2406_v50  ;;  %v2666_v37 = vrot.slane %v2630_v45, 1  ;;  %v2343_v36 = vmul.f32 %v3423_v2, %v5081_v26 }
 0x1d9   : > { %v2388_v54 = vsel %vm692_vm0, %v2386_v34, %v2387_v0  ;;  %v2354_v27 = vmul.f32 %v3530_v14, %v5081_v26  ;;  %v2353_v46 = vmul.f32 %v3529_v51, %v5081_v26  ;;  %v2665_v0 = vrot.slane %v2629_v23, 1 }
 0x1da   : > { %v2408_v20 = vadd.f32 %v2388_v54, %v2219_v63  ;;  %v2634_v51 = vmul.f32 %v3688_v5, %v5196_v38  ;;  %v2633_v63 = vmul.f32 %v3687_v40, %v5196_v38 }
 0x1db   : > { %v2393_v30 = vrot.slane %v2354_v27, 1  ;;  %v2392_v11 = vrot.slane %v2353_v46, 1 }
 0x1dc   : > { %v5208_v9 = vadd.f32 %v2529_v60, %v2408_v20  ;;  %v2344_v60 = vmul.f32 %v3424_v32, %v5081_v26  ;;  %v2667_v20 = vsel %vm692_vm0, %v2665_v0, %v2666_v37 }
 0x1dd   : > { %v3539_v58 = vpop.permute.xlu1 %3538  ;;  %v2394_v19 = vsel %vm692_vm0, %v2392_v11, %v2393_v30 }
 0x1de   : > { %v3541_v7 = vunpack.i.h.bf16 %v3539_v58  ;;  %v3540_v17 = vunpack.i.l.bf16 %v3539_v58  ;;  %v2410_v24 = vadd.f32 %v2394_v19, %v2221_v62  ;;  %v2378_v28 = vrot.slane %v2344_v60, 1 }
 0x1df   : > { %v2377_v19 = vrot.slane %v2343_v36, 1 }
 0x1e0   : > { %v2483_v1 = vmul.f32 %v3541_v7, %v5142_v39  ;;  %v2482_v44 = vmul.f32 %v3540_v17, %v5142_v39  ;;  %v5216_v13 = vadd.f32 %v2535_v41, %v2410_v24  ;;  %v2672_v7 = vrot.slane %v2634_v51, 1 }
 0x1e1   : > { %v3544_v49 = vpop.permute.xlu1 %3543  ;;  %v2671_v17 = vrot.slane %v2633_v63, 1  ;;  %v2379_v40 = vsel %vm692_vm0, %v2377_v19, %v2378_v28 }
 0x1e2   : > { %v2516_v18 = vrot.slane %v2483_v1, 1  ;;  %v2515_v57 = vrot.slane %v2482_v44, 1  ;;  %v3546_v14 = vunpack.i.h.bf16 %v3544_v49  ;;  %v3545_v29 = vunpack.i.l.bf16 %v3544_v49 }
 0x1e4   : > { %v2517_v10 = vsel %vm692_vm0, %v2515_v57, %v2516_v18  ;;  %v2485_v30 = vmul.f32 %v3546_v14, %v5142_v39  ;;  %v2484_v11 = vmul.f32 %v3545_v29, %v5142_v39 }
 0x1e5   : > { %v2545_v43 = vadd.f32 %v2517_v10, %v5115_v31  ;;  %v3554_v21 = vpop.permute.xlu1 %3553  ;;  %v2673_v10 = vsel %vm692_vm0, %v2671_v17, %v2672_v7 }
 0x1e6   : > { %v3556_v52 = vunpack.i.h.bf16 %v3554_v21  ;;  %v3555_v50 = vunpack.i.l.bf16 %v3554_v21  ;;  %v2519_v47 = vrot.slane %v2485_v30, 1  ;;  %v2518_v18 = vrot.slane %v2484_v11, 1 }
 0x1e7   : > { %v2686_v34 = vadd.f32 %v2658_v35, %v2545_v43 }
 0x1e8   : > { %v2489_v31 = vmul.f32 %v3556_v52, %v5142_v39  ;;  %v2488_v15 = vmul.f32 %v3555_v50, %v5142_v39 }
 0x1e9   : > { %v2701_v54 = vadd.f32 %v5226_v6, %v2686_v34  ;;  %v3564_v27 = vpop.permute.xlu1 %3563  ;;  %v2520_v34 = vsel %vm692_vm0, %v2518_v18, %v2519_v47 }
 0x1ea   : > { %v2525_v46 = vrot.slane %v2489_v31, 1  ;;  %v2524_v3 = vrot.slane %v2488_v15, 1  ;;  %v3566_v59 = vunpack.i.h.bf16 %v3564_v27  ;;  %v3565_v53 = vunpack.i.l.bf16 %v3564_v27 }
 0x1eb   : > { %v2709_v48 = vadd.f32 3.0, %v2701_v54 }
 0x1ec   : > { %v2526_v26 = vsel %vm692_vm0, %v2524_v3, %v2525_v46  ;;  %v2493_v58 = vmul.f32 %v3566_v59, %v5142_v39  ;;  %v2492_v62 = vmul.f32 %v3565_v53, %v5142_v39  ;;  %v2208_v39 = vmul.f32 %v3402_v4, %v5096_v33 }
 0x1ed   : > { %v2717_v55 = vmax.f32 %v2709_v48, 0.0  ;;  %v2548_v25 = vadd.f32 %v2526_v26, %v5159_v22 }
 0x1ee   : > { %v2531_v24 = vrot.slane %v2493_v58, 1  ;;  %v2530_v1 = vrot.slane %v2492_v62, 1  ;;  %v3656_v44 = vpop.permute.xlu1 %3655  ;;  %v2216_v52 = vadd.f32 %v2208_v39, %v5086_v56 }
 0x1ef   : > { %v2725_v41 = vmin.f32 %v2717_v55, 6.0  ;;  %v2689_v16 = vadd.f32 %v2667_v20, %v2548_v25  ;;  %v3658_v49 = vunpack.i.h.bf16 %v3656_v44  ;;  %v3657_v42 = vunpack.i.l.bf16 %v3656_v44 }
 0x1f0   : > { %v2532_v57 = vsel %vm692_vm0, %v2530_v1, %v2531_v24  ;;  %v2405_v29 = vadd.f32 %v2379_v40, %v2216_v52 }
 0x1f1   : > { %v2733_v45 = vmul.f32 0.16666667, %v2725_v41  ;;  %v2704_v23 = vadd.f32 %v5226_v6, %v2689_v16  ;;  %v2550_v22 = vadd.f32 %v2532_v57, %v5137_v8  ;;  %v2622_v5 = vmul.f32 %v3658_v49, %v5196_v38 }
 0x1f2   : > { %v2621_v32 = vmul.f32 %v3657_v42, %v5196_v38  ;;  %v3666_v33 = vpop.permute.xlu1 %3665  ;;  %v2546_v46 = vadd.f32 %v2520_v34, %v2405_v29 }
 0x1f3   : > { %v2741_v2 = vmul.f32 %v2733_v45, %v2701_v54  ;;  %v2712_v43 = vadd.f32 3.0, %v2704_v23  ;;  %v2691_v21 = vadd.f32 %v2673_v10, %v2550_v22  ;;  %v2654_v35 = vrot.slane %v2622_v5, 1 }
 0x1f4   : > { %v2653_v8 = vrot.slane %v2621_v32, 1  ;;  %v3668_v50 = vunpack.i.h.bf16 %v3666_v33  ;;  %v3667_v37 = vunpack.i.l.bf16 %v3666_v33 }
 0x1f5   : > { %v2749_v0 = vpack.c.bf16 %v2741_v2, %v2741_v2  ;;  %v2720_v14 = vmax.f32 %v2712_v43, 0.0  ;;  %v2706_v51 = vadd.f32 %v5226_v6, %v2691_v21 }
 0x1f6   : > { %v2655_v31 = vsel %vm692_vm0, %v2653_v8, %v2654_v35  ;;  %v2626_v56 = vmul.f32 %v3668_v50, %v5196_v38  ;;  %v2625_v15 = vmul.f32 %v3667_v37, %v5196_v38  ;;  %v3671_v63 = vpop.permute.xlu1 %3670 }
 0x1f7   : > { %2758 = vst.msk [vmem:[%s5262_s29 + $0x4] sm:$0xf] %vm2756_vm1, %v2749_v0  ;;  %v2728_v60 = vmin.f32 %v2720_v14, 6.0  ;;  %v2714_v36 = vadd.f32 3.0, %v2706_v51  ;;  %v2685_v54 = vadd.f32 %v2655_v31, %v5177_v61  ;;  %v3673_v27 = vunpack.i.h.bf16 %v3671_v63 }
 0x1f8   : > { %v2660_v3 = vrot.slane %v2626_v56, 1  ;;  %v2659_v59 = vrot.slane %v2625_v15, 1  ;;  %v3672_v53 = vunpack.i.l.bf16 %v3671_v63 }
 0x1f9   : > { %v2736_v20 = vmul.f32 0.16666667, %v2728_v60  ;;  %v2722_v4 = vmax.f32 %v2714_v36, 0.0  ;;  %v2700_v48 = vadd.f32 %v5226_v6, %v2685_v54  ;;  %v2628_v30 = vmul.f32 %v3673_v27, %v5196_v38 }
 0x1fa   : > { %v2661_v11 = vsel %vm692_vm0, %v2659_v59, %v2660_v3  ;;  %v2627_v26 = vmul.f32 %v3672_v53, %v5196_v38  ;;  %v3681_v58 = vpop.permute.xlu1 %3680 }
 0x1fb   : > { %v2744_v62 = vmul.f32 %v2736_v20, %v2704_v23  ;;  %v2730_v7 = vmin.f32 %v2722_v4, 6.0  ;;  %v2708_v61 = vadd.f32 3.0, %v2700_v48  ;;  %v2687_v17 = vadd.f32 %v2661_v11, %v2546_v46 }
 0x1fc   : > { %v2663_v55 = vrot.slane %v2628_v30, 1  ;;  %v2662_v25 = vrot.slane %v2627_v26, 1  ;;  %v3683_v28 = vunpack.i.h.bf16 %v3681_v58  ;;  %v3682_v19 = vunpack.i.l.bf16 %v3681_v58 }
 0x1fd   : > { %v2752_v24 = vpack.c.bf16 %v2744_v62, %v2744_v62  ;;  %v2738_v1 = vmul.f32 0.16666667, %v2730_v7  ;;  %v2716_v44 = vmax.f32 %v2708_v61, 0.0  ;;  %v2702_v41 = vadd.f32 %v5226_v6, %v2687_v17 }
 0x1fe   : > { %v2664_v16 = vsel %vm692_vm0, %v2662_v25, %v2663_v55  ;;  %v2632_v49 = vmul.f32 %v3683_v28, %v5196_v38  ;;  %v2631_v42 = vmul.f32 %v3682_v19, %v5196_v38  ;;  %v3691_v39 = vpop.permute.xlu1 %3690 }
 0x1ff   : > { %2761 = vst.msk [vmem:[%s5262_s29 + $0x10] sm:$0xf] %vm2756_vm1, %v2752_v24  ;;  %v2746_v47 = vmul.f32 %v2738_v1, %v2706_v51  ;;  %v2724_v18 = vmin.f32 %v2716_v44, 6.0  ;;  %v2710_v57 = vadd.f32 3.0, %v2702_v41  ;;  %v2688_v45 = vadd.f32 %v2664_v16, %v5199_v12 }
 0x200   : > { %v2669_v23 = vrot.slane %v2632_v49, 1  ;;  %v2668_v22 = vrot.slane %v2631_v42, 1  ;;  %v3693_v5 = vunpack.i.h.bf16 %v3691_v39  ;;  %v3692_v10 = vunpack.i.l.bf16 %v3691_v39 }
 0x201   : > { %v2754_v40 = vpack.c.bf16 %v2746_v47, %v2746_v47  ;;  %v2732_v32 = vmul.f32 0.16666667, %v2724_v18  ;;  %v2718_v33 = vmax.f32 %v2710_v57, 0.0  ;;  %v2703_v2 = vadd.f32 %v5226_v6, %v2688_v45 }
 0x202   : > { %v2670_v43 = vsel %vm692_vm0, %v2668_v22, %v2669_v23  ;;  %v2636_v21 = vmul.f32 %v3693_v5, %v5196_v38  ;;  %v2635_v35 = vmul.f32 %v3692_v10, %v5196_v38 }
 0x203   : > { %2763 = vst.msk [vmem:[%s5262_s29 + $0x18] sm:$0xf] %vm2756_vm1, %v2754_v40  ;;  %v2740_v52 = vmul.f32 %v2732_v32, %v2700_v48  ;;  %v2726_v12 = vmin.f32 %v2718_v33, 6.0  ;;  %v2711_v8 = vadd.f32 3.0, %v2703_v2  ;;  %v2690_v50 = vadd.f32 %v2670_v43, %v5208_v9 }
 0x204   : > { %v2675_v37 = vrot.slane %v2636_v21, 1  ;;  %v2674_v0 = vrot.slane %v2635_v35, 1 }
 0x205   : > { %v2748_v34 = vpack.c.bf16 %v2740_v52, %v2740_v52  ;;  %v2734_v14 = vmul.f32 0.16666667, %v2726_v12  ;;  %v2719_v51 = vmax.f32 %v2711_v8, 0.0  ;;  %v2705_v29 = vadd.f32 %v5226_v6, %v2690_v50 }
 0x206   : > { %v2676_v31 = vsel %vm692_vm0, %v2674_v0, %v2675_v37 }
 0x207   : > { %2757 = vst.msk [vmem:[%s5262_s29] sm:$0xf] %vm2756_vm1, %v2748_v34  ;;  %v2742_v38 = vmul.f32 %v2734_v14, %v2702_v41  ;;  %v2727_v56 = vmin.f32 %v2719_v51, 6.0  ;;  %v2713_v15 = vadd.f32 3.0, %v2705_v29  ;;  %v2692_v63 = vadd.f32 %v2676_v31, %v5216_v13 }
 0x209   : > { %v2750_v60 = vpack.c.bf16 %v2742_v38, %v2742_v38  ;;  %v2735_v9 = vmul.f32 0.16666667, %v2727_v56  ;;  %v2721_v36 = vmax.f32 %v2713_v15, 0.0  ;;  %v2707_v54 = vadd.f32 %v5226_v6, %v2692_v63 }
 0x20b   : > { %2759 = vst.msk [vmem:[%s5262_s29 + $0x8] sm:$0xf] %vm2756_vm1, %v2750_v60  ;;  %v2743_v27 = vmul.f32 %v2735_v9, %v2703_v2  ;;  %v2729_v46 = vmin.f32 %v2721_v36, 6.0  ;;  %v2715_v3 = vadd.f32 3.0, %v2707_v54 }
 0x20d   : > { %v2751_v59 = vpack.c.bf16 %v2743_v27, %v2743_v27  ;;  %v2737_v53 = vmul.f32 0.16666667, %v2729_v46  ;;  %v2723_v20 = vmax.f32 %v2715_v3, 0.0 }
 0x20f   : > { %2760 = vst.msk [vmem:[%s5262_s29 + $0xc] sm:$0xf] %vm2756_vm1, %v2751_v59  ;;  %v2745_v4 = vmul.f32 %v2737_v53, %v2705_v29  ;;  %v2731_v48 = vmin.f32 %v2723_v20, 6.0 }
 0x211   : > { %v2753_v13 = vpack.c.bf16 %v2745_v4, %v2745_v4  ;;  %v2739_v30 = vmul.f32 0.16666667, %v2731_v48 }
 0x213   : > { %2762 = vst.msk [vmem:[%s5262_s29 + $0x14] sm:$0xf] %vm2756_vm1, %v2753_v13  ;;  %v2747_v11 = vmul.f32 %v2739_v30, %v2707_v54 }
 0x215   : > { %v2755_v26 = vpack.c.bf16 %v2747_v11, %v2747_v11 }
 0x217   : > { %2764 = vst.msk [vmem:[%s5262_s29 + $0x1c] sm:$0xf] %vm2756_vm1, %v2755_v26 }
 0x218 PF: > { %s13_s12 = sadd.s32 1, %s3701_s12  }
 0x219   : > { %p10_p5 = scmp.ge.s32.totalorder %s13_s12, 4  }
 0x21b   :  { %12 = sbr.rel (!%p10_p5) target bundleno = 1 (0x1), region = 67 }

// kernel: mobilenet_v3_forward.20
= control target key start
LH: loop header
LB: loop body
LE: loop exit
PB: predicated region body
PF: predicated region fallthrough
CT: control target
= control target key end

     0   :  { %vm39_vm0 = vcmask 1043456   ;;  %v110_v0 = vmov 0.0   ;;  %vm111_vm1 = vmmov 0   ;;  %vm35_vm2 = vcmask 195584   ;;  %s147_s1 = inlined_call_operand.vmem [shape: bf16[24,88], index: 1, kind: input, shape index: {}]   ;;  %s148_s0 = inlined_call_operand.vmem [shape: bf16[8,24], index: 0, kind: input, shape index: {}]   ;;  %s149_s2 = inlined_call_operand.vmem [shape: f32[1,88], index: 2, kind: input, shape index: {}]   ;;  %s150_s3 = inlined_call_operand.vmem [shape: bf16[8,88], index: 3, kind: output, shape index: {}]  }
   0x1   :  { %98 = vmatprep.subr.bf16.mxu0 %v110_v0  ;;  %v108_v1 = vld [vmem:[%s147_s1 + $0x8] ss:$0 sps:$4 sm:$0xff]   ;;  %102 = vmatprep.mubr.msk.bf16.mxu0 %vm111_vm1, %v110_v0  ;;  %v109_v3 = vld [vmem:[%s147_s1] sm:$0xff]   ;;  %vm85_vm3 = vcmask 715776  }
   0x2   :  { %v41_v2 = vsel %vm39_vm0, %v108_v1, 0  ;;  %v15_v4 = vld [vmem:[%s148_s0] sm:$0xf] }
   0x3   :  { %99 = vmatpush3.bf16.msra.mxu0 %v41_v2  ;;  %v91_v5 = vld [vmem:[%s149_s2] ss:$0 sm:$0xff] }
   0x4   :  { %100 = vmatprep.subr.bf16.mxu0 %v110_v0 }
   0x7   :  { %101 = vmatpush3.bf16.msra.mxu0 %v109_v3 }
   0xa   :  { %103 = vmatmul.mubr.msk.bf16.vlgmr.msra.gmra.mxu0 %vm35_vm2, %v15_v4 }
  0xca   :  { %v77_v6 = vpop.f32.mrf.mxu0 }
  0xcb   :  { %v78_v7 = vadd.f32 %v91_v5, %v77_v6 }
  0xcc   :  { %v104_v8 = vpop.f32.mrf.mxu0 }
  0xcd   :  { %v83_v9 = vmax.f32 %v78_v7, 0.0 }
  0xce   :  { %v80_v10 = vpop.f32.mrf.mxu0 }
  0xcf   :  { %v84_v11 = vpack.c.bf16 %v83_v9, %v83_v9 }
  0xd0   :  { %v105_v12 = vpop.f32.mrf.mxu0 }
  0xd1   :  { %86 = vst.msk [vmem:[%s150_s3] sm:$0xf] %vm85_vm3, %v84_v11 }

// kernel: mobilenet_v3_forward.18
= control target key start
LH: loop header
LB: loop body
LE: loop exit
PB: predicated region body
PF: predicated region fallthrough
CT: control target
= control target key end

     0   :  { %s458_s12 = smov 0   ;;  %s531_s0 = inlined_call_operand.vmem [shape: bf16[8,3,3,72], index: 0, kind: input, shape index: {}]   ;;  %s532_s1 = inlined_call_operand.vmem [shape: bf16[9,72], index: 1, kind: input, shape index: {}]   ;;  %s533_s2 = inlined_call_operand.vmem [shape: f32[1,72], index: 2, kind: input, shape index: {}]   ;;  %s534_s3 = inlined_call_operand.vmem [shape: bf16[2,2,2,72], index: 3, kind: output, shape index: {}]  }
   0x1 LB: > { %s464_s13 = sadd.s32 4294967295, %s436_s12   ;;  %p394_p0 = scmp.ge.s32.totalorder %s436_s12, 1  ;;  %s436_s12 = sphi %s458_s12, %s13_s12  }
   0x2   : > { %p139_p1 = scmp.lt.s32.totalorder %s436_s12, 3 }
   0x4   : > { %p140_p2 = pnand %p394_p0, %p139_p1 }
   0x5   : > { %s395_s14 = sshll.u32 (!%p140_p2), %s464_s13, 2  ;;  %p170_p4 = scmp.lt.s32.totalorder (!%p140_p2), %s464_s13, 1 }
   0x6   : > { %143 = sbr.rel (%p140_p2) target bundleno = 50 (0x32), region = 32  ;;  %p164_p3 = scmp.lt.s32.totalorder (!%p140_p2), %s395_s14, 7 }
   0xb   : > { %v178_v0 = vld [vmem:[%s532_s1] sm:$0x1]  ;;  %v180_v1 = vlaneseq  ;;  %v205_v2 = vld [vmem:[%s532_s1] sm:$0x2]  ;;  %s536_s14 = smov (!%p164_p3, %s395_s14), 7  ;;  %s538_s13 = smov (!%p170_p4, %s464_s13), 1 }
   0xc   : > { %v179_v4 = vunpack.c.l.bf16 %v178_v0  ;;  %v241_v5 = vld [vmem:[%s532_s1] sm:$0x4]  ;;  %v206_v8 = vunpack.c.l.bf16 %v205_v2  ;;  %s421_s21 = smul.u32 6, %s536_s14  ;;  %v487_v11 = vld [vmem:[%s532_s1] sm:$0x8]  ;;  %s397_s4 = sshll.u32 %s538_s13, 1 }
   0xd   : > { %v475_v3 = vshrl.u32 %v180_v1, 7  ;;  %v242_v12 = vunpack.c.l.bf16 %v241_v5  ;;  %v303_v17 = vld [vmem:[%s532_s1 + $0x4] sm:$0x1]  ;;  %v277_v22 = vunpack.c.l.bf16 %v487_v11  ;;  %s173_s7 = scalar_lea.vmem %s534_s3, %s397_s4  ;;  %vm334_vm0 = vcmask 581632  }
   0xe   : > { %s493_s26 = scalar_lea.vmem %s531_s0, %s421_s21  ;;  %v304_v39 = vunpack.c.l.bf16 %v303_v17 }
   0xf   : > { %v182_v6 = vsub.s32 0, %v475_v3  ;;  %v195_v7 = vsub.s32 1, %v475_v3  ;;  %v209_v9 = vsub.s32 2, %v475_v3  ;;  %v230_v10 = vsub.s32 3, %v475_v3  ;;  %v174_v18 = vld [vmem:[%s493_s26] sm:$0x1] }
  0x10   : > { %v257_v13 = vsub.s32 5, %v475_v3  ;;  %v245_v16 = vsub.s32 4, %v475_v3  ;;  %v175_v19 = vld [vmem:[%s493_s26 + $0x2] sm:$0x1]  ;;  %v398_v20 = vld [vmem:[%s493_s26 + $0x6] sm:$0x1]  ;;  %v176_v23 = vunpack.c.l.bf16 %v174_v18 }
  0x11   : > { %v183_v14 = vrot.slane %v179_v4, %v182_v6  ;;  %v196_v15 = vrot.slane %v179_v4, %v195_v7  ;;  %v210_v21 = vrot.slane %v206_v8, %v209_v9  ;;  %v177_v24 = vunpack.c.l.bf16 %v175_v19  ;;  %v399_v25 = vld [vmem:[%s493_s26 + $0x8] sm:$0x1]  ;;  %v201_v27 = vld [vmem:[%s493_s26] sm:$0x3]  ;;  %v402_v28 = vld [vmem:[%s493_s26 + $0xc] sm:$0x1] }
  0x12   : > { %v191_v26 = vunpack.c.l.bf16 %v398_v20  ;;  %v231_v29 = vrot.slane %v206_v8, %v230_v10  ;;  %v192_v30 = vunpack.c.l.bf16 %v399_v25  ;;  %v203_v31 = vunpack.c.l.bf16 %v201_v27  ;;  %v404_v33 = vld [vmem:[%s493_s26 + $0x12] sm:$0x1]  ;;  %v406_v34 = vld [vmem:[%s493_s26 + $0xc] sm:$0x3]  ;;  %v202_v44 = vld [vmem:[%s493_s26 + $0x2] sm:$0x3] }
  0x13   : > { %v226_v32 = vunpack.c.l.bf16 %v402_v28  ;;  %v258_v35 = vrot.slane %v242_v12, %v257_v13  ;;  %v184_v36 = vmul.f32 %v183_v14, %v176_v23  ;;  %v280_v38 = vsub.s32 6, %v475_v3  ;;  %v403_v45 = vld [vmem:[%s493_s26 + $0xe] sm:$0x1]  ;;  %v410_v49 = vld [vmem:[%s493_s26 + $0x2] sm:$0x1] }
  0x14   : > { %v197_v37 = vmul.f32 %v196_v15, %v191_v26  ;;  %v211_v40 = vmul.f32 %v210_v21, %v203_v31  ;;  %v239_v41 = vunpack.c.l.bf16 %v404_v33  ;;  %v246_v42 = vrot.slane %v242_v12, %v245_v16  ;;  %v414_v50 = vld [vmem:[%s493_s26 + $0x2] sm:$0x3]  ;;  %v405_v55 = vld [vmem:[%s493_s26 + $0x14] sm:$0x1]  ;;  %v407_v56 = vld [vmem:[%s493_s26 + $0xe] sm:$0x3] }
  0x15   : > { %v253_v43 = vunpack.c.l.bf16 %v406_v34  ;;  %v185_v46 = vmul.f32 %v183_v14, %v177_v24  ;;  %v198_v47 = vmul.f32 %v196_v15, %v192_v30  ;;  %v232_v52 = vmul.f32 %v231_v29, %v226_v32  ;;  %v412_v58 = vld [vmem:[%s493_s26 + $0x8] sm:$0x1]  ;;  %v411_v11 = vld [vmem:[%s493_s26 + $0x4] sm:$0x1]  ;;  %v413_v18 = vld [vmem:[%s493_s26 + $0xa] sm:$0x1] }
  0x16   : > { %v199_v48 = vadd.f32 %v197_v37, %v184_v36  ;;  %v400_v51 = vrot.slane %v211_v40, 9  ;;  %v293_v54 = vsub.s32 7, %v475_v3  ;;  %v281_v57 = vrot.slane %v277_v22, %v280_v38  ;;  %v415_v12 = vld [vmem:[%s493_s26 + $0x4] sm:$0x3]  ;;  %v418_v34 = vld [vmem:[%s533_s2] ss:$0 sm:$0xff] }
  0x17   : > { %v259_v53 = vmul.f32 %v258_v35, %v253_v43  ;;  %v308_v59 = vrot.slane %v304_v39, %v182_v6  ;;  %v204_v60 = vunpack.c.l.bf16 %v202_v44  ;;  %v227_v61 = vunpack.c.l.bf16 %v403_v45 }
  0x18   : > { %v221_v62 = vadd.f32 %v400_v51, %v199_v48  ;;  %v247_v63 = vmul.f32 %v246_v42, %v239_v41  ;;  %v274_v0 = vunpack.c.l.bf16 %v410_v49  ;;  %v301_v1 = vunpack.c.l.bf16 %v414_v50 }
  0x19   : > { %v200_v2 = vadd.f32 %v198_v47, %v185_v46  ;;  %v212_v4 = vmul.f32 %v210_v21, %v204_v60  ;;  %v240_v5 = vunpack.c.l.bf16 %v405_v55  ;;  %v254_v7 = vunpack.c.l.bf16 %v407_v56 }
  0x1a   : > { %v234_v8 = vadd.f32 %v232_v52, %v221_v62  ;;  %v408_v3 = vrot.slane %v259_v53, 9  ;;  %v289_v9 = vunpack.c.l.bf16 %v412_v58  ;;  %v294_v10 = vrot.slane %v277_v22, %v293_v54 }
  0x1b   : > { %v401_v6 = vrot.slane %v212_v4, 9  ;;  %v233_v13 = vmul.f32 %v231_v29, %v227_v61  ;;  %v260_v14 = vmul.f32 %v258_v35, %v254_v7  ;;  %v282_v16 = vmul.f32 %v281_v57, %v274_v0 }
  0x1c   : > { %v249_v15 = vadd.f32 %v247_v63, %v234_v8  ;;  %v309_v17 = vmul.f32 %v308_v59, %v301_v1  ;;  %v248_v20 = vmul.f32 %v246_v42, %v240_v5  ;;  %v275_v21 = vunpack.c.l.bf16 %v411_v11 }
  0x1d   : > { %v222_v19 = vadd.f32 %v401_v6, %v200_v2  ;;  %v302_v23 = vunpack.c.l.bf16 %v415_v12  ;;  %v295_v25 = vmul.f32 %v294_v10, %v289_v9  ;;  %v409_v27 = vrot.slane %v260_v14, 9 }
  0x1e   : > { %v269_v24 = vadd.f32 %v408_v3, %v249_v15  ;;  %v290_v22 = vunpack.c.l.bf16 %v413_v18  ;;  %v416_v30 = vrot.slane %v309_v17, 9  ;;  %v283_v29 = vmul.f32 %v281_v57, %v275_v21 }
  0x1f   : > { %v235_v26 = vadd.f32 %v233_v13, %v222_v19  ;;  %v310_v32 = vmul.f32 %v308_v59, %v302_v23 }
  0x20   : > { %v284_v28 = vadd.f32 %v282_v16, %v269_v24  ;;  %v296_v36 = vmul.f32 %v294_v10, %v290_v22 }
  0x21   : > { %v250_v31 = vadd.f32 %v248_v20, %v235_v26  ;;  %v417_v39 = vrot.slane %v310_v32, 9 }
  0x22   : > { %v297_v33 = vadd.f32 %v295_v25, %v284_v28 }
  0x23   : > { %v270_v35 = vadd.f32 %v409_v27, %v250_v31 }
  0x24   : > { %v319_v37 = vadd.f32 %v416_v30, %v297_v33 }
  0x25   : > { %v285_v38 = vadd.f32 %v283_v29, %v270_v35 }
  0x26   : > { %v328_v40 = vadd.f32 %v418_v34, %v319_v37 }
  0x27   : > { %v298_v41 = vadd.f32 %v296_v36, %v285_v38 }
  0x28   : > { %v330_v42 = vmax.f32 %v328_v40, 0.0 }
  0x29   : > { %v320_v43 = vadd.f32 %v417_v39, %v298_v41 }
  0x2a   : > { %v332_v44 = vpack.c.bf16 %v330_v42, %v330_v42 }
  0x2b   : > { %v329_v45 = vadd.f32 %v418_v34, %v320_v43 }
  0x2c   : > { %335 = vst.msk [vmem:[%s173_s7] sm:$0x1] %vm334_vm0, %v332_v44 }
  0x2d   : > { %v331_v46 = vmax.f32 %v329_v45, 0.0 }
  0x2f   : > { %v333_v47 = vpack.c.bf16 %v331_v46, %v331_v46 }
  0x31   : > { %336 = vst.msk [vmem:[%s173_s7 + $0x1] sm:$0x1] %vm334_vm0, %v333_v47 }
  0x32 PF: > { %s13_s12 = sadd.s32 1, %s436_s12  }
  0x33   : > { %p10_p5 = scmp.ge.s32.totalorder %s13_s12, 4  }
  0x35   :  { %12 = sbr.rel (!%p10_p5) target bundleno = 1 (0x1), region = 67 }

// kernel: mobilenet_v3_forward.19
= control target key start
LH: loop header
LB: loop body
LE: loop exit
PB: predicated region body
PF: predicated region fallthrough
CT: control target
= control target key end

     0   :  { %vm63_vm0 = vcmask 1043456   ;;  %v148_v0 = vmov 0.0   ;;  %vm149_vm1 = vmmov 0   ;;  %vm59_vm2 = vcmask 588800   ;;  %s194_s1 = inlined_call_operand.vmem [shape: bf16[72,24], index: 1, kind: input, shape index: {}]   ;;  %s195_s0 = inlined_call_operand.vmem [shape: bf16[8,72], index: 0, kind: input, shape index: {}]   ;;  %s196_s2 = inlined_call_operand.vmem [shape: f32[1,24], index: 2, kind: input, shape index: {}]   ;;  %s197_s3 = inlined_call_operand.vmem [shape: bf16[8,24], index: 3, kind: output, shape index: {}]  }
   0x1   :  { %127 = vmatprep.subr.bf16.mxu0 %v148_v0  ;;  %v143_v1 = vld [vmem:[%s194_s1 + $0x20] ss:$0 sps:$4 sm:$0xff]   ;;  %137 = vmatprep.mubr.msk.bf16.mxu0 %vm149_vm1, %v148_v0  ;;  %v144_v3 = vld [vmem:[%s194_s1 + $0x18] sm:$0xff]   ;;  %v145_v4 = vld [vmem:[%s194_s1 + $0x10] sm:$0xff]   ;;  %vm108_vm3 = vcmask 191488  }
   0x2   :  { %v65_v2 = vsel %vm63_vm0, %v143_v1, 0  ;;  %v146_v5 = vld [vmem:[%s194_s1 + $0x8] sm:$0xff]   ;;  %v147_v6 = vld [vmem:[%s194_s1] sm:$0xff]  }
   0x3   :  { %128 = vmatpush3.bf16.msra.mxu0 %v65_v2  ;;  %v15_v7 = vld [vmem:[%s195_s0] sm:$0xf] }
   0x4   :  { %129 = vmatprep.subr.bf16.mxu0 %v148_v0  ;;  %v114_v8 = vld [vmem:[%s196_s2] ss:$0 sm:$0xff] }
   0x7   :  { %130 = vmatpush3.bf16.msra.mxu0 %v144_v3 }
   0x8   :  { %131 = vmatprep.subr.bf16.mxu0 %v148_v0 }
   0xb   :  { %132 = vmatpush3.bf16.msra.mxu0 %v145_v4 }
   0xc   :  { %133 = vmatprep.subr.bf16.mxu0 %v148_v0 }
   0xf   :  { %134 = vmatpush3.bf16.msra.mxu0 %v146_v5 }
  0x10   :  { %135 = vmatprep.subr.bf16.mxu0 %v148_v0 }
  0x13   :  { %136 = vmatpush3.bf16.msra.mxu0 %v147_v6 }
  0x16   :  { %138 = vmatmul.mubr.msk.bf16.vlgmr.msra.gmra.mxu0 %vm59_vm2, %v15_v7 }
  0xd6   :  { %v101_v9 = vpop.f32.mrf.mxu0 }
  0xd7   :  { %v102_v10 = vadd.f32 %v114_v8, %v101_v9 }
  0xd8   :  { %v139_v11 = vpop.f32.mrf.mxu0 }
  0xd9   :  { %v107_v12 = vpack.c.bf16 %v102_v10, %v102_v10 }
  0xda   :  { %v104_v13 = vpop.f32.mrf.mxu0 }
  0xdb   :  { %109 = vst.msk [vmem:[%s197_s3] sm:$0xf] %vm108_vm3, %v107_v12 }
  0xdc   :  { %v140_v14 = vpop.f32.mrf.mxu0 }

// kernel: mobilenet_v3_forward.22
= control target key start
LH: loop header
LB: loop body
LE: loop exit
PB: predicated region body
PF: predicated region fallthrough
CT: control target
= control target key end

     0   :  { %vm74_vm0 = vcmask 1043456   ;;  %v167_v0 = vmov 0.0   ;;  %vm168_vm1 = vmmov 0   ;;  %vm70_vm2 = vcmask 719872   ;;  %s224_s1 = inlined_call_operand.vmem [shape: bf16[88,24], index: 1, kind: input, shape index: {}]   ;;  %s225_s0 = inlined_call_operand.vmem [shape: bf16[8,88], index: 0, kind: input, shape index: {}]   ;;  %s226_s3 = inlined_call_operand.vmem [shape: bf16[8,24], index: 3, kind: input, shape index: {}]   ;;  %s227_s2 = inlined_call_operand.vmem [shape: f32[1,24], index: 2, kind: input, shape index: {}]   ;;  %s228_s4 = inlined_call_operand.vmem [shape: bf16[8,24], index: 4, kind: output, shape index: {}]  }
   0x1   :  { %143 = vmatprep.subr.bf16.mxu0 %v167_v0  ;;  %v161_v1 = vld [vmem:[%s224_s1 + $0x28] ss:$0 sps:$4 sm:$0xff]   ;;  %155 = vmatprep.mubr.msk.bf16.mxu0 %vm168_vm1, %v167_v0  ;;  %v162_v3 = vld [vmem:[%s224_s1 + $0x20] sm:$0xff]   ;;  %v163_v4 = vld [vmem:[%s224_s1 + $0x18] sm:$0xff]   ;;  %vm122_vm3 = vcmask 191488  }
   0x2   :  { %v76_v2 = vsel %vm74_vm0, %v161_v1, 0  ;;  %v164_v5 = vld [vmem:[%s224_s1 + $0x10] sm:$0xff]   ;;  %v165_v6 = vld [vmem:[%s224_s1 + $0x8] sm:$0xff]   ;;  %v166_v7 = vld [vmem:[%s224_s1] sm:$0xff]  }
   0x3   :  { %144 = vmatpush3.bf16.msra.mxu0 %v76_v2  ;;  %v18_v8 = vld [vmem:[%s225_s0] sm:$0xf] }
   0x4   :  { %145 = vmatprep.subr.bf16.mxu0 %v167_v0  ;;  %v118_v9 = vld [vmem:[%s226_s3] sm:$0xf] }
   0x5   :  { %v128_v10 = vld [vmem:[%s227_s2] ss:$0 sm:$0xff]  ;;  %v119_v11 = vunpack.c.l.bf16 %v118_v9 }
   0x7   :  { %146 = vmatpush3.bf16.msra.mxu0 %v162_v3 }
   0x8   :  { %147 = vmatprep.subr.bf16.mxu0 %v167_v0 }
   0xb   :  { %148 = vmatpush3.bf16.msra.mxu0 %v163_v4 }
   0xc   :  { %149 = vmatprep.subr.bf16.mxu0 %v167_v0 }
   0xf   :  { %150 = vmatpush3.bf16.msra.mxu0 %v164_v5 }
  0x10   :  { %151 = vmatprep.subr.bf16.mxu0 %v167_v0 }
  0x13   :  { %152 = vmatpush3.bf16.msra.mxu0 %v165_v6 }
  0x14   :  { %153 = vmatprep.subr.bf16.mxu0 %v167_v0 }
  0x17   :  { %154 = vmatpush3.bf16.msra.mxu0 %v166_v7 }
  0x1a   :  { %156 = vmatmul.mubr.msk.bf16.vlgmr.msra.gmra.mxu0 %vm70_vm2, %v18_v8 }
  0xda   :  { %v112_v12 = vpop.f32.mrf.mxu0 }
  0xdb   :  { %v113_v13 = vadd.f32 %v128_v10, %v112_v12 }
  0xdc   :  { %v157_v14 = vpop.f32.mrf.mxu0 }
  0xdd   :  { %v120_v15 = vadd.f32 %v119_v11, %v113_v13 }
  0xde   :  { %v115_v16 = vpop.f32.mrf.mxu0 }
  0xdf   :  { %v121_v17 = vpack.c.bf16 %v120_v15, %v120_v15 }
  0xe0   :  { %v158_v18 = vpop.f32.mrf.mxu0 }
  0xe1   :  { %123 = vst.msk [vmem:[%s228_s4] sm:$0xf] %vm122_vm3, %v121_v17 }

// kernel: mobilenet_v3_forward.23
= control target key start
LH: loop header
LB: loop body
LE: loop exit
PB: predicated region body
PF: predicated region fallthrough
CT: control target
= control target key end

     0   :  { %vm39_vm0 = vcmask 1043456   ;;  %v114_v0 = vmov 0.0   ;;  %vm115_vm1 = vmmov 0   ;;  %vm35_vm2 = vcmask 195584   ;;  %s151_s1 = inlined_call_operand.vmem [shape: bf16[24,96], index: 1, kind: input, shape index: {}]   ;;  %s152_s0 = inlined_call_operand.vmem [shape: bf16[8,24], index: 0, kind: input, shape index: {}]   ;;  %s153_s2 = inlined_call_operand.vmem [shape: f32[1,96], index: 2, kind: input, shape index: {}]   ;;  %s154_s3 = inlined_call_operand.vmem [shape: bf16[8,96], index: 3, kind: output, shape index: {}]  }
   0x1   :  { %102 = vmatprep.subr.bf16.mxu0 %v114_v0  ;;  %v112_v1 = vld [vmem:[%s151_s1 + $0x8] ss:$0 sps:$4 sm:$0xff]   ;;  %106 = vmatprep.mubr.msk.bf16.mxu0 %vm115_vm1, %v114_v0  ;;  %v113_v3 = vld [vmem:[%s151_s1] sm:$0xff]   ;;  %vm89_vm3 = vcmask 781312  }
   0x2   :  { %v41_v2 = vsel %vm39_vm0, %v112_v1, 0  ;;  %v15_v4 = vld [vmem:[%s152_s0] sm:$0xf] }
   0x3   :  { %103 = vmatpush3.bf16.msra.mxu0 %v41_v2  ;;  %v95_v5 = vld [vmem:[%s153_s2] ss:$0 sm:$0xff] }
   0x4   :  { %104 = vmatprep.subr.bf16.mxu0 %v114_v0 }
   0x7   :  { %105 = vmatpush3.bf16.msra.mxu0 %v113_v3 }
   0xa   :  { %107 = vmatmul.mubr.msk.bf16.vlgmr.msra.gmra.mxu0 %vm35_vm2, %v15_v4 }
  0xca   :  { %v77_v6 = vpop.f32.mrf.mxu0 }
  0xcb   :  { %v78_v7 = vadd.f32 %v95_v5, %v77_v6 }
  0xcc   :  { %v108_v8 = vpop.f32.mrf.mxu0 }
  0xcd   :  { %v83_v9 = vadd.f32 3.0, %v78_v7 }
  0xce   :  { %v80_v10 = vpop.f32.mrf.mxu0 }
  0xcf   :  { %v84_v11 = vmax.f32 %v83_v9, 0.0 }
  0xd0   :  { %v109_v12 = vpop.f32.mrf.mxu0 }
  0xd1   :  { %v85_v13 = vmin.f32 %v84_v11, 6.0 }
  0xd3   :  { %v86_v14 = vmul.f32 0.16666667, %v85_v13 }
  0xd5   :  { %v87_v15 = vmul.f32 %v86_v14, %v78_v7 }
  0xd7   :  { %v88_v16 = vpack.c.bf16 %v87_v15, %v87_v15 }
  0xd9   :  { %90 = vst.msk [vmem:[%s154_s3] sm:$0xf] %vm89_vm3, %v88_v16 }

// kernel: mobilenet_v3_forward.21
= control target key start
LH: loop header
LB: loop body
LE: loop exit
PB: predicated region body
PF: predicated region fallthrough
CT: control target
= control target key end

     0   :  { %s775_s12 = smov 0   ;;  %s957_s0 = inlined_call_operand.vmem [shape: bf16[2,6,6,88], index: 0, kind: input, shape index: {}]   ;;  %s958_s1 = inlined_call_operand.vmem [shape: bf16[25,88], index: 1, kind: input, shape index: {}]   ;;  %s959_s2 = inlined_call_operand.vmem [shape: f32[1,88], index: 2, kind: input, shape index: {}]   ;;  %s960_s3 = inlined_call_operand.vmem [shape: bf16[2,2,2,88], index: 3, kind: output, shape index: {}]  }
   0x1 LB: > { %s688_s13 = sadd.s32 4294967295, %s753_s12   ;;  %p692_p0 = scmp.ge.s32.totalorder %s753_s12, 1  ;;  %s753_s12 = sphi %s775_s12, %s13_s12  }
   0x2   : > { %p137_p1 = scmp.lt.s32.totalorder %s753_s12, 3 }
   0x4   : > { %p138_p2 = pnand %p692_p0, %p137_p1 }
   0x5   : > { %p160_p3 = scmp.lt.s32.totalorder (!%p138_p2), %s688_s13, 1 }
   0x6   : > { %141 = sbr.rel (%p138_p2) target bundleno = 83 (0x53), region = 32 }
   0xb   : > { %v173_v0 = vld [vmem:[%s958_s1] sm:$0x1]  ;;  %v175_v1 = vlaneseq  ;;  %v205_v2 = vld [vmem:[%s958_s1] sm:$0x2]  ;;  %v243_v3 = vld [vmem:[%s958_s1] sm:$0x4] }
   0xc   : > { %v276_v4 = vld [vmem:[%s958_s1] sm:$0x8]  ;;  %v314_v5 = vld [vmem:[%s958_s1 + $0x4] sm:$0x1]  ;;  %s962_s13 = smov (!%p160_p3, %s688_s13), 1  ;;  %v174_v6 = vunpack.c.l.bf16 %v173_v0  ;;  %v206_v8 = vunpack.c.l.bf16 %v205_v2  ;;  %v244_v9 = vunpack.c.l.bf16 %v243_v3  ;;  %vm632_vm0 = vcmask 712704  }
   0xd   : > { %v176_v7 = vshrl.u32 %v175_v1, 7  ;;  %v803_v10 = vld [vmem:[%s958_s1 + $0x4] sm:$0x2]  ;;  %v808_v11 = vld [vmem:[%s958_s1 + $0x4] sm:$0x4]  ;;  %v277_v12 = vunpack.c.l.bf16 %v276_v4  ;;  %v315_v13 = vunpack.c.l.bf16 %v314_v5  ;;  %s738_s28 = smul.u32 24, %s962_s13 }
   0xe   : > { %v354_v14 = vunpack.c.l.bf16 %v803_v10  ;;  %v386_v15 = vunpack.c.l.bf16 %v808_v11  ;;  %s694_s21 = sshll.u32 %s962_s13, 1 }
   0xf   : > { %v813_v16 = vsub.s32 0, %v176_v7  ;;  %v815_v17 = vsub.s32 1, %v176_v7  ;;  %v817_v18 = vsub.s32 2, %v176_v7  ;;  %v819_v19 = vsub.s32 3, %v176_v7  ;;  %s832_s4 = scalar_lea.vmem %s957_s0, %s738_s28  ;;  %s168_s24 = scalar_lea.vmem %s960_s3, %s694_s21 }
  0x10   : > { %v821_v20 = vsub.s32 4, %v176_v7  ;;  %v823_v21 = vsub.s32 5, %v176_v7  ;;  %v825_v22 = vsub.s32 6, %v176_v7  ;;  %v827_v23 = vsub.s32 7, %v176_v7  ;;  %v169_v28 = vld [vmem:[%s832_s4] sm:$0x1] }
  0x11   : > { %v178_v24 = vrot.slane %v174_v6, %v813_v16  ;;  %v190_v25 = vrot.slane %v174_v6, %v815_v17  ;;  %v210_v26 = vrot.slane %v206_v8, %v817_v18  ;;  %v228_v27 = vrot.slane %v206_v8, %v819_v19  ;;  %v170_v29 = vld [vmem:[%s832_s4 + $0x4] sm:$0x1]  ;;  %v183_v30 = vld [vmem:[%s832_s4] sm:$0x3]  ;;  %v202_v40 = vld [vmem:[%s832_s4 + $0x4] sm:$0x2] }
  0x12   : > { %v248_v31 = vrot.slane %v244_v9, %v821_v20  ;;  %v267_v32 = vrot.slane %v244_v9, %v823_v21  ;;  %v281_v33 = vrot.slane %v277_v12, %v825_v22  ;;  %v845_v34 = vrot.slane %v277_v12, %v827_v23  ;;  %v184_v37 = vld [vmem:[%s832_s4 + $0x4] sm:$0x3]  ;;  %v201_v39 = vld [vmem:[%s832_s4] sm:$0x2]  ;;  %v239_v47 = vld [vmem:[%s832_s4] sm:$0x4] }
  0x13   : > { %v171_v35 = vunpack.c.l.bf16 %v169_v28  ;;  %v172_v36 = vunpack.c.l.bf16 %v170_v29  ;;  %v185_v38 = vunpack.c.l.bf16 %v183_v30  ;;  %v851_v41 = vrot.slane %v315_v13, %v813_v16  ;;  %v221_v45 = vld [vmem:[%s832_s4] sm:$0x6]  ;;  %v222_v46 = vld [vmem:[%s832_s4 + $0x4] sm:$0x6]  ;;  %v695_v62 = vld [vmem:[%s832_s4 + $0x4] sm:$0x1] }
  0x14   : > { %v186_v42 = vunpack.c.l.bf16 %v184_v37  ;;  %v203_v43 = vunpack.c.l.bf16 %v201_v39  ;;  %v204_v44 = vunpack.c.l.bf16 %v202_v40  ;;  %v857_v48 = vrot.slane %v315_v13, %v815_v17  ;;  %v240_v53 = vld [vmem:[%s832_s4 + $0x4] sm:$0x4]  ;;  %v696_v63 = vld [vmem:[%s832_s4 + $0x8] sm:$0x1]  ;;  %v697_v4 = vld [vmem:[%s832_s4 + $0x4] sm:$0x3] }
  0x15   : > { %v179_v49 = vmul.f32 %v178_v24, %v171_v35  ;;  %v180_v50 = vmul.f32 %v178_v24, %v172_v36  ;;  %v191_v51 = vmul.f32 %v190_v25, %v185_v38  ;;  %v223_v52 = vunpack.c.l.bf16 %v221_v45  ;;  %v698_v9 = vld [vmem:[%s832_s4 + $0x8] sm:$0x3] }
  0x16   : > { %v192_v54 = vmul.f32 %v190_v25, %v186_v42  ;;  %v211_v55 = vmul.f32 %v210_v26, %v203_v43  ;;  %v212_v56 = vmul.f32 %v210_v26, %v204_v44  ;;  %v224_v57 = vunpack.c.l.bf16 %v222_v46  ;;  %v699_v26 = vld [vmem:[%s832_s4 + $0x4] sm:$0x2]  ;;  %v700_v28 = vld [vmem:[%s832_s4 + $0x8] sm:$0x2] }
  0x17   : > { %v195_v58 = vrot.slane %v191_v51, 1  ;;  %v229_v59 = vmul.f32 %v228_v27, %v223_v52  ;;  %v241_v60 = vunpack.c.l.bf16 %v239_v47  ;;  %v242_v61 = vunpack.c.l.bf16 %v240_v53  ;;  %v702_v37 = vld [vmem:[%s832_s4 + $0x8] sm:$0x6]  ;;  %v703_v51 = vld [vmem:[%s832_s4 + $0x4] sm:$0x4] }
  0x18   : > { %v196_v0 = vrot.slane %v192_v54, 1  ;;  %v215_v1 = vrot.slane %v211_v55, 2  ;;  %v216_v2 = vrot.slane %v212_v56, 2  ;;  %v230_v3 = vmul.f32 %v228_v27, %v224_v57  ;;  %v701_v27 = vld [vmem:[%s832_s4 + $0x4] sm:$0x6] }
  0x19   : > { %v199_v5 = vadd.f32 %v195_v58, %v179_v49  ;;  %v233_v6 = vrot.slane %v229_v59, 3  ;;  %v249_v7 = vmul.f32 %v248_v31, %v241_v60  ;;  %v250_v8 = vmul.f32 %v248_v31, %v242_v61  ;;  %v705_v60 = vld [vmem:[%s832_s4 + $0x8] sm:$0x1] }
  0x1a   : > { %v200_v12 = vadd.f32 %v196_v0, %v180_v50  ;;  %v234_v13 = vrot.slane %v230_v3, 3  ;;  %v262_v24 = vunpack.c.l.bf16 %v695_v62  ;;  %v263_v25 = vunpack.c.l.bf16 %v696_v63 }
  0x1b   : > { %v219_v29 = vadd.f32 %v215_v1, %v199_v5  ;;  %v253_v30 = vrot.slane %v249_v7, 4  ;;  %v254_v35 = vrot.slane %v250_v8, 4  ;;  %v274_v36 = vunpack.c.l.bf16 %v697_v4  ;;  %v707_v1 = vld [vmem:[%s832_s4 + $0x8] sm:$0x3]  ;;  %v708_v5 = vld [vmem:[%s832_s4 + $0xc] sm:$0x3] }
  0x1c   : > { %v220_v38 = vadd.f32 %v216_v2, %v200_v12  ;;  %v268_v39 = vmul.f32 %v267_v32, %v262_v24  ;;  %v269_v40 = vmul.f32 %v267_v32, %v263_v25  ;;  %v275_v42 = vunpack.c.l.bf16 %v698_v9  ;;  %v704_v32 = vld [vmem:[%s832_s4 + $0x8] sm:$0x4]  ;;  %v709_v25 = vld [vmem:[%s832_s4 + $0x8] sm:$0x2] }
  0x1d   : > { %v237_v31 = vadd.f32 %v233_v6, %v219_v29  ;;  %v282_v43 = vmul.f32 %v281_v33, %v274_v36  ;;  %v294_v44 = vunpack.c.l.bf16 %v699_v26  ;;  %v295_v45 = vunpack.c.l.bf16 %v700_v28  ;;  %v711_v36 = vld [vmem:[%s832_s4 + $0x8] sm:$0x6] }
  0x1e   : > { %v238_v46 = vadd.f32 %v234_v13, %v220_v38  ;;  %v283_v47 = vmul.f32 %v281_v33, %v275_v42  ;;  %v312_v49 = vunpack.c.l.bf16 %v701_v27  ;;  %v313_v50 = vunpack.c.l.bf16 %v702_v37  ;;  %v706_v33 = vld [vmem:[%s832_s4 + $0xc] sm:$0x1] }
  0x1f   : > { %v257_v52 = vadd.f32 %v253_v30, %v237_v31  ;;  %v286_v53 = vrot.slane %v282_v43, 1  ;;  %v300_v54 = vmul.f32 %v845_v34, %v294_v44  ;;  %v301_v55 = vmul.f32 %v845_v34, %v295_v45 }
  0x20   : > { %v258_v56 = vadd.f32 %v254_v35, %v238_v46  ;;  %v287_v57 = vrot.slane %v283_v47, 1  ;;  %v320_v58 = vmul.f32 %v851_v41, %v312_v49  ;;  %v321_v59 = vmul.f32 %v851_v41, %v313_v50  ;;  %v710_v35 = vld [vmem:[%s832_s4 + $0xc] sm:$0x2]  ;;  %v713_v46 = vld [vmem:[%s832_s4 + $0x8] sm:$0x4] }
  0x21   : > { %v270_v61 = vadd.f32 %v268_v39, %v257_v52  ;;  %v304_v62 = vrot.slane %v300_v54, 2  ;;  %v305_v63 = vrot.slane %v301_v55, 2  ;;  %v332_v0 = vunpack.c.l.bf16 %v703_v51  ;;  %v712_v39 = vld [vmem:[%s832_s4 + $0xc] sm:$0x6]  ;;  %v423_v49 = vld [vmem:[%s958_s1 + $0x4] sm:$0x8] }
  0x22   : > { %v271_v2 = vadd.f32 %v269_v40, %v258_v56  ;;  %v324_v3 = vrot.slane %v320_v58, 3  ;;  %v325_v4 = vrot.slane %v321_v59, 3  ;;  %v333_v34 = vunpack.c.l.bf16 %v704_v32  ;;  %v714_v47 = vld [vmem:[%s832_s4 + $0xc] sm:$0x4] }
  0x23   : > { %v290_v6 = vadd.f32 %v286_v53, %v270_v61  ;;  %v338_v7 = vmul.f32 %v857_v48, %v332_v0  ;;  %v351_v8 = vunpack.c.l.bf16 %v705_v60  ;;  %v352_v41 = vunpack.c.l.bf16 %v706_v33  ;;  %v716_v61 = vld [vmem:[%s832_s4 + $0x10] sm:$0x1] }
  0x24   : > { %v291_v9 = vadd.f32 %v287_v57, %v271_v2  ;;  %v339_v12 = vmul.f32 %v857_v48, %v333_v34  ;;  %v358_v13 = vrot.slane %v354_v14, %v817_v18  ;;  %v365_v24 = vunpack.c.l.bf16 %v707_v1  ;;  %v715_v57 = vld [vmem:[%s832_s4 + $0xc] sm:$0x1] }
  0x25   : > { %v308_v26 = vadd.f32 %v304_v62, %v290_v6  ;;  %v342_v28 = vrot.slane %v338_v7, 4  ;;  %v366_v29 = vunpack.c.l.bf16 %v708_v5  ;;  %v370_v30 = vrot.slane %v354_v14, %v819_v19  ;;  %v717_v34 = vld [vmem:[%s832_s4 + $0xc] sm:$0x3] }
  0x26   : > { %v309_v27 = vadd.f32 %v305_v63, %v291_v9  ;;  %v343_v37 = vrot.slane %v339_v12, 4  ;;  %v359_v48 = vmul.f32 %v358_v13, %v351_v8  ;;  %v360_v38 = vmul.f32 %v358_v13, %v352_v41  ;;  %v718_v8 = vld [vmem:[%s832_s4 + $0x10] sm:$0x3]  ;;  %v456_v41 = vld [vmem:[%s958_s1 + $0x8] sm:$0x1] }
  0x27   : > { %v328_v40 = vadd.f32 %v324_v3, %v308_v26  ;;  %v371_v42 = vmul.f32 %v370_v30, %v365_v24  ;;  %v372_v31 = vmul.f32 %v370_v30, %v366_v29  ;;  %v383_v43 = vunpack.c.l.bf16 %v709_v25  ;;  %v719_v25 = vld [vmem:[%s832_s4 + $0xc] sm:$0x2]  ;;  %v720_v26 = vld [vmem:[%s832_s4 + $0x10] sm:$0x2] }
  0x28   : > { %v329_v44 = vadd.f32 %v325_v4, %v309_v27  ;;  %v384_v45 = vunpack.c.l.bf16 %v710_v35  ;;  %v390_v10 = vrot.slane %v386_v15, %v821_v20  ;;  %v403_v14 = vunpack.c.l.bf16 %v711_v36  ;;  %v721_v36 = vld [vmem:[%s832_s4 + $0xc] sm:$0x6]  ;;  %v722_v27 = vld [vmem:[%s832_s4 + $0x10] sm:$0x6] }
  0x29   : > { %v346_v50 = vadd.f32 %v342_v28, %v328_v40  ;;  %v375_v51 = vrot.slane %v371_v42, 1  ;;  %v376_v52 = vrot.slane %v372_v31, 1  ;;  %v404_v53 = vunpack.c.l.bf16 %v712_v39  ;;  %v723_v42 = vld [vmem:[%s832_s4 + $0xc] sm:$0x4] }
  0x2a   : > { %v347_v54 = vadd.f32 %v343_v37, %v329_v44  ;;  %v391_v55 = vmul.f32 %v390_v10, %v383_v43  ;;  %v392_v32 = vmul.f32 %v390_v10, %v384_v45  ;;  %v408_v56 = vrot.slane %v386_v15, %v823_v21  ;;  %v494_v37 = vld [vmem:[%s958_s1 + $0x8] sm:$0x2]  ;;  %v724_v10 = vld [vmem:[%s832_s4 + $0x10] sm:$0x4] }
  0x2b   : > { %v361_v58 = vadd.f32 %v359_v48, %v346_v50  ;;  %v421_v59 = vunpack.c.l.bf16 %v713_v46  ;;  %v422_v60 = vunpack.c.l.bf16 %v714_v47  ;;  %v424_v33 = vunpack.c.l.bf16 %v423_v49 }
  0x2c   : > { %v362_v62 = vadd.f32 %v360_v38, %v347_v54  ;;  %v395_v63 = vrot.slane %v391_v55, 2  ;;  %v396_v0 = vrot.slane %v392_v32, 2  ;;  %v409_v1 = vmul.f32 %v408_v56, %v403_v14 }
  0x2d   : > { %v379_v2 = vadd.f32 %v375_v51, %v361_v58  ;;  %v410_v3 = vmul.f32 %v408_v56, %v404_v53  ;;  %v428_v4 = vrot.slane %v424_v33, %v825_v22  ;;  %v442_v11 = vunpack.c.l.bf16 %v715_v57 }
  0x2e   : > { %v380_v15 = vadd.f32 %v376_v52, %v362_v62  ;;  %v413_v5 = vrot.slane %v409_v1, 3  ;;  %v443_v6 = vunpack.c.l.bf16 %v716_v61  ;;  %v447_v7 = vrot.slane %v424_v33, %v827_v23  ;;  %v725_v33 = vld [vmem:[%s832_s4 + $0x10] sm:$0x1]  ;;  %v726_v1 = vld [vmem:[%s832_s4 + $0x14] sm:$0x1] }
  0x2f   : > { %v399_v9 = vadd.f32 %v395_v63, %v379_v2  ;;  %v414_v12 = vrot.slane %v410_v3, 3  ;;  %v429_v13 = vmul.f32 %v428_v4, %v421_v59  ;;  %v430_v24 = vmul.f32 %v428_v4, %v422_v60  ;;  %v728_v2 = vld [vmem:[%s832_s4 + $0x14] sm:$0x3] }
  0x30   : > { %v400_v28 = vadd.f32 %v396_v0, %v380_v15  ;;  %v448_v29 = vmul.f32 %v447_v7, %v442_v11  ;;  %v449_v30 = vmul.f32 %v447_v7, %v443_v6  ;;  %v454_v35 = vunpack.c.l.bf16 %v717_v34  ;;  %v729_v34 = vld [vmem:[%s832_s4 + $0x10] sm:$0x2] }
  0x31   : > { %v417_v48 = vadd.f32 %v413_v5, %v399_v9  ;;  %v433_v38 = vrot.slane %v429_v13, 4  ;;  %v434_v39 = vrot.slane %v430_v24, 4  ;;  %v455_v40 = vunpack.c.l.bf16 %v718_v8  ;;  %v730_v8 = vld [vmem:[%s832_s4 + $0x14] sm:$0x2]  ;;  %v565_v24 = vld [vmem:[%s958_s1 + $0x8] sm:$0x8] }
  0x32   : > { %v418_v31 = vadd.f32 %v414_v12, %v400_v28  ;;  %v457_v43 = vunpack.c.l.bf16 %v456_v41  ;;  %v474_v44 = vunpack.c.l.bf16 %v719_v25  ;;  %v475_v45 = vunpack.c.l.bf16 %v720_v26  ;;  %v731_v25 = vld [vmem:[%s832_s4 + $0x10] sm:$0x6] }
  0x33   : > { %v437_v14 = vadd.f32 %v433_v38, %v417_v48  ;;  %v492_v46 = vunpack.c.l.bf16 %v721_v36  ;;  %v493_v47 = vunpack.c.l.bf16 %v722_v27  ;;  %v495_v49 = vunpack.c.l.bf16 %v494_v37  ;;  %v733_v36 = vld [vmem:[%s832_s4 + $0x10] sm:$0x4] }
  0x34   : > { %v438_v50 = vadd.f32 %v434_v39, %v418_v31  ;;  %v461_v51 = vrot.slane %v457_v43, %v813_v16  ;;  %v479_v52 = vrot.slane %v457_v43, %v815_v17  ;;  %v512_v53 = vunpack.c.l.bf16 %v723_v42  ;;  %v533_v17 = vld [vmem:[%s958_s1 + $0x8] sm:$0x4] }
  0x35   : > { %v450_v54 = vadd.f32 %v448_v29, %v437_v14  ;;  %v499_v55 = vrot.slane %v495_v49, %v817_v18  ;;  %v513_v32 = vunpack.c.l.bf16 %v724_v10  ;;  %v517_v56 = vrot.slane %v495_v49, %v819_v19  ;;  %v727_v18 = vld [vmem:[%s832_s4 + $0x10] sm:$0x3]  ;;  %v734_v10 = vld [vmem:[%s832_s4 + $0x14] sm:$0x4] }
  0x36   : > { %v451_v57 = vadd.f32 %v449_v30, %v438_v50  ;;  %v462_v58 = vmul.f32 %v461_v51, %v454_v35  ;;  %v463_v59 = vmul.f32 %v461_v51, %v455_v40  ;;  %v480_v60 = vmul.f32 %v479_v52, %v474_v44  ;;  %v732_v35 = vld [vmem:[%s832_s4 + $0x14] sm:$0x6] }
  0x37   : > { %v481_v61 = vmul.f32 %v479_v52, %v475_v45  ;;  %v500_v62 = vmul.f32 %v499_v55, %v492_v46  ;;  %v501_v63 = vmul.f32 %v499_v55, %v493_v47  ;;  %v518_v0 = vmul.f32 %v517_v56, %v512_v53  ;;  %v603_v46 = vld [vmem:[%s958_s1 + $0xc] sm:$0x1] }
  0x38   : > { %v466_v19 = vrot.slane %v462_v58, 1  ;;  %v467_v3 = vrot.slane %v463_v59, 1  ;;  %v484_v4 = vrot.slane %v480_v60, 2  ;;  %v519_v11 = vmul.f32 %v517_v56, %v513_v32 }
  0x39   : > { %v485_v15 = vrot.slane %v481_v61, 2  ;;  %v504_v5 = vrot.slane %v500_v62, 3  ;;  %v505_v6 = vrot.slane %v501_v63, 3  ;;  %v522_v7 = vrot.slane %v518_v0, 4 }
  0x3a   : > { %v470_v41 = vadd.f32 %v466_v19, %v450_v54  ;;  %v471_v9 = vadd.f32 %v467_v3, %v451_v57  ;;  %v523_v12 = vrot.slane %v519_v11, 4  ;;  %v531_v13 = vunpack.c.l.bf16 %v725_v33 }
  0x3b   : > { %v532_v26 = vunpack.c.l.bf16 %v726_v1  ;;  %v534_v28 = vunpack.c.l.bf16 %v533_v17  ;;  %v545_v29 = vunpack.c.l.bf16 %v727_v18  ;;  %v546_v30 = vunpack.c.l.bf16 %v728_v2 }
  0x3c   : > { %v488_v27 = vadd.f32 %v484_v4, %v470_v41  ;;  %v489_v37 = vadd.f32 %v485_v15, %v471_v9  ;;  %v563_v48 = vunpack.c.l.bf16 %v729_v34  ;;  %v564_v38 = vunpack.c.l.bf16 %v730_v8 }
  0x3d   : > { %v538_v39 = vrot.slane %v534_v28, %v821_v20  ;;  %v550_v40 = vrot.slane %v534_v28, %v823_v21  ;;  %v566_v42 = vunpack.c.l.bf16 %v565_v24  ;;  %v583_v31 = vunpack.c.l.bf16 %v731_v25 }
  0x3e   : > { %v508_v43 = vadd.f32 %v504_v5, %v488_v27  ;;  %v509_v44 = vadd.f32 %v505_v6, %v489_v37  ;;  %v584_v45 = vunpack.c.l.bf16 %v732_v35  ;;  %v601_v14 = vunpack.c.l.bf16 %v733_v36  ;;  %v735_v5 = vld [vmem:[%s959_s2] ss:$0 sm:$0xff] }
  0x3f   : > { %v539_v47 = vmul.f32 %v538_v39, %v531_v13  ;;  %v540_v49 = vmul.f32 %v538_v39, %v532_v26  ;;  %v551_v50 = vmul.f32 %v550_v40, %v545_v29  ;;  %v552_v51 = vmul.f32 %v550_v40, %v546_v30 }
  0x40   : > { %v526_v52 = vadd.f32 %v522_v7, %v508_v43  ;;  %v527_v53 = vadd.f32 %v523_v12, %v509_v44  ;;  %v570_v20 = vrot.slane %v566_v42, %v825_v22  ;;  %v588_v21 = vrot.slane %v566_v42, %v827_v23 }
  0x41   : > { %v555_v54 = vrot.slane %v551_v50, 1  ;;  %v556_v55 = vrot.slane %v552_v51, 1  ;;  %v602_v32 = vunpack.c.l.bf16 %v734_v10  ;;  %v604_v56 = vunpack.c.l.bf16 %v603_v46 }
  0x42   : > { %v541_v57 = vadd.f32 %v539_v47, %v526_v52  ;;  %v542_v58 = vadd.f32 %v540_v49, %v527_v53  ;;  %v571_v59 = vmul.f32 %v570_v20, %v563_v48  ;;  %v572_v60 = vmul.f32 %v570_v20, %v564_v38 }
  0x43   : > { %v589_v33 = vmul.f32 %v588_v21, %v583_v31  ;;  %v590_v17 = vmul.f32 %v588_v21, %v584_v45  ;;  %v608_v61 = vrot.slane %v604_v56, %v813_v16 }
  0x44   : > { %v559_v62 = vadd.f32 %v555_v54, %v541_v57  ;;  %v560_v63 = vadd.f32 %v556_v55, %v542_v58  ;;  %v575_v0 = vrot.slane %v571_v59, 2  ;;  %v576_v1 = vrot.slane %v572_v60, 2 }
  0x45   : > { %v593_v22 = vrot.slane %v589_v33, 3  ;;  %v594_v18 = vrot.slane %v590_v17, 3  ;;  %v609_v23 = vmul.f32 %v608_v61, %v601_v14  ;;  %v610_v2 = vmul.f32 %v608_v61, %v602_v32 }
  0x46   : > { %v579_v19 = vadd.f32 %v575_v0, %v559_v62  ;;  %v580_v3 = vadd.f32 %v576_v1, %v560_v63 }
  0x47   : > { %v613_v4 = vrot.slane %v609_v23, 4  ;;  %v614_v11 = vrot.slane %v610_v2, 4 }
  0x48   : > { %v597_v34 = vadd.f32 %v593_v22, %v579_v19  ;;  %v598_v15 = vadd.f32 %v594_v18, %v580_v3 }
  0x4a   : > { %v617_v16 = vadd.f32 %v613_v4, %v597_v34  ;;  %v618_v6 = vadd.f32 %v614_v11, %v598_v15 }
  0x4c   : > { %v626_v7 = vadd.f32 %v735_v5, %v617_v16  ;;  %v627_v8 = vadd.f32 %v735_v5, %v618_v6 }
  0x4e   : > { %v628_v41 = vmax.f32 %v626_v7, 0.0  ;;  %v629_v9 = vmax.f32 %v627_v8, 0.0 }
  0x50   : > { %v630_v12 = vpack.c.bf16 %v628_v41, %v628_v41  ;;  %v631_v13 = vpack.c.bf16 %v629_v9, %v629_v9 }
  0x52   : > { %633 = vst.msk [vmem:[%s168_s24] sm:$0x1] %vm632_vm0, %v630_v12  ;;  %634 = vst.msk [vmem:[%s168_s24 + $0x1] sm:$0x1] %vm632_vm0, %v631_v13 }
  0x53 PF: > { %s13_s12 = sadd.s32 1, %s753_s12  }
  0x54   : > { %p10_p4 = scmp.ge.s32.totalorder %s13_s12, 4  }
  0x56   :  { %12 = sbr.rel (!%p10_p4) target bundleno = 1 (0x1), region = 66 }

// kernel: mobilenet_v3_forward.24
= control target key start
LH: loop header
LB: loop body
LE: loop exit
PB: predicated region body
PF: predicated region fallthrough
CT: control target
= control target key end

     0   :  { %s862_s15 = smov 0   ;;  %s1051_s0 = inlined_call_operand.vmem [shape: bf16[2,6,6,96], index: 0, kind: input, shape index: {}]   ;;  %s1052_s1 = inlined_call_operand.vmem [shape: bf16[25,96], index: 1, kind: input, shape index: {}]   ;;  %s1053_s2 = inlined_call_operand.vmem [shape: f32[1,96], index: 2, kind: input, shape index: {}]   ;;  %s1054_s3 = inlined_call_operand.vmem [shape: bf16[2,2,2,96], index: 3, kind: output, shape index: {0}]   ;;  %s1055_s4 = inlined_call_operand.vmem [shape: f32[2,1,96], index: 4, kind: output, shape index: {1}]  }
   0x1 LB: > { %s770_s16 = sadd.s32 4294967295, %s835_s15   ;;  %p774_p0 = scmp.ge.s32.totalorder %s835_s15, 1  ;;  %s835_s15 = sphi %s862_s15, %s15_s15  }
   0x2   : > { %p165_p1 = scmp.lt.s32.totalorder %s835_s15, 3 }
   0x4   : > { %p166_p2 = pnand %p774_p0, %p165_p1 }
   0x5   : > { %p193_p3 = scmp.lt.s32.totalorder (!%p166_p2), %s770_s16, 1 }
   0x6   : > { %169 = sbr.rel (%p166_p2) target bundleno = 107 (0x6b), region = 32 }
   0xb   : > { %v209_v0 = vld [vmem:[%s1052_s1] sm:$0x1]  ;;  %v211_v1 = vlaneseq  ;;  %v241_v2 = vld [vmem:[%s1052_s1] sm:$0x2]  ;;  %v279_v3 = vld [vmem:[%s1052_s1] sm:$0x4] }
   0xc   : > { %v312_v4 = vld [vmem:[%s1052_s1] sm:$0x8]  ;;  %v350_v5 = vld [vmem:[%s1052_s1 + $0x4] sm:$0x1]  ;;  %s1057_s16 = smov (!%p193_p3, %s770_s16), 1  ;;  %v210_v6 = vunpack.c.l.bf16 %v209_v0  ;;  %v242_v8 = vunpack.c.l.bf16 %v241_v2  ;;  %v280_v9 = vunpack.c.l.bf16 %v279_v3  ;;  %vm679_vm0 = vcmask 779264  }
   0xd   : > { %v212_v7 = vshrl.u32 %v211_v1, 7  ;;  %v890_v10 = vld [vmem:[%s1052_s1 + $0x4] sm:$0x2]  ;;  %v895_v11 = vld [vmem:[%s1052_s1 + $0x4] sm:$0x4]  ;;  %v313_v12 = vunpack.c.l.bf16 %v312_v4  ;;  %v351_v13 = vunpack.c.l.bf16 %v350_v5  ;;  %s820_s5 = smul.u32 24, %s1057_s16 }
   0xe   : > { %v390_v14 = vunpack.c.l.bf16 %v890_v10  ;;  %v422_v15 = vunpack.c.l.bf16 %v895_v11  ;;  %s776_s25 = sshll.u32 %s1057_s16, 1  ;;  %vm676_vm1 = vcmask 778240  }
   0xf   : > { %v900_v16 = vsub.s32 0, %v212_v7  ;;  %v902_v17 = vsub.s32 1, %v212_v7  ;;  %v904_v18 = vsub.s32 2, %v212_v7  ;;  %v906_v19 = vsub.s32 3, %v212_v7  ;;  %s919_s8 = scalar_lea.vmem %s1051_s0, %s820_s5  ;;  %s201_s28 = scalar_lea.vmem %s1054_s3, %s776_s25 }
  0x10   : > { %v908_v20 = vsub.s32 4, %v212_v7  ;;  %v910_v21 = vsub.s32 5, %v212_v7  ;;  %v912_v22 = vsub.s32 6, %v212_v7  ;;  %v914_v23 = vsub.s32 7, %v212_v7  ;;  %v205_v28 = vld [vmem:[%s919_s8] sm:$0x1]  ;;  %s204_s5 = scalar_lea.vmem %s1055_s4, %s1057_s16 }
  0x11   : > { %v214_v24 = vrot.slane %v210_v6, %v900_v16  ;;  %v226_v25 = vrot.slane %v210_v6, %v902_v17  ;;  %v246_v26 = vrot.slane %v242_v8, %v904_v18  ;;  %v264_v27 = vrot.slane %v242_v8, %v906_v19  ;;  %v206_v29 = vld [vmem:[%s919_s8 + $0x4] sm:$0x1]  ;;  %v219_v30 = vld [vmem:[%s919_s8] sm:$0x3]  ;;  %v238_v40 = vld [vmem:[%s919_s8 + $0x4] sm:$0x2] }
  0x12   : > { %v284_v31 = vrot.slane %v280_v9, %v908_v20  ;;  %v303_v32 = vrot.slane %v280_v9, %v910_v21  ;;  %v317_v33 = vrot.slane %v313_v12, %v912_v22  ;;  %v932_v34 = vrot.slane %v313_v12, %v914_v23  ;;  %v220_v37 = vld [vmem:[%s919_s8 + $0x4] sm:$0x3]  ;;  %v237_v39 = vld [vmem:[%s919_s8] sm:$0x2]  ;;  %v275_v47 = vld [vmem:[%s919_s8] sm:$0x4] }
  0x13   : > { %v207_v35 = vunpack.c.l.bf16 %v205_v28  ;;  %v208_v36 = vunpack.c.l.bf16 %v206_v29  ;;  %v221_v38 = vunpack.c.l.bf16 %v219_v30  ;;  %v938_v41 = vrot.slane %v351_v13, %v900_v16  ;;  %v257_v45 = vld [vmem:[%s919_s8] sm:$0x6]  ;;  %v258_v46 = vld [vmem:[%s919_s8 + $0x4] sm:$0x6]  ;;  %v777_v62 = vld [vmem:[%s919_s8 + $0x4] sm:$0x1] }
  0x14   : > { %v222_v42 = vunpack.c.l.bf16 %v220_v37  ;;  %v239_v43 = vunpack.c.l.bf16 %v237_v39  ;;  %v240_v44 = vunpack.c.l.bf16 %v238_v40  ;;  %v944_v48 = vrot.slane %v351_v13, %v902_v17  ;;  %v276_v53 = vld [vmem:[%s919_s8 + $0x4] sm:$0x4]  ;;  %v778_v63 = vld [vmem:[%s919_s8 + $0x8] sm:$0x1]  ;;  %v779_v4 = vld [vmem:[%s919_s8 + $0x4] sm:$0x3] }
  0x15   : > { %v215_v49 = vmul.f32 %v214_v24, %v207_v35  ;;  %v216_v50 = vmul.f32 %v214_v24, %v208_v36  ;;  %v227_v51 = vmul.f32 %v226_v25, %v221_v38  ;;  %v259_v52 = vunpack.c.l.bf16 %v257_v45  ;;  %v780_v9 = vld [vmem:[%s919_s8 + $0x8] sm:$0x3] }
  0x16   : > { %v228_v54 = vmul.f32 %v226_v25, %v222_v42  ;;  %v247_v55 = vmul.f32 %v246_v26, %v239_v43  ;;  %v248_v56 = vmul.f32 %v246_v26, %v240_v44  ;;  %v260_v57 = vunpack.c.l.bf16 %v258_v46  ;;  %v781_v26 = vld [vmem:[%s919_s8 + $0x4] sm:$0x2]  ;;  %v782_v28 = vld [vmem:[%s919_s8 + $0x8] sm:$0x2] }
  0x17   : > { %v231_v58 = vrot.slane %v227_v51, 1  ;;  %v265_v59 = vmul.f32 %v264_v27, %v259_v52  ;;  %v277_v60 = vunpack.c.l.bf16 %v275_v47  ;;  %v278_v61 = vunpack.c.l.bf16 %v276_v53  ;;  %v784_v37 = vld [vmem:[%s919_s8 + $0x8] sm:$0x6]  ;;  %v785_v51 = vld [vmem:[%s919_s8 + $0x4] sm:$0x4] }
  0x18   : > { %v232_v0 = vrot.slane %v228_v54, 1  ;;  %v251_v1 = vrot.slane %v247_v55, 2  ;;  %v252_v2 = vrot.slane %v248_v56, 2  ;;  %v266_v3 = vmul.f32 %v264_v27, %v260_v57  ;;  %v783_v27 = vld [vmem:[%s919_s8 + $0x4] sm:$0x6] }
  0x19   : > { %v235_v5 = vadd.f32 %v231_v58, %v215_v49  ;;  %v269_v6 = vrot.slane %v265_v59, 3  ;;  %v285_v7 = vmul.f32 %v284_v31, %v277_v60  ;;  %v286_v8 = vmul.f32 %v284_v31, %v278_v61  ;;  %v787_v60 = vld [vmem:[%s919_s8 + $0x8] sm:$0x1] }
  0x1a   : > { %v236_v12 = vadd.f32 %v232_v0, %v216_v50  ;;  %v270_v13 = vrot.slane %v266_v3, 3  ;;  %v298_v24 = vunpack.c.l.bf16 %v777_v62  ;;  %v299_v25 = vunpack.c.l.bf16 %v778_v63 }
  0x1b   : > { %v255_v29 = vadd.f32 %v251_v1, %v235_v5  ;;  %v289_v30 = vrot.slane %v285_v7, 4  ;;  %v290_v35 = vrot.slane %v286_v8, 4  ;;  %v310_v36 = vunpack.c.l.bf16 %v779_v4  ;;  %v789_v1 = vld [vmem:[%s919_s8 + $0x8] sm:$0x3]  ;;  %v790_v5 = vld [vmem:[%s919_s8 + $0xc] sm:$0x3] }
  0x1c   : > { %v256_v38 = vadd.f32 %v252_v2, %v236_v12  ;;  %v304_v39 = vmul.f32 %v303_v32, %v298_v24  ;;  %v305_v40 = vmul.f32 %v303_v32, %v299_v25  ;;  %v311_v42 = vunpack.c.l.bf16 %v780_v9  ;;  %v786_v32 = vld [vmem:[%s919_s8 + $0x8] sm:$0x4]  ;;  %v791_v25 = vld [vmem:[%s919_s8 + $0x8] sm:$0x2] }
  0x1d   : > { %v273_v31 = vadd.f32 %v269_v6, %v255_v29  ;;  %v318_v43 = vmul.f32 %v317_v33, %v310_v36  ;;  %v330_v44 = vunpack.c.l.bf16 %v781_v26  ;;  %v331_v45 = vunpack.c.l.bf16 %v782_v28  ;;  %v793_v36 = vld [vmem:[%s919_s8 + $0x8] sm:$0x6] }
  0x1e   : > { %v274_v46 = vadd.f32 %v270_v13, %v256_v38  ;;  %v319_v47 = vmul.f32 %v317_v33, %v311_v42  ;;  %v348_v49 = vunpack.c.l.bf16 %v783_v27  ;;  %v349_v50 = vunpack.c.l.bf16 %v784_v37  ;;  %v788_v33 = vld [vmem:[%s919_s8 + $0xc] sm:$0x1] }
  0x1f   : > { %v293_v52 = vadd.f32 %v289_v30, %v273_v31  ;;  %v322_v53 = vrot.slane %v318_v43, 1  ;;  %v336_v54 = vmul.f32 %v932_v34, %v330_v44  ;;  %v337_v55 = vmul.f32 %v932_v34, %v331_v45 }
  0x20   : > { %v294_v56 = vadd.f32 %v290_v35, %v274_v46  ;;  %v323_v57 = vrot.slane %v319_v47, 1  ;;  %v356_v58 = vmul.f32 %v938_v41, %v348_v49  ;;  %v357_v59 = vmul.f32 %v938_v41, %v349_v50  ;;  %v792_v35 = vld [vmem:[%s919_s8 + $0xc] sm:$0x2]  ;;  %v795_v46 = vld [vmem:[%s919_s8 + $0x8] sm:$0x4] }
  0x21   : > { %v306_v61 = vadd.f32 %v304_v39, %v293_v52  ;;  %v340_v62 = vrot.slane %v336_v54, 2  ;;  %v341_v63 = vrot.slane %v337_v55, 2  ;;  %v368_v0 = vunpack.c.l.bf16 %v785_v51  ;;  %v794_v39 = vld [vmem:[%s919_s8 + $0xc] sm:$0x6]  ;;  %v459_v49 = vld [vmem:[%s1052_s1 + $0x4] sm:$0x8] }
  0x22   : > { %v307_v2 = vadd.f32 %v305_v40, %v294_v56  ;;  %v360_v3 = vrot.slane %v356_v58, 3  ;;  %v361_v4 = vrot.slane %v357_v59, 3  ;;  %v369_v34 = vunpack.c.l.bf16 %v786_v32  ;;  %v796_v47 = vld [vmem:[%s919_s8 + $0xc] sm:$0x4] }
  0x23   : > { %v326_v6 = vadd.f32 %v322_v53, %v306_v61  ;;  %v374_v7 = vmul.f32 %v944_v48, %v368_v0  ;;  %v387_v8 = vunpack.c.l.bf16 %v787_v60  ;;  %v388_v41 = vunpack.c.l.bf16 %v788_v33  ;;  %v798_v61 = vld [vmem:[%s919_s8 + $0x10] sm:$0x1] }
  0x24   : > { %v327_v9 = vadd.f32 %v323_v57, %v307_v2  ;;  %v375_v12 = vmul.f32 %v944_v48, %v369_v34  ;;  %v394_v13 = vrot.slane %v390_v14, %v904_v18  ;;  %v401_v24 = vunpack.c.l.bf16 %v789_v1  ;;  %v797_v57 = vld [vmem:[%s919_s8 + $0xc] sm:$0x1] }
  0x25   : > { %v344_v26 = vadd.f32 %v340_v62, %v326_v6  ;;  %v378_v28 = vrot.slane %v374_v7, 4  ;;  %v402_v29 = vunpack.c.l.bf16 %v790_v5  ;;  %v406_v30 = vrot.slane %v390_v14, %v906_v19  ;;  %v799_v34 = vld [vmem:[%s919_s8 + $0xc] sm:$0x3] }
  0x26   : > { %v345_v27 = vadd.f32 %v341_v63, %v327_v9  ;;  %v379_v37 = vrot.slane %v375_v12, 4  ;;  %v395_v48 = vmul.f32 %v394_v13, %v387_v8  ;;  %v396_v38 = vmul.f32 %v394_v13, %v388_v41  ;;  %v800_v8 = vld [vmem:[%s919_s8 + $0x10] sm:$0x3]  ;;  %v492_v41 = vld [vmem:[%s1052_s1 + $0x8] sm:$0x1] }
  0x27   : > { %v364_v40 = vadd.f32 %v360_v3, %v344_v26  ;;  %v407_v42 = vmul.f32 %v406_v30, %v401_v24  ;;  %v408_v31 = vmul.f32 %v406_v30, %v402_v29  ;;  %v419_v43 = vunpack.c.l.bf16 %v791_v25  ;;  %v801_v25 = vld [vmem:[%s919_s8 + $0xc] sm:$0x2]  ;;  %v802_v26 = vld [vmem:[%s919_s8 + $0x10] sm:$0x2] }
  0x28   : > { %v365_v44 = vadd.f32 %v361_v4, %v345_v27  ;;  %v420_v45 = vunpack.c.l.bf16 %v792_v35  ;;  %v426_v10 = vrot.slane %v422_v15, %v908_v20  ;;  %v439_v14 = vunpack.c.l.bf16 %v793_v36  ;;  %v803_v36 = vld [vmem:[%s919_s8 + $0xc] sm:$0x6]  ;;  %v804_v27 = vld [vmem:[%s919_s8 + $0x10] sm:$0x6] }
  0x29   : > { %v382_v50 = vadd.f32 %v378_v28, %v364_v40  ;;  %v411_v51 = vrot.slane %v407_v42, 1  ;;  %v412_v52 = vrot.slane %v408_v31, 1  ;;  %v440_v53 = vunpack.c.l.bf16 %v794_v39  ;;  %v805_v42 = vld [vmem:[%s919_s8 + $0xc] sm:$0x4] }
  0x2a   : > { %v383_v54 = vadd.f32 %v379_v37, %v365_v44  ;;  %v427_v55 = vmul.f32 %v426_v10, %v419_v43  ;;  %v428_v32 = vmul.f32 %v426_v10, %v420_v45  ;;  %v444_v56 = vrot.slane %v422_v15, %v910_v21  ;;  %v530_v37 = vld [vmem:[%s1052_s1 + $0x8] sm:$0x2]  ;;  %v806_v10 = vld [vmem:[%s919_s8 + $0x10] sm:$0x4] }
  0x2b   : > { %v397_v58 = vadd.f32 %v395_v48, %v382_v50  ;;  %v457_v59 = vunpack.c.l.bf16 %v795_v46  ;;  %v458_v60 = vunpack.c.l.bf16 %v796_v47  ;;  %v460_v33 = vunpack.c.l.bf16 %v459_v49 }
  0x2c   : > { %v398_v62 = vadd.f32 %v396_v38, %v383_v54  ;;  %v431_v63 = vrot.slane %v427_v55, 2  ;;  %v432_v0 = vrot.slane %v428_v32, 2  ;;  %v445_v1 = vmul.f32 %v444_v56, %v439_v14 }
  0x2d   : > { %v415_v2 = vadd.f32 %v411_v51, %v397_v58  ;;  %v446_v3 = vmul.f32 %v444_v56, %v440_v53  ;;  %v464_v4 = vrot.slane %v460_v33, %v912_v22  ;;  %v478_v11 = vunpack.c.l.bf16 %v797_v57 }
  0x2e   : > { %v416_v15 = vadd.f32 %v412_v52, %v398_v62  ;;  %v449_v5 = vrot.slane %v445_v1, 3  ;;  %v479_v6 = vunpack.c.l.bf16 %v798_v61  ;;  %v483_v7 = vrot.slane %v460_v33, %v914_v23  ;;  %v807_v33 = vld [vmem:[%s919_s8 + $0x10] sm:$0x1]  ;;  %v808_v1 = vld [vmem:[%s919_s8 + $0x14] sm:$0x1] }
  0x2f   : > { %v435_v9 = vadd.f32 %v431_v63, %v415_v2  ;;  %v450_v12 = vrot.slane %v446_v3, 3  ;;  %v465_v13 = vmul.f32 %v464_v4, %v457_v59  ;;  %v466_v24 = vmul.f32 %v464_v4, %v458_v60  ;;  %v810_v2 = vld [vmem:[%s919_s8 + $0x14] sm:$0x3] }
  0x30   : > { %v436_v28 = vadd.f32 %v432_v0, %v416_v15  ;;  %v484_v29 = vmul.f32 %v483_v7, %v478_v11  ;;  %v485_v30 = vmul.f32 %v483_v7, %v479_v6  ;;  %v490_v35 = vunpack.c.l.bf16 %v799_v34  ;;  %v811_v34 = vld [vmem:[%s919_s8 + $0x10] sm:$0x2] }
  0x31   : > { %v453_v48 = vadd.f32 %v449_v5, %v435_v9  ;;  %v469_v38 = vrot.slane %v465_v13, 4  ;;  %v470_v39 = vrot.slane %v466_v24, 4  ;;  %v491_v40 = vunpack.c.l.bf16 %v800_v8  ;;  %v812_v8 = vld [vmem:[%s919_s8 + $0x14] sm:$0x2]  ;;  %v601_v24 = vld [vmem:[%s1052_s1 + $0x8] sm:$0x8] }
  0x32   : > { %v454_v31 = vadd.f32 %v450_v12, %v436_v28  ;;  %v493_v43 = vunpack.c.l.bf16 %v492_v41  ;;  %v510_v44 = vunpack.c.l.bf16 %v801_v25  ;;  %v511_v45 = vunpack.c.l.bf16 %v802_v26  ;;  %v813_v25 = vld [vmem:[%s919_s8 + $0x10] sm:$0x6] }
  0x33   : > { %v473_v14 = vadd.f32 %v469_v38, %v453_v48  ;;  %v528_v46 = vunpack.c.l.bf16 %v803_v36  ;;  %v529_v47 = vunpack.c.l.bf16 %v804_v27  ;;  %v531_v49 = vunpack.c.l.bf16 %v530_v37  ;;  %v815_v36 = vld [vmem:[%s919_s8 + $0x10] sm:$0x4] }
  0x34   : > { %v474_v50 = vadd.f32 %v470_v39, %v454_v31  ;;  %v497_v51 = vrot.slane %v493_v43, %v900_v16  ;;  %v515_v52 = vrot.slane %v493_v43, %v902_v17  ;;  %v548_v53 = vunpack.c.l.bf16 %v805_v42  ;;  %v569_v17 = vld [vmem:[%s1052_s1 + $0x8] sm:$0x4] }
  0x35   : > { %v486_v54 = vadd.f32 %v484_v29, %v473_v14  ;;  %v535_v55 = vrot.slane %v531_v49, %v904_v18  ;;  %v549_v32 = vunpack.c.l.bf16 %v806_v10  ;;  %v553_v56 = vrot.slane %v531_v49, %v906_v19  ;;  %v809_v18 = vld [vmem:[%s919_s8 + $0x10] sm:$0x3]  ;;  %v816_v10 = vld [vmem:[%s919_s8 + $0x14] sm:$0x4] }
  0x36   : > { %v487_v57 = vadd.f32 %v485_v30, %v474_v50  ;;  %v498_v58 = vmul.f32 %v497_v51, %v490_v35  ;;  %v499_v59 = vmul.f32 %v497_v51, %v491_v40  ;;  %v516_v60 = vmul.f32 %v515_v52, %v510_v44  ;;  %v814_v35 = vld [vmem:[%s919_s8 + $0x14] sm:$0x6] }
  0x37   : > { %v517_v61 = vmul.f32 %v515_v52, %v511_v45  ;;  %v536_v62 = vmul.f32 %v535_v55, %v528_v46  ;;  %v537_v63 = vmul.f32 %v535_v55, %v529_v47  ;;  %v554_v0 = vmul.f32 %v553_v56, %v548_v53  ;;  %v639_v46 = vld [vmem:[%s1052_s1 + $0xc] sm:$0x1] }
  0x38   : > { %v502_v19 = vrot.slane %v498_v58, 1  ;;  %v503_v3 = vrot.slane %v499_v59, 1  ;;  %v520_v4 = vrot.slane %v516_v60, 2  ;;  %v555_v11 = vmul.f32 %v553_v56, %v549_v32 }
  0x39   : > { %v521_v15 = vrot.slane %v517_v61, 2  ;;  %v540_v5 = vrot.slane %v536_v62, 3  ;;  %v541_v6 = vrot.slane %v537_v63, 3  ;;  %v558_v7 = vrot.slane %v554_v0, 4 }
  0x3a   : > { %v506_v41 = vadd.f32 %v502_v19, %v486_v54  ;;  %v507_v9 = vadd.f32 %v503_v3, %v487_v57  ;;  %v559_v12 = vrot.slane %v555_v11, 4  ;;  %v567_v13 = vunpack.c.l.bf16 %v807_v33 }
  0x3b   : > { %v568_v26 = vunpack.c.l.bf16 %v808_v1  ;;  %v570_v28 = vunpack.c.l.bf16 %v569_v17  ;;  %v581_v29 = vunpack.c.l.bf16 %v809_v18  ;;  %v582_v30 = vunpack.c.l.bf16 %v810_v2 }
  0x3c   : > { %v524_v27 = vadd.f32 %v520_v4, %v506_v41  ;;  %v525_v37 = vadd.f32 %v521_v15, %v507_v9  ;;  %v599_v48 = vunpack.c.l.bf16 %v811_v34  ;;  %v600_v38 = vunpack.c.l.bf16 %v812_v8 }
  0x3d   : > { %v574_v39 = vrot.slane %v570_v28, %v908_v20  ;;  %v586_v40 = vrot.slane %v570_v28, %v910_v21  ;;  %v602_v42 = vunpack.c.l.bf16 %v601_v24  ;;  %v619_v31 = vunpack.c.l.bf16 %v813_v25 }
  0x3e   : > { %v544_v43 = vadd.f32 %v540_v5, %v524_v27  ;;  %v545_v44 = vadd.f32 %v541_v6, %v525_v37  ;;  %v620_v45 = vunpack.c.l.bf16 %v814_v35  ;;  %v637_v14 = vunpack.c.l.bf16 %v815_v36  ;;  %v817_v5 = vld [vmem:[%s1053_s2] ss:$0 sm:$0xff] }
  0x3f   : > { %v575_v47 = vmul.f32 %v574_v39, %v567_v13  ;;  %v576_v49 = vmul.f32 %v574_v39, %v568_v26  ;;  %v587_v50 = vmul.f32 %v586_v40, %v581_v29  ;;  %v588_v51 = vmul.f32 %v586_v40, %v582_v30 }
  0x40   : > { %v562_v52 = vadd.f32 %v558_v7, %v544_v43  ;;  %v563_v53 = vadd.f32 %v559_v12, %v545_v44  ;;  %v606_v20 = vrot.slane %v602_v42, %v912_v22  ;;  %v624_v21 = vrot.slane %v602_v42, %v914_v23 }
  0x41   : > { %v591_v54 = vrot.slane %v587_v50, 1  ;;  %v592_v55 = vrot.slane %v588_v51, 1  ;;  %v638_v32 = vunpack.c.l.bf16 %v816_v10  ;;  %v640_v56 = vunpack.c.l.bf16 %v639_v46 }
  0x42   : > { %v577_v57 = vadd.f32 %v575_v47, %v562_v52  ;;  %v578_v58 = vadd.f32 %v576_v49, %v563_v53  ;;  %v607_v59 = vmul.f32 %v606_v20, %v599_v48  ;;  %v608_v60 = vmul.f32 %v606_v20, %v600_v38 }
  0x43   : > { %v625_v33 = vmul.f32 %v624_v21, %v619_v31  ;;  %v626_v17 = vmul.f32 %v624_v21, %v620_v45  ;;  %v644_v61 = vrot.slane %v640_v56, %v900_v16 }
  0x44   : > { %v595_v62 = vadd.f32 %v591_v54, %v577_v57  ;;  %v596_v63 = vadd.f32 %v592_v55, %v578_v58  ;;  %v611_v0 = vrot.slane %v607_v59, 2  ;;  %v612_v1 = vrot.slane %v608_v60, 2 }
  0x45   : > { %v629_v18 = vrot.slane %v625_v33, 3  ;;  %v630_v22 = vrot.slane %v626_v17, 3  ;;  %v645_v2 = vmul.f32 %v644_v61, %v637_v14  ;;  %v646_v23 = vmul.f32 %v644_v61, %v638_v32 }
  0x46   : > { %v615_v19 = vadd.f32 %v611_v0, %v595_v62  ;;  %v616_v3 = vadd.f32 %v612_v1, %v596_v63 }
  0x47   : > { %v649_v4 = vrot.slane %v645_v2, 4  ;;  %v650_v11 = vrot.slane %v646_v23, 4 }
  0x48   : > { %v633_v34 = vadd.f32 %v629_v18, %v615_v19  ;;  %v634_v15 = vadd.f32 %v630_v22, %v616_v3 }
  0x4a   : > { %v653_v16 = vadd.f32 %v649_v4, %v633_v34  ;;  %v654_v6 = vadd.f32 %v650_v11, %v634_v15 }
  0x4c   : > { %v662_v7 = vadd.f32 %v817_v5, %v653_v16  ;;  %v663_v8 = vadd.f32 %v817_v5, %v654_v6 }
  0x4e   : > { %v664_v41 = vadd.f32 3.0, %v662_v7  ;;  %v665_v9 = vadd.f32 3.0, %v663_v8 }
  0x50   : > { %v666_v12 = vmax.f32 %v664_v41, 0.0  ;;  %v667_v13 = vmax.f32 %v665_v9, 0.0 }
  0x52   : > { %v668_v24 = vmin.f32 %v666_v12, 6.0  ;;  %v669_v25 = vmin.f32 %v667_v13, 6.0 }
  0x54   : > { %v670_v26 = vmul.f32 0.16666667, %v668_v24  ;;  %v671_v28 = vmul.f32 0.16666667, %v669_v25 }
  0x56   : > { %v672_v29 = vmul.f32 %v670_v26, %v662_v7  ;;  %v673_v30 = vmul.f32 %v671_v28, %v663_v8 }
  0x58   : > { %v674_v35 = vpack.c.bf16 %v672_v29, %v672_v29  ;;  %v675_v36 = vpack.c.bf16 %v673_v30, %v673_v30  ;;  %v680_v27 = vsel %vm679_vm0, %v672_v29, 0.0  ;;  %v681_v37 = vsel %vm679_vm0, %v673_v30, 0.0 }
  0x59   : > { %v682_v48 = vadd.f32 %v681_v37, %v680_v27 }
  0x5a   : > { %677 = vst.msk [vmem:[%s201_s28] sm:$0x1] %vm676_vm1, %v674_v35  ;;  %678 = vst.msk [vmem:[%s201_s28 + $0x1] sm:$0x1] %vm676_vm1, %v675_v36 }
  0x5b   : > { %v683_v38 = vsel %vm679_vm0, %v682_v48, 0.0 }
  0x5c   : > { %v684_v39 = vrot.slane %v683_v38, 4 }
  0x5e   : > { %v685_v40 = vadd.f32 %v684_v39, %v683_v38 }
  0x60   : > { %v686_v42 = vrot.slane %v685_v40, 2 }
  0x62   : > { %v687_v31 = vadd.f32 %v686_v42, %v685_v40 }
  0x64   : > { %v688_v43 = vrot.slane %v687_v31, 1 }
  0x66   : > { %v689_v44 = vadd.f32 %v688_v43, %v687_v31 }
  0x68   : > { %v690_v45 = vmul.f32 0.25, %v689_v44 }
  0x6a   : > { %691 = vst.msk [vmem:[%s204_s5] sm:$0x1] %vm676_vm1, %v690_v45 }
  0x6b PF: > { %s15_s15 = sadd.s32 1, %s835_s15  }
  0x6c   : > { %p12_p4 = scmp.ge.s32.totalorder %s15_s15, 4  }
  0x6e   :  { %14 = sbr.rel (!%p12_p4) target bundleno = 1 (0x1), region = 78 }

// kernel: mobilenet_v3_forward.25
= control target key start
LH: loop header
LB: loop body
LE: loop exit
PB: predicated region body
PF: predicated region fallthrough
CT: control target
= control target key end

     0   :  { %s559_s15 = smov 0   ;;  %s561_s16 = smov 0   ;;  %s616_s0 = inlined_call_operand.vmem [shape: bf16[2,4,96], index: 0, kind: input, shape index: {}]   ;;  %s617_s1 = inlined_call_operand.vmem [shape: bf16[96,40], index: 1, kind: input, shape index: {}]   ;;  %s618_s2 = inlined_call_operand.vmem [shape: f32[1,40], index: 2, kind: input, shape index: {}]   ;;  %s619_s3 = inlined_call_operand.vmem [shape: f32[2,1,96], index: 3, kind: input, shape index: {}]   ;;  %s620_s4 = inlined_call_operand.vmem [shape: bf16[2,4,40], index: 4, kind: output, shape index: {}]  }
   0x1   :  { %s563_s17 = smov 0  }
   0x2 LB: > { %s26_s18 = sadd.s32 1, %s526_s16  ;;  %p439_p0 = scmp.ge.s32.totalorder %s530_s17, 1  ;;  %s530_s17 = sphi %s563_s17, %s14_s17   ;;  %s526_s16 = sphi %s561_s16, %s622_s16   ;;  %s522_s15 = sphi %s559_s15, %s621_s15  }
   0x3   : > { %p28_p1 = scmp.ge.s32.totalorder %s26_s18, 2  ;;  %p188_p2 = scmp.lt.s32.totalorder %s530_s17, 3 }
   0x5   : > { %s624_s18 = smov (%p28_p1, %s26_s18), 0  ;;  %p189_p3 = pnand %p439_p0, %p188_p2 }
   0x6   : > { %p221_p4 = scmp.lt.s32.totalorder (!%p189_p3), %s522_s15, 1 }
   0x7   : > { %192 = sbr.rel (%p189_p3) target bundleno = 236 (0xec), region = 36 }
   0xc   : > { %v502_v0 = vld [vmem:[%s617_s1 + $0x28] sm:$0xff]   ;;  %v532_v1 = vmov 0.0   ;;  %v503_v2 = vld [vmem:[%s617_s1 + $0x20] sm:$0xff]   ;;  %vm533_vm0 = vmmov 0   ;;  %s626_s15 = smov (!%p221_p4, %s522_s15), 1  ;;  %v504_v3 = vld [vmem:[%s617_s1 + $0x18] sm:$0xff]  }
   0xd   : > { %460 = vmatprep.subr.bf16.mxu0 %v532_v1  ;;  %472 = vmatprep.mubr.msk.bf16.mxu0 %vm533_vm0, %v532_v1  ;;  %s440_s25 = sshll.u32 %s626_s15, 1  ;;  %v505_v4 = vld [vmem:[%s617_s1 + $0x10] sm:$0xff]   ;;  %s230_s7 = scalar_lea.vmem %s619_s3, %s626_s15  ;;  %v506_v7 = vld [vmem:[%s617_s1 + $0x8] sm:$0xff]   ;;  %v507_v10 = vld [vmem:[%s617_s1] sm:$0xff]   ;;  %vm305_vm1 = vcmask 785408   ;;  %vm350_vm2 = vcmask 320512  }
   0xe   : > { %461 = vmatpush3.bf16.msra.mxu0 %v502_v0  ;;  %s227_s28 = scalar_lea.vmem %s616_s0, %s440_s25  ;;  %v442_v8 = vld [vmem:[%s230_s7] ss:$0 sm:$0xff]  ;;  %s237_s19 = scalar_lea.vmem %s620_s4, %s440_s25 }
   0xf   : > { %462 = vmatprep.subr.bf16.mxu0 %v532_v1  ;;  %v239_v5 = vld [vmem:[%s227_s28] sm:$0x3] }
  0x10   : > { %v240_v6 = vunpack.c.l.bf16 %v239_v5  ;;  %v443_v12 = vld [vmem:[%s618_s2] ss:$0 sm:$0xff] }
  0x12   : > { %463 = vmatpush3.bf16.msra.mxu0 %v503_v2  ;;  %v248_v9 = vmul.f32 %v442_v8, %v240_v6 }
  0x13   : > { %464 = vmatprep.subr.bf16.mxu0 %v532_v1 }
  0x14   : > { %v249_v11 = vpack.c.bf16 %v248_v9, %v248_v9 }
  0x16   : > { %465 = vmatpush3.bf16.msra.mxu0 %v504_v3 }
  0x17   : > { %466 = vmatprep.subr.bf16.mxu0 %v532_v1 }
  0x1a   : > { %467 = vmatpush3.bf16.msra.mxu0 %v505_v4 }
  0x1b   : > { %468 = vmatprep.subr.bf16.mxu0 %v532_v1 }
  0x1e   : > { %469 = vmatpush3.bf16.msra.mxu0 %v506_v7 }
  0x1f   : > { %470 = vmatprep.subr.bf16.mxu0 %v532_v1 }
  0x22   : > { %471 = vmatpush3.bf16.msra.mxu0 %v507_v10 }
  0x25   : > { %473 = vmatmul.mubr.msk.bf16.vlgmr.msra.gmra.mxu0 %vm305_vm1, %v249_v11 }
  0xe5   : > { %v343_v13 = vpop.f32.mrf.mxu0 }
  0xe6   : > { %v344_v14 = vadd.f32 %v443_v12, %v343_v13 }
  0xe7   : > { %v474_v15 = vpop.f32.mrf.mxu0 }
  0xe8   : > { %v349_v16 = vpack.c.bf16 %v344_v14, %v344_v14 }
  0xe9   : > { %v346_v17 = vpop.f32.mrf.mxu0 }
  0xea   : > { %351 = vst.msk [vmem:[%s237_s19] sm:$0x3] %vm350_vm2, %v349_v16 }
  0xeb   : > { %v475_v18 = vpop.f32.mrf.mxu0 }
  0xec PF: > { %s14_s17 = sadd.s32 1, %s530_s17   ;;  %s621_s15 = smov %s526_s16 }
  0xed   : > { %p11_p5 = scmp.ge.s32.totalorder %s14_s17, 4   ;;  %s622_s16 = smov %s624_s18 }
  0xef   :  { %13 = sbr.rel (!%p11_p5) target bundleno = 2 (0x2), region = 69 }

// kernel: mobilenet_v3_forward.26
= control target key start
LH: loop header
LB: loop body
LE: loop exit
PB: predicated region body
PF: predicated region fallthrough
CT: control target
= control target key end

     0   :  { %s430_s12 = smov 0   ;;  %s475_s0 = inlined_call_operand.vmem [shape: bf16[2,4,40], index: 0, kind: input, shape index: {}]   ;;  %s476_s1 = inlined_call_operand.vmem [shape: bf16[40,240], index: 1, kind: input, shape index: {}]   ;;  %s477_s2 = inlined_call_operand.vmem [shape: f32[1,240], index: 2, kind: input, shape index: {}]   ;;  %s478_s3 = inlined_call_operand.vmem [shape: f32[2,1,240], index: 3, kind: output, shape index: {}]  }
   0x1 LB: > { %s365_s13 = sadd.s32 4294967295, %s406_s12   ;;  %p369_p0 = scmp.ge.s32.totalorder %s406_s12, 1  ;;  %s406_s12 = sphi %s430_s12, %s13_s12  }
   0x2   : > { %p136_p1 = scmp.lt.s32.totalorder %s406_s12, 3 }
   0x4   : > { %p137_p2 = pnand %p369_p0, %p136_p1 }
   0x5   : > { %p158_p3 = scmp.lt.s32.totalorder (!%p137_p2), %s365_s13, 1 }
   0x6   : > { %140 = sbr.rel (%p137_p2) target bundleno = 255 (0xff), region = 32 }
   0xb   : > { %v172_v0 = vld [vmem:[%s476_s1 + $0x20] sm:$0xff]  ;;  %vm214_vm0 = vcmask 1043456   ;;  %v394_v3 = vld [vmem:[%s476_s1 + $0x14] ss:$8 sps:$4 sm:$0xff]   ;;  %v408_v4 = vmov 0   ;;  %s480_s13 = smov (!%p158_p3, %s365_s13), 1  ;;  %v175_v10 = vlaneseq }
   0xc   : > { %v377_v1 = vcombine.high %v172_v0, %v172_v0  ;;  %v376_v2 = vcombine.low %v172_v0, %v172_v0  ;;  %253 = vmatprep.mubr.bf16.mxu0 %v408_v4  ;;  %v396_v6 = vld [vmem:[%s476_s1 + $0x10] ss:$8 sps:$4 sm:$0xff]   ;;  %v397_v7 = vld [vmem:[%s476_s1 + $0x4] ss:$8 sps:$4 sm:$0xff]   ;;  %s370_s22 = sshll.u32 %s480_s13, 1  ;;  %vm210_vm1 = vcmask 326656  }
   0xd   : > { %v399_v8 = vld [vmem:[%s476_s1] ss:$8 sps:$4 sm:$0xff]   ;;  %s161_s27 = scalar_lea.vmem %s475_s0, %s370_s22  ;;  %v176_v11 = vshrl.u32 %v175_v10, 7  ;;  %vm279_vm2 = vcmask 912384   ;;  %v409_v41 = vmov 1966171168   ;;  %s165_s5 = scalar_lea.vmem %s478_s3, %s370_s22 }
   0xe   : > { %378 = vmatprep.subr.msk.bf16.mxu0 %vm214_vm0, %v377_v1  ;;  %v216_v5 = vsel %vm214_vm0, %v376_v2, 0  ;;  %v167_v9 = vld [vmem:[%s161_s27] sm:$0x3]  ;;  %v293_v42 = vunpack.c.l.s4 %v409_v41  ;;  %vm309_vm3 = vcmp.lt.s32.totalorder %v175_v10, 240 }
   0xf   : > { %232 = vmatpush1.bf16.msra.mxu0 %v216_v5  ;;  %v177_v12 = vsub.s32 0, %v176_v11  ;;  %v173_v13 = vld [vmem:[%s477_s2] sm:$0x3]  ;;  %v181_v14 = vsub.s32 1, %v176_v11 }
  0x10   : > { %233 = vmatprep.subr.bf16.mxu0 %v394_v3  ;;  %v294_v47 = vunpack.c.0.s8 %v293_v42 }
  0x11   : > { %v178_v15 = vrot.slane %v173_v13, %v177_v12  ;;  %v182_v16 = vrot.slane %v173_v13, %v181_v14 }
  0x12   : > { %v297_v51 = vsub.s32 %v294_v47, %v176_v11 }
  0x13   : > { %234 = vmatpush1.bf16.msra.mxu0 %v396_v6 }
  0x14   : > { %235 = vmatprep.subr.bf16.mxu0 %v397_v7 }
  0x17   : > { %236 = vmatpush1.bf16.msra.mxu0 %v399_v8 }
  0x1a   : > { %379 = vmatmul.mubr.msk.bf16.vlgmr.msra.gmra.mxu0 %vm210_vm1, %v167_v9 }
  0xda   : > { %v255_v17 = vpop.f32.mrf.mxu0 }
  0xdb   : > { %v256_v18 = vadd.f32 %v255_v17, %v178_v15 }
  0xdc   : > { %v257_v19 = vpop.f32.mrf.mxu0 }
  0xdd   : > { %v262_v20 = vadd.f32 3.0, %v256_v18  ;;  %v258_v21 = vadd.f32 %v257_v19, %v182_v16 }
  0xde   : > { %v259_v22 = vpop.f32.mrf.mxu0 }
  0xdf   : > { %v264_v23 = vmax.f32 %v262_v20, 0.0  ;;  %v263_v24 = vadd.f32 3.0, %v258_v21 }
  0xe0   : > { %v260_v25 = vpop.f32.mrf.mxu0 }
  0xe1   : > { %v266_v26 = vmin.f32 %v264_v23, 6.0  ;;  %v265_v27 = vmax.f32 %v263_v24, 0.0 }
  0xe3   : > { %v268_v28 = vmul.f32 0.16666667, %v266_v26  ;;  %v267_v29 = vmin.f32 %v265_v27, 6.0 }
  0xe5   : > { %v270_v30 = vmul.f32 %v268_v28, %v256_v18  ;;  %v269_v31 = vmul.f32 0.16666667, %v267_v29 }
  0xe7   : > { %v272_v32 = vsel %vm214_vm0, %v270_v30, 0.0  ;;  %v271_v33 = vmul.f32 %v269_v31, %v258_v21 }
  0xe8   : > { %v273_v34 = vrot.slane %v272_v32, 4 }
  0xe9   : > { %v280_v35 = vsel %vm279_vm2, %v271_v33, 0.0 }
  0xea   : > { %v274_v36 = vadd.f32 %v273_v34, %v272_v32  ;;  %v281_v37 = vrot.slane %v280_v35, 4 }
  0xec   : > { %v275_v38 = vrot.slane %v274_v36, 2  ;;  %v282_v39 = vadd.f32 %v281_v37, %v280_v35 }
  0xee   : > { %v276_v40 = vadd.f32 %v275_v38, %v274_v36  ;;  %v283_v43 = vrot.slane %v282_v39, 2 }
  0xf0   : > { %v277_v44 = vrot.slane %v276_v40, 1  ;;  %v284_v45 = vadd.f32 %v283_v43, %v282_v39 }
  0xf2   : > { %v278_v46 = vadd.f32 %v277_v44, %v276_v40  ;;  %v285_v48 = vrot.slane %v284_v45, 1 }
  0xf4   : > { %v286_v49 = vadd.f32 %v285_v48, %v284_v45  ;;  %v287_v50 = vmul.f32 0.25, %v278_v46 }
  0xf6   : > { %v288_v52 = vmul.f32 0.25, %v286_v49 }
  0xf8   : > { %v291_v53 = vcombine.low %v287_v50, %v288_v52 }
  0xfa   : > { %v298_v54 = vrot.slane %v291_v53, %v297_v51 }
  0xfc   : > { %v305_v55 = vrot.slane %v298_v54, %v297_v51 }
  0xfe   : > { %311 = vst.msk [vmem:[%s165_s5] sm:$0x3] %vm309_vm3, %v305_v55 }
  0xff PF: > { %s13_s12 = sadd.s32 1, %s406_s12  }
 0x100   : > { %p10_p4 = scmp.ge.s32.totalorder %s13_s12, 4  }
 0x102   :  { %12 = sbr.rel (!%p10_p4) target bundleno = 1 (0x1), region = 62 }

// kernel: mobilenet_v3_forward.27
= control target key start
LH: loop header
LB: loop body
LE: loop exit
PB: predicated region body
PF: predicated region fallthrough
CT: control target
= control target key end

     0   :  { %v309_v1 = vmov 0.0   ;;  %vm69_vm0 = vcmask 916480   ;;  %s512_s0 = inlined_call_operand.vmem [shape: f32[2,240], index: 0, kind: input, shape index: {}]   ;;  %s513_s1 = inlined_call_operand.vmem [shape: f32[240,64], index: 1, kind: input, shape index: {}]   ;;  %s514_s2 = inlined_call_operand.vmem [shape: f32[1,64], index: 2, kind: input, shape index: {}]   ;;  %s515_s3 = inlined_call_operand.vmem [shape: f32[64,128], index: 3, kind: input, shape index: {}]   ;;  %s516_s4 = inlined_call_operand.vmem [shape: f32[1,128], index: 4, kind: input, shape index: {}]   ;;  %s517_s5 = inlined_call_operand.hbm [shape: f32[2,128], index: 5, kind: output, shape index: {}]  }
   0x1   :  { %v37_v0 = vld [vmem:[%s513_s1 + $0x78] sm:$0xff]  ;;  %72 = vmatprep.subr.mxu0 %v309_v1  ;;  %v36_v2 = vld [vmem:[%s513_s1 + $0x70] sm:$0xff]  ;;  %265 = vmatprep.subr.mxu1 %v309_v1  ;;  %v35_v3 = vld [vmem:[%s513_s1 + $0x68] sm:$0xff] }
   0x2   :  { %73 = vmatpush1.msra.mxu0 %v37_v0  ;;  %v34_v4 = vld [vmem:[%s513_s1 + $0x60] sm:$0xff]  ;;  %v33_v5 = vld [vmem:[%s513_s1 + $0x58] sm:$0xff]  ;;  %v32_v6 = vld [vmem:[%s513_s1 + $0x50] sm:$0xff] }
   0x3   :  { %74 = vmatprep.subr.mxu0 %v309_v1  ;;  %v369_v7 = vld.sshfl [vmem:[%s512_s0] sm:$0x33 pattern:$0x76325410]  ;;  %v154_v8 = vld [vmem:[%s515_s3 + $0x38] sm:$0xff]  ;;  %v31_v9 = vld [vmem:[%s513_s1 + $0x48] sm:$0xff] }
   0x4   :  { %75 = vmatpush1.msra.mxu0 %v36_v2  ;;  %v67_v10 = vcombine.high %v369_v7, %v369_v7  ;;  %266 = vmatpush3.msra.mxu1 %v154_v8 }
   0x5   :  { %76 = vmatprep.subr.mxu0 %v309_v1 }
   0x6   :  { %77 = vmatpush1.msra.mxu0 %v35_v3 }
   0x7   :  { %78 = vmatprep.subr.mxu0 %v309_v1 }
   0x8   :  { %79 = vmatpush1.msra.mxu0 %v34_v4 }
   0x9   :  { %80 = vmatprep.subr.mxu0 %v309_v1 }
   0xa   :  { %81 = vmatpush1.msra.mxu0 %v33_v5 }
   0xb   :  { %82 = vmatprep.subr.mxu0 %v309_v1 }
   0xc   :  { %10 = vsyncpa [#allocation3], 0  ;;  %83 = vmatpush1.msra.mxu0 %v32_v6  ;;  %267 = vmatprep.subr.mxu1 %v309_v1  ;;  %v30_v11 = vld [vmem:[%s513_s1 + $0x40] sm:$0xff]  ;;  %v29_v12 = vld [vmem:[%s513_s1 + $0x38] sm:$0xff]  ;;  %vm310_vm1 = vmmov 0   ;;  %vm162_vm2 = vcmask 523264  }
   0xd   :  { %84 = vmatprep.subr.mxu0 %v309_v1  ;;  %253 = vmatprep.mubr.msk.f32.mxu0 %vm69_vm0, %v67_v10  ;;  %v28_v13 = vld [vmem:[%s513_s1 + $0x30] sm:$0xff]  ;;  %v27_v14 = vld [vmem:[%s513_s1 + $0x28] sm:$0xff]  ;;  %v26_v15 = vld [vmem:[%s513_s1 + $0x20] sm:$0xff]  ;;  %s311_s20 = smov [#allocation2]  }
   0xe   :  { %85 = vmatpush1.msra.mxu0 %v31_v9  ;;  %v25_v16 = vld [vmem:[%s513_s1 + $0x18] sm:$0xff]  ;;  %v24_v17 = vld [vmem:[%s513_s1 + $0x10] sm:$0xff]  ;;  %v23_v18 = vld [vmem:[%s513_s1 + $0x8] sm:$0xff]  ;;  %281 = vmatprep.mubr.msk.f32.mxu1 %vm310_vm1, %v309_v1  ;;  %s243_s21 = sshll.u32 %s311_s20, 4  ;;  %s244_s21 = int_to_ptr.vmem [resolvable:$true] %s243_s21 }
   0xf   :  { %86 = vmatprep.subr.mxu0 %v309_v1  ;;  %v22_v19 = vld [vmem:[%s513_s1] sm:$0xff]  ;;  %v51_v20 = vld [vmem:[%s513_s1 + $0xe8] sm:$0xff]  ;;  %v49_v22 = vld [vmem:[%s513_s1 + $0xd8] sm:$0xff]  ;;  %p292_p1 = scmp.lt.s32.totalorder %s244_s21, %s244_s21 }
  0x10   :  { %87 = vmatpush1.msra.mxu0 %v30_v11  ;;  %v50_v21 = vld [vmem:[%s513_s1 + $0xe0] sm:$0xff]  ;;  %v48_v23 = vld [vmem:[%s513_s1 + $0xd0] sm:$0xff]  ;;  %v47_v24 = vld [vmem:[%s513_s1 + $0xc8] sm:$0xff] }
  0x11   :  { %88 = vmatprep.subr.mxu0 %v309_v1  ;;  %v46_v25 = vld [vmem:[%s513_s1 + $0xc0] sm:$0xff]  ;;  %v45_v26 = vld [vmem:[%s513_s1 + $0xb8] sm:$0xff]  ;;  %v44_v27 = vld [vmem:[%s513_s1 + $0xb0] sm:$0xff] }
  0x12   :  { %89 = vmatpush1.msra.mxu0 %v29_v12  ;;  %v43_v28 = vld [vmem:[%s513_s1 + $0xa8] sm:$0xff]  ;;  %v42_v29 = vld [vmem:[%s513_s1 + $0xa0] sm:$0xff]  ;;  %v41_v30 = vld [vmem:[%s513_s1 + $0x98] sm:$0xff] }
  0x13   :  { %90 = vmatprep.subr.mxu0 %v309_v1  ;;  %v40_v31 = vld [vmem:[%s513_s1 + $0x90] sm:$0xff]  ;;  %v39_v32 = vld [vmem:[%s513_s1 + $0x88] sm:$0xff]  ;;  %v38_v33 = vld [vmem:[%s513_s1 + $0x80] sm:$0xff] }
  0x14   :  { %91 = vmatpush1.msra.mxu0 %v28_v13  ;;  %v153_v34 = vld [vmem:[%s515_s3 + $0x30] sm:$0xff]  ;;  %v152_v35 = vld [vmem:[%s515_s3 + $0x28] sm:$0xff]  ;;  %v151_v36 = vld [vmem:[%s515_s3 + $0x20] sm:$0xff] }
  0x15   :  { %92 = vmatprep.subr.mxu0 %v309_v1  ;;  %268 = vmatpush3.msra.mxu1 %v153_v34  ;;  %v150_v37 = vld [vmem:[%s515_s3 + $0x18] sm:$0xff]  ;;  %v149_v38 = vld [vmem:[%s515_s3 + $0x10] sm:$0xff]  ;;  %v148_v39 = vld [vmem:[%s515_s3 + $0x8] sm:$0xff] }
  0x16   :  { %93 = vmatpush1.msra.mxu0 %v27_v14  ;;  %269 = vmatprep.subr.mxu1 %v309_v1  ;;  %v147_v40 = vld [vmem:[%s515_s3] sm:$0xff] }
  0x17   :  { %94 = vmatprep.subr.mxu0 %v309_v1  ;;  %270 = vmatpush3.msra.mxu1 %v152_v35  ;;  %v251_v41 = vld [vmem:[%s514_s2] ss:$0 sm:$0xff]  ;;  %s287_s2 = scalar_lea.vmem %s244_s21, 32 }
  0x18   :  { %95 = vmatpush1.msra.mxu0 %v26_v15  ;;  %271 = vmatprep.subr.mxu1 %v309_v1  ;;  %v254_v50 = vld [vmem:[%s516_s4] ss:$0 sm:$0xff]  ;;  %p288_p0 = scmp.ne.s32.totalorder %s244_s21, %s287_s2  ;;  %p293_p2 = scmp.lt.s32.totalorder %s287_s2, %s287_s2 }
  0x19   :  { %96 = vmatprep.subr.mxu0 %v309_v1  ;;  %272 = vmatpush3.msra.mxu1 %v151_v36 }
  0x1a   :  { %97 = vmatpush1.msra.mxu0 %v25_v16  ;;  %273 = vmatprep.subr.mxu1 %v309_v1  ;;  %p294_p3 = por %p293_p2, %p292_p1 }
  0x1b   :  { %98 = vmatprep.subr.mxu0 %v309_v1  ;;  %274 = vmatpush3.msra.mxu1 %v150_v37 }
  0x1c   :  { %99 = vmatpush1.msra.mxu0 %v24_v17  ;;  %275 = vmatprep.subr.mxu1 %v309_v1  ;;  %p295_p4 = pnand %p294_p3, %p288_p0 }
  0x1d   :  { %100 = vmatprep.subr.mxu0 %v309_v1  ;;  %276 = vmatpush3.msra.mxu1 %v149_v38 }
  0x1e   :  { %101 = vmatpush1.msra.mxu0 %v23_v18  ;;  %277 = vmatprep.subr.mxu1 %v309_v1 }
  0x1f   :  { %102 = vmatprep.subr.mxu0 %v309_v1  ;;  %278 = vmatpush3.msra.mxu1 %v148_v39 }
  0x20   :  { %103 = vmatpush1.msra.mxu0 %v22_v19  ;;  %279 = vmatprep.subr.mxu1 %v309_v1 }
  0x21   :  { %108 = vmatprep.subr.mxu0 %v309_v1  ;;  %280 = vmatpush3.msra.mxu1 %v147_v40 }
  0x22   :  { %109 = vmatpush2.msra.mxu0 %v51_v20 }
  0x23   :  { %110 = vmatprep.subr.mxu0 %v309_v1 }
  0x24   :  { %111 = vmatpush2.msra.mxu0 %v50_v21 }
  0x25   :  { %112 = vmatprep.subr.mxu0 %v309_v1 }
  0x26   :  { %113 = vmatpush2.msra.mxu0 %v49_v22 }
  0x27   :  { %114 = vmatprep.subr.mxu0 %v309_v1 }
  0x28   :  { %115 = vmatpush2.msra.mxu0 %v48_v23 }
  0x29   :  { %116 = vmatprep.subr.mxu0 %v309_v1 }
  0x2a   :  { %117 = vmatpush2.msra.mxu0 %v47_v24 }
  0x2b   :  { %118 = vmatprep.subr.mxu0 %v309_v1 }
  0x2c   :  { %119 = vmatpush2.msra.mxu0 %v46_v25 }
  0x2d   :  { %120 = vmatprep.subr.mxu0 %v309_v1 }
  0x2e   :  { %121 = vmatpush2.msra.mxu0 %v45_v26 }
  0x2f   :  { %122 = vmatprep.subr.mxu0 %v309_v1 }
  0x30   :  { %123 = vmatpush2.msra.mxu0 %v44_v27 }
  0x31   :  { %124 = vmatprep.subr.mxu0 %v309_v1 }
  0x32   :  { %125 = vmatpush2.msra.mxu0 %v43_v28 }
  0x33   :  { %126 = vmatprep.subr.mxu0 %v309_v1 }
  0x34   :  { %127 = vmatpush2.msra.mxu0 %v42_v29 }
  0x35   :  { %128 = vmatprep.subr.mxu0 %v309_v1 }
  0x36   :  { %129 = vmatpush2.msra.mxu0 %v41_v30 }
  0x37   :  { %130 = vmatprep.subr.mxu0 %v309_v1 }
  0x38   :  { %131 = vmatpush2.msra.mxu0 %v40_v31 }
  0x39   :  { %132 = vmatprep.subr.mxu0 %v309_v1 }
  0x3a   :  { %133 = vmatpush2.msra.mxu0 %v39_v32 }
  0x3b   :  { %134 = vmatprep.subr.mxu0 %v309_v1 }
  0x3c   :  { %135 = vmatpush2.msra.mxu0 %v38_v33 }
  0x3d   :  { %137 = vmatmul.mubr.f32.vlgmr.msra.gmra.mxu0 %v369_v7 }
  0xfd   :  { %v138_v42 = vpop.f32.mrf.mxu0 }
  0xfe   :  { %v139_v43 = vadd.f32 %v251_v41, %v138_v42 }
  0xff   :  { %v140_v44 = vpop.f32.mrf.mxu0 }
 0x100   :  { %v142_v45 = vadd.f32 3.0, %v139_v43 }
 0x102   :  { %v143_v46 = vmax.f32 %v142_v45, 0.0 }
 0x104   :  { %v144_v47 = vmin.f32 %v143_v46, 6.0 }
 0x106   :  { %v145_v48 = vmul.f32 0.16666667, %v144_v47 }
 0x108   :  { %v146_v49 = vmul.f32 %v145_v48, %v139_v43 }
 0x10a   :  { %282 = vmatmul.mubr.msk.f32.vlgmr.msra.gmra.mxu1 %vm162_vm2, %v146_v49 }
 0x1ca   :  { %v232_v51 = vpop.f32.mrf.mxu1 }
 0x1cb   :  { %v233_v52 = vadd.f32 %v254_v50, %v232_v51 }
 0x1cc   :  { %v283_v53 = vpop.f32.mrf.mxu1 }
 0x1cd   :  { %236 = vst [vmem:[#allocation2] sm:$0x3] %v233_v52 }
 0x1ce   :  { %298 = shalt.err (!%p295_p4)
}
 0x1cf   :  { %246 = dma.vmem_to_hbm [thread:$0]  %s244_s21, 32, %s517_s5, [#allocation3]  }
 0x1d0   :  { %307 = dma.done.wait [#allocation3], 32  }
 0x1d1   :  { %308 = vsyncadd [#allocation3], 4294967264 }
 0x1d2   :  { %250 = vsyncpa [#allocation3], 1 }

</bundles_post_ra>
